<compile_context>
chip_gen: v6e
topology: v6e:2x2x1
jax: 0.10.0
libtpu: 0.0.40
codegen_flags: <defaults>
</compile_context>

<pallas_src>
import functools

import numpy as np
import jax
import jax.numpy as jnp
from jax.experimental import pallas as pl
from jax.experimental.pallas import tpu as pltpu

N_EMBD = 32
N_HEAD = 2
LN_EPS = 1e-5          # PyTorch LayerNorm / TransformerEncoderLayer default
TAB_W = 128            # lane width of the packed constant tables (needs 4*E <= 128)
F_PACK = 128           # lane width of the packed input slab  (lane-dense load)
F_OUT = 128            # lane width of the packed output slab (unmasked vst)
NEG_INF = -1e9


# ----------------------------------------------------------------------------
# pos embed (same as the reference numpy helper)
# ----------------------------------------------------------------------------
def get_1d_sincos_pos_embed_from_grid(embed_dim, pos):
    assert embed_dim % 2 == 0
    omega = np.arange(embed_dim // 2, dtype=np.float32)
    omega /= embed_dim / 2.0
    omega = 1.0 / 10000 ** omega
    pos = np.arange(pos, dtype=np.float32).reshape(-1)
    out = np.einsum("m,d->md", pos, omega)
    return np.concatenate([np.sin(out), np.cos(out)], axis=1)


# ----------------------------------------------------------------------------
# in-kernel math helpers
# ----------------------------------------------------------------------------
def _layernorm(x, w, b):
    # single-pass stats: var = E[x^2] - mean^2 (halves the XLU reduction chains)
    mean = jnp.mean(x, axis=-1, keepdims=True)
    var = jnp.mean(x * x, axis=-1, keepdims=True) - mean * mean
    return (x - mean) * jax.lax.rsqrt(var + LN_EPS) * w + b


def _erf(x):
    # Abramowitz-Stegun 7.1.26, |err| < 1.5e-7 -- exact-GELU semantics within
    # fp32 noise.  The divide is an EUP reciprocal (frees VALU slots).
    a1, a2, a3, a4, a5 = 0.254829592, -0.284496736, 1.421413741, -1.453152027, 1.061405429
    p = 0.3275911
    s = jnp.where(x >= 0.0, 1.0, -1.0)
    ax = jnp.abs(x)
    t = pl.reciprocal(1.0 + p * ax, approx=True)
    y = 1.0 - ((((a5 * t + a4) * t + a3) * t + a2) * t + a1) * t * jnp.exp(-ax * ax)
    return s * y


def _gelu(x):
    # torch.nn.functional.gelu default = exact (erf) GELU
    return 0.5 * x * (1.0 + _erf(x * 0.7071067811865476))


def _encoder_layer(x, qo_w, ff1_w, ff2_w, vec, *, nb, seg, n_head, kmask=None):
    """Pre-norm TransformerEncoderLayer (batch_first, norm_first, gelu) followed
    by the TransformerEncoder final LayerNorm, with `nb` batch elements folded
    into the row axis.  Only the tiny QK^T / PV attention dots are per batch
    segment; every other dot runs on all nb*seg rows at once.

    x   : (nb*seg, E)
    qo_w: (E, 4E)   = [qkv_w (E,3E) | out_w (E,E)]
    ff1_w: (E, 4E); ff2_w: (4E, E)
    vec : (10, 4E)  = rows [ln1_w, ln1_b, ln2_w, ln2_b, lnf_w, lnf_b, out_b,
                            ff2_b, qkv_b(3E), ff1_b(4E)], zero-padded to 4E lanes.
    kmask: optional (1, seg) additive attention-key mask (0 keep / -1e9 drop).

    NOTE: folding the TransformerEncoder `norm` (lnf) into the layer is only
    correct for n_enc_layer == n_dec_layer == 1 (the reference config).
    """
    rows, e = x.shape
    dh = e // n_head
    scale = 1.0 / np.sqrt(dh)

    ln1_w, ln1_b = vec[0:1, :e], vec[1:2, :e]
    ln2_w, ln2_b = vec[2:3, :e], vec[3:4, :e]
    lnf_w, lnf_b = vec[4:5, :e], vec[5:6, :e]
    out_b, ff2_b = vec[6:7, :e], vec[7:8, :e]
    qkv_b = vec[8:9, :3 * e]
    ff1_b = vec[9:10, :4 * e]
    qkv_w = qo_w[:, :3 * e]
    out_w = qo_w[:, 3 * e:4 * e]

    # ---- pre-norm multi-head self-attention ----
    h = _layernorm(x, ln1_w, ln1_b)
    qkv = jnp.dot(h, qkv_w, preferred_element_type=jnp.float32) + qkv_b
    ctx_rows = []
    for b in range(nb):
        r0 = b * seg
        head_outs = []
        for hh in range(n_head):
            q = qkv[r0:r0 + seg, hh * dh:(hh + 1) * dh] * scale       # fold 1/sqrt(dh)
            k = qkv[r0:r0 + seg, e + hh * dh:e + (hh + 1) * dh]
            v = qkv[r0:r0 + seg, 2 * e + hh * dh:2 * e + (hh + 1) * dh]
            s = jnp.dot(q, k.T, preferred_element_type=jnp.float32)
            if kmask is not None:
                s = s + kmask
            p = jax.nn.softmax(s, axis=-1)
            head_outs.append(jnp.dot(p, v, preferred_element_type=jnp.float32))
        ctx_rows.append(jnp.concatenate(head_outs, axis=1))
    ctx = ctx_rows[0] if nb == 1 else jnp.concatenate(ctx_rows, axis=0)
    x = x + jnp.dot(ctx, out_w, preferred_element_type=jnp.float32) + out_b

    # ---- pre-norm feed-forward (E -> 4E -> E, gelu) ----
    h = _layernorm(x, ln2_w, ln2_b)
    h = _gelu(jnp.dot(h, ff1_w, preferred_element_type=jnp.float32) + ff1_b)
    x = x + jnp.dot(h, ff2_w, preferred_element_type=jnp.float32) + ff2_b

    # ---- TransformerEncoder final LayerNorm ----
    return _layernorm(x, lnf_w, lnf_b)


# ----------------------------------------------------------------------------
# fused MTM forward kernel: one grid step == `nb` batch elements
# ----------------------------------------------------------------------------
def _mtm_fused_kernel(x_ref, tabp_ref, tabm_ref, out_ref, *,
                      offp, offm, nb, seq, e, n_keys, n_head):
    rows = nb * seq
    fpack = x_ref.shape[2]
    fout = out_ref.shape[2]

    def tp(name):                       # params table accessor (static slices)
        o, r, c = offp[name]
        return tabp_ref[o:o + r, :c]

    def tm(name):                       # mask table accessor
        o, r, c = offm[name]
        return tabm_ref[o:o + r, :c]

    def add_rows(x, c):                 # x: (nb*seq, W), c: (seq, W) / (seq, 1)
        w = x.shape[1]
        return (x.reshape(nb, seq, w) + c[None]).reshape(rows, w)

    def mul_rows(x, c):
        w = x.shape[1]
        return (x.reshape(nb, seq, w) * c[None]).reshape(rows, w)

    # ---- trajectory_encoding: all keys' encoder_embed in ONE lane-block-diag
    # dot; bias + per-dim encoding + sincos pos embed pre-packed into enc_add.
    x = x_ref[...].reshape(rows, fpack)
    emb = jnp.dot(x, tp('enc_w'), preferred_element_type=jnp.float32)
    emb = add_rows(emb, tp('enc_add'))

    # ---- forward_encoder: transformer over ALL positions; masked-out tokens are
    # excluded as attention keys (equivalent to the reference token-select since
    # attention is permutation-equivariant and all other ops are per-position).
    enc_out = _encoder_layer(emb, tp('enc_qo'), tp('enc_ff1'), tp('enc_ff2'),
                             tp('enc_vec'), nb=nb, seg=seq, n_head=n_head,
                             kmask=tm('kmask'))

    # ---- forward_decoder restore: zero masked positions; their mask-token
    # contribution is pre-folded (through the affine decoder embed) into dec_add.
    kept = mul_rows(enc_out, tm('keep'))

    # decoder embedding: one (rows,E)@(E,nK*E) dot + per-row key select
    dall = jnp.dot(kept, tp('dec_w'), preferred_element_type=jnp.float32)
    key_ind = tp('key_ind')                                    # (seq, n_keys)
    x_dec = mul_rows(dall[:, 0:e], key_ind[:, 0:1])
    for k in range(1, n_keys):
        x_dec = x_dec + mul_rows(dall[:, k * e:(k + 1) * e], key_ind[:, k:k + 1])
    x_dec = add_rows(x_dec, tm('dec_add'))

    dec_out = _encoder_layer(x_dec, tp('dec_qo'), tp('dec_ff1'), tp('dec_ff2'),
                             tp('dec_vec'), nb=nb, seg=seq, n_head=n_head)

    # ---- output heads (all keys fused): per-row LayerNorm affine -> one
    # (rows,E)@(E,nK*E) dot -> GELU -> one block-structured (nK*E,F_OUT) dot that
    # lane-packs each key's prediction into its own output columns (cross-key
    # lanes are junk but never read by the wrapper).
    mean = jnp.mean(dec_out, axis=-1, keepdims=True)
    var = jnp.mean(dec_out * dec_out, axis=-1, keepdims=True) - mean * mean
    zn = (dec_out - mean) * jax.lax.rsqrt(var + LN_EPS)
    zn = add_rows(mul_rows(zn, tp('head_ln_w')), tp('head_ln_b'))
    h = jnp.dot(zn, tp('head_w1'), preferred_element_type=jnp.float32) + tp('head_b1')
    h = _gelu(h)
    y = jnp.dot(h, tp('head_w2'), preferred_element_type=jnp.float32)
    y = add_rows(y, tp('head_b2'))

    # single lane-dense store: one unmasked (nb, seq, 128) block write per step
    out_ref[...] = y.reshape(nb, seq, fout)


# ----------------------------------------------------------------------------
# constant-table packing
# ----------------------------------------------------------------------------
def _pack_table(sections):
    """Pack named 2-D f32 arrays row-wise into one (R, TAB_W) table.  Lanes are
    zero-padded to TAB_W and each section is padded to a multiple of 8 rows so
    every in-kernel slice starts sublane-aligned."""
    parts, offs, r = [], {}, 0
    for name, a in sections:
        a = jnp.asarray(a, jnp.float32)
        assert a.ndim == 2 and a.shape[1] <= TAB_W, (name, a.shape)
        rows, cols = a.shape
        rpad = (-rows) % 8
        parts.append(jnp.pad(a, ((0, rpad), (0, TAB_W - cols))))
        offs[name] = (r, rows, cols)
        r += rows + rpad
    return jnp.concatenate(parts, axis=0), offs


# ----------------------------------------------------------------------------
# parameter init (deterministic, shapes from MTM.__init__)
# ----------------------------------------------------------------------------
def init_params(key, data_shapes, traj_length, n_embd=N_EMBD):
    def linear_init(k, fin, fout):
        k1, k2 = jax.random.split(k)
        bound = 1.0 / np.sqrt(fin)
        w = jax.random.uniform(k1, (fin, fout), jnp.float32, -bound, bound)
        b = jax.random.uniform(k2, (1, fout), jnp.float32, -bound, bound)
        return w, b

    def block_init(k, e):
        ks = jax.random.split(k, 4)
        qkv_w, qkv_b = linear_init(ks[0], e, 3 * e)
        out_w, out_b = linear_init(ks[1], e, e)
        ff1_w, ff1_b = linear_init(ks[2], e, 4 * e)
        ff2_w, ff2_b = linear_init(ks[3], 4 * e, e)
        ones = jnp.ones((1, e), jnp.float32)
        zeros = jnp.zeros((1, e), jnp.float32)
        return dict(
            ln1_w=ones, ln1_b=zeros, qkv_w=qkv_w, qkv_b=qkv_b,
            out_w=out_w, out_b=out_b, ln2_w=ones, ln2_b=zeros,
            ff1_w=ff1_w, ff1_b=ff1_b, ff2_w=ff2_w, ff2_b=ff2_b,
            lnf_w=ones, lnf_b=zeros,
        )

    params = {"keys": {}}
    k_enc, k_dec, key = jax.random.split(key, 3)
    params["encoder"] = block_init(k_enc, n_embd)
    params["decoder"] = block_init(k_dec, n_embd)
    for name, shape in data_shapes.items():
        key, k1, k2, k3, k4 = jax.random.split(key, 5)
        p_dim, f_dim = shape
        enc_w, enc_b = linear_init(k1, f_dim, n_embd)
        dec_w, dec_b = linear_init(k2, n_embd, n_embd)
        w1, b1 = linear_init(k3, n_embd, n_embd)
        w2, b2 = linear_init(k4, n_embd, f_dim)
        params["keys"][name] = dict(
            enc_w=enc_w, enc_b=enc_b, dec_w=dec_w, dec_b=dec_b,
            # torch.zeros(...) init in the reference module:
            mask_token=jnp.zeros((1, 1, n_embd), jnp.float32),
            enc_per_dim=jnp.zeros((1, 1, p_dim, n_embd), jnp.float32),
            dec_per_dim=jnp.zeros((1, 1, p_dim, n_embd), jnp.float32),
            head=dict(
                ln_w=jnp.ones((1, n_embd), jnp.float32),
                ln_b=jnp.zeros((1, n_embd), jnp.float32),
                w1=w1, b1=b1, w2=w2, b2=b2,
            ),
        )
    pos = get_1d_sincos_pos_embed_from_grid(n_embd, traj_length)
    params["pos_embed"] = jnp.asarray(pos, jnp.float32)[None, :, None, :] / 2.0
    return params


def pack_params(params, data_shapes, traj_length, n_embd=N_EMBD):
    """One-time packing of the parameter pytree into ONE mask-independent dense
    (rows, 128) table (plus a few raw pieces used for the per-mask fold)."""
    keys = list(data_shapes.keys())
    nk, e, t = len(keys), n_embd, traj_length
    assert 4 * e <= TAB_W, "table packing assumes 4*n_embd <= 128"
    pos = params["pos_embed"]                                    # (1, max_len, 1, E)

    row_sizes = [t * data_shapes[k][0] for k in keys]
    row_off = np.concatenate([[0], np.cumsum(row_sizes)]).astype(int)
    L = int(row_off[-1])
    feat = [data_shapes[k][1] for k in keys]
    col_off = np.concatenate([[0], np.cumsum(feat)]).astype(int)
    assert int(col_off[-1]) <= F_PACK and int(col_off[-1]) <= F_OUT

    def kp(k):
        return params["keys"][k]

    # lane-block-diagonal encoder-embed weight over the packed feature slab
    enc_w = jnp.zeros((F_PACK, e), jnp.float32)
    for i, k in enumerate(keys):
        enc_w = enc_w.at[col_off[i]:col_off[i + 1], :].set(kp(k)["enc_w"])

    def per_row_add(which):
        blocks = []
        for i, k in enumerate(keys):
            p = kp(k)
            add = (p[which + "_per_dim"] + pos[:, :t]).reshape(row_sizes[i], e) \
                + p[which + "_b"]
            blocks.append(add)
        return jnp.concatenate(blocks, axis=0)                   # (L, E)

    enc_add = per_row_add("enc")
    dec_add_base = per_row_add("dec")

    dec_w_cat = jnp.concatenate([kp(k)["dec_w"] for k in keys], axis=1)     # (E, nk*E)
    mask_dec = jnp.concatenate(
        [kp(k)["mask_token"].reshape(1, e) @ kp(k)["dec_w"] for k in keys], axis=0)

    key_ind = np.zeros((L, nk), np.float32)
    for i in range(nk):
        key_ind[row_off[i]:row_off[i + 1], i] = 1.0

    head_ln_w = jnp.concatenate(
        [jnp.broadcast_to(kp(k)["head"]["ln_w"], (row_sizes[i], e))
         for i, k in enumerate(keys)], axis=0)
    head_ln_b = jnp.concatenate(
        [jnp.broadcast_to(kp(k)["head"]["ln_b"], (row_sizes[i], e))
         for i, k in enumerate(keys)], axis=0)
    head_w1 = jnp.concatenate([kp(k)["head"]["w1"] for k in keys], axis=1)  # (E, nk*E)
    head_b1 = jnp.concatenate([kp(k)["head"]["b1"] for k in keys], axis=1)  # (1, nk*E)

    head_w2 = jnp.zeros((nk * e, F_OUT), jnp.float32)
    head_b2 = jnp.zeros((L, F_OUT), jnp.float32)
    for i, k in enumerate(keys):
        f = feat[i]
        head_w2 = head_w2.at[i * e:(i + 1) * e, col_off[i]:col_off[i] + f].set(
            kp(k)["head"]["w2"])
        head_b2 = head_b2.at[row_off[i]:row_off[i + 1], col_off[i]:col_off[i] + f].set(
            jnp.broadcast_to(kp(k)["head"]["b2"], (row_sizes[i], f)))

    def blk(p, prefix):
        def row(v, width):
            v = v.reshape(1, -1)
            return jnp.pad(v, ((0, 0), (0, width - v.shape[1])))
        vec = jnp.concatenate(
            [row(p["ln1_w"], 4 * e), row(p["ln1_b"], 4 * e),
             row(p["ln2_w"], 4 * e), row(p["ln2_b"], 4 * e),
             row(p["lnf_w"], 4 * e), row(p["lnf_b"], 4 * e),
             row(p["out_b"], 4 * e), row(p["ff2_b"], 4 * e),
             row(p["qkv_b"], 4 * e), row(p["ff1_b"], 4 * e)], axis=0)       # (10, 4E)
        return [(prefix + "_qo", jnp.concatenate([p["qkv_w"], p["out_w"]], axis=1)),
                (prefix + "_ff1", p["ff1_w"]),
                (prefix + "_ff2", p["ff2_w"]),
                (prefix + "_vec", vec)]

    sections = ([("enc_w", enc_w), ("enc_add", enc_add)]
                + blk(params["encoder"], "enc") + blk(params["decoder"], "dec")
                + [("dec_w", dec_w_cat), ("key_ind", key_ind),
                   ("head_ln_w", head_ln_w), ("head_ln_b", head_ln_b),
                   ("head_w1", head_w1), ("head_b1", head_b1),
                   ("head_w2", head_w2), ("head_b2", head_b2)])
    tab_params, offp = _pack_table(sections)

    return {
        "keys_order": keys, "row_sizes": row_sizes, "row_off": row_off,
        "col_off": col_off, "feat": feat, "seq_len": L, "n_embd": n_embd,
        "tab_params": tab_params, "offp": offp,
        "dec_add_base": dec_add_base, "mask_dec": mask_dec,
    }


# ----------------------------------------------------------------------------
# MTM forward: host-side mask bookkeeping + ONE fused pallas_call
# ----------------------------------------------------------------------------
def mtm_forward(packed, trajectories, masks, data_shapes, n_head=N_HEAD,
                batch_fold=None):
    keys = packed["keys_order"]
    nk = len(keys)
    e = packed["n_embd"]
    L = packed["seq_len"]
    row_off, col_off = packed["row_off"], packed["col_off"]
    feat, row_sizes = packed["feat"], packed["row_sizes"]

    # ---- host-side mask bookkeeping (masks are host-static 0/1 patterns) ----
    keep = np.zeros((L,), np.float32)
    batch = None
    x_parts = {}
    for i, k in enumerate(keys):
        x = jnp.asarray(trajectories[k], jnp.float32)            # (B, T, P, F)
        b, t, p, f = x.shape
        assert (p, f) == tuple(data_shapes[k])
        batch = b if batch is None else batch
        assert batch == b
        x_parts[k] = x.reshape(b, row_sizes[i], f)

        m = np.asarray(masks[k])
        if m.ndim == 1:
            m = np.repeat(m[:, None], p, axis=1)
        keep[row_off[i]:row_off[i + 1]] = (m.reshape(-1) == 1).astype(np.float32)

    # lane-dense packed input slab (one contiguous DMA per grid step)
    x_slab = jnp.zeros((batch, L, F_PACK), jnp.float32)
    for i, k in enumerate(keys):
        x_slab = x_slab.at[:, row_off[i]:row_off[i + 1],
                           col_off[i]:col_off[i + 1]].set(x_parts[k])

    # mask-dependent constants (tiny table): attention key mask, keep column and
    # the decoder-embed additive term with the mask-token contribution folded in
    kmask = np.where(keep == 1.0, 0.0, NEG_INF).astype(np.float32)[None, :]   # (1, L)
    notkeep_ind = np.zeros((L, nk), np.float32)
    for i in range(nk):
        seg = slice(row_off[i], row_off[i + 1])
        notkeep_ind[seg, i] = 1.0 - keep[seg]
    dec_add = packed["dec_add_base"] + jnp.asarray(notkeep_ind) @ packed["mask_dec"]
    tab_mask, offm = _pack_table(
        [("kmask", kmask), ("keep", keep[:, None]), ("dec_add", dec_add)])

    # batch folding: single-TC chips (v5e/v6e) fold the whole batch into rows
    # (grid=(1,)); v7x keeps grid=(B,) so its two TensorCores split the batch.
    if batch_fold is None:
        try:
            kind = jax.devices()[0].device_kind.lower()
        except Exception:
            kind = ""
        batch_fold = 1 if ("v7" in kind or "7x" in kind) else batch
    nb = max(1, min(int(batch_fold), batch))
    while batch % nb:
        nb -= 1
    n_steps = batch // nb

    tab_params = packed["tab_params"]
    kernel = functools.partial(
        _mtm_fused_kernel, offp=packed["offp"], offm=offm,
        nb=nb, seq=L, e=e, n_keys=nk, n_head=n_head)

    out_slab = pl.pallas_call(
        kernel,
        grid=(n_steps,),
        in_specs=[
            pl.BlockSpec((nb, L, F_PACK), lambda i: (i, 0, 0)),   # packed inputs
            pl.BlockSpec(tab_params.shape, lambda i: (0, 0)),     # params table
            pl.BlockSpec(tab_mask.shape, lambda i: (0, 0)),       # mask table
        ],
        out_specs=pl.BlockSpec((nb, L, F_OUT), lambda i: (i, 0, 0)),
        out_shape=jax.ShapeDtypeStruct((batch, L, F_OUT), jnp.float32),
        compiler_params=pltpu.CompilerParams(dimension_semantics=("parallel",)),
    )(x_slab, tab_params, tab_mask)

    # slice the lane-packed output slab back into per-key (B, T, P, F)
    result = {}
    for i, k in enumerate(keys):
        p, f = data_shapes[k]
        t = row_sizes[i] // p
        result[k] = out_slab[:, row_off[i]:row_off[i + 1],
                             col_off[i]:col_off[i] + f].reshape(batch, t, p, f)
    return result


if __name__ == "__main__":
    B, T = 2, 8
    data_shapes = {"states": (3, 16), "actions": (1, 8)}

    key = jax.random.PRNGKey(0)
    k_params, k_s, k_a = jax.random.split(key, 3)
    params = init_params(k_params, data_shapes, traj_length=T)
    packed = pack_params(params, data_shapes, traj_length=T)

    trajectories = {
        "states": jax.random.normal(k_s, (B, T, 3, 16), jnp.float32),
        "actions": jax.random.normal(k_a, (B, T, 1, 8), jnp.float32),
    }
    masks = {
        "states": np.array([1, 0, 1, 1, 0, 1, 0, 1], dtype=np.int32),
        "actions": np.array([1, 1, 0, 0, 1, 0, 1, 0], dtype=np.int32),
    }

    out = mtm_forward(packed, trajectories, masks, data_shapes)
    out = jax.block_until_ready(out)

    assert out["states"].shape == (B, T, 3, 16), out["states"].shape
    assert out["actions"].shape == (B, T, 1, 8), out["actions"].shape
    assert all(bool(jnp.all(jnp.isfinite(v))) for v in out.values())
    print("KERNEL_OK")
</pallas_src>

<mosaic_0001>
module attributes {stable_mosaic.version = 11 : i64} {
  func.func @_mtm_fused_kernel(%arg0: i32, %arg1: memref<2x32x128xf32, #tpu.memory_space<vmem>>, %arg2: memref<840x128xf32, #tpu.memory_space<vmem>>, %arg3: memref<72x128xf32, #tpu.memory_space<vmem>>, %arg4: memref<2x32x128xf32, #tpu.memory_space<vmem>>) attributes {dimension_semantics = [#tpu.dimension_semantics<parallel>], iteration_bounds = array<i64: 1>, scalar_prefetch = 0 : i64, scratch_operands = 0 : i64, tpu.core_type = #tpu.core_type<tc>, window_params = [{transform_indices = @transform_0, window_bounds = array<i64: 2, 32, 128>}, {pipeline_mode = #tpu.pipeline_mode<synchronous>, transform_indices = @transform_1, window_bounds = array<i64: 840, 128>}, {pipeline_mode = #tpu.pipeline_mode<synchronous>, transform_indices = @transform_2, window_bounds = array<i64: 72, 128>}, {transform_indices = @transform_3, window_bounds = array<i64: 2, 32, 128>}]} {
    %c0 = arith.constant 0 : index
    %c0_0 = arith.constant 0 : index
    %c0_1 = arith.constant 0 : index
    %0 = vector.load %arg1[%c0, %c0_0, %c0_1] : memref<2x32x128xf32, #tpu.memory_space<vmem>>, vector<2x32x128xf32>
    %1 = vector.shape_cast %0 : vector<2x32x128xf32> to vector<64x128xf32>
    %c0_2 = arith.constant 0 : index
    %c0_3 = arith.constant 0 : index
    %2 = vector.load %arg2[%c0_2, %c0_3] : memref<840x128xf32, #tpu.memory_space<vmem>>, vector<128x32xf32>
    %cst = arith.constant dense<0.000000e+00> : vector<64x32xf32>
    %3 = tpu.matmul %1, %2, %cst {dimension_numbers = #tpu.dot_dimension_numbers<[1], [0], [0], [1], [0, 0, 1, 1], [], []>} : vector<64x128xf32>, vector<128x32xf32>, vector<64x32xf32> -> vector<64x32xf32>
    %c128 = arith.constant 128 : index
    %c0_4 = arith.constant 0 : index
    %4 = vector.load %arg2[%c128, %c0_4] : memref<840x128xf32, #tpu.memory_space<vmem>>, vector<32x32xf32>
    %5 = vector.shape_cast %3 : vector<64x32xf32> to vector<2x32x32xf32>
    %6 = vector.shape_cast %4 : vector<32x32xf32> to vector<1x32x32xf32>
    %7 = vector.broadcast %6 : vector<1x32x32xf32> to vector<2x32x32xf32>
    %8 = arith.addf %5, %7 : vector<2x32x32xf32>
    %9 = vector.shape_cast %8 : vector<2x32x32xf32> to vector<64x32xf32>
    %c160 = arith.constant 160 : index
    %c0_5 = arith.constant 0 : index
    %10 = vector.load %arg2[%c160, %c0_5] : memref<840x128xf32, #tpu.memory_space<vmem>>, vector<32x128xf32>
    %c192 = arith.constant 192 : index
    %c0_6 = arith.constant 0 : index
    %11 = vector.load %arg2[%c192, %c0_6] : memref<840x128xf32, #tpu.memory_space<vmem>>, vector<32x128xf32>
    %c224 = arith.constant 224 : index
    %c0_7 = arith.constant 0 : index
    %12 = vector.load %arg2[%c224, %c0_7] : memref<840x128xf32, #tpu.memory_space<vmem>>, vector<128x32xf32>
    %c352 = arith.constant 352 : index
    %c0_8 = arith.constant 0 : index
    %13 = vector.load %arg2[%c352, %c0_8] : memref<840x128xf32, #tpu.memory_space<vmem>>, vector<10x128xf32>
    %c0_9 = arith.constant 0 : index
    %c0_10 = arith.constant 0 : index
    %14 = vector.load %arg3[%c0_9, %c0_10] : memref<72x128xf32, #tpu.memory_space<vmem>>, vector<1x32xf32>
    %15 = vector.extract_strided_slice %13 {offsets = [0, 0], sizes = [1, 32], strides = [1, 1]} : vector<10x128xf32> to vector<1x32xf32>
    %16 = vector.extract_strided_slice %13 {offsets = [1, 0], sizes = [1, 32], strides = [1, 1]} : vector<10x128xf32> to vector<1x32xf32>
    %17 = vector.extract_strided_slice %13 {offsets = [2, 0], sizes = [1, 32], strides = [1, 1]} : vector<10x128xf32> to vector<1x32xf32>
    %18 = vector.extract_strided_slice %13 {offsets = [3, 0], sizes = [1, 32], strides = [1, 1]} : vector<10x128xf32> to vector<1x32xf32>
    %19 = vector.extract_strided_slice %13 {offsets = [4, 0], sizes = [1, 32], strides = [1, 1]} : vector<10x128xf32> to vector<1x32xf32>
    %20 = vector.extract_strided_slice %13 {offsets = [5, 0], sizes = [1, 32], strides = [1, 1]} : vector<10x128xf32> to vector<1x32xf32>
    %21 = vector.extract_strided_slice %13 {offsets = [6, 0], sizes = [1, 32], strides = [1, 1]} : vector<10x128xf32> to vector<1x32xf32>
    %22 = vector.extract_strided_slice %13 {offsets = [7, 0], sizes = [1, 32], strides = [1, 1]} : vector<10x128xf32> to vector<1x32xf32>
    %23 = vector.extract_strided_slice %13 {offsets = [8, 0], sizes = [1, 96], strides = [1, 1]} : vector<10x128xf32> to vector<1x96xf32>
    %24 = vector.extract_strided_slice %13 {offsets = [9, 0], sizes = [1, 128], strides = [1, 1]} : vector<10x128xf32> to vector<1x128xf32>
    %25 = vector.extract_strided_slice %10 {offsets = [0, 0], sizes = [32, 96], strides = [1, 1]} : vector<32x128xf32> to vector<32x96xf32>
    %26 = vector.extract_strided_slice %10 {offsets = [0, 96], sizes = [32, 32], strides = [1, 1]} : vector<32x128xf32> to vector<32x32xf32>
    %cst_11 = arith.constant dense<0.000000e+00> : vector<64xf32>
    %27 = vector.multi_reduction <add>, %9, %cst_11 [1] : vector<64x32xf32> to vector<64xf32>
    %28 = vector.shape_cast %27 : vector<64xf32> to vector<64x1xf32>
    %cst_12 = arith.constant 3.200000e+01 : f32
    %29 = vector.broadcast %cst_12 : f32 to vector<64x1xf32>
    %30 = arith.divf %28, %29 : vector<64x1xf32>
    %31 = arith.mulf %9, %9 : vector<64x32xf32>
    %cst_13 = arith.constant dense<0.000000e+00> : vector<64xf32>
    %32 = vector.multi_reduction <add>, %31, %cst_13 [1] : vector<64x32xf32> to vector<64xf32>
    %33 = vector.shape_cast %32 : vector<64xf32> to vector<64x1xf32>
    %cst_14 = arith.constant 3.200000e+01 : f32
    %34 = vector.broadcast %cst_14 : f32 to vector<64x1xf32>
    %35 = arith.divf %33, %34 : vector<64x1xf32>
    %36 = arith.mulf %30, %30 : vector<64x1xf32>
    %37 = arith.subf %35, %36 : vector<64x1xf32>
    %38 = vector.broadcast %30 : vector<64x1xf32> to vector<64x32xf32>
    %39 = arith.subf %9, %38 : vector<64x32xf32>
    %cst_15 = arith.constant 9.99999974E-6 : f32
    %40 = vector.broadcast %cst_15 : f32 to vector<64x1xf32>
    %41 = arith.addf %37, %40 : vector<64x1xf32>
    %42 = math.rsqrt %41 : vector<64x1xf32>
    %43 = vector.broadcast %42 : vector<64x1xf32> to vector<64x32xf32>
    %44 = arith.mulf %39, %43 : vector<64x32xf32>
    %45 = vector.broadcast %15 : vector<1x32xf32> to vector<64x32xf32>
    %46 = arith.mulf %44, %45 : vector<64x32xf32>
    %47 = vector.broadcast %16 : vector<1x32xf32> to vector<64x32xf32>
    %48 = arith.addf %46, %47 : vector<64x32xf32>
    %cst_16 = arith.constant dense<0.000000e+00> : vector<64x96xf32>
    %49 = tpu.matmul %48, %25, %cst_16 {dimension_numbers = #tpu.dot_dimension_numbers<[1], [0], [0], [1], [0, 0, 1, 1], [], []>} : vector<64x32xf32>, vector<32x96xf32>, vector<64x96xf32> -> vector<64x96xf32>
    %50 = vector.broadcast %23 : vector<1x96xf32> to vector<64x96xf32>
    %51 = arith.addf %49, %50 : vector<64x96xf32>
    %52 = vector.extract_strided_slice %51 {offsets = [0, 0], sizes = [32, 16], strides = [1, 1]} : vector<64x96xf32> to vector<32x16xf32>
    %cst_17 = arith.constant 2.500000e-01 : f32
    %53 = vector.broadcast %cst_17 : f32 to vector<32x16xf32>
    %54 = arith.mulf %52, %53 : vector<32x16xf32>
    %55 = vector.extract_strided_slice %51 {offsets = [0, 32], sizes = [32, 16], strides = [1, 1]} : vector<64x96xf32> to vector<32x16xf32>
    %56 = vector.extract_strided_slice %51 {offsets = [0, 64], sizes = [32, 16], strides = [1, 1]} : vector<64x96xf32> to vector<32x16xf32>
    %57 = tpu.transpose %55, [1, 0] : vector<32x16xf32> -> vector<16x32xf32>
    %cst_18 = arith.constant dense<0.000000e+00> : vector<32x32xf32>
    %58 = tpu.matmul %54, %57, %cst_18 {dimension_numbers = #tpu.dot_dimension_numbers<[1], [0], [0], [1], [0, 0, 1, 1], [], []>} : vector<32x16xf32>, vector<16x32xf32>, vector<32x32xf32> -> vector<32x32xf32>
    %59 = vector.broadcast %14 : vector<1x32xf32> to vector<32x32xf32>
    %60 = arith.addf %58, %59 : vector<32x32xf32>
    %cst_19 = arith.constant dense<0xFF800000> : vector<32xf32>
    %61 = vector.multi_reduction <maximumf>, %60, %cst_19 [1] : vector<32x32xf32> to vector<32xf32>
    %cst_20 = arith.constant 0xFF800000 : f32
    %62 = vector.broadcast %cst_20 : f32 to vector<32xf32>
    %63 = arith.maximumf %62, %61 : vector<32xf32>
    %64 = vector.shape_cast %63 : vector<32xf32> to vector<32x1xf32>
    %65 = vector.broadcast %64 : vector<32x1xf32> to vector<32x32xf32>
    %66 = arith.subf %60, %65 : vector<32x32xf32>
    %67 = math.exp %66 : vector<32x32xf32>
    %cst_21 = arith.constant dense<0.000000e+00> : vector<32xf32>
    %68 = vector.multi_reduction <add>, %67, %cst_21 [1] : vector<32x32xf32> to vector<32xf32>
    %69 = vector.shape_cast %68 : vector<32xf32> to vector<32x1xf32>
    %70 = vector.broadcast %69 : vector<32x1xf32> to vector<32x32xf32>
    %71 = arith.divf %67, %70 : vector<32x32xf32>
    %cst_22 = arith.constant dense<0.000000e+00> : vector<32x16xf32>
    %72 = tpu.matmul %71, %56, %cst_22 {dimension_numbers = #tpu.dot_dimension_numbers<[1], [0], [0], [1], [0, 0, 1, 1], [], []>} : vector<32x32xf32>, vector<32x16xf32>, vector<32x16xf32> -> vector<32x16xf32>
    %73 = vector.extract_strided_slice %51 {offsets = [0, 16], sizes = [32, 16], strides = [1, 1]} : vector<64x96xf32> to vector<32x16xf32>
    %cst_23 = arith.constant 2.500000e-01 : f32
    %74 = vector.broadcast %cst_23 : f32 to vector<32x16xf32>
    %75 = arith.mulf %73, %74 : vector<32x16xf32>
    %76 = vector.extract_strided_slice %51 {offsets = [0, 48], sizes = [32, 16], strides = [1, 1]} : vector<64x96xf32> to vector<32x16xf32>
    %77 = vector.extract_strided_slice %51 {offsets = [0, 80], sizes = [32, 16], strides = [1, 1]} : vector<64x96xf32> to vector<32x16xf32>
    %78 = tpu.transpose %76, [1, 0] : vector<32x16xf32> -> vector<16x32xf32>
    %cst_24 = arith.constant dense<0.000000e+00> : vector<32x32xf32>
    %79 = tpu.matmul %75, %78, %cst_24 {dimension_numbers = #tpu.dot_dimension_numbers<[1], [0], [0], [1], [0, 0, 1, 1], [], []>} : vector<32x16xf32>, vector<16x32xf32>, vector<32x32xf32> -> vector<32x32xf32>
    %80 = vector.broadcast %14 : vector<1x32xf32> to vector<32x32xf32>
    %81 = arith.addf %79, %80 : vector<32x32xf32>
    %cst_25 = arith.constant dense<0xFF800000> : vector<32xf32>
    %82 = vector.multi_reduction <maximumf>, %81, %cst_25 [1] : vector<32x32xf32> to vector<32xf32>
    %cst_26 = arith.constant 0xFF800000 : f32
    %83 = vector.broadcast %cst_26 : f32 to vector<32xf32>
    %84 = arith.maximumf %83, %82 : vector<32xf32>
    %85 = vector.shape_cast %84 : vector<32xf32> to vector<32x1xf32>
    %86 = vector.broadcast %85 : vector<32x1xf32> to vector<32x32xf32>
    %87 = arith.subf %81, %86 : vector<32x32xf32>
    %88 = math.exp %87 : vector<32x32xf32>
    %cst_27 = arith.constant dense<0.000000e+00> : vector<32xf32>
    %89 = vector.multi_reduction <add>, %88, %cst_27 [1] : vector<32x32xf32> to vector<32xf32>
    %90 = vector.shape_cast %89 : vector<32xf32> to vector<32x1xf32>
    %91 = vector.broadcast %90 : vector<32x1xf32> to vector<32x32xf32>
    %92 = arith.divf %88, %91 : vector<32x32xf32>
    %cst_28 = arith.constant dense<0.000000e+00> : vector<32x16xf32>
    %93 = tpu.matmul %92, %77, %cst_28 {dimension_numbers = #tpu.dot_dimension_numbers<[1], [0], [0], [1], [0, 0, 1, 1], [], []>} : vector<32x32xf32>, vector<32x16xf32>, vector<32x16xf32> -> vector<32x16xf32>
    %94 = tpu.concatenate %72, %93 in 1 : vector<32x16xf32>, vector<32x16xf32> -> vector<32x32xf32>
    %95 = vector.extract_strided_slice %51 {offsets = [32, 0], sizes = [32, 16], strides = [1, 1]} : vector<64x96xf32> to vector<32x16xf32>
    %cst_29 = arith.constant 2.500000e-01 : f32
    %96 = vector.broadcast %cst_29 : f32 to vector<32x16xf32>
    %97 = arith.mulf %95, %96 : vector<32x16xf32>
    %98 = vector.extract_strided_slice %51 {offsets = [32, 32], sizes = [32, 16], strides = [1, 1]} : vector<64x96xf32> to vector<32x16xf32>
    %99 = vector.extract_strided_slice %51 {offsets = [32, 64], sizes = [32, 16], strides = [1, 1]} : vector<64x96xf32> to vector<32x16xf32>
    %100 = tpu.transpose %98, [1, 0] : vector<32x16xf32> -> vector<16x32xf32>
    %cst_30 = arith.constant dense<0.000000e+00> : vector<32x32xf32>
    %101 = tpu.matmul %97, %100, %cst_30 {dimension_numbers = #tpu.dot_dimension_numbers<[1], [0], [0], [1], [0, 0, 1, 1], [], []>} : vector<32x16xf32>, vector<16x32xf32>, vector<32x32xf32> -> vector<32x32xf32>
    %102 = vector.broadcast %14 : vector<1x32xf32> to vector<32x32xf32>
    %103 = arith.addf %101, %102 : vector<32x32xf32>
    %cst_31 = arith.constant dense<0xFF800000> : vector<32xf32>
    %104 = vector.multi_reduction <maximumf>, %103, %cst_31 [1] : vector<32x32xf32> to vector<32xf32>
    %cst_32 = arith.constant 0xFF800000 : f32
    %105 = vector.broadcast %cst_32 : f32 to vector<32xf32>
    %106 = arith.maximumf %105, %104 : vector<32xf32>
    %107 = vector.shape_cast %106 : vector<32xf32> to vector<32x1xf32>
    %108 = vector.broadcast %107 : vector<32x1xf32> to vector<32x32xf32>
    %109 = arith.subf %103, %108 : vector<32x32xf32>
    %110 = math.exp %109 : vector<32x32xf32>
    %cst_33 = arith.constant dense<0.000000e+00> : vector<32xf32>
    %111 = vector.multi_reduction <add>, %110, %cst_33 [1] : vector<32x32xf32> to vector<32xf32>
    %112 = vector.shape_cast %111 : vector<32xf32> to vector<32x1xf32>
    %113 = vector.broadcast %112 : vector<32x1xf32> to vector<32x32xf32>
    %114 = arith.divf %110, %113 : vector<32x32xf32>
    %cst_34 = arith.constant dense<0.000000e+00> : vector<32x16xf32>
    %115 = tpu.matmul %114, %99, %cst_34 {dimension_numbers = #tpu.dot_dimension_numbers<[1], [0], [0], [1], [0, 0, 1, 1], [], []>} : vector<32x32xf32>, vector<32x16xf32>, vector<32x16xf32> -> vector<32x16xf32>
    %116 = vector.extract_strided_slice %51 {offsets = [32, 16], sizes = [32, 16], strides = [1, 1]} : vector<64x96xf32> to vector<32x16xf32>
    %cst_35 = arith.constant 2.500000e-01 : f32
    %117 = vector.broadcast %cst_35 : f32 to vector<32x16xf32>
    %118 = arith.mulf %116, %117 : vector<32x16xf32>
    %119 = vector.extract_strided_slice %51 {offsets = [32, 48], sizes = [32, 16], strides = [1, 1]} : vector<64x96xf32> to vector<32x16xf32>
    %120 = vector.extract_strided_slice %51 {offsets = [32, 80], sizes = [32, 16], strides = [1, 1]} : vector<64x96xf32> to vector<32x16xf32>
    %121 = tpu.transpose %119, [1, 0] : vector<32x16xf32> -> vector<16x32xf32>
    %cst_36 = arith.constant dense<0.000000e+00> : vector<32x32xf32>
    %122 = tpu.matmul %118, %121, %cst_36 {dimension_numbers = #tpu.dot_dimension_numbers<[1], [0], [0], [1], [0, 0, 1, 1], [], []>} : vector<32x16xf32>, vector<16x32xf32>, vector<32x32xf32> -> vector<32x32xf32>
    %123 = vector.broadcast %14 : vector<1x32xf32> to vector<32x32xf32>
    %124 = arith.addf %122, %123 : vector<32x32xf32>
    %cst_37 = arith.constant dense<0xFF800000> : vector<32xf32>
    %125 = vector.multi_reduction <maximumf>, %124, %cst_37 [1] : vector<32x32xf32> to vector<32xf32>
    %cst_38 = arith.constant 0xFF800000 : f32
    %126 = vector.broadcast %cst_38 : f32 to vector<32xf32>
    %127 = arith.maximumf %126, %125 : vector<32xf32>
    %128 = vector.shape_cast %127 : vector<32xf32> to vector<32x1xf32>
    %129 = vector.broadcast %128 : vector<32x1xf32> to vector<32x32xf32>
    %130 = arith.subf %124, %129 : vector<32x32xf32>
    %131 = math.exp %130 : vector<32x32xf32>
    %cst_39 = arith.constant dense<0.000000e+00> : vector<32xf32>
    %132 = vector.multi_reduction <add>, %131, %cst_39 [1] : vector<32x32xf32> to vector<32xf32>
    %133 = vector.shape_cast %132 : vector<32xf32> to vector<32x1xf32>
    %134 = vector.broadcast %133 : vector<32x1xf32> to vector<32x32xf32>
    %135 = arith.divf %131, %134 : vector<32x32xf32>
    %cst_40 = arith.constant dense<0.000000e+00> : vector<32x16xf32>
    %136 = tpu.matmul %135, %120, %cst_40 {dimension_numbers = #tpu.dot_dimension_numbers<[1], [0], [0], [1], [0, 0, 1, 1], [], []>} : vector<32x32xf32>, vector<32x16xf32>, vector<32x16xf32> -> vector<32x16xf32>
    %137 = tpu.concatenate %115, %136 in 1 : vector<32x16xf32>, vector<32x16xf32> -> vector<32x32xf32>
    %138 = tpu.concatenate %94, %137 in 0 : vector<32x32xf32>, vector<32x32xf32> -> vector<64x32xf32>
    %cst_41 = arith.constant dense<0.000000e+00> : vector<64x32xf32>
    %139 = tpu.matmul %138, %26, %cst_41 {dimension_numbers = #tpu.dot_dimension_numbers<[1], [0], [0], [1], [0, 0, 1, 1], [], []>} : vector<64x32xf32>, vector<32x32xf32>, vector<64x32xf32> -> vector<64x32xf32>
    %140 = arith.addf %9, %139 : vector<64x32xf32>
    %141 = vector.broadcast %21 : vector<1x32xf32> to vector<64x32xf32>
    %142 = arith.addf %140, %141 : vector<64x32xf32>
    %cst_42 = arith.constant dense<0.000000e+00> : vector<64xf32>
    %143 = vector.multi_reduction <add>, %142, %cst_42 [1] : vector<64x32xf32> to vector<64xf32>
    %144 = vector.shape_cast %143 : vector<64xf32> to vector<64x1xf32>
    %cst_43 = arith.constant 3.200000e+01 : f32
    %145 = vector.broadcast %cst_43 : f32 to vector<64x1xf32>
    %146 = arith.divf %144, %145 : vector<64x1xf32>
    %147 = arith.mulf %142, %142 : vector<64x32xf32>
    %cst_44 = arith.constant dense<0.000000e+00> : vector<64xf32>
    %148 = vector.multi_reduction <add>, %147, %cst_44 [1] : vector<64x32xf32> to vector<64xf32>
    %149 = vector.shape_cast %148 : vector<64xf32> to vector<64x1xf32>
    %cst_45 = arith.constant 3.200000e+01 : f32
    %150 = vector.broadcast %cst_45 : f32 to vector<64x1xf32>
    %151 = arith.divf %149, %150 : vector<64x1xf32>
    %152 = arith.mulf %146, %146 : vector<64x1xf32>
    %153 = arith.subf %151, %152 : vector<64x1xf32>
    %154 = vector.broadcast %146 : vector<64x1xf32> to vector<64x32xf32>
    %155 = arith.subf %142, %154 : vector<64x32xf32>
    %cst_46 = arith.constant 9.99999974E-6 : f32
    %156 = vector.broadcast %cst_46 : f32 to vector<64x1xf32>
    %157 = arith.addf %153, %156 : vector<64x1xf32>
    %158 = math.rsqrt %157 : vector<64x1xf32>
    %159 = vector.broadcast %158 : vector<64x1xf32> to vector<64x32xf32>
    %160 = arith.mulf %155, %159 : vector<64x32xf32>
    %161 = vector.broadcast %17 : vector<1x32xf32> to vector<64x32xf32>
    %162 = arith.mulf %160, %161 : vector<64x32xf32>
    %163 = vector.broadcast %18 : vector<1x32xf32> to vector<64x32xf32>
    %164 = arith.addf %162, %163 : vector<64x32xf32>
    %cst_47 = arith.constant dense<0.000000e+00> : vector<64x128xf32>
    %165 = tpu.matmul %164, %11, %cst_47 {dimension_numbers = #tpu.dot_dimension_numbers<[1], [0], [0], [1], [0, 0, 1, 1], [], []>} : vector<64x32xf32>, vector<32x128xf32>, vector<64x128xf32> -> vector<64x128xf32>
    %166 = vector.broadcast %24 : vector<1x128xf32> to vector<64x128xf32>
    %167 = arith.addf %165, %166 : vector<64x128xf32>
    %cst_48 = arith.constant 5.000000e-01 : f32
    %168 = vector.broadcast %cst_48 : f32 to vector<64x128xf32>
    %169 = arith.mulf %168, %167 : vector<64x128xf32>
    %cst_49 = arith.constant 0.707106769 : f32
    %170 = vector.broadcast %cst_49 : f32 to vector<64x128xf32>
    %171 = arith.mulf %167, %170 : vector<64x128xf32>
    %cst_50 = arith.constant 0.000000e+00 : f32
    %172 = vector.broadcast %cst_50 : f32 to vector<64x128xf32>
    %173 = arith.cmpf oge, %171, %172 : vector<64x128xf32>
    %cst_51 = arith.constant 1.000000e+00 : f32
    %cst_52 = arith.constant -1.000000e+00 : f32
    %174 = vector.broadcast %cst_51 : f32 to vector<64x128xf32>
    %175 = vector.broadcast %cst_52 : f32 to vector<64x128xf32>
    %176 = arith.select %173, %174, %175 : vector<64x128xi1>, vector<64x128xf32>
    %177 = math.absf %171 : vector<64x128xf32>
    %cst_53 = arith.constant 0.327591091 : f32
    %178 = vector.broadcast %cst_53 : f32 to vector<64x128xf32>
    %179 = arith.mulf %178, %177 : vector<64x128xf32>
    %cst_54 = arith.constant 1.000000e+00 : f32
    %180 = vector.broadcast %cst_54 : f32 to vector<64x128xf32>
    %181 = arith.addf %180, %179 : vector<64x128xf32>
    %182 = tpu.reciprocal %181 {approx = true} : vector<64x128xf32> -> vector<64x128xf32>
    %cst_55 = arith.constant 1.06140542 : f32
    %183 = vector.broadcast %cst_55 : f32 to vector<64x128xf32>
    %184 = arith.mulf %183, %182 : vector<64x128xf32>
    %cst_56 = arith.constant -1.45315206 : f32
    %185 = vector.broadcast %cst_56 : f32 to vector<64x128xf32>
    %186 = arith.addf %184, %185 : vector<64x128xf32>
    %187 = arith.mulf %186, %182 : vector<64x128xf32>
    %cst_57 = arith.constant 1.42141378 : f32
    %188 = vector.broadcast %cst_57 : f32 to vector<64x128xf32>
    %189 = arith.addf %187, %188 : vector<64x128xf32>
    %190 = arith.mulf %189, %182 : vector<64x128xf32>
    %cst_58 = arith.constant -0.284496725 : f32
    %191 = vector.broadcast %cst_58 : f32 to vector<64x128xf32>
    %192 = arith.addf %190, %191 : vector<64x128xf32>
    %193 = arith.mulf %192, %182 : vector<64x128xf32>
    %cst_59 = arith.constant 0.254829586 : f32
    %194 = vector.broadcast %cst_59 : f32 to vector<64x128xf32>
    %195 = arith.addf %193, %194 : vector<64x128xf32>
    %196 = arith.mulf %195, %182 : vector<64x128xf32>
    %cst_60 = arith.constant 0.000000e+00 : f32
    %197 = vector.broadcast %cst_60 : f32 to vector<64x128xf32>
    %198 = arith.subf %197, %177 : vector<64x128xf32>
    %199 = arith.mulf %198, %177 : vector<64x128xf32>
    %200 = math.exp %199 : vector<64x128xf32>
    %201 = arith.mulf %196, %200 : vector<64x128xf32>
    %cst_61 = arith.constant 1.000000e+00 : f32
    %202 = vector.broadcast %cst_61 : f32 to vector<64x128xf32>
    %203 = arith.subf %202, %201 : vector<64x128xf32>
    %204 = arith.mulf %176, %203 : vector<64x128xf32>
    %cst_62 = arith.constant 1.000000e+00 : f32
    %205 = vector.broadcast %cst_62 : f32 to vector<64x128xf32>
    %206 = arith.addf %205, %204 : vector<64x128xf32>
    %207 = arith.mulf %169, %206 : vector<64x128xf32>
    %cst_63 = arith.constant dense<0.000000e+00> : vector<64x32xf32>
    %208 = tpu.matmul %207, %12, %cst_63 {dimension_numbers = #tpu.dot_dimension_numbers<[1], [0], [0], [1], [0, 0, 1, 1], [], []>} : vector<64x128xf32>, vector<128x32xf32>, vector<64x32xf32> -> vector<64x32xf32>
    %209 = arith.addf %142, %208 : vector<64x32xf32>
    %210 = vector.broadcast %22 : vector<1x32xf32> to vector<64x32xf32>
    %211 = arith.addf %209, %210 : vector<64x32xf32>
    %cst_64 = arith.constant dense<0.000000e+00> : vector<64xf32>
    %212 = vector.multi_reduction <add>, %211, %cst_64 [1] : vector<64x32xf32> to vector<64xf32>
    %213 = vector.shape_cast %212 : vector<64xf32> to vector<64x1xf32>
    %cst_65 = arith.constant 3.200000e+01 : f32
    %214 = vector.broadcast %cst_65 : f32 to vector<64x1xf32>
    %215 = arith.divf %213, %214 : vector<64x1xf32>
    %216 = arith.mulf %211, %211 : vector<64x32xf32>
    %cst_66 = arith.constant dense<0.000000e+00> : vector<64xf32>
    %217 = vector.multi_reduction <add>, %216, %cst_66 [1] : vector<64x32xf32> to vector<64xf32>
    %218 = vector.shape_cast %217 : vector<64xf32> to vector<64x1xf32>
    %cst_67 = arith.constant 3.200000e+01 : f32
    %219 = vector.broadcast %cst_67 : f32 to vector<64x1xf32>
    %220 = arith.divf %218, %219 : vector<64x1xf32>
    %221 = arith.mulf %215, %215 : vector<64x1xf32>
    %222 = arith.subf %220, %221 : vector<64x1xf32>
    %223 = vector.broadcast %215 : vector<64x1xf32> to vector<64x32xf32>
    %224 = arith.subf %211, %223 : vector<64x32xf32>
    %cst_68 = arith.constant 9.99999974E-6 : f32
    %225 = vector.broadcast %cst_68 : f32 to vector<64x1xf32>
    %226 = arith.addf %222, %225 : vector<64x1xf32>
    %227 = math.rsqrt %226 : vector<64x1xf32>
    %228 = vector.broadcast %227 : vector<64x1xf32> to vector<64x32xf32>
    %229 = arith.mulf %224, %228 : vector<64x32xf32>
    %230 = vector.broadcast %19 : vector<1x32xf32> to vector<64x32xf32>
    %231 = arith.mulf %229, %230 : vector<64x32xf32>
    %232 = vector.broadcast %20 : vector<1x32xf32> to vector<64x32xf32>
    %233 = arith.addf %231, %232 : vector<64x32xf32>
    %c8 = arith.constant 8 : index
    %c0_69 = arith.constant 0 : index
    %234 = vector.load %arg3[%c8, %c0_69] : memref<72x128xf32, #tpu.memory_space<vmem>>, vector<32x1xf32>
    %235 = vector.shape_cast %233 : vector<64x32xf32> to vector<2x32x32xf32>
    %236 = vector.shape_cast %234 : vector<32x1xf32> to vector<1x32x1xf32>
    %237 = vector.broadcast %236 : vector<1x32x1xf32> to vector<2x32x32xf32>
    %238 = arith.mulf %235, %237 : vector<2x32x32xf32>
    %239 = vector.shape_cast %238 : vector<2x32x32xf32> to vector<64x32xf32>
    %c576 = arith.constant 576 : index
    %c0_70 = arith.constant 0 : index
    %240 = vector.load %arg2[%c576, %c0_70] : memref<840x128xf32, #tpu.memory_space<vmem>>, vector<32x64xf32>
    %cst_71 = arith.constant dense<0.000000e+00> : vector<64x64xf32>
    %241 = tpu.matmul %239, %240, %cst_71 {dimension_numbers = #tpu.dot_dimension_numbers<[1], [0], [0], [1], [0, 0, 1, 1], [], []>} : vector<64x32xf32>, vector<32x64xf32>, vector<64x64xf32> -> vector<64x64xf32>
    %c608 = arith.constant 608 : index
    %c0_72 = arith.constant 0 : index
    %242 = vector.load %arg2[%c608, %c0_72] : memref<840x128xf32, #tpu.memory_space<vmem>>, vector<32x2xf32>
    %243 = vector.extract_strided_slice %241 {offsets = [0, 0], sizes = [64, 32], strides = [1, 1]} : vector<64x64xf32> to vector<64x32xf32>
    %244 = vector.extract_strided_slice %242 {offsets = [0, 0], sizes = [32, 1], strides = [1, 1]} : vector<32x2xf32> to vector<32x1xf32>
    %245 = vector.shape_cast %243 : vector<64x32xf32> to vector<2x32x32xf32>
    %246 = vector.shape_cast %244 : vector<32x1xf32> to vector<1x32x1xf32>
    %247 = vector.broadcast %246 : vector<1x32x1xf32> to vector<2x32x32xf32>
    %248 = arith.mulf %245, %247 : vector<2x32x32xf32>
    %249 = vector.shape_cast %248 : vector<2x32x32xf32> to vector<64x32xf32>
    %250 = vector.extract_strided_slice %241 {offsets = [0, 32], sizes = [64, 32], strides = [1, 1]} : vector<64x64xf32> to vector<64x32xf32>
    %251 = vector.extract_strided_slice %242 {offsets = [0, 1], sizes = [32, 1], strides = [1, 1]} : vector<32x2xf32> to vector<32x1xf32>
    %252 = vector.shape_cast %250 : vector<64x32xf32> to vector<2x32x32xf32>
    %253 = vector.shape_cast %251 : vector<32x1xf32> to vector<1x32x1xf32>
    %254 = vector.broadcast %253 : vector<1x32x1xf32> to vector<2x32x32xf32>
    %255 = arith.mulf %252, %254 : vector<2x32x32xf32>
    %256 = vector.shape_cast %255 : vector<2x32x32xf32> to vector<64x32xf32>
    %257 = arith.addf %249, %256 : vector<64x32xf32>
    %c40 = arith.constant 40 : index
    %c0_73 = arith.constant 0 : index
    %258 = vector.load %arg3[%c40, %c0_73] : memref<72x128xf32, #tpu.memory_space<vmem>>, vector<32x32xf32>
    %259 = vector.shape_cast %257 : vector<64x32xf32> to vector<2x32x32xf32>
    %260 = vector.shape_cast %258 : vector<32x32xf32> to vector<1x32x32xf32>
    %261 = vector.broadcast %260 : vector<1x32x32xf32> to vector<2x32x32xf32>
    %262 = arith.addf %259, %261 : vector<2x32x32xf32>
    %263 = vector.shape_cast %262 : vector<2x32x32xf32> to vector<64x32xf32>
    %c368 = arith.constant 368 : index
    %c0_74 = arith.constant 0 : index
    %264 = vector.load %arg2[%c368, %c0_74] : memref<840x128xf32, #tpu.memory_space<vmem>>, vector<32x128xf32>
    %c400 = arith.constant 400 : index
    %c0_75 = arith.constant 0 : index
    %265 = vector.load %arg2[%c400, %c0_75] : memref<840x128xf32, #tpu.memory_space<vmem>>, vector<32x128xf32>
    %c432 = arith.constant 432 : index
    %c0_76 = arith.constant 0 : index
    %266 = vector.load %arg2[%c432, %c0_76] : memref<840x128xf32, #tpu.memory_space<vmem>>, vector<128x32xf32>
    %c560 = arith.constant 560 : index
    %c0_77 = arith.constant 0 : index
    %267 = vector.load %arg2[%c560, %c0_77] : memref<840x128xf32, #tpu.memory_space<vmem>>, vector<10x128xf32>
    %268 = vector.extract_strided_slice %267 {offsets = [0, 0], sizes = [1, 32], strides = [1, 1]} : vector<10x128xf32> to vector<1x32xf32>
    %269 = vector.extract_strided_slice %267 {offsets = [1, 0], sizes = [1, 32], strides = [1, 1]} : vector<10x128xf32> to vector<1x32xf32>
    %270 = vector.extract_strided_slice %267 {offsets = [2, 0], sizes = [1, 32], strides = [1, 1]} : vector<10x128xf32> to vector<1x32xf32>
    %271 = vector.extract_strided_slice %267 {offsets = [3, 0], sizes = [1, 32], strides = [1, 1]} : vector<10x128xf32> to vector<1x32xf32>
    %272 = vector.extract_strided_slice %267 {offsets = [4, 0], sizes = [1, 32], strides = [1, 1]} : vector<10x128xf32> to vector<1x32xf32>
    %273 = vector.extract_strided_slice %267 {offsets = [5, 0], sizes = [1, 32], strides = [1, 1]} : vector<10x128xf32> to vector<1x32xf32>
    %274 = vector.extract_strided_slice %267 {offsets = [6, 0], sizes = [1, 32], strides = [1, 1]} : vector<10x128xf32> to vector<1x32xf32>
    %275 = vector.extract_strided_slice %267 {offsets = [7, 0], sizes = [1, 32], strides = [1, 1]} : vector<10x128xf32> to vector<1x32xf32>
    %276 = vector.extract_strided_slice %267 {offsets = [8, 0], sizes = [1, 96], strides = [1, 1]} : vector<10x128xf32> to vector<1x96xf32>
    %277 = vector.extract_strided_slice %267 {offsets = [9, 0], sizes = [1, 128], strides = [1, 1]} : vector<10x128xf32> to vector<1x128xf32>
    %278 = vector.extract_strided_slice %264 {offsets = [0, 0], sizes = [32, 96], strides = [1, 1]} : vector<32x128xf32> to vector<32x96xf32>
    %279 = vector.extract_strided_slice %264 {offsets = [0, 96], sizes = [32, 32], strides = [1, 1]} : vector<32x128xf32> to vector<32x32xf32>
    %cst_78 = arith.constant dense<0.000000e+00> : vector<64xf32>
    %280 = vector.multi_reduction <add>, %263, %cst_78 [1] : vector<64x32xf32> to vector<64xf32>
    %281 = vector.shape_cast %280 : vector<64xf32> to vector<64x1xf32>
    %cst_79 = arith.constant 3.200000e+01 : f32
    %282 = vector.broadcast %cst_79 : f32 to vector<64x1xf32>
    %283 = arith.divf %281, %282 : vector<64x1xf32>
    %284 = arith.mulf %263, %263 : vector<64x32xf32>
    %cst_80 = arith.constant dense<0.000000e+00> : vector<64xf32>
    %285 = vector.multi_reduction <add>, %284, %cst_80 [1] : vector<64x32xf32> to vector<64xf32>
    %286 = vector.shape_cast %285 : vector<64xf32> to vector<64x1xf32>
    %cst_81 = arith.constant 3.200000e+01 : f32
    %287 = vector.broadcast %cst_81 : f32 to vector<64x1xf32>
    %288 = arith.divf %286, %287 : vector<64x1xf32>
    %289 = arith.mulf %283, %283 : vector<64x1xf32>
    %290 = arith.subf %288, %289 : vector<64x1xf32>
    %291 = vector.broadcast %283 : vector<64x1xf32> to vector<64x32xf32>
    %292 = arith.subf %263, %291 : vector<64x32xf32>
    %cst_82 = arith.constant 9.99999974E-6 : f32
    %293 = vector.broadcast %cst_82 : f32 to vector<64x1xf32>
    %294 = arith.addf %290, %293 : vector<64x1xf32>
    %295 = math.rsqrt %294 : vector<64x1xf32>
    %296 = vector.broadcast %295 : vector<64x1xf32> to vector<64x32xf32>
    %297 = arith.mulf %292, %296 : vector<64x32xf32>
    %298 = vector.broadcast %268 : vector<1x32xf32> to vector<64x32xf32>
    %299 = arith.mulf %297, %298 : vector<64x32xf32>
    %300 = vector.broadcast %269 : vector<1x32xf32> to vector<64x32xf32>
    %301 = arith.addf %299, %300 : vector<64x32xf32>
    %cst_83 = arith.constant dense<0.000000e+00> : vector<64x96xf32>
    %302 = tpu.matmul %301, %278, %cst_83 {dimension_numbers = #tpu.dot_dimension_numbers<[1], [0], [0], [1], [0, 0, 1, 1], [], []>} : vector<64x32xf32>, vector<32x96xf32>, vector<64x96xf32> -> vector<64x96xf32>
    %303 = vector.broadcast %276 : vector<1x96xf32> to vector<64x96xf32>
    %304 = arith.addf %302, %303 : vector<64x96xf32>
    %305 = vector.extract_strided_slice %304 {offsets = [0, 0], sizes = [32, 16], strides = [1, 1]} : vector<64x96xf32> to vector<32x16xf32>
    %cst_84 = arith.constant 2.500000e-01 : f32
    %306 = vector.broadcast %cst_84 : f32 to vector<32x16xf32>
    %307 = arith.mulf %305, %306 : vector<32x16xf32>
    %308 = vector.extract_strided_slice %304 {offsets = [0, 32], sizes = [32, 16], strides = [1, 1]} : vector<64x96xf32> to vector<32x16xf32>
    %309 = vector.extract_strided_slice %304 {offsets = [0, 64], sizes = [32, 16], strides = [1, 1]} : vector<64x96xf32> to vector<32x16xf32>
    %310 = tpu.transpose %308, [1, 0] : vector<32x16xf32> -> vector<16x32xf32>
    %cst_85 = arith.constant dense<0.000000e+00> : vector<32x32xf32>
    %311 = tpu.matmul %307, %310, %cst_85 {dimension_numbers = #tpu.dot_dimension_numbers<[1], [0], [0], [1], [0, 0, 1, 1], [], []>} : vector<32x16xf32>, vector<16x32xf32>, vector<32x32xf32> -> vector<32x32xf32>
    %cst_86 = arith.constant dense<0xFF800000> : vector<32xf32>
    %312 = vector.multi_reduction <maximumf>, %311, %cst_86 [1] : vector<32x32xf32> to vector<32xf32>
    %cst_87 = arith.constant 0xFF800000 : f32
    %313 = vector.broadcast %cst_87 : f32 to vector<32xf32>
    %314 = arith.maximumf %313, %312 : vector<32xf32>
    %315 = vector.shape_cast %314 : vector<32xf32> to vector<32x1xf32>
    %316 = vector.broadcast %315 : vector<32x1xf32> to vector<32x32xf32>
    %317 = arith.subf %311, %316 : vector<32x32xf32>
    %318 = math.exp %317 : vector<32x32xf32>
    %cst_88 = arith.constant dense<0.000000e+00> : vector<32xf32>
    %319 = vector.multi_reduction <add>, %318, %cst_88 [1] : vector<32x32xf32> to vector<32xf32>
    %320 = vector.shape_cast %319 : vector<32xf32> to vector<32x1xf32>
    %321 = vector.broadcast %320 : vector<32x1xf32> to vector<32x32xf32>
    %322 = arith.divf %318, %321 : vector<32x32xf32>
    %cst_89 = arith.constant dense<0.000000e+00> : vector<32x16xf32>
    %323 = tpu.matmul %322, %309, %cst_89 {dimension_numbers = #tpu.dot_dimension_numbers<[1], [0], [0], [1], [0, 0, 1, 1], [], []>} : vector<32x32xf32>, vector<32x16xf32>, vector<32x16xf32> -> vector<32x16xf32>
    %324 = vector.extract_strided_slice %304 {offsets = [0, 16], sizes = [32, 16], strides = [1, 1]} : vector<64x96xf32> to vector<32x16xf32>
    %cst_90 = arith.constant 2.500000e-01 : f32
    %325 = vector.broadcast %cst_90 : f32 to vector<32x16xf32>
    %326 = arith.mulf %324, %325 : vector<32x16xf32>
    %327 = vector.extract_strided_slice %304 {offsets = [0, 48], sizes = [32, 16], strides = [1, 1]} : vector<64x96xf32> to vector<32x16xf32>
    %328 = vector.extract_strided_slice %304 {offsets = [0, 80], sizes = [32, 16], strides = [1, 1]} : vector<64x96xf32> to vector<32x16xf32>
    %329 = tpu.transpose %327, [1, 0] : vector<32x16xf32> -> vector<16x32xf32>
    %cst_91 = arith.constant dense<0.000000e+00> : vector<32x32xf32>
    %330 = tpu.matmul %326, %329, %cst_91 {dimension_numbers = #tpu.dot_dimension_numbers<[1], [0], [0], [1], [0, 0, 1, 1], [], []>} : vector<32x16xf32>, vector<16x32xf32>, vector<32x32xf32> -> vector<32x32xf32>
    %cst_92 = arith.constant dense<0xFF800000> : vector<32xf32>
    %331 = vector.multi_reduction <maximumf>, %330, %cst_92 [1] : vector<32x32xf32> to vector<32xf32>
    %cst_93 = arith.constant 0xFF800000 : f32
    %332 = vector.broadcast %cst_93 : f32 to vector<32xf32>
    %333 = arith.maximumf %332, %331 : vector<32xf32>
    %334 = vector.shape_cast %333 : vector<32xf32> to vector<32x1xf32>
    %335 = vector.broadcast %334 : vector<32x1xf32> to vector<32x32xf32>
    %336 = arith.subf %330, %335 : vector<32x32xf32>
    %337 = math.exp %336 : vector<32x32xf32>
    %cst_94 = arith.constant dense<0.000000e+00> : vector<32xf32>
    %338 = vector.multi_reduction <add>, %337, %cst_94 [1] : vector<32x32xf32> to vector<32xf32>
    %339 = vector.shape_cast %338 : vector<32xf32> to vector<32x1xf32>
    %340 = vector.broadcast %339 : vector<32x1xf32> to vector<32x32xf32>
    %341 = arith.divf %337, %340 : vector<32x32xf32>
    %cst_95 = arith.constant dense<0.000000e+00> : vector<32x16xf32>
    %342 = tpu.matmul %341, %328, %cst_95 {dimension_numbers = #tpu.dot_dimension_numbers<[1], [0], [0], [1], [0, 0, 1, 1], [], []>} : vector<32x32xf32>, vector<32x16xf32>, vector<32x16xf32> -> vector<32x16xf32>
    %343 = tpu.concatenate %323, %342 in 1 : vector<32x16xf32>, vector<32x16xf32> -> vector<32x32xf32>
    %344 = vector.extract_strided_slice %304 {offsets = [32, 0], sizes = [32, 16], strides = [1, 1]} : vector<64x96xf32> to vector<32x16xf32>
    %cst_96 = arith.constant 2.500000e-01 : f32
    %345 = vector.broadcast %cst_96 : f32 to vector<32x16xf32>
    %346 = arith.mulf %344, %345 : vector<32x16xf32>
    %347 = vector.extract_strided_slice %304 {offsets = [32, 32], sizes = [32, 16], strides = [1, 1]} : vector<64x96xf32> to vector<32x16xf32>
    %348 = vector.extract_strided_slice %304 {offsets = [32, 64], sizes = [32, 16], strides = [1, 1]} : vector<64x96xf32> to vector<32x16xf32>
    %349 = tpu.transpose %347, [1, 0] : vector<32x16xf32> -> vector<16x32xf32>
    %cst_97 = arith.constant dense<0.000000e+00> : vector<32x32xf32>
    %350 = tpu.matmul %346, %349, %cst_97 {dimension_numbers = #tpu.dot_dimension_numbers<[1], [0], [0], [1], [0, 0, 1, 1], [], []>} : vector<32x16xf32>, vector<16x32xf32>, vector<32x32xf32> -> vector<32x32xf32>
    %cst_98 = arith.constant dense<0xFF800000> : vector<32xf32>
    %351 = vector.multi_reduction <maximumf>, %350, %cst_98 [1] : vector<32x32xf32> to vector<32xf32>
    %cst_99 = arith.constant 0xFF800000 : f32
    %352 = vector.broadcast %cst_99 : f32 to vector<32xf32>
    %353 = arith.maximumf %352, %351 : vector<32xf32>
    %354 = vector.shape_cast %353 : vector<32xf32> to vector<32x1xf32>
    %355 = vector.broadcast %354 : vector<32x1xf32> to vector<32x32xf32>
    %356 = arith.subf %350, %355 : vector<32x32xf32>
    %357 = math.exp %356 : vector<32x32xf32>
    %cst_100 = arith.constant dense<0.000000e+00> : vector<32xf32>
    %358 = vector.multi_reduction <add>, %357, %cst_100 [1] : vector<32x32xf32> to vector<32xf32>
    %359 = vector.shape_cast %358 : vector<32xf32> to vector<32x1xf32>
    %360 = vector.broadcast %359 : vector<32x1xf32> to vector<32x32xf32>
    %361 = arith.divf %357, %360 : vector<32x32xf32>
    %cst_101 = arith.constant dense<0.000000e+00> : vector<32x16xf32>
    %362 = tpu.matmul %361, %348, %cst_101 {dimension_numbers = #tpu.dot_dimension_numbers<[1], [0], [0], [1], [0, 0, 1, 1], [], []>} : vector<32x32xf32>, vector<32x16xf32>, vector<32x16xf32> -> vector<32x16xf32>
    %363 = vector.extract_strided_slice %304 {offsets = [32, 16], sizes = [32, 16], strides = [1, 1]} : vector<64x96xf32> to vector<32x16xf32>
    %cst_102 = arith.constant 2.500000e-01 : f32
    %364 = vector.broadcast %cst_102 : f32 to vector<32x16xf32>
    %365 = arith.mulf %363, %364 : vector<32x16xf32>
    %366 = vector.extract_strided_slice %304 {offsets = [32, 48], sizes = [32, 16], strides = [1, 1]} : vector<64x96xf32> to vector<32x16xf32>
    %367 = vector.extract_strided_slice %304 {offsets = [32, 80], sizes = [32, 16], strides = [1, 1]} : vector<64x96xf32> to vector<32x16xf32>
    %368 = tpu.transpose %366, [1, 0] : vector<32x16xf32> -> vector<16x32xf32>
    %cst_103 = arith.constant dense<0.000000e+00> : vector<32x32xf32>
    %369 = tpu.matmul %365, %368, %cst_103 {dimension_numbers = #tpu.dot_dimension_numbers<[1], [0], [0], [1], [0, 0, 1, 1], [], []>} : vector<32x16xf32>, vector<16x32xf32>, vector<32x32xf32> -> vector<32x32xf32>
    %cst_104 = arith.constant dense<0xFF800000> : vector<32xf32>
    %370 = vector.multi_reduction <maximumf>, %369, %cst_104 [1] : vector<32x32xf32> to vector<32xf32>
    %cst_105 = arith.constant 0xFF800000 : f32
    %371 = vector.broadcast %cst_105 : f32 to vector<32xf32>
    %372 = arith.maximumf %371, %370 : vector<32xf32>
    %373 = vector.shape_cast %372 : vector<32xf32> to vector<32x1xf32>
    %374 = vector.broadcast %373 : vector<32x1xf32> to vector<32x32xf32>
    %375 = arith.subf %369, %374 : vector<32x32xf32>
    %376 = math.exp %375 : vector<32x32xf32>
    %cst_106 = arith.constant dense<0.000000e+00> : vector<32xf32>
    %377 = vector.multi_reduction <add>, %376, %cst_106 [1] : vector<32x32xf32> to vector<32xf32>
    %378 = vector.shape_cast %377 : vector<32xf32> to vector<32x1xf32>
    %379 = vector.broadcast %378 : vector<32x1xf32> to vector<32x32xf32>
    %380 = arith.divf %376, %379 : vector<32x32xf32>
    %cst_107 = arith.constant dense<0.000000e+00> : vector<32x16xf32>
    %381 = tpu.matmul %380, %367, %cst_107 {dimension_numbers = #tpu.dot_dimension_numbers<[1], [0], [0], [1], [0, 0, 1, 1], [], []>} : vector<32x32xf32>, vector<32x16xf32>, vector<32x16xf32> -> vector<32x16xf32>
    %382 = tpu.concatenate %362, %381 in 1 : vector<32x16xf32>, vector<32x16xf32> -> vector<32x32xf32>
    %383 = tpu.concatenate %343, %382 in 0 : vector<32x32xf32>, vector<32x32xf32> -> vector<64x32xf32>
    %cst_108 = arith.constant dense<0.000000e+00> : vector<64x32xf32>
    %384 = tpu.matmul %383, %279, %cst_108 {dimension_numbers = #tpu.dot_dimension_numbers<[1], [0], [0], [1], [0, 0, 1, 1], [], []>} : vector<64x32xf32>, vector<32x32xf32>, vector<64x32xf32> -> vector<64x32xf32>
    %385 = arith.addf %263, %384 : vector<64x32xf32>
    %386 = vector.broadcast %274 : vector<1x32xf32> to vector<64x32xf32>
    %387 = arith.addf %385, %386 : vector<64x32xf32>
    %cst_109 = arith.constant dense<0.000000e+00> : vector<64xf32>
    %388 = vector.multi_reduction <add>, %387, %cst_109 [1] : vector<64x32xf32> to vector<64xf32>
    %389 = vector.shape_cast %388 : vector<64xf32> to vector<64x1xf32>
    %cst_110 = arith.constant 3.200000e+01 : f32
    %390 = vector.broadcast %cst_110 : f32 to vector<64x1xf32>
    %391 = arith.divf %389, %390 : vector<64x1xf32>
    %392 = arith.mulf %387, %387 : vector<64x32xf32>
    %cst_111 = arith.constant dense<0.000000e+00> : vector<64xf32>
    %393 = vector.multi_reduction <add>, %392, %cst_111 [1] : vector<64x32xf32> to vector<64xf32>
    %394 = vector.shape_cast %393 : vector<64xf32> to vector<64x1xf32>
    %cst_112 = arith.constant 3.200000e+01 : f32
    %395 = vector.broadcast %cst_112 : f32 to vector<64x1xf32>
    %396 = arith.divf %394, %395 : vector<64x1xf32>
    %397 = arith.mulf %391, %391 : vector<64x1xf32>
    %398 = arith.subf %396, %397 : vector<64x1xf32>
    %399 = vector.broadcast %391 : vector<64x1xf32> to vector<64x32xf32>
    %400 = arith.subf %387, %399 : vector<64x32xf32>
    %cst_113 = arith.constant 9.99999974E-6 : f32
    %401 = vector.broadcast %cst_113 : f32 to vector<64x1xf32>
    %402 = arith.addf %398, %401 : vector<64x1xf32>
    %403 = math.rsqrt %402 : vector<64x1xf32>
    %404 = vector.broadcast %403 : vector<64x1xf32> to vector<64x32xf32>
    %405 = arith.mulf %400, %404 : vector<64x32xf32>
    %406 = vector.broadcast %270 : vector<1x32xf32> to vector<64x32xf32>
    %407 = arith.mulf %405, %406 : vector<64x32xf32>
    %408 = vector.broadcast %271 : vector<1x32xf32> to vector<64x32xf32>
    %409 = arith.addf %407, %408 : vector<64x32xf32>
    %cst_114 = arith.constant dense<0.000000e+00> : vector<64x128xf32>
    %410 = tpu.matmul %409, %265, %cst_114 {dimension_numbers = #tpu.dot_dimension_numbers<[1], [0], [0], [1], [0, 0, 1, 1], [], []>} : vector<64x32xf32>, vector<32x128xf32>, vector<64x128xf32> -> vector<64x128xf32>
    %411 = vector.broadcast %277 : vector<1x128xf32> to vector<64x128xf32>
    %412 = arith.addf %410, %411 : vector<64x128xf32>
    %cst_115 = arith.constant 5.000000e-01 : f32
    %413 = vector.broadcast %cst_115 : f32 to vector<64x128xf32>
    %414 = arith.mulf %413, %412 : vector<64x128xf32>
    %cst_116 = arith.constant 0.707106769 : f32
    %415 = vector.broadcast %cst_116 : f32 to vector<64x128xf32>
    %416 = arith.mulf %412, %415 : vector<64x128xf32>
    %cst_117 = arith.constant 0.000000e+00 : f32
    %417 = vector.broadcast %cst_117 : f32 to vector<64x128xf32>
    %418 = arith.cmpf oge, %416, %417 : vector<64x128xf32>
    %cst_118 = arith.constant 1.000000e+00 : f32
    %cst_119 = arith.constant -1.000000e+00 : f32
    %419 = vector.broadcast %cst_118 : f32 to vector<64x128xf32>
    %420 = vector.broadcast %cst_119 : f32 to vector<64x128xf32>
    %421 = arith.select %418, %419, %420 : vector<64x128xi1>, vector<64x128xf32>
    %422 = math.absf %416 : vector<64x128xf32>
    %cst_120 = arith.constant 0.327591091 : f32
    %423 = vector.broadcast %cst_120 : f32 to vector<64x128xf32>
    %424 = arith.mulf %423, %422 : vector<64x128xf32>
    %cst_121 = arith.constant 1.000000e+00 : f32
    %425 = vector.broadcast %cst_121 : f32 to vector<64x128xf32>
    %426 = arith.addf %425, %424 : vector<64x128xf32>
    %427 = tpu.reciprocal %426 {approx = true} : vector<64x128xf32> -> vector<64x128xf32>
    %cst_122 = arith.constant 1.06140542 : f32
    %428 = vector.broadcast %cst_122 : f32 to vector<64x128xf32>
    %429 = arith.mulf %428, %427 : vector<64x128xf32>
    %cst_123 = arith.constant -1.45315206 : f32
    %430 = vector.broadcast %cst_123 : f32 to vector<64x128xf32>
    %431 = arith.addf %429, %430 : vector<64x128xf32>
    %432 = arith.mulf %431, %427 : vector<64x128xf32>
    %cst_124 = arith.constant 1.42141378 : f32
    %433 = vector.broadcast %cst_124 : f32 to vector<64x128xf32>
    %434 = arith.addf %432, %433 : vector<64x128xf32>
    %435 = arith.mulf %434, %427 : vector<64x128xf32>
    %cst_125 = arith.constant -0.284496725 : f32
    %436 = vector.broadcast %cst_125 : f32 to vector<64x128xf32>
    %437 = arith.addf %435, %436 : vector<64x128xf32>
    %438 = arith.mulf %437, %427 : vector<64x128xf32>
    %cst_126 = arith.constant 0.254829586 : f32
    %439 = vector.broadcast %cst_126 : f32 to vector<64x128xf32>
    %440 = arith.addf %438, %439 : vector<64x128xf32>
    %441 = arith.mulf %440, %427 : vector<64x128xf32>
    %cst_127 = arith.constant 0.000000e+00 : f32
    %442 = vector.broadcast %cst_127 : f32 to vector<64x128xf32>
    %443 = arith.subf %442, %422 : vector<64x128xf32>
    %444 = arith.mulf %443, %422 : vector<64x128xf32>
    %445 = math.exp %444 : vector<64x128xf32>
    %446 = arith.mulf %441, %445 : vector<64x128xf32>
    %cst_128 = arith.constant 1.000000e+00 : f32
    %447 = vector.broadcast %cst_128 : f32 to vector<64x128xf32>
    %448 = arith.subf %447, %446 : vector<64x128xf32>
    %449 = arith.mulf %421, %448 : vector<64x128xf32>
    %cst_129 = arith.constant 1.000000e+00 : f32
    %450 = vector.broadcast %cst_129 : f32 to vector<64x128xf32>
    %451 = arith.addf %450, %449 : vector<64x128xf32>
    %452 = arith.mulf %414, %451 : vector<64x128xf32>
    %cst_130 = arith.constant dense<0.000000e+00> : vector<64x32xf32>
    %453 = tpu.matmul %452, %266, %cst_130 {dimension_numbers = #tpu.dot_dimension_numbers<[1], [0], [0], [1], [0, 0, 1, 1], [], []>} : vector<64x128xf32>, vector<128x32xf32>, vector<64x32xf32> -> vector<64x32xf32>
    %454 = arith.addf %387, %453 : vector<64x32xf32>
    %455 = vector.broadcast %275 : vector<1x32xf32> to vector<64x32xf32>
    %456 = arith.addf %454, %455 : vector<64x32xf32>
    %cst_131 = arith.constant dense<0.000000e+00> : vector<64xf32>
    %457 = vector.multi_reduction <add>, %456, %cst_131 [1] : vector<64x32xf32> to vector<64xf32>
    %458 = vector.shape_cast %457 : vector<64xf32> to vector<64x1xf32>
    %cst_132 = arith.constant 3.200000e+01 : f32
    %459 = vector.broadcast %cst_132 : f32 to vector<64x1xf32>
    %460 = arith.divf %458, %459 : vector<64x1xf32>
    %461 = arith.mulf %456, %456 : vector<64x32xf32>
    %cst_133 = arith.constant dense<0.000000e+00> : vector<64xf32>
    %462 = vector.multi_reduction <add>, %461, %cst_133 [1] : vector<64x32xf32> to vector<64xf32>
    %463 = vector.shape_cast %462 : vector<64xf32> to vector<64x1xf32>
    %cst_134 = arith.constant 3.200000e+01 : f32
    %464 = vector.broadcast %cst_134 : f32 to vector<64x1xf32>
    %465 = arith.divf %463, %464 : vector<64x1xf32>
    %466 = arith.mulf %460, %460 : vector<64x1xf32>
    %467 = arith.subf %465, %466 : vector<64x1xf32>
    %468 = vector.broadcast %460 : vector<64x1xf32> to vector<64x32xf32>
    %469 = arith.subf %456, %468 : vector<64x32xf32>
    %cst_135 = arith.constant 9.99999974E-6 : f32
    %470 = vector.broadcast %cst_135 : f32 to vector<64x1xf32>
    %471 = arith.addf %467, %470 : vector<64x1xf32>
    %472 = math.rsqrt %471 : vector<64x1xf32>
    %473 = vector.broadcast %472 : vector<64x1xf32> to vector<64x32xf32>
    %474 = arith.mulf %469, %473 : vector<64x32xf32>
    %475 = vector.broadcast %272 : vector<1x32xf32> to vector<64x32xf32>
    %476 = arith.mulf %474, %475 : vector<64x32xf32>
    %477 = vector.broadcast %273 : vector<1x32xf32> to vector<64x32xf32>
    %478 = arith.addf %476, %477 : vector<64x32xf32>
    %cst_136 = arith.constant dense<0.000000e+00> : vector<64xf32>
    %479 = vector.multi_reduction <add>, %478, %cst_136 [1] : vector<64x32xf32> to vector<64xf32>
    %480 = vector.shape_cast %479 : vector<64xf32> to vector<64x1xf32>
    %cst_137 = arith.constant 3.200000e+01 : f32
    %481 = vector.broadcast %cst_137 : f32 to vector<64x1xf32>
    %482 = arith.divf %480, %481 : vector<64x1xf32>
    %483 = arith.mulf %478, %478 : vector<64x32xf32>
    %cst_138 = arith.constant dense<0.000000e+00> : vector<64xf32>
    %484 = vector.multi_reduction <add>, %483, %cst_138 [1] : vector<64x32xf32> to vector<64xf32>
    %485 = vector.shape_cast %484 : vector<64xf32> to vector<64x1xf32>
    %cst_139 = arith.constant 3.200000e+01 : f32
    %486 = vector.broadcast %cst_139 : f32 to vector<64x1xf32>
    %487 = arith.divf %485, %486 : vector<64x1xf32>
    %488 = arith.mulf %482, %482 : vector<64x1xf32>
    %489 = arith.subf %487, %488 : vector<64x1xf32>
    %490 = vector.broadcast %482 : vector<64x1xf32> to vector<64x32xf32>
    %491 = arith.subf %478, %490 : vector<64x32xf32>
    %cst_140 = arith.constant 9.99999974E-6 : f32
    %492 = vector.broadcast %cst_140 : f32 to vector<64x1xf32>
    %493 = arith.addf %489, %492 : vector<64x1xf32>
    %494 = math.rsqrt %493 : vector<64x1xf32>
    %495 = vector.broadcast %494 : vector<64x1xf32> to vector<64x32xf32>
    %496 = arith.mulf %491, %495 : vector<64x32xf32>
    %c640 = arith.constant 640 : index
    %c0_141 = arith.constant 0 : index
    %497 = vector.load %arg2[%c640, %c0_141] : memref<840x128xf32, #tpu.memory_space<vmem>>, vector<32x32xf32>
    %498 = vector.shape_cast %496 : vector<64x32xf32> to vector<2x32x32xf32>
    %499 = vector.shape_cast %497 : vector<32x32xf32> to vector<1x32x32xf32>
    %500 = vector.broadcast %499 : vector<1x32x32xf32> to vector<2x32x32xf32>
    %501 = arith.mulf %498, %500 : vector<2x32x32xf32>
    %502 = vector.shape_cast %501 : vector<2x32x32xf32> to vector<64x32xf32>
    %c672 = arith.constant 672 : index
    %c0_142 = arith.constant 0 : index
    %503 = vector.load %arg2[%c672, %c0_142] : memref<840x128xf32, #tpu.memory_space<vmem>>, vector<32x32xf32>
    %504 = vector.shape_cast %502 : vector<64x32xf32> to vector<2x32x32xf32>
    %505 = vector.shape_cast %503 : vector<32x32xf32> to vector<1x32x32xf32>
    %506 = vector.broadcast %505 : vector<1x32x32xf32> to vector<2x32x32xf32>
    %507 = arith.addf %504, %506 : vector<2x32x32xf32>
    %508 = vector.shape_cast %507 : vector<2x32x32xf32> to vector<64x32xf32>
    %c704 = arith.constant 704 : index
    %c0_143 = arith.constant 0 : index
    %509 = vector.load %arg2[%c704, %c0_143] : memref<840x128xf32, #tpu.memory_space<vmem>>, vector<32x64xf32>
    %cst_144 = arith.constant dense<0.000000e+00> : vector<64x64xf32>
    %510 = tpu.matmul %508, %509, %cst_144 {dimension_numbers = #tpu.dot_dimension_numbers<[1], [0], [0], [1], [0, 0, 1, 1], [], []>} : vector<64x32xf32>, vector<32x64xf32>, vector<64x64xf32> -> vector<64x64xf32>
    %c736 = arith.constant 736 : index
    %c0_145 = arith.constant 0 : index
    %511 = vector.load %arg2[%c736, %c0_145] : memref<840x128xf32, #tpu.memory_space<vmem>>, vector<1x64xf32>
    %512 = vector.broadcast %511 : vector<1x64xf32> to vector<64x64xf32>
    %513 = arith.addf %510, %512 : vector<64x64xf32>
    %cst_146 = arith.constant 5.000000e-01 : f32
    %514 = vector.broadcast %cst_146 : f32 to vector<64x64xf32>
    %515 = arith.mulf %514, %513 : vector<64x64xf32>
    %cst_147 = arith.constant 0.707106769 : f32
    %516 = vector.broadcast %cst_147 : f32 to vector<64x64xf32>
    %517 = arith.mulf %513, %516 : vector<64x64xf32>
    %cst_148 = arith.constant 0.000000e+00 : f32
    %518 = vector.broadcast %cst_148 : f32 to vector<64x64xf32>
    %519 = arith.cmpf oge, %517, %518 : vector<64x64xf32>
    %cst_149 = arith.constant 1.000000e+00 : f32
    %cst_150 = arith.constant -1.000000e+00 : f32
    %520 = vector.broadcast %cst_149 : f32 to vector<64x64xf32>
    %521 = vector.broadcast %cst_150 : f32 to vector<64x64xf32>
    %522 = arith.select %519, %520, %521 : vector<64x64xi1>, vector<64x64xf32>
    %523 = math.absf %517 : vector<64x64xf32>
    %cst_151 = arith.constant 0.327591091 : f32
    %524 = vector.broadcast %cst_151 : f32 to vector<64x64xf32>
    %525 = arith.mulf %524, %523 : vector<64x64xf32>
    %cst_152 = arith.constant 1.000000e+00 : f32
    %526 = vector.broadcast %cst_152 : f32 to vector<64x64xf32>
    %527 = arith.addf %526, %525 : vector<64x64xf32>
    %528 = tpu.reciprocal %527 {approx = true} : vector<64x64xf32> -> vector<64x64xf32>
    %cst_153 = arith.constant 1.06140542 : f32
    %529 = vector.broadcast %cst_153 : f32 to vector<64x64xf32>
    %530 = arith.mulf %529, %528 : vector<64x64xf32>
    %cst_154 = arith.constant -1.45315206 : f32
    %531 = vector.broadcast %cst_154 : f32 to vector<64x64xf32>
    %532 = arith.addf %530, %531 : vector<64x64xf32>
    %533 = arith.mulf %532, %528 : vector<64x64xf32>
    %cst_155 = arith.constant 1.42141378 : f32
    %534 = vector.broadcast %cst_155 : f32 to vector<64x64xf32>
    %535 = arith.addf %533, %534 : vector<64x64xf32>
    %536 = arith.mulf %535, %528 : vector<64x64xf32>
    %cst_156 = arith.constant -0.284496725 : f32
    %537 = vector.broadcast %cst_156 : f32 to vector<64x64xf32>
    %538 = arith.addf %536, %537 : vector<64x64xf32>
    %539 = arith.mulf %538, %528 : vector<64x64xf32>
    %cst_157 = arith.constant 0.254829586 : f32
    %540 = vector.broadcast %cst_157 : f32 to vector<64x64xf32>
    %541 = arith.addf %539, %540 : vector<64x64xf32>
    %542 = arith.mulf %541, %528 : vector<64x64xf32>
    %cst_158 = arith.constant 0.000000e+00 : f32
    %543 = vector.broadcast %cst_158 : f32 to vector<64x64xf32>
    %544 = arith.subf %543, %523 : vector<64x64xf32>
    %545 = arith.mulf %544, %523 : vector<64x64xf32>
    %546 = math.exp %545 : vector<64x64xf32>
    %547 = arith.mulf %542, %546 : vector<64x64xf32>
    %cst_159 = arith.constant 1.000000e+00 : f32
    %548 = vector.broadcast %cst_159 : f32 to vector<64x64xf32>
    %549 = arith.subf %548, %547 : vector<64x64xf32>
    %550 = arith.mulf %522, %549 : vector<64x64xf32>
    %cst_160 = arith.constant 1.000000e+00 : f32
    %551 = vector.broadcast %cst_160 : f32 to vector<64x64xf32>
    %552 = arith.addf %551, %550 : vector<64x64xf32>
    %553 = arith.mulf %515, %552 : vector<64x64xf32>
    %c744 = arith.constant 744 : index
    %c0_161 = arith.constant 0 : index
    %554 = vector.load %arg2[%c744, %c0_161] : memref<840x128xf32, #tpu.memory_space<vmem>>, vector<64x128xf32>
    %cst_162 = arith.constant dense<0.000000e+00> : vector<64x128xf32>
    %555 = tpu.matmul %553, %554, %cst_162 {dimension_numbers = #tpu.dot_dimension_numbers<[1], [0], [0], [1], [0, 0, 1, 1], [], []>} : vector<64x64xf32>, vector<64x128xf32>, vector<64x128xf32> -> vector<64x128xf32>
    %c808 = arith.constant 808 : index
    %c0_163 = arith.constant 0 : index
    %556 = vector.load %arg2[%c808, %c0_163] : memref<840x128xf32, #tpu.memory_space<vmem>>, vector<32x128xf32>
    %557 = vector.shape_cast %555 : vector<64x128xf32> to vector<2x32x128xf32>
    %558 = vector.shape_cast %556 : vector<32x128xf32> to vector<1x32x128xf32>
    %559 = vector.broadcast %558 : vector<1x32x128xf32> to vector<2x32x128xf32>
    %560 = arith.addf %557, %559 : vector<2x32x128xf32>
    %561 = vector.shape_cast %560 : vector<2x32x128xf32> to vector<64x128xf32>
    %562 = vector.shape_cast %561 : vector<64x128xf32> to vector<2x32x128xf32>
    %c0_164 = arith.constant 0 : index
    %c0_165 = arith.constant 0 : index
    %c0_166 = arith.constant 0 : index
    %563 = vector.load %arg4[%c0_164, %c0_165, %c0_166] : memref<2x32x128xf32, #tpu.memory_space<vmem>>, vector<2x32x128xf32>
    tpu.vector_store %arg4[%c0_164, %c0_165, %c0_166], %562 {strides = array<i32>} : memref<2x32x128xf32, #tpu.memory_space<vmem>>, vector<2x32x128xf32>,
    return
  }
  func.func @transform_0(%arg0: i32) -> (i32, i32, i32) {
    %c0_i32 = arith.constant 0 : i32
    %c0_i32_0 = arith.constant 0 : i32
    %c0_i32_1 = arith.constant 0 : i32
    return %arg0, %c0_i32, %c0_i32_0 : i32, i32, i32
  }
  func.func @transform_1(%arg0: i32) -> (i32, i32) {
    %c0_i32 = arith.constant 0 : i32
    %c0_i32_0 = arith.constant 0 : i32
    %c0_i32_1 = arith.constant 0 : i32
    return %c0_i32, %c0_i32_0 : i32, i32
  }
  func.func @transform_2(%arg0: i32) -> (i32, i32) {
    %c0_i32 = arith.constant 0 : i32
    %c0_i32_0 = arith.constant 0 : i32
    %c0_i32_1 = arith.constant 0 : i32
    return %c0_i32, %c0_i32_0 : i32, i32
  }
  func.func @transform_3(%arg0: i32) -> (i32, i32, i32) {
    %c0_i32 = arith.constant 0 : i32
    %c0_i32_0 = arith.constant 0 : i32
    %c0_i32_1 = arith.constant 0 : i32
    return %arg0, %c0_i32, %c0_i32_0 : i32, i32, i32
  }
}

</mosaic_0001>

<bundles_post_ra>
// kernel: tpu_custom_call.1
= control target key start
LH: loop header
LB: loop body
LE: loop exit
PB: predicated region body
PF: predicated region fallthrough
CT: control target
= control target key end

     0   :  { %8 = vsyncpa [#allocation3], 0  ;;  %s9227_s0 = inlined_call_operand.hbm [shape: f32[2,32,128], index: 0, kind: input, shape index: {}]   ;;  %s9228_s1 = inlined_call_operand.hbm [shape: f32[840,128], index: 1, kind: input, shape index: {}]   ;;  %s9229_s2 = inlined_call_operand.hbm [shape: f32[72,128], index: 2, kind: input, shape index: {}]   ;;  %s9230_s3 = inlined_call_operand.hbm [shape: f32[2,32,128], index: 3, kind: output, shape index: {}]  }
   0x1   :  { %9 = vsyncpa [#allocation6], 0 }
   0x2   :  { %10 = vsyncpa [#allocation4], 0  ;;  %s7327_s12 = smov [#allocation5]   ;;  %s7328_s14 = smov [#allocation2]  }
   0x3   :  { %s28_s13 = sshll.u32 %s7327_s12, 4  ;;  %s16_s15 = sshll.u32 %s7328_s14, 4  ;;  %s29_s13 = int_to_ptr.vmem [resolvable:$true] %s28_s13  ;;  %s17_s15 = int_to_ptr.vmem [resolvable:$true] %s16_s15 }
   0x4   :  { %s7249_s16 = scalar_lea.vmem %s29_s13, 13440  ;;  %p7254_p1 = scmp.lt.s32.totalorder %s29_s13, %s29_s13 }
   0x5   :  { %p7250_p0 = scmp.ne.s32.totalorder %s29_s13, %s7249_s16  ;;  %p7255_p2 = scmp.lt.s32.totalorder %s7249_s16, %s7249_s16 }
   0x7   :  { %p7256_p3 = por %p7255_p2, %p7254_p1 }
   0x9   :  { %p7257_p4 = pnand %p7256_p3, %p7250_p0 }
   0xb   :  { %7260 = shalt.err (!%p7257_p4)
}
   0xc   :  { %s7329_s17 = smov 128   ;;  %s7330_s18 = smov 8  }
   0xd   :  { %34 = dma.hbm_to_vmem [thread:$0]  %s9228_s1, 13440, %s29_s13, [#allocation6], %s7329_s17, %s7329_s17, %s7330_s18  }
   0xe   :  { %s7269_s21 = scalar_lea.vmem %s17_s15, 1024  ;;  %p7274_p6 = scmp.lt.s32.totalorder %s17_s15, %s17_s15 }
   0xf   :  { %p7270_p5 = scmp.ne.s32.totalorder %s17_s15, %s7269_s21  ;;  %p7275_p7 = scmp.lt.s32.totalorder %s7269_s21, %s7269_s21 }
  0x11   :  { %p7276_p8 = por %p7275_p7, %p7274_p6 }
  0x13   :  { %p7277_p9 = pnand %p7276_p8, %p7270_p5 }
  0x15   :  { %7280 = shalt.err (!%p7277_p9)
}
  0x16   :  { %22 = dma.hbm_to_vmem [thread:$0]  %s9227_s0, 1024, %s17_s15, [#allocation3], %s7329_s17, %s7329_s17, %s7330_s18  }
  0x17   :  { %s7331_s24 = smov [#allocation7]  }
  0x18   :  { %s40_s25 = sshll.u32 %s7331_s24, 4  ;;  %s41_s25 = int_to_ptr.vmem [resolvable:$true] %s40_s25 }
  0x19   :  { %s7289_s26 = scalar_lea.vmem %s41_s25, 1152  ;;  %p7294_p11 = scmp.lt.s32.totalorder %s41_s25, %s41_s25 }
  0x1a   :  { %p7290_p10 = scmp.ne.s32.totalorder %s41_s25, %s7289_s26  ;;  %p7295_p12 = scmp.lt.s32.totalorder %s7289_s26, %s7289_s26 }
  0x1c   :  { %p7296_p13 = por %p7295_p12, %p7294_p11 }
  0x1e   :  { %p7297_p0 = pnand %p7296_p13, %p7290_p10 }
  0x20   :  { %7300 = shalt.err (!%p7297_p0)
}
  0x21   :  { %46 = dma.hbm_to_vmem [thread:$0]  %s9229_s2, 1152, %s41_s25, [#allocation6], %s7329_s17, %s7329_s17, %s7330_s18  }
  0x22   :  { %7321 = dma.done.wait [#allocation3], 1024  }
  0x23   :  { %7322 = vsyncadd [#allocation3], 4294966272 }
  0x24   :  { %7323 = dma.done.wait [#allocation6], 14592  }
  0x25   :  { %7324 = vsyncadd [#allocation6], 4294952704  ;;  %v79_v0 = vld [vmem:[#allocation5 + $0x78] sm:$0xff]  ;;  %v78_v1 = vld [vmem:[#allocation5 + $0x70] sm:$0xff]  ;;  %vm224_vm0 = vcmask 261120   ;;  %s7332_s0 = smov 96  }
  0x26   :  { %6326 = vmatprep.subr.mxu0 %v79_v0  ;;  %v77_v2 = vld [vmem:[#allocation5 + $0x68] sm:$0xff]  ;;  %v76_v3 = vld [vmem:[#allocation5 + $0x60] sm:$0xff]  ;;  %v75_v5 = vld [vmem:[#allocation5 + $0x58] sm:$0xff]  ;;  %vm523_vm1 = vcmask 130048   ;;  %s7333_s2 = smov 80   ;;  %s7334_s28 = smov 112  }
  0x27   :  { %6327 = vmatpush3.msra.mxu0 %v79_v0  ;;  %v56_v4 = vld [vmem:[#allocation2] sm:$0xff]  ;;  %v74_v6 = vld [vmem:[#allocation5 + $0x50] sm:$0xff]  ;;  %v73_v7 = vld [vmem:[#allocation5 + $0x48] sm:$0xff]  ;;  %s7335_s29 = smov 64   ;;  %s7336_s30 = smov 48  }
  0x28   :  { %6328 = vmatprep.subr.mxu0 %v78_v1  ;;  %6358 = vmatprep.mubr.f32.mxu0 %v56_v4  ;;  %v72_v8 = vld [vmem:[#allocation5 + $0x40] sm:$0xff]  ;;  %v71_v9 = vld [vmem:[#allocation5 + $0x38] sm:$0xff]  ;;  %v70_v10 = vld [vmem:[#allocation5 + $0x30] sm:$0xff]  ;;  %s7337_s4 = smov 32   ;;  %s7338_s5 = smov 16  }
  0x29   :  { %6329 = vmatpush3.msra.mxu0 %v78_v1  ;;  %v69_v11 = vld [vmem:[#allocation5 + $0x28] sm:$0xff]  ;;  %v68_v12 = vld [vmem:[#allocation5 + $0x20] sm:$0xff]  ;;  %v67_v13 = vld [vmem:[#allocation5 + $0x18] sm:$0xff]  ;;  %s7342_s6 = smov [#allocation8]  }
  0x2a   :  { %6330 = vmatprep.subr.mxu0 %v77_v2  ;;  %v66_v14 = vld [vmem:[#allocation5 + $0x10] sm:$0xff]  ;;  %v65_v15 = vld [vmem:[#allocation5 + $0x8] sm:$0xff]  ;;  %v64_v16 = vld [vmem:[#allocation5] sm:$0xff]  ;;  %s5831_s7 = sshll.u32 %s7342_s6, 4  ;;  %s5832_s7 = int_to_ptr.vmem [resolvable:$true] %s5831_s7 }
  0x2b   :  { %6331 = vmatpush3.msra.mxu0 %v77_v2  ;;  %v57_v17 = vld [vmem:[#allocation2 + $0x8] sm:$0xff]  ;;  %v58_v18 = vld [vmem:[#allocation2 + $0x10] sm:$0xff]  ;;  %v59_v19 = vld [vmem:[#allocation2 + $0x18] sm:$0xff]  ;;  %s7301_s8 = scalar_lea.vmem %s5832_s7, 1024  ;;  %p7306_p2 = scmp.lt.s32.totalorder %s5832_s7, %s5832_s7 }
  0x2c   :  { %6332 = vmatprep.subr.mxu0 %v76_v3  ;;  %v60_v20 = vld [vmem:[#allocation2 + $0x20] sm:$0xff]  ;;  %v61_v21 = vld [vmem:[#allocation2 + $0x28] sm:$0xff]  ;;  %v62_v22 = vld [vmem:[#allocation2 + $0x30] sm:$0xff]  ;;  %p7302_p1 = scmp.ne.s32.totalorder %s5832_s7, %s7301_s8  ;;  %p7307_p3 = scmp.lt.s32.totalorder %s7301_s8, %s7301_s8 }
  0x2d   :  { %6333 = vmatpush3.msra.mxu0 %v76_v3  ;;  %v63_v23 = vld [vmem:[#allocation2 + $0x38] sm:$0xff]  ;;  %v186_v24 = vld [vmem:[#allocation5 + $0x88] sm:$0xff]  ;;  %v185_v26 = vld [vmem:[#allocation5 + $0x80] sm:$0xff] }
  0x2e   :  { %6334 = vmatprep.subr.mxu0 %v75_v5  ;;  %v187_v33 = vld [vmem:[#allocation5 + $0x90] sm:$0xff]  ;;  %v188_v36 = vld [vmem:[#allocation5 + $0x98] sm:$0xff]  ;;  %v198_v61 = vld [vmem:[#allocation5 + $0xa8] sm:$0xff]  ;;  %p7308_p4 = por %p7307_p3, %p7306_p2 }
  0x2f   :  { %6335 = vmatpush3.msra.mxu0 %v75_v5  ;;  %v200_v54 = vld [vmem:[#allocation5 + $0xb8] sm:$0xff]  ;;  %v199_v56 = vld [vmem:[#allocation5 + $0xb0] sm:$0xff]  ;;  %v197_v1 = vld [vmem:[#allocation5 + $0xa0] sm:$0xff] }
  0x30   :  { %6336 = vmatprep.subr.mxu0 %v74_v6  ;;  %6370 = vmatprep.subr.mxu1 %v200_v54  ;;  %p7309_p5 = pnand %p7308_p4, %p7302_p1 }
  0x31   :  { %6337 = vmatpush3.msra.mxu0 %v74_v6  ;;  %6371 = vmatpush3.msra.mxu1 %v200_v54 }
  0x32   :  { %6338 = vmatprep.subr.mxu0 %v73_v7  ;;  %6372 = vmatprep.subr.mxu1 %v199_v56 }
  0x33   :  { %6339 = vmatpush3.msra.mxu0 %v73_v7  ;;  %6373 = vmatpush3.msra.mxu1 %v199_v56 }
  0x34   :  { %6340 = vmatprep.subr.mxu0 %v72_v8  ;;  %6374 = vmatprep.subr.mxu1 %v198_v61 }
  0x35   :  { %6341 = vmatpush3.msra.mxu0 %v72_v8  ;;  %6375 = vmatpush3.msra.mxu1 %v198_v61 }
  0x36   :  { %6342 = vmatprep.subr.mxu0 %v71_v9  ;;  %6376 = vmatprep.subr.mxu1 %v197_v1 }
  0x37   :  { %6343 = vmatpush3.msra.mxu0 %v71_v9  ;;  %6377 = vmatpush3.msra.mxu1 %v197_v1 }
  0x38   :  { %6344 = vmatprep.subr.mxu0 %v70_v10 }
  0x39   :  { %6345 = vmatpush3.msra.mxu0 %v70_v10 }
  0x3a   :  { %6346 = vmatprep.subr.mxu0 %v69_v11 }
  0x3b   :  { %6347 = vmatpush3.msra.mxu0 %v69_v11 }
  0x3c   :  { %6348 = vmatprep.subr.mxu0 %v68_v12 }
  0x3d   :  { %6349 = vmatpush3.msra.mxu0 %v68_v12 }
  0x3e   :  { %6350 = vmatprep.subr.mxu0 %v67_v13 }
  0x3f   :  { %6351 = vmatpush3.msra.mxu0 %v67_v13 }
  0x40   :  { %6352 = vmatprep.subr.mxu0 %v66_v14 }
  0x41   :  { %6353 = vmatpush3.msra.mxu0 %v66_v14 }
  0x42   :  { %6354 = vmatprep.subr.mxu0 %v65_v15 }
  0x43   :  { %6355 = vmatpush3.msra.mxu0 %v65_v15 }
  0x44   :  { %6356 = vmatprep.subr.mxu0 %v64_v16 }
  0x45   :  { %6357 = vmatpush3.msra.mxu0 %v64_v16 }
  0x46   :  { %6359 = vmatmul.mubr.f32.vlgmr.msra.gmra.mxu0 %v57_v17 }
  0x47   :  { %6361 = vmatprep.mubr.f32.mxu0 %v58_v18 }
  0x4a   :  { %6362 = vmatmul.mubr.f32.gmra.mxu0 %v59_v19 }
  0x4b   :  { %6364 = vmatprep.mubr.f32.mxu0 %v60_v20 }
  0x4e   :  { %6365 = vmatmul.mubr.f32.gmra.mxu0 %v61_v21 }
  0x4f   :  { %6367 = vmatprep.mubr.f32.mxu0 %v62_v22 }
  0x52   :  { %6368 = vmatmul.mubr.f32.gmra.mxu0 %v63_v23 }
 0x106   :  { %v6360_v25 = vpop.f32.mrf.mxu0 }
 0x107   :  { %v7381_v27 = vadd.f32 %v6360_v25, %v186_v24 }
 0x108   :  { %v146_v28 = vpop.f32.mrf.mxu0 }
 0x109   :  { %v7383_v29 = vadd.f32 %v185_v26, %v146_v28  ;;  %v228_v30 = vsel %vm224_vm0, %v7381_v27, 0.0  ;;  %v259_v31 = vmul.f32 %v7381_v27, %v7381_v27  ;;  %v346_v28 = vlaneseq }
 0x10a   :  { %229 = vadd.xlane.f32.xlu0 %v228_v30  ;;  %v6363_v32 = vpop.f32.mrf.mxu0 }
 0x10b   :  { %v269_v34 = vsel %vm224_vm0, %v259_v31, 0.0  ;;  %v258_v35 = vmul.f32 %v7383_v29, %v7383_v29  ;;  %v225_v39 = vsel %vm224_vm0, %v7383_v29, 0.0  ;;  %v7396_v40 = vadd.f32 %v6363_v32, %v188_v36 }
 0x10c   :  { %270 = vadd.xlane.f32.xlu1 %v269_v34  ;;  %v156_v37 = vpop.f32.mrf.mxu0 }
 0x10d   :  { %v7392_v38 = vadd.f32 %v187_v33, %v156_v37  ;;  %v266_v41 = vsel %vm224_vm0, %v258_v35, 0.0  ;;  %v234_v44 = vsel %vm224_vm0, %v7396_v40, 0.0  ;;  %v261_v45 = vmul.f32 %v7396_v40, %v7396_v40 }
 0x10e   :  { %226 = vadd.xlane.f32.xlu0 %v225_v39  ;;  %v6366_v48 = vpop.f32.mrf.mxu0 }
 0x10f   :  { %v231_v42 = vsel %vm224_vm0, %v7392_v38, 0.0  ;;  %v260_v43 = vmul.f32 %v7392_v38, %v7392_v38  ;;  %v275_v47 = vsel %vm224_vm0, %v261_v45, 0.0  ;;  %v7411_v51 = vadd.f32 %v6366_v48, %v186_v24 }
 0x110   :  { %267 = vadd.xlane.f32.xlu1 %v266_v41  ;;  %v166_v49 = vpop.f32.mrf.mxu0 }
 0x111   :  { %v272_v46 = vsel %vm224_vm0, %v260_v43, 0.0  ;;  %v7409_v50 = vadd.f32 %v185_v26, %v166_v49  ;;  %v240_v57 = vsel %vm224_vm0, %v7411_v51, 0.0  ;;  %v263_v58 = vmul.f32 %v7411_v51, %v7411_v51  ;;  %v221_v43 = vld [vmem:[#allocation5 + $0x160] sm:$0xff] }
 0x112   :  { %232 = vadd.xlane.f32.xlu0 %v231_v42  ;;  %v6369_v53 = vpop.f32.mrf.mxu0 }
 0x113   :  { %v237_v52 = vsel %vm224_vm0, %v7409_v50, 0.0  ;;  %v262_v55 = vmul.f32 %v7409_v50, %v7409_v50  ;;  %v7422_v62 = vadd.f32 %v6369_v53, %v188_v36  ;;  %v281_v0 = vsel %vm224_vm0, %v263_v58, 0.0 }
 0x114   :  { %235 = vadd.xlane.f32.xlu1 %v234_v44  ;;  %v176_v60 = vpop.f32.mrf.mxu0  ;;  %v7437_v36 = vshrl.u32 %v346_v28, 7 }
 0x115   :  { %v278_v59 = vsel %vm224_vm0, %v262_v55, 0.0  ;;  %v7424_v63 = vadd.f32 %v187_v33, %v176_v60  ;;  %v246_v3 = vsel %vm224_vm0, %v7422_v62, 0.0  ;;  %v265_v5 = vmul.f32 %v7422_v62, %v7422_v62 }
 0x116   :  { %273 = vadd.xlane.f32.xlu0 %v272_v46  ;;  %v7440_v42 = vsub.s32 0, %v7437_v36 }
 0x117   :  { %v243_v2 = vsel %vm224_vm0, %v7424_v63, 0.0  ;;  %v264_v4 = vmul.f32 %v7424_v63, %v7424_v63  ;;  %v287_v7 = vsel %vm224_vm0, %v265_v5, 0.0 }
 0x118   :  { %276 = vadd.xlane.f32.xlu1 %v275_v47  ;;  %v7444_v46 = vrot.slane %v221_v43, %v7440_v42  ;;  %v7447_v47 = vsub.s32 1, %v7437_v36 }
 0x119   :  { %v284_v6 = vsel %vm224_vm0, %v264_v4, 0.0 }
 0x11a   :  { %238 = vadd.xlane.f32.xlu0 %v237_v52  ;;  %v7451_v54 = vrot.slane %v221_v43, %v7447_v47 }
 0x11c   :  { %241 = vadd.xlane.f32.xlu1 %v240_v57 }
 0x11e   :  { %279 = vadd.xlane.f32.xlu0 %v278_v59 }
 0x120   :  { %282 = vadd.xlane.f32.xlu1 %v281_v0 }
 0x122   :  { %244 = vadd.xlane.f32.xlu0 %v243_v2 }
 0x124   :  { %247 = vadd.xlane.f32.xlu1 %v246_v3 }
 0x126   :  { %285 = vadd.xlane.f32.xlu0 %v284_v6 }
 0x128   :  { %288 = vadd.xlane.f32.xlu1 %v287_v7 }
 0x193   :  { %v230_v8 = vpop.xlane.xlu0 %229 }
 0x194   :  { %v251_v9 = vmul.f32 0.03125, %v230_v8 }
 0x195   :  { %v271_v10 = vpop.xlane.xlu1 %270 }
 0x196   :  { %v299_v11 = vmul.f32 %v251_v9, %v251_v9  ;;  %v291_v12 = vmul.f32 0.03125, %v271_v10  ;;  %v315_v45 = vsub.f32 %v7381_v27, %v251_v9 }
 0x197   :  { %v227_v13 = vpop.xlane.xlu0 %226 }
 0x198   :  { %v307_v14 = vsub.f32 %v291_v12, %v299_v11  ;;  %v250_v15 = vmul.f32 0.03125, %v227_v13 }
 0x199   :  { %v268_v16 = vpop.xlane.xlu1 %267 }
 0x19a   :  { %v323_v17 = vadd.f32 1e-05, %v307_v14  ;;  %v298_v18 = vmul.f32 %v250_v15, %v250_v15  ;;  %v290_v19 = vmul.f32 0.03125, %v268_v16  ;;  %v314_v49 = vsub.f32 %v7383_v29, %v250_v15 }
 0x19b   :  { %v233_v20 = vpop.xlane.xlu0 %232 }
 0x19c   :  { %6891 = vrsqrt.f32 %v323_v17  ;;  %v306_v21 = vsub.f32 %v290_v19, %v298_v18  ;;  %v252_v22 = vmul.f32 0.03125, %v233_v20 }
 0x19d   :  { %v236_v23 = vpop.xlane.xlu1 %235 }
 0x19e   :  { %v322_v24 = vadd.f32 1e-05, %v306_v21  ;;  %v253_v25 = vmul.f32 0.03125, %v236_v23  ;;  %v300_v30 = vmul.f32 %v252_v22, %v252_v22  ;;  %v316_v57 = vsub.f32 %v7392_v38, %v252_v22 }
 0x19f   :  { %v274_v26 = vpop.xlane.xlu0 %273 }
 0x1a0   :  { %6893 = vrsqrt.f32 %v322_v24  ;;  %v292_v31 = vmul.f32 0.03125, %v274_v26  ;;  %v301_v33 = vmul.f32 %v253_v25, %v253_v25  ;;  %v317_v2 = vsub.f32 %v7396_v40, %v253_v25 }
 0x1a1   :  { %v277_v32 = vpop.xlane.xlu1 %276 }
 0x1a2   :  { %v308_v34 = vsub.f32 %v292_v31, %v300_v30  ;;  %v293_v35 = vmul.f32 0.03125, %v277_v32 }
 0x1a3   :  { %v239_v59 = vpop.xlane.xlu0 %238 }
 0x1a4   :  { %v324_v37 = vadd.f32 1e-05, %v308_v34  ;;  %v309_v39 = vsub.f32 %v293_v35, %v301_v33  ;;  %v254_v0 = vmul.f32 0.03125, %v239_v59 }
 0x1a5   :  { %v242_v1 = vpop.xlane.xlu1 %241 }
 0x1a6   :  { %6895 = vrsqrt.f32 %v324_v37  ;;  %v325_v41 = vadd.f32 1e-05, %v309_v39  ;;  %v255_v4 = vmul.f32 0.03125, %v242_v1  ;;  %v302_v6 = vmul.f32 %v254_v0, %v254_v0 }
 0x1a7   :  { %v280_v10 = vpop.xlane.xlu0 %279  ;;  %v318_v39 = vsub.f32 %v7409_v50, %v254_v0 }
 0x1a8   :  { %6897 = vrsqrt.f32 %v325_v41  ;;  %v303_v9 = vmul.f32 %v255_v4, %v255_v4  ;;  %v294_v11 = vmul.f32 0.03125, %v280_v10  ;;  %v319_v41 = vsub.f32 %v7411_v51, %v255_v4  ;;  %v222_v4 = vld [vmem:[#allocation5 + $0x168] sm:$0x3] }
 0x1a9   :  { %v6892_v44 = vpop.eup %6891  ;;  %v283_v12 = vpop.xlane.xlu1 %282 }
 0x1aa   :  { %v339_v48 = vmul.f32 %v6892_v44, %v315_v45  ;;  %v295_v15 = vmul.f32 0.03125, %v283_v12  ;;  %v310_v16 = vsub.f32 %v294_v11, %v302_v6 }
 0x1ab   :  { %v245_v19 = vpop.xlane.xlu0 %244 }
 0x1ac   :  { %v351_v55 = vmul.f32 %v7444_v46, %v339_v48  ;;  %v311_v18 = vsub.f32 %v295_v15, %v303_v9  ;;  %v326_v20 = vadd.f32 1e-05, %v310_v16  ;;  %v256_v21 = vmul.f32 0.03125, %v245_v19 }
 0x1ad   :  { %v6894_v52 = vpop.eup %6893  ;;  %v248_v22 = vpop.xlane.xlu1 %247 }
 0x1ae   :  { %v338_v53 = vmul.f32 %v6894_v52, %v314_v49  ;;  %v363_v61 = vadd.f32 %v7451_v54, %v351_v55  ;;  %v327_v23 = vadd.f32 1e-05, %v311_v18  ;;  %v257_v24 = vmul.f32 0.03125, %v248_v22 }
 0x1af   :  { %6899 = vrsqrt.f32 %v326_v20  ;;  %v304_v25 = vmul.f32 %v256_v21, %v256_v21  ;;  %v286_v28 = vpop.xlane.xlu0 %285 }
 0x1b0   :  { %v350_v56 = vmul.f32 %v7444_v46, %v338_v53  ;;  %6901 = vrsqrt.f32 %v327_v23  ;;  %v305_v26 = vmul.f32 %v257_v24, %v257_v24  ;;  %v296_v30 = vmul.f32 0.03125, %v286_v28 }
 0x1b1   :  { %v289_v31 = vpop.xlane.xlu1 %288  ;;  %v320_v53 = vsub.f32 %v7424_v63, %v256_v21 }
 0x1b2   :  { %v362_v58 = vadd.f32 %v7451_v54, %v350_v56  ;;  %v297_v32 = vmul.f32 0.03125, %v289_v31  ;;  %v312_v33 = vsub.f32 %v296_v30, %v304_v25  ;;  %v321_v56 = vsub.f32 %v7422_v62, %v257_v24 }
 0x1b3   :  { %v6896_v60 = vpop.eup %6895 }
 0x1b4   :  { %6378 = vmatprep.mubr.msk.f32.mxu1 %vm224_vm0, %v362_v58  ;;  %v340_v3 = vmul.f32 %v6896_v60, %v316_v57  ;;  %v313_v34 = vsub.f32 %v297_v32, %v305_v26  ;;  %v328_v35 = vadd.f32 1e-05, %v312_v33 }
 0x1b5   :  { %v6898_v5 = vpop.eup %6897  ;;  %6379 = vmatmul.mubr.msk.f32.vlgmr.msra.gmra.mxu1 %vm224_vm0, %v363_v61 }
 0x1b6   :  { %v352_v7 = vmul.f32 %v7444_v46, %v340_v3  ;;  %v341_v8 = vmul.f32 %v6898_v5, %v317_v2  ;;  %v329_v37 = vadd.f32 1e-05, %v313_v34  ;;  %6903 = vrsqrt.f32 %v328_v35 }
 0x1b7   :  { %v7484_v5 = vrot.slane %v222_v4, %v7440_v42 }
 0x1b8   :  { %v364_v13 = vadd.f32 %v7451_v54, %v352_v7  ;;  %v353_v14 = vmul.f32 %v7444_v46, %v341_v8  ;;  %6905 = vrsqrt.f32 %v329_v37 }
 0x1ba   :  { %6381 = vmatprep.mubr.msk.f32.mxu1 %vm224_vm0, %v364_v13  ;;  %v365_v17 = vadd.f32 %v7451_v54, %v353_v14 }
 0x1bc   :  { %6382 = vmatmul.mubr.msk.f32.gmra.mxu1 %vm224_vm0, %v365_v17  ;;  %v6900_v43 = vpop.eup %6899 }
 0x1bd   :  { %v6902_v44 = vpop.eup %6901  ;;  %v342_v45 = vmul.f32 %v6900_v43, %v318_v39  ;;  %v7561_v43 = vld [vmem:[#allocation7] ss:$0 sm:$0xff] }
 0x1be   :  { %v343_v48 = vmul.f32 %v6902_v44, %v319_v41 }
 0x1bf   :  { %v354_v49 = vmul.f32 %v7444_v46, %v342_v45 }
 0x1c0   :  { %v355_v52 = vmul.f32 %v7444_v46, %v343_v48 }
 0x1c1   :  { %v366_v55 = vadd.f32 %v7451_v54, %v354_v49 }
 0x1c2   :  { %v367_v57 = vadd.f32 %v7451_v54, %v355_v52 }
 0x1c3   :  { %6384 = vmatprep.mubr.msk.f32.mxu1 %vm224_vm0, %v366_v55  ;;  %v6904_v58 = vpop.eup %6903 }
 0x1c4   :  { %6385 = vmatmul.mubr.msk.f32.gmra.mxu1 %vm224_vm0, %v367_v57  ;;  %v344_v60 = vmul.f32 %v6904_v58, %v320_v53 }
 0x1c5   :  { %v6906_v59 = vpop.eup %6905 }
 0x1c6   :  { %v345_v61 = vmul.f32 %v6906_v59, %v321_v56  ;;  %v356_v0 = vmul.f32 %v7444_v46, %v344_v60 }
 0x1c8   :  { %v357_v1 = vmul.f32 %v7444_v46, %v345_v61  ;;  %v368_v2 = vadd.f32 %v7451_v54, %v356_v0 }
 0x1ca   :  { %v369_v3 = vadd.f32 %v7451_v54, %v357_v1  ;;  %6387 = vmatprep.mubr.msk.f32.mxu1 %vm224_vm0, %v368_v2 }
 0x1cc   :  { %6388 = vmatmul.mubr.msk.f32.gmra.mxu1 %vm224_vm0, %v369_v3 }
 0x275   :  { %v6380_v6 = vpop.f32.mrf.mxu1 }
 0x276   :  { %v7487_v7 = vadd.f32 %v6380_v6, %v7484_v5 }
 0x277   :  { %v464_v8 = vpop.f32.mrf.mxu1 }
 0x278   :  { %v7490_v9 = vadd.f32 %v464_v8, %v7484_v5  ;;  %517 = vrot.lane.b32.xlu1 %v7487_v7, %s7332_s0  ;;  %v504_v14 = vmul.f32 0.25, %v7487_v7 }
 0x27a   :  { %v503_v46 = vmul.f32 0.25, %v7490_v9 }
 0x27c   :  { %v6383_v54 = vpop.f32.mrf.mxu1  ;;  %6398 = vmatprep.mubr.msk.f32.mxu1 %vm523_vm1, %v503_v46 }
 0x27d   :  { %v7497_v10 = vadd.f32 %v6383_v54, %v7484_v5 }
 0x27e   :  { %v474_v11 = vpop.f32.mrf.mxu1 }
 0x27f   :  { %v7500_v12 = vadd.f32 %v474_v11, %v7484_v5  ;;  %521 = vrot.lane.b32.xlu0 %v7497_v10, %s7332_s0  ;;  %v506_v16 = vmul.f32 0.25, %v7497_v10 }
 0x281   :  { %519 = vrot.lane.b32.xlu1 %v7500_v12, %s7332_s0  ;;  %v505_v13 = vmul.f32 0.25, %v7500_v12 }
 0x283   :  { %515 = vrot.lane.b32.xlu0 %v7490_v9, %s7332_s0 }
 0x284   :  { %v6386_v15 = vpop.f32.mrf.mxu1 }
 0x285   :  { %796 = vrot.lane.b32.xlu1 %v7497_v10, %s7333_s2  ;;  %v7525_v17 = vadd.f32 %v6386_v15, %v7484_v5 }
 0x286   :  { %v484_v18 = vpop.f32.mrf.mxu1 }
 0x287   :  { %792 = vrot.lane.b32.xlu0 %v7487_v7, %s7333_s2  ;;  %v7529_v19 = vadd.f32 %v484_v18, %v7484_v5 }
 0x289   :  { %794 = vrot.lane.b32.xlu1 %v7500_v12, %s7333_s2 }
 0x28b   :  { %782 = vrot.lane.b32.xlu0 %v503_v46, %s7334_s28 }
 0x28c   :  { %v6389_v20 = vpop.f32.mrf.mxu1 }
 0x28d   :  { %790 = vrot.lane.b32.xlu1 %v7490_v9, %s7333_s2  ;;  %v7534_v21 = vadd.f32 %v6389_v20, %v7484_v5 }
 0x28e   :  { %v7559_v41 = vpop.f32.mrf.mxu1 }
 0x28f   :  { %786 = vrot.lane.b32.xlu0 %v505_v13, %s7334_s28 }
 0x291   :  { %784 = vrot.lane.b32.xlu1 %v504_v14, %s7334_s28 }
 0x293   :  { %677 = vrot.lane.b32.xlu0 %v7500_v12, %s7335_s29 }
 0x295   :  { %788 = vrot.lane.b32.xlu1 %v506_v16, %s7334_s28 }
 0x299   :  { %679 = vrot.lane.b32.xlu1 %v7497_v10, %s7335_s29 }
 0x2ea   :  { %v518_v22 = vpop.permute.xlu1 %517 }
 0x2f1   :  { %v522_v23 = vpop.permute.xlu0 %521 }
 0x2f2   :  { %6390 = vmatprep.subr.msk.mxu1 %vm523_vm1, %v522_v23 }
 0x2f3   :  { %v520_v24 = vpop.permute.xlu1 %519  ;;  %6391 = vmatpush3.xpose.msk.msra.mxu1 %vm523_vm1, %v522_v23 }
 0x2f4   :  { %6392 = vmatprep.subr.msk.mxu1 %vm523_vm1, %v520_v24 }
 0x2f5   :  { %v516_v25 = vpop.permute.xlu0 %515 }
 0x2f7   :  { %v797_v26 = vpop.permute.xlu1 %796  ;;  %6393 = vmatpush3.xpose.msk.msra.mxu1 %vm523_vm1, %v520_v24 }
 0x2f8   :  { %6394 = vmatprep.subr.msk.mxu1 %vm523_vm1, %v518_v22  ;;  %6418 = vmatprep.subr.msk.mxu0 %vm523_vm1, %v797_v26 }
 0x2f9   :  { %6419 = vmatpush3.xpose.msk.msra.mxu0 %vm523_vm1, %v797_v26  ;;  %v793_v28 = vpop.permute.xlu0 %792 }
 0x2fb   :  { %v795_v30 = vpop.permute.xlu1 %794  ;;  %6395 = vmatpush3.xpose.msk.msra.mxu1 %vm523_vm1, %v518_v22 }
 0x2fc   :  { %6396 = vmatprep.subr.msk.mxu1 %vm523_vm1, %v516_v25  ;;  %6420 = vmatprep.subr.msk.mxu0 %vm523_vm1, %v795_v30 }
 0x2fd   :  { %6421 = vmatpush3.xpose.msk.msra.mxu0 %vm523_vm1, %v795_v30  ;;  %v783_v31 = vpop.permute.xlu0 %782 }
 0x2fe   :  { %6422 = vmatprep.subr.msk.mxu0 %vm523_vm1, %v793_v28  ;;  %6426 = vmatprep.mubr.msk.f32.mxu0 %vm523_vm1, %v783_v31 }
 0x2ff   :  { %v791_v32 = vpop.permute.xlu1 %790  ;;  %6397 = vmatpush3.xpose.msk.msra.mxu1 %vm523_vm1, %v516_v25 }
 0x301   :  { %6423 = vmatpush3.xpose.msk.msra.mxu0 %vm523_vm1, %v793_v28  ;;  %v787_v34 = vpop.permute.xlu0 %786 }
 0x302   :  { %6399 = vmatmul.mubr.msk.f32.vlgmr.msra.gmra.mxu1 %vm523_vm1, %v504_v14  ;;  %6424 = vmatprep.subr.msk.mxu0 %vm523_vm1, %v791_v32 }
 0x303   :  { %v785_v33 = vpop.permute.xlu1 %784  ;;  %6401 = vmatprep.mubr.msk.f32.mxu1 %vm523_vm1, %v505_v13 }
 0x305   :  { %6425 = vmatpush3.xpose.msk.msra.mxu0 %vm523_vm1, %v791_v32  ;;  %v678_v39 = vpop.permute.xlu0 %677 }
 0x306   :  { %6402 = vmatmul.mubr.msk.f32.gmra.mxu1 %vm523_vm1, %v506_v16 }
 0x307   :  { %v789_v35 = vpop.permute.xlu1 %788 }
 0x308   :  { %6427 = vmatmul.mubr.msk.f32.vlgmr.msra.gmra.mxu0 %vm523_vm1, %v785_v33 }
 0x309   :  { %6429 = vmatprep.mubr.msk.f32.mxu0 %vm523_vm1, %v787_v34 }
 0x30b   :  { %v680_v37 = vpop.permute.xlu1 %679 }
 0x30c   :  { %6404 = vmatprep.subr.mxu1 %v680_v37  ;;  %6430 = vmatmul.mubr.msk.f32.gmra.mxu0 %vm523_vm1, %v789_v35 }
 0x30d   :  { %6405 = vmatpush3.msra.mxu1 %v680_v37 }
 0x30e   :  { %6406 = vmatprep.subr.mxu1 %v678_v39 }
 0x30f   :  { %6407 = vmatpush3.msra.mxu1 %v678_v39 }
 0x3c2   :  { %v6400_v44 = vpop.f32.mrf.mxu1 }
 0x3c3   :  { %v616_v45 = vadd.f32 %v6400_v44, %v7561_v43 }
 0x3c4   :  { %v610_v48 = vpop.f32.mrf.mxu1 }
 0x3c5   :  { %v611_v49 = vadd.f32 %v7561_v43, %v610_v48  ;;  %v632_v52 = vsel %vm224_vm0, %v616_v45, -inf }
 0x3c6   :  { %633 = vmax.xlane.f32.xlu1 %v632_v52  ;;  %v6403_v57 = vpop.f32.mrf.mxu1 }
 0x3c7   :  { %v629_v53 = vsel %vm224_vm0, %v611_v49, -inf  ;;  %v626_v61 = vadd.f32 %v6403_v57, %v7561_v43 }
 0x3c8   :  { %630 = vmax.xlane.f32.xlu0 %v629_v53  ;;  %v6428_v55 = vpop.f32.mrf.mxu0  ;;  %v620_v1 = vpop.f32.mrf.mxu1 }
 0x3c9   :  { %v886_v56 = vadd.f32 %v6428_v55, %v7561_v43  ;;  %v7573_v3 = vadd.f32 %v7561_v43, %v620_v1  ;;  %v638_v4 = vsel %vm224_vm0, %v626_v61, -inf }
 0x3ca   :  { %v880_v58 = vpop.f32.mrf.mxu0 }
 0x3cb   :  { %v881_v59 = vadd.f32 %v7561_v43, %v880_v58  ;;  %v902_v60 = vsel %vm224_vm0, %v886_v56, -inf  ;;  %v635_v46 = vsel %vm224_vm0, %v7573_v3, -inf }
 0x3cc   :  { %903 = vmax.xlane.f32.xlu1 %v902_v60  ;;  %v6431_v2 = vpop.f32.mrf.mxu0 }
 0x3cd   :  { %v899_v0 = vsel %vm224_vm0, %v881_v59, -inf  ;;  %v896_v11 = vadd.f32 %v6431_v2, %v7561_v43 }
 0x3ce   :  { %900 = vmax.xlane.f32.xlu0 %v899_v0  ;;  %v890_v6 = vpop.f32.mrf.mxu0 }
 0x3cf   :  { %v7577_v8 = vadd.f32 %v7561_v43, %v890_v6  ;;  %v908_v13 = vsel %vm224_vm0, %v896_v11, -inf }
 0x3d1   :  { %v905_v54 = vsel %vm224_vm0, %v7577_v8, -inf }
 0x3d2   :  { %639 = vmax.xlane.f32.xlu0 %v638_v4 }
 0x3d6   :  { %636 = vmax.xlane.f32.xlu0 %v635_v46 }
 0x3da   :  { %906 = vmax.xlane.f32.xlu0 %v905_v54 }
 0x3dd   :  { %675 = vrot.lane.b32.xlu1 %v7487_v7, %s7335_s29 }
 0x3f0   :  { %945 = vrot.lane.b32.xlu0 %v7487_v7, %s7336_s30 }
 0x401   :  { %909 = vmax.xlane.f32.xlu1 %v908_v13 }
 0x412   :  { %673 = vrot.lane.b32.xlu1 %v7490_v9, %s7335_s29 }
 0x416   :  { %949 = vrot.lane.b32.xlu1 %v7497_v10, %s7336_s30 }
 0x41a   :  { %947 = vrot.lane.b32.xlu1 %v7500_v12, %s7336_s30 }
 0x41e   :  { %943 = vrot.lane.b32.xlu1 %v7490_v9, %s7336_s30 }
 0x44f   :  { %v634_v14 = vpop.xlane.xlu1 %633 }
 0x450   :  { %v642_v15 = vsub.f32 %v616_v45, %v634_v14 }
 0x451   :  { %v631_v7 = vpop.xlane.xlu0 %630 }
 0x452   :  { %v647_v16 = vmul.f32 1.442695, %v642_v15  ;;  %v641_v18 = vsub.f32 %v611_v49, %v631_v7  ;;  %v7613_v49 = vadd.f32 %v7559_v41, %v7484_v5 }
 0x454   :  { %6907 = vpow2.f32 %v647_v16  ;;  %v645_v20 = vmul.f32 1.442695, %v641_v18 }
 0x455   :  { %v904_v22 = vpop.xlane.xlu1 %903 }
 0x456   :  { %6909 = vpow2.f32 %v645_v20  ;;  %v912_v23 = vsub.f32 %v886_v56, %v904_v22 }
 0x457   :  { %v901_v24 = vpop.xlane.xlu0 %900 }
 0x458   :  { %v917_v25 = vmul.f32 1.442695, %v912_v23  ;;  %v911_v26 = vsub.f32 %v881_v59, %v901_v24 }
 0x459   :  { %v676_v10 = vpop.permute.xlu1 %675 }
 0x45a   :  { %6911 = vpow2.f32 %v917_v25  ;;  %v915_v28 = vmul.f32 1.442695, %v911_v26  ;;  %6408 = vmatprep.subr.mxu1 %v676_v10 }
 0x45b   :  { %6409 = vmatpush3.msra.mxu1 %v676_v10  ;;  %v640_v12 = vpop.xlane.xlu0 %639 }
 0x45c   :  { %6913 = vpow2.f32 %v915_v28  ;;  %v644_v9 = vsub.f32 %v626_v61, %v640_v12 }
 0x45e   :  { %v651_v30 = vmul.f32 1.442695, %v644_v9 }
 0x45f   :  { %v637_v52 = vpop.xlane.xlu0 %636 }
 0x460   :  { %6915 = vpow2.f32 %v651_v30  ;;  %v643_v53 = vsub.f32 %v7573_v3, %v637_v52  ;;  %v7651_v52 = vmul.f32 0.25, %v7529_v19 }
 0x461   :  { %v6908_v31 = vpop.eup %6907 }
 0x462   :  { %v656_v32 = vsel %vm224_vm0, %v6908_v31, 0.0  ;;  %v649_v57 = vmul.f32 1.442695, %v643_v53  ;;  %v7657_v53 = vmul.f32 0.25, %v7525_v17 }
 0x463   :  { %v6910_v33 = vpop.eup %6909  ;;  %657 = vadd.xlane.f32.xlu1 %v656_v32  ;;  %v907_v1 = vpop.xlane.xlu0 %906 }
 0x464   :  { %v653_v34 = vsel %vm224_vm0, %v6910_v33, 0.0  ;;  %v913_v2 = vsub.f32 %v7577_v8, %v907_v1 }
 0x465   :  { %654 = vadd.xlane.f32.xlu0 %v653_v34 }
 0x466   :  { %v919_v3 = vmul.f32 1.442695, %v913_v2 }
 0x467   :  { %v7599_v35 = vpop.eup %6911 }
 0x468   :  { %v926_v37 = vsel %vm224_vm0, %v7599_v35, 0.0 }
 0x469   :  { %v7603_v39 = vpop.eup %6913  ;;  %927 = vadd.xlane.f32.xlu1 %v926_v37 }
 0x46a   :  { %v923_v44 = vsel %vm224_vm0, %v7603_v39, 0.0 }
 0x46b   :  { %924 = vadd.xlane.f32.xlu0 %v923_v44 }
 0x46d   :  { %v7607_v45 = vpop.eup %6915 }
 0x46e   :  { %v662_v48 = vsel %vm224_vm0, %v7607_v45, 0.0 }
 0x46f   :  { %663 = vadd.xlane.f32.xlu1 %v662_v48 }
 0x480   :  { %1084 = vrot.lane.b32.xlu1 %v7613_v49, %s7332_s0 }
 0x484   :  { %1080 = vrot.lane.b32.xlu1 %v7529_v19, %s7332_s0 }
 0x48a   :  { %v910_v55 = vpop.xlane.xlu1 %909 }
 0x48b   :  { %v914_v56 = vsub.f32 %v896_v11, %v910_v55  ;;  %v946_v11 = vpop.permute.xlu0 %945  ;;  %v7660_v55 = vmul.f32 0.25, %v7613_v49 }
 0x48d   :  { %v921_v58 = vmul.f32 1.442695, %v914_v56  ;;  %v7667_v56 = vmul.f32 0.25, %v7534_v21 }
 0x48e   :  { %v674_v59 = vpop.permute.xlu1 %673 }
 0x48f   :  { %6917 = vpow2.f32 %v921_v58  ;;  %6410 = vmatprep.subr.mxu1 %v674_v59 }
 0x490   :  { %6411 = vmatpush3.msra.mxu1 %v674_v59  ;;  %6919 = vpow2.f32 %v649_v57 }
 0x491   :  { %6921 = vpow2.f32 %v919_v3 }
 0x492   :  { %v950_v5 = vpop.permute.xlu1 %949 }
 0x493   :  { %6432 = vmatprep.subr.mxu1 %v950_v5 }
 0x496   :  { %v948_v46 = vpop.permute.xlu1 %947 }
 0x49a   :  { %v944_v54 = vpop.permute.xlu1 %943 }
 0x49c   :  { %v7620_v41 = vpop.eup %6917 }
 0x49d   :  { %v932_v60 = vsel %vm224_vm0, %v7620_v41, 0.0  ;;  %v6920_v61 = vpop.eup %6919 }
 0x49e   :  { %933 = vadd.xlane.f32.xlu0 %v932_v60  ;;  %v659_v0 = vsel %vm224_vm0, %v6920_v61, 0.0  ;;  %v6922_v4 = vpop.eup %6921 }
 0x49f   :  { %v929_v6 = vsel %vm224_vm0, %v6922_v4, 0.0 }
 0x4a2   :  { %660 = vadd.xlane.f32.xlu0 %v659_v0 }
 0x4b8   :  { %1086 = vrot.lane.b32.xlu0 %v7534_v21, %s7332_s0 }
 0x4d7   :  { %930 = vadd.xlane.f32.xlu0 %v929_v6 }
 0x4ec   :  { %v658_v13 = vpop.xlane.xlu1 %657 }
 0x4ed   :  { %1082 = vrot.lane.b32.xlu0 %v7525_v17, %s7332_s0  ;;  %6923 = vrcp.f32 %v658_v13 }
 0x4ee   :  { %v655_v14 = vpop.xlane.xlu0 %654 }
 0x4ef   :  { %6925 = vrcp.f32 %v655_v14 }
 0x4f2   :  { %v928_v20 = vpop.xlane.xlu1 %927 }
 0x4f4   :  { %v925_v18 = vpop.xlane.xlu0 %924 }
 0x4f5   :  { %6927 = vrcp.f32 %v925_v18 }
 0x4f8   :  { %v664_v23 = vpop.xlane.xlu1 %663 }
 0x4f9   :  { %6929 = vrcp.f32 %v664_v23 }
 0x4fa   :  { %v6924_v15 = vpop.eup %6923 }
 0x4fb   :  { %v668_v8 = vmul.f32 %v6924_v15, %v6908_v31 }
 0x4fc   :  { %v6926_v7 = vpop.eup %6925 }
 0x4fd   :  { %v666_v16 = vmul.f32 %v6926_v7, %v6910_v33  ;;  %v1085_v33 = vpop.permute.xlu1 %1084 }
 0x4ff   :  { %6412 = vmatprep.mubr.msk.f32.mxu1 %vm224_vm0, %v666_v16 }
 0x500   :  { %6413 = vmatmul.mubr.msk.f32.vlgmr.msra.gmra.mxu1 %vm224_vm0, %v668_v8 }
 0x501   :  { %6433 = vmatpush3.msra.mxu1 %v950_v5 }
 0x502   :  { %6434 = vmatprep.subr.mxu1 %v948_v46  ;;  %v6928_v26 = vpop.eup %6927 }
 0x503   :  { %6435 = vmatpush3.msra.mxu1 %v948_v46  ;;  %v936_v31 = vmul.f32 %v6928_v26, %v7603_v39  ;;  %v1081_v39 = vpop.permute.xlu1 %1080 }
 0x504   :  { %6436 = vmatprep.subr.mxu1 %v946_v11 }
 0x505   :  { %6437 = vmatpush3.msra.mxu1 %v946_v11 }
 0x506   :  { %6438 = vmatprep.subr.mxu1 %v944_v54  ;;  %v6930_v10 = vpop.eup %6929 }
 0x507   :  { %6439 = vmatpush3.msra.mxu1 %v944_v54  ;;  %v672_v9 = vmul.f32 %v6930_v10, %v7607_v45 }
 0x527   :  { %v934_v22 = vpop.xlane.xlu0 %933 }
 0x52b   :  { %v661_v24 = vpop.xlane.xlu0 %660 }
 0x52c   :  { %6931 = vrcp.f32 %v661_v24 }
 0x52d   :  { %6933 = vrcp.f32 %v928_v20 }
 0x52e   :  { %6935 = vrcp.f32 %v934_v22 }
 0x52f   :  { %v1087_v25 = vpop.permute.xlu0 %1086 }
 0x530   :  { %6446 = vmatprep.subr.msk.mxu1 %vm523_vm1, %v1087_v25 }
 0x539   :  { %v6932_v28 = vpop.eup %6931 }
 0x53a   :  { %v670_v12 = vmul.f32 %v6932_v28, %v6920_v61  ;;  %v6934_v30 = vpop.eup %6933 }
 0x53b   :  { %v938_v32 = vmul.f32 %v6934_v30, %v7599_v35  ;;  %v6936_v35 = vpop.eup %6935 }
 0x53c   :  { %6415 = vmatprep.mubr.msk.f32.mxu1 %vm224_vm0, %v670_v12  ;;  %v942_v48 = vmul.f32 %v6936_v35, %v7620_v41 }
 0x53d   :  { %6416 = vmatmul.mubr.msk.f32.gmra.mxu1 %vm224_vm0, %v672_v9 }
 0x53e   :  { %6440 = vmatprep.mubr.msk.f32.mxu1 %vm224_vm0, %v936_v31 }
 0x541   :  { %6441 = vmatmul.mubr.msk.f32.vlgmr.msra.gmra.mxu1 %vm224_vm0, %v938_v32 }
 0x542   :  { %6447 = vmatpush3.xpose.msk.msra.mxu1 %vm523_vm1, %v1087_v25 }
 0x543   :  { %6448 = vmatprep.subr.msk.mxu1 %vm523_vm1, %v1085_v33 }
 0x546   :  { %6449 = vmatpush3.xpose.msk.msra.mxu1 %vm523_vm1, %v1085_v33 }
 0x560   :  { %v931_v34 = vpop.xlane.xlu0 %930 }
 0x561   :  { %6937 = vrcp.f32 %v931_v34 }
 0x564   :  { %v1083_v37 = vpop.permute.xlu0 %1082 }
 0x565   :  { %6450 = vmatprep.subr.msk.mxu1 %vm523_vm1, %v1083_v37 }
 0x566   :  { %6451 = vmatpush3.xpose.msk.msra.mxu1 %vm523_vm1, %v1083_v37 }
 0x567   :  { %6452 = vmatprep.subr.msk.mxu1 %vm523_vm1, %v1081_v39 }
 0x56a   :  { %6453 = vmatpush3.xpose.msk.msra.mxu1 %vm523_vm1, %v1081_v39 }
 0x56e   :  { %v6938_v44 = vpop.eup %6937 }
 0x56f   :  { %v940_v45 = vmul.f32 %v6938_v44, %v6922_v4 }
 0x571   :  { %6443 = vmatprep.mubr.msk.f32.mxu1 %vm224_vm0, %v940_v45 }
 0x572   :  { %6444 = vmatmul.mubr.msk.f32.gmra.mxu1 %vm224_vm0, %v942_v48 }
 0x573   :  { %6454 = vmatprep.mubr.msk.f32.mxu1 %vm523_vm1, %v7651_v52 }
 0x576   :  { %6455 = vmatmul.mubr.msk.f32.vlgmr.msra.gmra.mxu1 %vm523_vm1, %v7657_v53 }
 0x577   :  { %6457 = vmatprep.mubr.msk.f32.mxu1 %vm523_vm1, %v7660_v55 }
 0x57a   :  { %6458 = vmatmul.mubr.msk.f32.gmra.mxu1 %vm523_vm1, %v7667_v56 }
 0x5c0   :  { %v7671_v57 = vpop.f32.mrf.mxu1 }
 0x5c2   :  { %v7673_v58 = vpop.f32.mrf.mxu1 }
 0x5fd   :  { %v7675_v59 = vpop.f32.mrf.mxu1 }
 0x5ff   :  { %v7677_v5 = vpop.f32.mrf.mxu1 }
 0x601   :  { %v7679_v41 = vpop.f32.mrf.mxu1 }
 0x603   :  { %v7681_v60 = vpop.f32.mrf.mxu1 }
 0x632   :  { %v7683_v61 = vpop.f32.mrf.mxu1 }
 0x634   :  { %v7685_v0 = vpop.f32.mrf.mxu1 }
 0x636   :  { %v6456_v1 = vpop.f32.mrf.mxu1 }
 0x637   :  { %v1180_v2 = vadd.f32 %v6456_v1, %v7561_v43 }
 0x638   :  { %v1174_v3 = vpop.f32.mrf.mxu1 }
 0x639   :  { %v1175_v4 = vadd.f32 %v7561_v43, %v1174_v3  ;;  %v1196_v6 = vsel %vm224_vm0, %v1180_v2, -inf }
 0x63a   :  { %1197 = vmax.xlane.f32.xlu1 %v1196_v6  ;;  %v6459_v46 = vpop.f32.mrf.mxu1 }
 0x63b   :  { %v1190_v54 = vadd.f32 %v6459_v46, %v7561_v43  ;;  %v1193_v11 = vsel %vm224_vm0, %v1175_v4, -inf }
 0x63c   :  { %v1184_v13 = vpop.f32.mrf.mxu1  ;;  %1194 = vmax.xlane.f32.xlu0 %v1193_v11 }
 0x63d   :  { %v1185_v14 = vadd.f32 %v7561_v43, %v1184_v13  ;;  %v1202_v15 = vsel %vm224_vm0, %v1190_v54, -inf }
 0x63f   :  { %v1199_v7 = vsel %vm224_vm0, %v1185_v14, -inf }
 0x640   :  { %1203 = vmax.xlane.f32.xlu0 %v1202_v15 }
 0x644   :  { %1200 = vmax.xlane.f32.xlu0 %v1199_v7 }
 0x64b   :  { %1241 = vrot.lane.b32.xlu1 %v7613_v49, %s7335_s29 }
 0x64f   :  { %1239 = vrot.lane.b32.xlu1 %v7525_v17, %s7335_s29 }
 0x653   :  { %1237 = vrot.lane.b32.xlu1 %v7529_v19, %s7335_s29 }
 0x65a   :  { %1243 = vrot.lane.b32.xlu0 %v7534_v21, %s7335_s29 }
 0x6c3   :  { %v1198_v16 = vpop.xlane.xlu1 %1197 }
 0x6c4   :  { %v1206_v8 = vsub.f32 %v1180_v2, %v1198_v16 }
 0x6c5   :  { %v1195_v18 = vpop.xlane.xlu0 %1194 }
 0x6c6   :  { %v1211_v20 = vmul.f32 1.442695, %v1206_v8  ;;  %v1205_v22 = vsub.f32 %v1175_v4, %v1195_v18 }
 0x6c7   :  { %v1242_v25 = vpop.permute.xlu1 %1241 }
 0x6c8   :  { %6939 = vpow2.f32 %v1211_v20  ;;  %v1209_v23 = vmul.f32 1.442695, %v1205_v22 }
 0x6c9   :  { %v1204_v24 = vpop.xlane.xlu0 %1203 }
 0x6ca   :  { %6941 = vpow2.f32 %v1209_v23  ;;  %v1208_v33 = vsub.f32 %v1190_v54, %v1204_v24 }
 0x6cb   :  { %v1240_v10 = vpop.permute.xlu1 %1239 }
 0x6cc   :  { %v1215_v37 = vmul.f32 1.442695, %v1208_v33 }
 0x6cd   :  { %v1201_v26 = vpop.xlane.xlu0 %1200 }
 0x6ce   :  { %v1207_v34 = vsub.f32 %v1185_v14, %v1201_v26  ;;  %6943 = vpow2.f32 %v1215_v37 }
 0x6cf   :  { %v1238_v31 = vpop.permute.xlu1 %1237 }
 0x6d0   :  { %v1213_v39 = vmul.f32 1.442695, %v1207_v34 }
 0x6d1   :  { %v1244_v28 = vpop.permute.xlu0 %1243 }
 0x6d2   :  { %6460 = vmatprep.subr.mxu0 %v1244_v28  ;;  %6945 = vpow2.f32 %v1213_v39 }
 0x6d3   :  { %6461 = vmatpush3.msra.mxu0 %v1244_v28 }
 0x6d4   :  { %6462 = vmatprep.subr.mxu0 %v1242_v25 }
 0x6d5   :  { %v6940_v12 = vpop.eup %6939  ;;  %6463 = vmatpush3.msra.mxu0 %v1242_v25 }
 0x6d6   :  { %6464 = vmatprep.subr.mxu0 %v1240_v10  ;;  %v1220_v9 = vsel %vm224_vm0, %v6940_v12, 0.0 }
 0x6d7   :  { %v6942_v30 = vpop.eup %6941  ;;  %1221 = vadd.xlane.f32.xlu1 %v1220_v9  ;;  %6465 = vmatpush3.msra.mxu0 %v1240_v10 }
 0x6d8   :  { %6466 = vmatprep.subr.mxu0 %v1238_v31  ;;  %v1217_v32 = vsel %vm224_vm0, %v6942_v30, 0.0 }
 0x6d9   :  { %1218 = vadd.xlane.f32.xlu0 %v1217_v32  ;;  %6467 = vmatpush3.msra.mxu0 %v1238_v31 }
 0x6db   :  { %v6944_v35 = vpop.eup %6943 }
 0x6dc   :  { %v1226_v45 = vsel %vm224_vm0, %v6944_v35, 0.0 }
 0x6df   :  { %v6946_v44 = vpop.eup %6945 }
 0x6e0   :  { %v1223_v48 = vsel %vm224_vm0, %v6946_v44, 0.0 }
 0x6e8   :  { %1358 = vrot.lane.b32.xlu1 %v7613_v49, %s7333_s2 }
 0x6ef   :  { %1360 = vrot.lane.b32.xlu0 %v7534_v21, %s7333_s2 }
 0x70c   :  { %1227 = vadd.xlane.f32.xlu1 %v1226_v45 }
 0x70e   :  { %1224 = vadd.xlane.f32.xlu0 %v1223_v48 }
 0x71d   :  { %1354 = vrot.lane.b32.xlu1 %v7529_v19, %s7333_s2 }
 0x721   :  { %1348 = vrot.lane.b32.xlu1 %v7657_v53, %s7334_s28 }
 0x724   :  { %1356 = vrot.lane.b32.xlu0 %v7525_v17, %s7333_s2 }
 0x725   :  { %1352 = vrot.lane.b32.xlu1 %v7667_v56, %s7334_s28 }
 0x728   :  { %1346 = vrot.lane.b32.xlu0 %v7651_v52, %s7334_s28 }
 0x72c   :  { %1350 = vrot.lane.b32.xlu0 %v7660_v55, %s7334_s28 }
 0x760   :  { %v1222_v1 = vpop.xlane.xlu1 %1221 }
 0x761   :  { %6947 = vrcp.f32 %v1222_v1 }
 0x762   :  { %v1219_v2 = vpop.xlane.xlu0 %1218 }
 0x763   :  { %6949 = vrcp.f32 %v1219_v2 }
 0x764   :  { %v1359_v56 = vpop.permute.xlu1 %1358 }
 0x766   :  { %v1361_v3 = vpop.permute.xlu0 %1360 }
 0x767   :  { %6474 = vmatprep.subr.msk.mxu0 %vm523_vm1, %v1361_v3 }
 0x76e   :  { %v6948_v53 = vpop.eup %6947 }
 0x76f   :  { %v1232_v46 = vmul.f32 %v6948_v53, %v6940_v12 }
 0x770   :  { %v6950_v4 = vpop.eup %6949 }
 0x771   :  { %v1230_v6 = vmul.f32 %v6950_v4, %v6942_v30 }
 0x773   :  { %6468 = vmatprep.mubr.msk.f32.mxu0 %vm224_vm0, %v1230_v6 }
 0x774   :  { %6469 = vmatmul.mubr.msk.f32.vlgmr.msra.gmra.mxu0 %vm224_vm0, %v1232_v46 }
 0x775   :  { %6475 = vmatpush3.xpose.msk.msra.mxu0 %vm523_vm1, %v1361_v3 }
 0x776   :  { %6476 = vmatprep.subr.msk.mxu0 %vm523_vm1, %v1359_v56 }
 0x779   :  { %6477 = vmatpush3.xpose.msk.msra.mxu0 %vm523_vm1, %v1359_v56 }
 0x795   :  { %v1228_v52 = vpop.xlane.xlu1 %1227 }
 0x796   :  { %6951 = vrcp.f32 %v1228_v52 }
 0x797   :  { %v1225_v55 = vpop.xlane.xlu0 %1224 }
 0x798   :  { %6953 = vrcp.f32 %v1225_v55 }
 0x799   :  { %v1355_v11 = vpop.permute.xlu1 %1354 }
 0x79b   :  { %v1357_v54 = vpop.permute.xlu0 %1356 }
 0x79c   :  { %6478 = vmatprep.subr.msk.mxu0 %vm523_vm1, %v1357_v54 }
 0x79d   :  { %6479 = vmatpush3.xpose.msk.msra.mxu0 %vm523_vm1, %v1357_v54  ;;  %v1349_v8 = vpop.permute.xlu1 %1348 }
 0x79e   :  { %6480 = vmatprep.subr.msk.mxu0 %vm523_vm1, %v1355_v11 }
 0x79f   :  { %v1347_v7 = vpop.permute.xlu0 %1346 }
 0x7a1   :  { %6481 = vmatpush3.xpose.msk.msra.mxu0 %vm523_vm1, %v1355_v11  ;;  %v1353_v20 = vpop.permute.xlu1 %1352 }
 0x7a3   :  { %v6952_v13 = vpop.eup %6951  ;;  %v1351_v18 = vpop.permute.xlu0 %1350 }
 0x7a4   :  { %v1236_v16 = vmul.f32 %v6952_v13, %v6944_v35  ;;  %v7227_v35 = vld [vmem:[#allocation5 + $0xb0] sm:$0xff] }
 0x7a5   :  { %v6954_v14 = vpop.eup %6953 }
 0x7a6   :  { %v1234_v15 = vmul.f32 %v6954_v14, %v6946_v44 }
 0x7a8   :  { %6471 = vmatprep.mubr.msk.f32.mxu0 %vm224_vm0, %v1234_v15 }
 0x7a9   :  { %6472 = vmatmul.mubr.msk.f32.gmra.mxu0 %vm224_vm0, %v1236_v16 }
 0x7aa   :  { %6482 = vmatprep.mubr.msk.f32.mxu0 %vm523_vm1, %v1347_v7 }
 0x7ad   :  { %6483 = vmatmul.mubr.msk.f32.vlgmr.msra.gmra.mxu0 %vm523_vm1, %v1349_v8 }
 0x7ae   :  { %6485 = vmatprep.mubr.msk.f32.mxu0 %vm523_vm1, %v1351_v18  ;;  %v7230_v18 = vld [vmem:[#allocation5 + $0xa0] sm:$0xff] }
 0x7b1   :  { %6486 = vmatmul.mubr.msk.f32.gmra.mxu0 %vm523_vm1, %v1353_v20 }
 0x834   :  { %v7739_v22 = vpop.f32.mrf.mxu0 }
 0x836   :  { %v7741_v23 = vpop.f32.mrf.mxu0 }
 0x869   :  { %v7743_v24 = vpop.f32.mrf.mxu0 }
 0x86b   :  { %v7745_v25 = vpop.f32.mrf.mxu0 }
 0x86d   :  { %v6484_v26 = vpop.f32.mrf.mxu0 }
 0x86e   :  { %v1450_v10 = vadd.f32 %v6484_v26, %v7561_v43 }
 0x86f   :  { %v1444_v28 = vpop.f32.mrf.mxu0 }
 0x870   :  { %v1445_v12 = vadd.f32 %v7561_v43, %v1444_v28  ;;  %v1466_v9 = vsel %vm224_vm0, %v1450_v10, -inf }
 0x871   :  { %1467 = vmax.xlane.f32.xlu1 %v1466_v9  ;;  %v6487_v30 = vpop.f32.mrf.mxu0 }
 0x872   :  { %v1463_v31 = vsel %vm224_vm0, %v1445_v12, -inf  ;;  %v1460_v34 = vadd.f32 %v6487_v30, %v7561_v43 }
 0x873   :  { %1464 = vmax.xlane.f32.xlu0 %v1463_v31  ;;  %v1454_v32 = vpop.f32.mrf.mxu0 }
 0x874   :  { %v1455_v33 = vadd.f32 %v7561_v43, %v1454_v32  ;;  %v1472_v39 = vsel %vm224_vm0, %v1460_v34, -inf  ;;  %v7228_v43 = vld [vmem:[#allocation5 + $0xb8] sm:$0xff] }
 0x876   :  { %v1469_v37 = vsel %vm224_vm0, %v1455_v33, -inf }
 0x877   :  { %1470 = vmax.xlane.f32.xlu0 %v1469_v37 }
 0x87b   :  { %1473 = vmax.xlane.f32.xlu0 %v1472_v39 }
 0x882   :  { %1511 = vrot.lane.b32.xlu1 %v7613_v49, %s7336_s30  ;;  %v7229_v49 = vld [vmem:[#allocation5 + $0xa8] sm:$0xff] }
 0x886   :  { %1509 = vrot.lane.b32.xlu1 %v7525_v17, %s7336_s30 }
 0x88a   :  { %1507 = vrot.lane.b32.xlu1 %v7529_v19, %s7336_s30 }
 0x88e   :  { %1644 = vrot.lane.b32.xlu1 %v7227_v35, %s7337_s4 }
 0x891   :  { %1513 = vrot.lane.b32.xlu0 %v7534_v21, %s7336_s30 }
 0x892   :  { %1056 = vrot.lane.b32.xlu1 %v7681_v60, %s7338_s5 }
 0x895   :  { %1646 = vrot.lane.b32.xlu0 %v7228_v43, %s7337_s4 }
 0x899   :  { %1642 = vrot.lane.b32.xlu0 %v7229_v49, %s7337_s4 }
 0x8fa   :  { %v1468_v17 = vpop.xlane.xlu1 %1467 }
 0x8fb   :  { %v1476_v44 = vsub.f32 %v1450_v10, %v1468_v17 }
 0x8fc   :  { %v1465_v19 = vpop.xlane.xlu0 %1464 }
 0x8fd   :  { %v1481_v45 = vmul.f32 1.442695, %v1476_v44  ;;  %v1475_v48 = vsub.f32 %v1445_v12, %v1465_v19 }
 0x8fe   :  { %v1512_v3 = vpop.permute.xlu1 %1511 }
 0x8ff   :  { %6955 = vpow2.f32 %v1481_v45  ;;  %v1479_v1 = vmul.f32 1.442695, %v1475_v48 }
 0x900   :  { %v1471_v2 = vpop.xlane.xlu0 %1470 }
 0x901   :  { %6957 = vpow2.f32 %v1479_v1  ;;  %v1477_v21 = vsub.f32 %v1455_v33, %v1471_v2  ;;  %v1791_v1 = vsub.s32 6, %v7437_v36 }
 0x902   :  { %v1510_v46 = vpop.permute.xlu1 %1509 }
 0x903   :  { %v1483_v53 = vmul.f32 1.442695, %v1477_v21 }
 0x904   :  { %v1474_v4 = vpop.xlane.xlu0 %1473 }
 0x905   :  { %6959 = vpow2.f32 %v1483_v53  ;;  %v1478_v60 = vsub.f32 %v1460_v34, %v1474_v4 }
 0x906   :  { %v1508_v11 = vpop.permute.xlu1 %1507 }
 0x907   :  { %v1485_v6 = vmul.f32 1.442695, %v1478_v60 }
 0x908   :  { %v1514_v56 = vpop.permute.xlu0 %1513 }
 0x909   :  { %6961 = vpow2.f32 %v1485_v6  ;;  %6488 = vmatprep.subr.mxu1 %v1514_v56 }
 0x90a   :  { %6489 = vmatpush3.msra.mxu1 %v1514_v56  ;;  %v1645_v20 = vpop.permute.xlu1 %1644 }
 0x90b   :  { %6490 = vmatprep.subr.mxu1 %v1512_v3 }
 0x90c   :  { %v6956_v52 = vpop.eup %6955  ;;  %6491 = vmatpush3.msra.mxu1 %v1512_v3  ;;  %v1647_v13 = vpop.permute.xlu0 %1646 }
 0x90d   :  { %6492 = vmatprep.subr.mxu1 %v1510_v46  ;;  %v1490_v55 = vsel %vm224_vm0, %v6956_v52, 0.0 }
 0x90e   :  { %v6958_v54 = vpop.eup %6957  ;;  %1491 = vadd.xlane.f32.xlu1 %v1490_v55  ;;  %6493 = vmatpush3.msra.mxu1 %v1510_v46  ;;  %v1057_v26 = vpop.permute.xlu1 %1056 }
 0x90f   :  { %6494 = vmatprep.subr.mxu1 %v1508_v11  ;;  %v1487_v14 = vsel %vm224_vm0, %v6958_v54, 0.0  ;;  %v1068_v43 = vsel %vm523_vm1, %v7673_v58, %v1057_v26  ;;  %v204_v26 = vld [vmem:[#allocation5 + $0xd8] sm:$0xff] }
 0x910   :  { %1488 = vadd.xlane.f32.xlu0 %v1487_v14  ;;  %6495 = vmatpush3.msra.mxu1 %v1508_v11  ;;  %v1643_v10 = vpop.permute.xlu0 %1642 }
 0x911   :  { %6502 = vmatprep.subr.mxu1 %v1647_v13  ;;  %6522 = vmatprep.subr.mxu0 %v204_v26 }
 0x912   :  { %v6960_v15 = vpop.eup %6959  ;;  %6523 = vmatpush3.msra.mxu0 %v204_v26 }
 0x913   :  { %v1493_v7 = vsel %vm224_vm0, %v6960_v15, 0.0 }
 0x914   :  { %1494 = vadd.xlane.f32.xlu0 %v1493_v7 }
 0x916   :  { %v6962_v16 = vpop.eup %6961 }
 0x917   :  { %v1496_v8 = vsel %vm224_vm0, %v6962_v16, 0.0 }
 0x918   :  { %1497 = vadd.xlane.f32.xlu1 %v1496_v8 }
 0x929   :  { %1058 = vrot.lane.b32.xlu1 %v7679_v41, %s7338_s5 }
 0x92a   :  { %1640 = vrot.lane.b32.xlu0 %v7230_v18, %s7337_s4 }
 0x92d   :  { %1062 = vrot.lane.b32.xlu1 %v7683_v61, %s7338_s5 }
 0x92e   :  { %1060 = vrot.lane.b32.xlu0 %v7685_v0, %s7338_s5 }
 0x997   :  { %v1492_v28 = vpop.xlane.xlu1 %1491 }
 0x998   :  { %6963 = vrcp.f32 %v1492_v28  ;;  %v202_v28 = vld [vmem:[#allocation5 + $0xc8] sm:$0xff] }
 0x999   :  { %v1489_v12 = vpop.xlane.xlu0 %1488 }
 0x99a   :  { %6965 = vrcp.f32 %v1489_v12  ;;  %v201_v12 = vld [vmem:[#allocation5 + $0xc0] sm:$0xff] }
 0x99d   :  { %v1495_v9 = vpop.xlane.xlu0 %1494 }
 0x99e   :  { %6967 = vrcp.f32 %v1495_v9 }
 0x9a1   :  { %v1498_v30 = vpop.xlane.xlu1 %1497  ;;  %v1641_v34 = vpop.permute.xlu0 %1640 }
 0x9a2   :  { %6969 = vrcp.f32 %v1498_v30 }
 0x9a5   :  { %v6964_v41 = vpop.eup %6963  ;;  %v1059_v39 = vpop.permute.xlu1 %1058 }
 0x9a6   :  { %v1502_v33 = vmul.f32 %v6964_v41, %v6956_v52  ;;  %v1061_v49 = vpop.permute.xlu0 %1060  ;;  %v1069_v17 = vsel %vm523_vm1, %v7671_v57, %v1059_v39  ;;  %v7796_v57 = vld [vmem:[#allocation5 + $0x160] sm:$0xff] }
 0x9a7   :  { %v6966_v31 = vpop.eup %6965  ;;  %v1070_v44 = vsel %vm523_vm1, %v7677_v5, %v1061_v49  ;;  %v7801_v5 = vrot.slane %v7796_v57, %v1791_v1 }
 0x9a8   :  { %v1500_v32 = vmul.f32 %v6966_v31, %v6958_v54 }
 0x9a9   :  { %v1063_v19 = vpop.permute.xlu1 %1062 }
 0x9aa   :  { %6496 = vmatprep.mubr.msk.f32.mxu1 %vm224_vm0, %v1500_v32  ;;  %v1071_v58 = vsel %vm523_vm1, %v7675_v59, %v1063_v19 }
 0x9ab   :  { %v6968_v61 = vpop.eup %6967  ;;  %6497 = vmatmul.mubr.msk.f32.vlgmr.msra.gmra.mxu1 %vm224_vm0, %v1502_v33 }
 0x9ac   :  { %6503 = vmatpush3.msra.mxu1 %v1647_v13  ;;  %v1504_v0 = vmul.f32 %v6968_v61, %v6960_v15 }
 0x9ad   :  { %6504 = vmatprep.subr.mxu1 %v1645_v20 }
 0x9ae   :  { %6505 = vmatpush3.msra.mxu1 %v1645_v20  ;;  %6499 = vmatprep.mubr.msk.f32.mxu1 %vm224_vm0, %v1504_v0 }
 0x9af   :  { %v6970_v37 = vpop.eup %6969  ;;  %6506 = vmatprep.subr.mxu1 %v1643_v10 }
 0x9b0   :  { %6507 = vmatpush3.msra.mxu1 %v1643_v10  ;;  %v1506_v35 = vmul.f32 %v6970_v37, %v6962_v16  ;;  %v203_v10 = vld [vmem:[#allocation5 + $0xd0] sm:$0xff] }
 0x9b1   :  { %6508 = vmatprep.subr.mxu1 %v1641_v34  ;;  %6524 = vmatprep.subr.mxu0 %v203_v10 }
 0x9b2   :  { %6500 = vmatmul.mubr.msk.f32.gmra.mxu1 %vm224_vm0, %v1506_v35  ;;  %6525 = vmatpush3.msra.mxu0 %v203_v10 }
 0x9b3   :  { %6510 = vmatprep.mubr.msk.f32.mxu1 %vm224_vm0, %v1068_v43  ;;  %6509 = vmatpush3.msra.mxu1 %v1641_v34 }
 0x9b4   :  { %6526 = vmatprep.subr.mxu0 %v202_v28 }
 0x9b5   :  { %6527 = vmatpush3.msra.mxu0 %v202_v28 }
 0x9b6   :  { %6511 = vmatmul.mubr.msk.f32.vlgmr.msra.gmra.mxu1 %vm224_vm0, %v1069_v17  ;;  %6528 = vmatprep.subr.mxu0 %v201_v12 }
 0x9b7   :  { %6513 = vmatprep.mubr.msk.f32.mxu1 %vm224_vm0, %v1070_v44  ;;  %6529 = vmatpush3.msra.mxu0 %v201_v12 }
 0x9ba   :  { %6514 = vmatmul.mubr.msk.f32.gmra.mxu1 %vm224_vm0, %v1071_v58 }
 0xa6b   :  { %v6498_v45 = vpop.f32.mrf.mxu1 }
 0xa6d   :  { %v1597_v48 = vpop.f32.mrf.mxu1 }
 0xa72   :  { %v6501_v2 = vpop.f32.mrf.mxu1 }
 0xa74   :  { %v1607_v21 = vpop.f32.mrf.mxu1 }
 0xa76   :  { %v6512_v3 = vpop.f32.mrf.mxu1 }
 0xa77   :  { %v1782_v53 = vadd.f32 %v6512_v3, %v7381_v27 }
 0xa78   :  { %v1742_v4 = vpop.f32.mrf.mxu1 }
 0xa79   :  { %v7805_v59 = vadd.f32 %v7801_v5, %v1782_v53  ;;  %v1781_v60 = vadd.f32 %v1742_v4, %v7383_v29 }
 0xa7a   :  { %v6515_v6 = vpop.f32.mrf.mxu1 }
 0xa7b   :  { %v7809_v46 = vadd.f32 %v7801_v5, %v1781_v60  ;;  %v1784_v56 = vadd.f32 %v6515_v6, %v7396_v40  ;;  %v1804_v52 = vsel %vm224_vm0, %v7805_v59, 0.0  ;;  %v1834_v54 = vmul.f32 %v7805_v59, %v7805_v59 }
 0xa7c   :  { %1805 = vadd.xlane.f32.xlu1 %v1804_v52  ;;  %v1752_v29 = vpop.f32.mrf.mxu1 }
 0xa7d   :  { %v7815_v55 = vadd.f32 %v7801_v5, %v1784_v56  ;;  %v1801_v27 = vsel %vm224_vm0, %v7809_v46, 0.0  ;;  %v1783_v13 = vadd.f32 %v1752_v29, %v7392_v38  ;;  %v1844_v14 = vsel %vm224_vm0, %v1834_v54, 0.0 }
 0xa7e   :  { %1802 = vadd.xlane.f32.xlu0 %v1801_v27  ;;  %v1833_v15 = vmul.f32 %v7809_v46, %v7809_v46 }
 0xa7f   :  { %v1810_v11 = vsel %vm224_vm0, %v7815_v55, 0.0  ;;  %v1836_v40 = vmul.f32 %v7815_v55, %v7815_v55  ;;  %v7831_v16 = vadd.f32 %v7801_v5, %v1783_v13 }
 0xa80   :  { %1811 = vadd.xlane.f32.xlu1 %v1810_v11  ;;  %v1841_v8 = vsel %vm224_vm0, %v1833_v15, 0.0 }
 0xa81   :  { %v1850_v7 = vsel %vm224_vm0, %v1836_v40, 0.0  ;;  %v1807_v18 = vsel %vm224_vm0, %v7831_v16, 0.0  ;;  %v1835_v38 = vmul.f32 %v7831_v16, %v7831_v16  ;;  %v1923_v40 = vsub.s32 2, %v7437_v36 }
 0xa82   :  { %1845 = vadd.xlane.f32.xlu0 %v1844_v14 }
 0xa83   :  { %v1847_v20 = vsel %vm224_vm0, %v1835_v38, 0.0 }
 0xa84   :  { %1851 = vadd.xlane.f32.xlu1 %v1850_v7 }
 0xa86   :  { %1842 = vadd.xlane.f32.xlu0 %v1841_v8  ;;  %v7859_v8 = vrot.slane %v7796_v57, %v1923_v40 }
 0xa8a   :  { %1808 = vadd.xlane.f32.xlu0 %v1807_v18 }
 0xa8e   :  { %1848 = vadd.xlane.f32.xlu0 %v1847_v20 }
 0xa95   :  { %1622 = vrot.lane.b32.xlu1 %v6498_v45, %s7338_s5 }
 0xa99   :  { %1624 = vrot.lane.b32.xlu1 %v1607_v21, %s7338_s5 }
 0xa9d   :  { %1626 = vrot.lane.b32.xlu1 %v6501_v2, %s7338_s5 }
 0xaa4   :  { %1620 = vrot.lane.b32.xlu0 %v1597_v48, %s7338_s5 }
 0xb05   :  { %v1806_v9 = vpop.xlane.xlu1 %1805 }
 0xb06   :  { %v1826_v41 = vmul.f32 0.03125, %v1806_v9 }
 0xb07   :  { %v1803_v30 = vpop.xlane.xlu0 %1802 }
 0xb08   :  { %v1874_v61 = vmul.f32 %v1826_v41, %v1826_v41  ;;  %v1825_v0 = vmul.f32 0.03125, %v1803_v30  ;;  %v1890_v7 = vsub.f32 %v7805_v59, %v1826_v41 }
 0xb09   :  { %v1812_v31 = vpop.xlane.xlu1 %1811 }
 0xb0a   :  { %v1828_v32 = vmul.f32 0.03125, %v1812_v31  ;;  %v1873_v17 = vmul.f32 %v1825_v0, %v1825_v0  ;;  %v1889_v18 = vsub.f32 %v7809_v46, %v1825_v0 }
 0xb0b   :  { %v1846_v33 = vpop.xlane.xlu0 %1845 }
 0xb0c   :  { %v1866_v34 = vmul.f32 0.03125, %v1846_v33  ;;  %v1876_v43 = vmul.f32 %v1828_v32, %v1828_v32  ;;  %v1892_v12 = vsub.f32 %v7815_v55, %v1828_v32 }
 0xb0d   :  { %v1852_v37 = vpop.xlane.xlu1 %1851 }
 0xb0e   :  { %v1882_v39 = vsub.f32 %v1866_v34, %v1874_v61  ;;  %v1868_v35 = vmul.f32 0.03125, %v1852_v37 }
 0xb0f   :  { %v1843_v49 = vpop.xlane.xlu0 %1842 }
 0xb10   :  { %v1898_v44 = vadd.f32 1e-05, %v1882_v39  ;;  %v1865_v19 = vmul.f32 0.03125, %v1843_v49  ;;  %v1884_v58 = vsub.f32 %v1868_v35, %v1876_v43  ;;  %v220_v39 = vld [vmem:[#allocation5 + $0x158] sm:$0xff]  ;;  %v219_v35 = vld [vmem:[#allocation5 + $0x150] sm:$0xff]  ;;  %v218_v43 = vld [vmem:[#allocation5 + $0x148] sm:$0xff] }
 0xb11   :  { %v1623_v48 = vpop.permute.xlu1 %1622  ;;  %6542 = vmatprep.subr.mxu1 %v220_v39  ;;  %v217_v49 = vld [vmem:[#allocation5 + $0x140] sm:$0xff] }
 0xb12   :  { %6971 = vrsqrt.f32 %v1898_v44  ;;  %v1881_v45 = vsub.f32 %v1865_v19, %v1873_v17  ;;  %v1900_v53 = vadd.f32 1e-05, %v1884_v58  ;;  %v1633_v11 = vsel %vm523_vm1, %v7739_v22, %v1623_v48  ;;  %6543 = vmatpush3.msra.mxu1 %v220_v39  ;;  %v216_v17 = vld [vmem:[#allocation5 + $0x138] sm:$0xff]  ;;  %v215_v44 = vld [vmem:[#allocation5 + $0x130] sm:$0xff]  ;;  %v214_v19 = vld [vmem:[#allocation5 + $0x128] sm:$0xff] }
 0xb13   :  { %v1809_v2 = vpop.xlane.xlu0 %1808  ;;  %6544 = vmatprep.subr.mxu1 %v219_v35  ;;  %v213_v58 = vld [vmem:[#allocation5 + $0x120] sm:$0xff]  ;;  %v211_v48 = vld [vmem:[#allocation5 + $0x110] sm:$0xff] }
 0xb14   :  { %v1897_v21 = vadd.f32 1e-05, %v1881_v45  ;;  %v1827_v3 = vmul.f32 0.03125, %v1809_v2  ;;  %6545 = vmatpush3.msra.mxu1 %v219_v35  ;;  %v212_v45 = vld [vmem:[#allocation5 + $0x118] sm:$0xff]  ;;  %v210_v2 = vld [vmem:[#allocation5 + $0x108] sm:$0xff] }
 0xb15   :  { %v1625_v6 = vpop.permute.xlu1 %1624  ;;  %6546 = vmatprep.subr.mxu1 %v218_v43 }
 0xb16   :  { %6973 = vrsqrt.f32 %v1897_v21  ;;  %v1875_v60 = vmul.f32 %v1827_v3, %v1827_v3  ;;  %v1634_v13 = vsel %vm523_vm1, %v7745_v25, %v1625_v6  ;;  %v1935_v25 = vsub.s32 3, %v7437_v36  ;;  %6547 = vmatpush3.msra.mxu1 %v218_v43  ;;  %v209_v21 = vld [vmem:[#allocation5 + $0x100] sm:$0xff] }
 0xb17   :  { %v1849_v4 = vpop.xlane.xlu0 %1848  ;;  %6975 = vrsqrt.f32 %v1900_v53  ;;  %v1891_v31 = vsub.f32 %v7831_v16, %v1827_v3  ;;  %6548 = vmatprep.subr.mxu1 %v217_v49  ;;  %v208_v3 = vld [vmem:[#allocation5 + $0xf8] sm:$0xff]  ;;  %v207_v53 = vld [vmem:[#allocation5 + $0xf0] sm:$0xff] }
 0xb18   :  { %v1867_v56 = vmul.f32 0.03125, %v1849_v4  ;;  %v7867_v26 = vrot.slane %v7796_v57, %v1935_v25  ;;  %6549 = vmatpush3.msra.mxu1 %v217_v49  ;;  %v206_v4 = vld [vmem:[#allocation5 + $0xe8] sm:$0xff] }
 0xb19   :  { %v1627_v14 = vpop.permute.xlu1 %1626  ;;  %6550 = vmatprep.subr.mxu1 %v216_v17 }
 0xb1a   :  { %v1883_v52 = vsub.f32 %v1867_v56, %v1875_v60  ;;  %v1635_v22 = vsel %vm523_vm1, %v7743_v24, %v1627_v14  ;;  %6551 = vmatpush3.msra.mxu1 %v216_v17  ;;  %v205_v60 = vld [vmem:[#allocation5 + $0xe0] sm:$0xff] }
 0xb1b   :  { %v1621_v27 = vpop.permute.xlu0 %1620  ;;  %6552 = vmatprep.subr.mxu1 %v215_v44 }
 0xb1c   :  { %v1899_v54 = vadd.f32 1e-05, %v1883_v52  ;;  %v1632_v29 = vsel %vm523_vm1, %v7741_v23, %v1621_v27  ;;  %6553 = vmatpush3.msra.mxu1 %v215_v44 }
 0xb1d   :  { %6516 = vmatprep.mubr.msk.f32.mxu1 %vm224_vm0, %v1632_v29  ;;  %6554 = vmatprep.subr.mxu1 %v214_v19 }
 0xb1e   :  { %6977 = vrsqrt.f32 %v1899_v54  ;;  %6517 = vmatmul.mubr.msk.f32.gmra.mxu1 %vm224_vm0, %v1633_v11 }
 0xb1f   :  { %v6972_v15 = vpop.eup %6971  ;;  %6519 = vmatprep.mubr.msk.f32.mxu1 %vm224_vm0, %v1634_v13  ;;  %6555 = vmatpush3.msra.mxu1 %v214_v19 }
 0xb20   :  { %v1914_v23 = vmul.f32 %v6972_v15, %v1890_v7  ;;  %6556 = vmatprep.subr.mxu1 %v213_v58 }
 0xb21   :  { %6557 = vmatpush3.msra.mxu1 %v213_v58 }
 0xb22   :  { %6520 = vmatmul.mubr.msk.f32.gmra.mxu1 %vm224_vm0, %v1635_v22  ;;  %v1926_v24 = vmul.f32 %v7859_v8, %v1914_v23  ;;  %6558 = vmatprep.subr.mxu1 %v212_v45  ;;  %v7232_v22 = vld [vmem:[#allocation5 + $0x168] sm:$0x3] }
 0xb23   :  { %v6974_v38 = vpop.eup %6973  ;;  %6559 = vmatpush3.msra.mxu1 %v212_v45 }
 0xb24   :  { %v1913_v20 = vmul.f32 %v6974_v38, %v1889_v18  ;;  %v6976_v10 = vpop.eup %6975  ;;  %v1938_v30 = vadd.f32 %v7867_v26, %v1926_v24  ;;  %6560 = vmatprep.subr.mxu1 %v211_v48  ;;  %v7906_v18 = vrot.slane %v7232_v22, %v7447_v47 }
 0xb25   :  { %v1916_v41 = vmul.f32 %v6976_v10, %v1892_v12  ;;  %6561 = vmatpush3.msra.mxu1 %v211_v48 }
 0xb26   :  { %v1925_v28 = vmul.f32 %v7859_v8, %v1913_v20  ;;  %6562 = vmatprep.subr.mxu1 %v210_v2 }
 0xb27   :  { %v1928_v0 = vmul.f32 %v7859_v8, %v1916_v41  ;;  %6563 = vmatpush3.msra.mxu1 %v210_v2 }
 0xb28   :  { %v1937_v9 = vadd.f32 %v7867_v26, %v1925_v28  ;;  %6564 = vmatprep.subr.mxu1 %v209_v21 }
 0xb29   :  { %v1940_v32 = vadd.f32 %v7867_v26, %v1928_v0  ;;  %6565 = vmatpush3.msra.mxu1 %v209_v21 }
 0xb2a   :  { %6530 = vmatprep.mubr.msk.f32.mxu0 %vm224_vm0, %v1937_v9  ;;  %6566 = vmatprep.subr.mxu1 %v208_v3 }
 0xb2b   :  { %v6978_v33 = vpop.eup %6977  ;;  %6531 = vmatmul.mubr.msk.f32.vlgmr.msra.gmra.mxu0 %vm224_vm0, %v1938_v30  ;;  %6567 = vmatpush3.msra.mxu1 %v208_v3 }
 0xb2c   :  { %v1915_v61 = vmul.f32 %v6978_v33, %v1891_v31  ;;  %6568 = vmatprep.subr.mxu1 %v207_v53 }
 0xb2d   :  { %6569 = vmatpush3.msra.mxu1 %v207_v53 }
 0xb2e   :  { %v1927_v34 = vmul.f32 %v7859_v8, %v1915_v61  ;;  %6570 = vmatprep.subr.mxu1 %v206_v4 }
 0xb2f   :  { %6571 = vmatpush3.msra.mxu1 %v206_v4 }
 0xb30   :  { %v1939_v37 = vadd.f32 %v7867_v26, %v1927_v34  ;;  %6572 = vmatprep.subr.mxu1 %v205_v60 }
 0xb31   :  { %6573 = vmatpush3.msra.mxu1 %v205_v60 }
 0xb32   :  { %6533 = vmatprep.mubr.msk.f32.mxu0 %vm224_vm0, %v1939_v37 }
 0xb33   :  { %6534 = vmatmul.mubr.msk.f32.gmra.mxu0 %vm224_vm0, %v1940_v32 }
 0xbde   :  { %v6518_v6 = vpop.f32.mrf.mxu1 }
 0xbdf   :  { %v1786_v56 = vadd.f32 %v6518_v6, %v7411_v51 }
 0xbe0   :  { %v1762_v52 = vpop.f32.mrf.mxu1 }
 0xbe1   :  { %v7885_v27 = vadd.f32 %v7801_v5, %v1786_v56  ;;  %v1785_v54 = vadd.f32 %v1762_v52, %v7409_v50 }
 0xbe2   :  { %v6521_v29 = vpop.f32.mrf.mxu1 }
 0xbe3   :  { %v7889_v11 = vadd.f32 %v7801_v5, %v1785_v54  ;;  %v1788_v13 = vadd.f32 %v6521_v29, %v7422_v62  ;;  %v1816_v14 = vsel %vm224_vm0, %v7885_v27, 0.0  ;;  %v1838_v7 = vmul.f32 %v7885_v27, %v7885_v27 }
 0xbe4   :  { %1817 = vadd.xlane.f32.xlu1 %v1816_v14  ;;  %v1772_v50 = vpop.f32.mrf.mxu1 }
 0xbe5   :  { %v7895_v15 = vadd.f32 %v7801_v5, %v1788_v13  ;;  %v1813_v51 = vsel %vm224_vm0, %v7889_v11, 0.0  ;;  %v1787_v38 = vadd.f32 %v1772_v50, %v7424_v63  ;;  %v1856_v20 = vsel %vm224_vm0, %v1838_v7, 0.0 }
 0xbe6   :  { %1814 = vadd.xlane.f32.xlu0 %v1813_v51  ;;  %v1837_v24 = vmul.f32 %v7889_v11, %v7889_v11 }
 0xbe7   :  { %v1822_v23 = vsel %vm224_vm0, %v7895_v15, 0.0  ;;  %v1840_v62 = vmul.f32 %v7895_v15, %v7895_v15  ;;  %v7917_v9 = vadd.f32 %v7801_v5, %v1787_v38 }
 0xbe8   :  { %1823 = vadd.xlane.f32.xlu1 %v1822_v23  ;;  %v1853_v41 = vsel %vm224_vm0, %v1837_v24, 0.0 }
 0xbe9   :  { %v1862_v28 = vsel %vm224_vm0, %v1840_v62, 0.0  ;;  %v1819_v0 = vsel %vm224_vm0, %v7917_v9, 0.0  ;;  %v1839_v5 = vmul.f32 %v7917_v9, %v7917_v9 }
 0xbea   :  { %1857 = vadd.xlane.f32.xlu0 %v1856_v20 }
 0xbeb   :  { %v6532_v10 = vpop.f32.mrf.mxu0  ;;  %v1859_v17 = vsel %vm224_vm0, %v1839_v5, 0.0 }
 0xbec   :  { %v7914_v12 = vadd.f32 %v6532_v10, %v7906_v18  ;;  %1863 = vadd.xlane.f32.xlu1 %v1862_v28 }
 0xbed   :  { %v2039_v30 = vpop.f32.mrf.mxu0 }
 0xbee   :  { %v7921_v63 = vmul.f32 0.70710677, %v7914_v12  ;;  %v7924_v31 = vadd.f32 %v2039_v30, %v7906_v18  ;;  %1854 = vadd.xlane.f32.xlu0 %v1853_v41 }
 0xbf0   :  { %v2111_v33 = vand.u32 2147483647, %v7921_v63  ;;  %v7928_v61 = vmul.f32 0.70710677, %v7924_v31  ;;  %vm2095_vm2 = vcmp.ge.f32.partialorder %v7921_v63, 0.0 }
 0xbf2   :  { %v2119_v34 = vmul.f32 0.3275911, %v2111_v33  ;;  %v2110_v37 = vand.u32 2147483647, %v7928_v61  ;;  %1820 = vadd.xlane.f32.xlu0 %v1819_v0  ;;  %v2215_v21 = vsub.f32 0.0, %v2111_v33  ;;  %vm2094_vm3 = vcmp.ge.f32.partialorder %v7928_v61, 0.0 }
 0xbf3   :  { %v6535_v32 = vpop.f32.mrf.mxu0 }
 0xbf4   :  { %v2127_v39 = vadd.f32 1.0, %v2119_v34  ;;  %v2118_v35 = vmul.f32 0.3275911, %v2110_v37  ;;  %v7936_v43 = vadd.f32 %v6535_v32, %v7906_v18  ;;  %v2214_v60 = vsub.f32 0.0, %v2110_v37 }
 0xbf5   :  { %v2049_v49 = vpop.f32.mrf.mxu0  ;;  %v2223_v6 = vmul.f32 %v2215_v21, %v2111_v33 }
 0xbf6   :  { %6979 = vrcp.f32 %v2127_v39  ;;  %v2126_v44 = vadd.f32 1.0, %v2118_v35  ;;  %1860 = vadd.xlane.f32.xlu0 %v1859_v17  ;;  %v7940_v19 = vmul.f32 0.70710677, %v7936_v43  ;;  %v7943_v58 = vadd.f32 %v2049_v49, %v7906_v18 }
 0xbf7   :  { %v2222_v54 = vmul.f32 %v2214_v60, %v2110_v37  ;;  %v2232_v13 = vmul.f32 1.442695, %v2223_v6 }
 0xbf8   :  { %6981 = vrcp.f32 %v2126_v44  ;;  %v2113_v45 = vand.u32 2147483647, %v7940_v19  ;;  %v7947_v48 = vmul.f32 0.70710677, %v7943_v58  ;;  %vm2097_vm4 = vcmp.ge.f32.partialorder %v7940_v19, 0.0 }
 0xbf9   :  { %v2230_v50 = vmul.f32 1.442695, %v2222_v54 }
 0xbfa   :  { %v2121_v2 = vmul.f32 0.3275911, %v2113_v45  ;;  %v2112_v3 = vand.u32 2147483647, %v7947_v48  ;;  %v2217_v14 = vsub.f32 0.0, %v2113_v45  ;;  %vm2096_vm5 = vcmp.ge.f32.partialorder %v7947_v48, 0.0 }
 0xbfc   :  { %v2129_v53 = vadd.f32 1.0, %v2121_v2  ;;  %v2120_v4 = vmul.f32 0.3275911, %v2112_v3  ;;  %v2216_v22 = vsub.f32 0.0, %v2112_v3  ;;  %v2225_v38 = vmul.f32 %v2217_v14, %v2113_v45 }
 0xbfe   :  { %6983 = vrcp.f32 %v2129_v53  ;;  %v2128_v56 = vadd.f32 1.0, %v2120_v4  ;;  %v2224_v41 = vmul.f32 %v2216_v22, %v2112_v3  ;;  %v2236_v33 = vmul.f32 1.442695, %v2225_v38 }
 0xbff   :  { %v7339_v22 = vmov -1.0  }
 0xc00   :  { %6985 = vrcp.f32 %v2128_v56  ;;  %v2234_v49 = vmul.f32 1.442695, %v2224_v41  ;;  %v2103_v38 = vsel %vm2095_vm2, 1.0, %v7339_v22  ;;  %v2102_v63 = vsel %vm2094_vm3, 1.0, %v7339_v22 }
 0xc01   :  { %6987 = vpow2.f32 %v2232_v13  ;;  %v2104_v19 = vsel %vm2096_vm5, 1.0, %v7339_v22  ;;  %vm5676_vm5 = vcmask 523264  }
 0xc02   :  { %6989 = vpow2.f32 %v2230_v50 }
 0xc03   :  { %v6980_v52 = vpop.eup %6979  ;;  %6991 = vpow2.f32 %v2236_v33 }
 0xc04   :  { %v2143_v29 = vmul.f32 1.0614054, %v6980_v52  ;;  %6993 = vpow2.f32 %v2234_v49  ;;  %v2079_v49 = vmul.f32 0.5, %v7914_v12  ;;  %v2080_v12 = vmul.f32 0.5, %v7943_v58 }
 0xc05   :  { %v6982_v51 = vpop.eup %6981 }
 0xc06   :  { %v2151_v7 = vadd.f32 -1.4531521, %v2143_v29  ;;  %v2142_v23 = vmul.f32 1.0614054, %v6982_v51 }
 0xc08   :  { %v2159_v62 = vmul.f32 %v6980_v52, %v2151_v7  ;;  %v2150_v20 = vadd.f32 -1.4531521, %v2142_v23 }
 0xc0a   :  { %v2167_v24 = vadd.f32 1.4214138, %v2159_v62  ;;  %v2158_v10 = vmul.f32 %v6982_v51, %v2150_v20 }
 0xc0b   :  { %v6984_v28 = vpop.eup %6983 }
 0xc0c   :  { %v2175_v30 = vmul.f32 %v6980_v52, %v2167_v24  ;;  %v2166_v0 = vadd.f32 1.4214138, %v2158_v10  ;;  %v2145_v5 = vmul.f32 1.0614054, %v6984_v28 }
 0xc0d   :  { %v6986_v37 = vpop.eup %6985 }
 0xc0e   :  { %v2183_v34 = vadd.f32 -0.28449672, %v2175_v30  ;;  %v2174_v32 = vmul.f32 %v6982_v51, %v2166_v0  ;;  %v2153_v39 = vadd.f32 -1.4531521, %v2145_v5  ;;  %v2144_v17 = vmul.f32 1.0614054, %v6986_v37  ;;  %v6988_v6 = vpop.eup %6987 }
 0xc0f   :  { %v6990_v50 = vpop.eup %6989 }
 0xc10   :  { %v2191_v35 = vmul.f32 %v6980_v52, %v2183_v34  ;;  %v2182_v44 = vadd.f32 -0.28449672, %v2174_v32  ;;  %v2161_v45 = vmul.f32 %v6984_v28, %v2153_v39  ;;  %v2152_v21 = vadd.f32 -1.4531521, %v2144_v17  ;;  %v6992_v5 = vpop.eup %6991 }
 0xc11   :  { %v2078_v39 = vmul.f32 0.5, %v7924_v31 }
 0xc12   :  { %v2199_v2 = vadd.f32 0.2548296, %v2191_v35  ;;  %v2190_v53 = vmul.f32 %v6982_v51, %v2182_v44  ;;  %v2169_v4 = vadd.f32 1.4214138, %v2161_v45  ;;  %v2160_v3 = vmul.f32 %v6986_v37, %v2152_v21  ;;  %v6994_v44 = vpop.eup %6993 }
 0xc14   :  { %v2207_v60 = vmul.f32 %v6980_v52, %v2199_v2  ;;  %v2198_v56 = vadd.f32 0.2548296, %v2190_v53  ;;  %v2177_v54 = vmul.f32 %v6984_v28, %v2169_v4  ;;  %v2168_v13 = vadd.f32 1.4214138, %v2160_v3 }
 0xc15   :  { %v2105_v53 = vsel %vm2097_vm4, 1.0, %v7339_v22 }
 0xc16   :  { %v2247_v29 = vmul.f32 %v6988_v6, %v2207_v60  ;;  %v2206_v14 = vmul.f32 %v6982_v51, %v2198_v56  ;;  %v2185_v7 = vadd.f32 -0.28449672, %v2177_v54  ;;  %v2176_v62 = vmul.f32 %v6986_v37, %v2168_v13 }
 0xc17   :  { %v2081_v6 = vmul.f32 0.5, %v7936_v43 }
 0xc18   :  { %v2255_v23 = vsub.f32 1.0, %v2247_v29  ;;  %v2246_v52 = vmul.f32 %v6990_v50, %v2206_v14  ;;  %v2193_v20 = vmul.f32 %v6984_v28, %v2185_v7  ;;  %v2184_v10 = vadd.f32 -0.28449672, %v2176_v62 }
 0xc1a   :  { %v2263_v24 = vmul.f32 %v2255_v23, %v2103_v38  ;;  %v2254_v30 = vsub.f32 1.0, %v2246_v52  ;;  %v2201_v41 = vadd.f32 0.2548296, %v2193_v20  ;;  %v2192_v33 = vmul.f32 %v6986_v37, %v2184_v10 }
 0xc1c   :  { %v2262_v0 = vmul.f32 %v2254_v30, %v2102_v63  ;;  %v2209_v51 = vmul.f32 %v6984_v28, %v2201_v41  ;;  %v2271_v34 = vadd.f32 1.0, %v2263_v24  ;;  %v2200_v32 = vadd.f32 0.2548296, %v2192_v33 }
 0xc1e   :  { %v2270_v35 = vadd.f32 1.0, %v2262_v0  ;;  %v2249_v61 = vmul.f32 %v6992_v5, %v2209_v51  ;;  %v2208_v17 = vmul.f32 %v6986_v37, %v2200_v32  ;;  %v2279_v21 = vmul.f32 %v2271_v34, %v2079_v49 }
 0xc1f   :  { %v7340_v0 = vmov 0  }
 0xc20   :  { %v2278_v45 = vmul.f32 %v2270_v35, %v2078_v39  ;;  %v2257_v2 = vsub.f32 1.0, %v2249_v61  ;;  %v2248_v28 = vmul.f32 %v6994_v44, %v2208_v17  ;;  %6886 = vset.pattern.permute.xlu0 %v7340_v0  ;;  %6887 = vset.pattern.permute.xlu1 %v7340_v0 }
 0xc22   :  { %6574 = vmatprep.mubr.f32.mxu1 %v2278_v45  ;;  %v2265_v4 = vmul.f32 %v2257_v2, %v2105_v53  ;;  %v2256_v31 = vsub.f32 1.0, %v2248_v28 }
 0xc23   :  { %6575 = vmatmul.mubr.f32.vlgmr.msra.gmra.mxu1 %v2279_v21 }
 0xc24   :  { %v2264_v60 = vmul.f32 %v2256_v31, %v2104_v19  ;;  %v2273_v3 = vadd.f32 1.0, %v2265_v4 }
 0xc26   :  { %v2272_v37 = vadd.f32 1.0, %v2264_v60  ;;  %v2281_v54 = vmul.f32 %v2273_v3, %v2081_v6 }
 0xc28   :  { %v2280_v56 = vmul.f32 %v2272_v37, %v2080_v12 }
 0xc2a   :  { %6577 = vmatprep.mubr.f32.mxu1 %v2280_v56 }
 0xc2b   :  { %6578 = vmatmul.mubr.f32.gmra.mxu1 %v2281_v54 }
 0xc6d   :  { %v1818_v29 = vpop.xlane.xlu1 %1817 }
 0xc6e   :  { %v1830_v13 = vmul.f32 0.03125, %v1818_v29 }
 0xc6f   :  { %v1815_v48 = vpop.xlane.xlu0 %1814 }
 0xc70   :  { %v1878_v23 = vmul.f32 %v1830_v13, %v1830_v13  ;;  %v1829_v62 = vmul.f32 0.03125, %v1815_v48  ;;  %v1894_v45 = vsub.f32 %v7885_v27, %v1830_v13 }
 0xc71   :  { %v1824_v14 = vpop.xlane.xlu1 %1823 }
 0xc72   :  { %v1832_v7 = vmul.f32 0.03125, %v1824_v14  ;;  %v1877_v30 = vmul.f32 %v1829_v62, %v1829_v62  ;;  %v1893_v21 = vsub.f32 %v7889_v11, %v1829_v62 }
 0xc73   :  { %v1858_v50 = vpop.xlane.xlu0 %1857 }
 0xc74   :  { %v1870_v38 = vmul.f32 0.03125, %v1858_v50  ;;  %v1880_v58 = vmul.f32 %v1832_v7, %v1832_v7  ;;  %v1896_v60 = vsub.f32 %v7895_v15, %v1832_v7  ;;  %v2401_v7 = vsub.s32 7, %v7437_v36 }
 0xc75   :  { %v1864_v52 = vpop.xlane.xlu1 %1863 }
 0xc76   :  { %v1886_v20 = vsub.f32 %v1870_v38, %v1878_v23  ;;  %v1872_v24 = vmul.f32 0.03125, %v1864_v52  ;;  %v7984_v50 = vrot.slane %v7796_v57, %v2401_v7 }
 0xc77   :  { %v1855_v10 = vpop.xlane.xlu0 %1854 }
 0xc78   :  { %v1902_v43 = vadd.f32 1e-05, %v1886_v20  ;;  %v1869_v41 = vmul.f32 0.03125, %v1855_v10  ;;  %v1888_v63 = vsub.f32 %v1872_v24, %v1880_v58 }
 0xc7a   :  { %6995 = vrsqrt.f32 %v1902_v43  ;;  %v1885_v33 = vsub.f32 %v1869_v41, %v1877_v30  ;;  %v1904_v32 = vadd.f32 1e-05, %v1888_v63 }
 0xc7b   :  { %v1821_v51 = vpop.xlane.xlu0 %1820 }
 0xc7c   :  { %v1901_v5 = vadd.f32 1e-05, %v1885_v33  ;;  %v1831_v34 = vmul.f32 0.03125, %v1821_v51 }
 0xc7e   :  { %6997 = vrsqrt.f32 %v1901_v5  ;;  %v1879_v35 = vmul.f32 %v1831_v34, %v1831_v34  ;;  %v1895_v6 = vsub.f32 %v7917_v9, %v1831_v34 }
 0xc7f   :  { %v1861_v39 = vpop.xlane.xlu0 %1860  ;;  %6999 = vrsqrt.f32 %v1904_v32 }
 0xc80   :  { %v1871_v61 = vmul.f32 0.03125, %v1861_v39  ;;  %v2556_v39 = vld [vmem:[#allocation7 + $0x10] sm:$0xff] }
 0xc82   :  { %v1887_v49 = vsub.f32 %v1871_v61, %v1879_v35  ;;  %v2557_v35 = vld [vmem:[#allocation7 + $0x18] sm:$0xff]  ;;  %v2590_v61 = vld [vmem:[#allocation5 + $0x258] sm:$0xff] }
 0xc83   :  { %6586 = vmatprep.subr.mxu0 %v2590_v61 }
 0xc84   :  { %v1903_v17 = vadd.f32 1e-05, %v1887_v49  ;;  %6587 = vmatpush3.msra.mxu0 %v2590_v61  ;;  %v2589_v49 = vld [vmem:[#allocation5 + $0x250] sm:$0xff] }
 0xc85   :  { %6588 = vmatprep.subr.mxu0 %v2589_v49 }
 0xc86   :  { %7001 = vrsqrt.f32 %v1903_v17  ;;  %v2555_v17 = vld [vmem:[#allocation7 + $0x8] sm:$0xff]  ;;  %6589 = vmatpush3.msra.mxu0 %v2589_v49 }
 0xc87   :  { %v6996_v44 = vpop.eup %6995 }
 0xc88   :  { %v1918_v2 = vmul.f32 %v6996_v44, %v1894_v45  ;;  %v2558_v44 = vld [vmem:[#allocation7 + $0x20] sm:$0xff] }
 0xc89   :  { %v2721_v45 = vld [vmem:[#allocation5 + $0x268] sm:$0xff] }
 0xc8a   :  { %v1930_v4 = vmul.f32 %v7859_v8, %v1918_v2  ;;  %v2588_v2 = vld [vmem:[#allocation5 + $0x248] sm:$0xff] }
 0xc8b   :  { %v6998_v53 = vpop.eup %6997  ;;  %6590 = vmatprep.subr.mxu0 %v2588_v2 }
 0xc8c   :  { %v1917_v28 = vmul.f32 %v6998_v53, %v1893_v21  ;;  %v7000_v31 = vpop.eup %6999  ;;  %v1942_v12 = vadd.f32 %v7867_v26, %v1930_v4  ;;  %v2723_v21 = vld [vmem:[#allocation5 + $0x278] sm:$0xff]  ;;  %6591 = vmatpush3.msra.mxu0 %v2588_v2  ;;  %v2587_v53 = vld [vmem:[#allocation5 + $0x240] sm:$0xff]  ;;  %v7341_v4 = vmov 1  }
 0xc8d   :  { %v1920_v37 = vmul.f32 %v7000_v31, %v1896_v60  ;;  %6592 = vmatprep.subr.mxu0 %v2587_v53  ;;  %v2722_v31 = vld [vmem:[#allocation5 + $0x270] sm:$0xff] }
 0xc8e   :  { %v1929_v19 = vmul.f32 %v7859_v8, %v1917_v28  ;;  %6593 = vmatpush3.msra.mxu0 %v2587_v53  ;;  %v2720_v28 = vld [vmem:[#allocation5 + $0x260] sm:$0xff] }
 0xc8f   :  { %v1932_v29 = vmul.f32 %v7859_v8, %v1920_v37 }
 0xc90   :  { %v1941_v3 = vadd.f32 %v7867_v26, %v1929_v19 }
 0xc91   :  { %v1944_v14 = vadd.f32 %v7867_v26, %v1932_v29 }
 0xc92   :  { %6536 = vmatprep.mubr.msk.f32.mxu0 %vm224_vm0, %v1941_v3 }
 0xc93   :  { %v7002_v56 = vpop.eup %7001  ;;  %6537 = vmatmul.mubr.msk.f32.gmra.mxu0 %vm224_vm0, %v1942_v12 }
 0xc94   :  { %v1919_v54 = vmul.f32 %v7002_v56, %v1895_v6 }
 0xc96   :  { %v1931_v48 = vmul.f32 %v7859_v8, %v1919_v54 }
 0xc98   :  { %v1943_v13 = vadd.f32 %v7867_v26, %v1931_v48 }
 0xc9a   :  { %6539 = vmatprep.mubr.msk.f32.mxu0 %vm224_vm0, %v1943_v13 }
 0xc9b   :  { %6540 = vmatmul.mubr.msk.f32.gmra.mxu0 %vm224_vm0, %v1944_v14 }
 0xce3   :  { %v6576_v23 = vpop.f32.mrf.mxu1 }
 0xce4   :  { %v2392_v62 = vadd.f32 %v6576_v23, %v7805_v59 }
 0xce5   :  { %v2352_v38 = vpop.f32.mrf.mxu1 }
 0xce6   :  { %v7988_v8 = vadd.f32 %v7984_v50, %v2392_v62  ;;  %v2391_v26 = vadd.f32 %v2352_v38, %v7809_v46 }
 0xce8   :  { %v7992_v52 = vadd.f32 %v7984_v50, %v2391_v26  ;;  %v2414_v20 = vsel %vm224_vm0, %v7988_v8, 0.0  ;;  %v2444_v24 = vmul.f32 %v7988_v8, %v7988_v8 }
 0xce9   :  { %2415 = vadd.xlane.f32.xlu1 %v2414_v20 }
 0xcea   :  { %v2411_v57 = vsel %vm224_vm0, %v7992_v52, 0.0  ;;  %v2443_v59 = vmul.f32 %v7992_v52, %v7992_v52  ;;  %v2454_v46 = vsel %vm224_vm0, %v2444_v24, 0.0 }
 0xceb   :  { %2412 = vadd.xlane.f32.xlu0 %v2411_v57  ;;  %v6579_v58 = vpop.f32.mrf.mxu1 }
 0xcec   :  { %v2394_v10 = vadd.f32 %v6579_v58, %v7815_v55  ;;  %v2451_v43 = vsel %vm224_vm0, %v2443_v59, 0.0 }
 0xced   :  { %2455 = vadd.xlane.f32.xlu1 %v2454_v46  ;;  %v2362_v30 = vpop.f32.mrf.mxu1 }
 0xcee   :  { %v8006_v41 = vadd.f32 %v7984_v50, %v2394_v10  ;;  %v2393_v63 = vadd.f32 %v2362_v30, %v7831_v16 }
 0xcef   :  { %2452 = vadd.xlane.f32.xlu0 %v2451_v43 }
 0xcf0   :  { %v8010_v33 = vadd.f32 %v7984_v50, %v2393_v63  ;;  %v2420_v51 = vsel %vm224_vm0, %v8006_v41, 0.0  ;;  %v2446_v5 = vmul.f32 %v8006_v41, %v8006_v41 }
 0xcf1   :  { %2421 = vadd.xlane.f32.xlu1 %v2420_v51 }
 0xcf2   :  { %v2417_v55 = vsel %vm224_vm0, %v8010_v33, 0.0  ;;  %v2445_v34 = vmul.f32 %v8010_v33, %v8010_v33  ;;  %v2460_v16 = vsel %vm224_vm0, %v2446_v5, 0.0 }
 0xcf3   :  { %2418 = vadd.xlane.f32.xlu0 %v2417_v55 }
 0xcf4   :  { %v2457_v32 = vsel %vm224_vm0, %v2445_v34, 0.0 }
 0xcf5   :  { %2461 = vadd.xlane.f32.xlu1 %v2460_v16 }
 0xcf7   :  { %2458 = vadd.xlane.f32.xlu0 %v2457_v32 }
 0xd06   :  { %2566 = vperm.xlu1 %6887, %v2556_v39  }
 0xd0a   :  { %2571 = vperm.xlu1 %6887, %v2557_v35  }
 0xd0d   :  { %2561 = vperm.xlu0 %6886, %v2555_v17  }
 0xd0e   :  { %2576 = vperm.xlu1 %6887, %v2558_v44  }
 0xd11   :  { %2731 = vperm.xlu0 %6886, %v2721_v45  }
 0xd12   :  { %6888 = vset.pattern.permute.xlu1 %v7341_v4 }
 0xd13   :  { %2753 = vperm.xlu1 %6888, %v2720_v28  }
 0xd15   :  { %2741 = vperm.xlu0 %6886, %v2723_v21  }
 0xd17   :  { %2757 = vperm.xlu1 %6888, %v2721_v45  }
 0xd19   :  { %6890 = vset.pattern.permute.xlu0 %v7341_v4 }
 0xd1b   :  { %2761 = vperm.xlu1 %6888, %v2722_v31  }
 0xd1f   :  { %2765 = vperm.xlu1 %6888, %v2723_v21  }
 0xd23   :  { %6889 = vset.pattern.permute.xlu1 %v7340_v0 }
 0xd24   :  { %2726 = vperm.xlu1 %6889, %v2720_v28  }
 0xd28   :  { %2736 = vperm.xlu1 %6889, %v2722_v31  }
 0xd53   :  { %v6538_v19 = vpop.f32.mrf.mxu0 }
 0xd54   :  { %v8024_v60 = vadd.f32 %v6538_v19, %v7906_v18 }
 0xd55   :  { %v2059_v3 = vpop.f32.mrf.mxu0 }
 0xd56   :  { %v8027_v12 = vmul.f32 0.70710677, %v8024_v60  ;;  %v8030_v37 = vadd.f32 %v2059_v3, %v7906_v18 }
 0xd58   :  { %v2115_v6 = vand.u32 2147483647, %v8027_v12  ;;  %v8034_v56 = vmul.f32 0.70710677, %v8030_v37  ;;  %vm2099_vm6 = vcmp.ge.f32.partialorder %v8027_v12, 0.0 }
 0xd5a   :  { %v2123_v54 = vmul.f32 0.3275911, %v2115_v6  ;;  %v2114_v0 = vand.u32 2147483647, %v8034_v56  ;;  %v2219_v59 = vsub.f32 0.0, %v2115_v6  ;;  %vm2098_vm7 = vcmp.ge.f32.partialorder %v8034_v56, 0.0 }
 0xd5b   :  { %v6541_v29 = vpop.f32.mrf.mxu0 }
 0xd5c   :  { %v2131_v48 = vadd.f32 1.0, %v2123_v54  ;;  %v2122_v13 = vmul.f32 0.3275911, %v2114_v0  ;;  %v8038_v14 = vadd.f32 %v6541_v29, %v7906_v18  ;;  %v2218_v30 = vsub.f32 0.0, %v2114_v0 }
 0xd5d   :  { %v2069_v23 = vpop.f32.mrf.mxu0  ;;  %v2227_v43 = vmul.f32 %v2219_v59, %v2115_v6 }
 0xd5e   :  { %7003 = vrcp.f32 %v2131_v48  ;;  %v2130_v62 = vadd.f32 1.0, %v2122_v13  ;;  %v8041_v38 = vmul.f32 0.70710677, %v8038_v14  ;;  %v8044_v26 = vadd.f32 %v2069_v23, %v7906_v18 }
 0xd5f   :  { %v2226_v18 = vmul.f32 %v2218_v30, %v2114_v0  ;;  %v2240_v5 = vmul.f32 1.442695, %v2227_v43 }
 0xd60   :  { %7005 = vrcp.f32 %v2130_v62  ;;  %v2117_v20 = vand.u32 2147483647, %v8041_v38  ;;  %v8048_v24 = vmul.f32 0.70710677, %v8044_v26  ;;  %vm2101_vm8 = vcmp.ge.f32.partialorder %v8041_v38, 0.0 }
 0xd61   :  { %v2238_v39 = vmul.f32 1.442695, %v2226_v18 }
 0xd62   :  { %v2125_v57 = vmul.f32 0.3275911, %v2117_v20  ;;  %v2116_v58 = vand.u32 2147483647, %v8048_v24  ;;  %v2221_v34 = vsub.f32 0.0, %v2117_v20  ;;  %vm2100_vm9 = vcmp.ge.f32.partialorder %v8048_v24, 0.0 }
 0xd64   :  { %v2133_v46 = vadd.f32 1.0, %v2125_v57  ;;  %v2124_v10 = vmul.f32 0.3275911, %v2116_v58  ;;  %v2220_v61 = vsub.f32 0.0, %v2116_v58  ;;  %v2229_v17 = vmul.f32 %v2221_v34, %v2117_v20 }
 0xd66   :  { %7007 = vrcp.f32 %v2133_v46  ;;  %v2132_v63 = vadd.f32 1.0, %v2124_v10  ;;  %v2228_v28 = vmul.f32 %v2220_v61, %v2116_v58  ;;  %v2244_v19 = vmul.f32 1.442695, %v2229_v17 }
 0xd68   :  { %7009 = vrcp.f32 %v2132_v63  ;;  %v2242_v20 = vmul.f32 1.442695, %v2228_v28 }
 0xd69   :  { %7011 = vpow2.f32 %v2240_v5 }
 0xd6a   :  { %7013 = vpow2.f32 %v2238_v39 }
 0xd6b   :  { %v7004_v51 = vpop.eup %7003  ;;  %7015 = vpow2.f32 %v2244_v19 }
 0xd6c   :  { %v2147_v55 = vmul.f32 1.0614054, %v7004_v51  ;;  %7017 = vpow2.f32 %v2242_v20 }
 0xd6d   :  { %v7006_v16 = vpop.eup %7005 }
 0xd6e   :  { %v2155_v32 = vadd.f32 -1.4531521, %v2147_v55  ;;  %v2146_v35 = vmul.f32 1.0614054, %v7006_v16 }
 0xd70   :  { %v2163_v49 = vmul.f32 %v7004_v51, %v2155_v32  ;;  %v2154_v44 = vadd.f32 -1.4531521, %v2146_v35 }
 0xd72   :  { %v2171_v45 = vadd.f32 1.4214138, %v2163_v49  ;;  %v2416_v2 = vpop.xlane.xlu1 %2415  ;;  %v2162_v21 = vmul.f32 %v7006_v16, %v2154_v44 }
 0xd73   :  { %v8051_v53 = vpop.eup %7007  ;;  %v8053_v4 = vmul.f32 0.03125, %v2416_v2 }
 0xd74   :  { %v2179_v31 = vmul.f32 %v7004_v51, %v2171_v45  ;;  %v2413_v3 = vpop.xlane.xlu0 %2412  ;;  %v2170_v6 = vadd.f32 1.4214138, %v2162_v21  ;;  %v2149_v54 = vmul.f32 1.0614054, %v8051_v53 }
 0xd75   :  { %v8056_v0 = vmul.f32 0.03125, %v2413_v3  ;;  %v8058_v48 = vpop.eup %7009  ;;  %v2484_v57 = vmul.f32 %v8053_v4, %v8053_v4 }
 0xd76   :  { %v2187_v29 = vadd.f32 -0.28449672, %v2179_v31  ;;  %v2456_v13 = vpop.xlane.xlu1 %2455  ;;  %v2178_v23 = vmul.f32 %v7006_v16, %v2170_v6  ;;  %v2157_v62 = vadd.f32 -1.4531521, %v2149_v54  ;;  %v2148_v30 = vmul.f32 1.0614054, %v8058_v48  ;;  %v7012_v44 = vpop.eup %7011 }
 0xd77   :  { %v2476_v59 = vmul.f32 0.03125, %v2456_v13  ;;  %v2483_v63 = vmul.f32 %v8056_v0, %v8056_v0  ;;  %v2107_v6 = vsel %vm2099_vm6, 1.0, %v7339_v22 }
 0xd78   :  { %v2195_v58 = vmul.f32 %v7004_v51, %v2187_v29  ;;  %v2453_v46 = vpop.xlane.xlu0 %2452  ;;  %v2186_v10 = vadd.f32 -0.28449672, %v2178_v23  ;;  %v2165_v43 = vmul.f32 %v8051_v53, %v2157_v62  ;;  %v2156_v32 = vadd.f32 -1.4531521, %v2148_v30 }
 0xd79   :  { %v2492_v18 = vsub.f32 %v2476_v59, %v2484_v57  ;;  %v2475_v5 = vmul.f32 0.03125, %v2453_v46 }
 0xd7a   :  { %v2203_v55 = vadd.f32 0.2548296, %v2195_v58  ;;  %v2194_v34 = vmul.f32 %v7006_v16, %v2186_v10  ;;  %v2173_v39 = vadd.f32 1.4214138, %v2165_v43  ;;  %v2422_v49 = vpop.xlane.xlu1 %2421  ;;  %v2164_v21 = vmul.f32 %v8058_v48, %v2156_v32 }
 0xd7b   :  { %v2508_v35 = vadd.f32 1e-05, %v2492_v18  ;;  %v2491_v61 = vsub.f32 %v2475_v5, %v2483_v63  ;;  %v8067_v45 = vmul.f32 0.03125, %v2422_v49  ;;  %v2106_v5 = vsel %vm2098_vm7, 1.0, %v7339_v22 }
 0xd7c   :  { %v2211_v17 = vmul.f32 %v7004_v51, %v2203_v55  ;;  %v2202_v2 = vadd.f32 0.2548296, %v2194_v34  ;;  %v2181_v28 = vmul.f32 %v8051_v53, %v2173_v39  ;;  %v2419_v19 = vpop.xlane.xlu0 %2418  ;;  %v7014_v51 = vpop.eup %7013  ;;  %v2172_v62 = vadd.f32 1.4214138, %v2164_v21 }
 0xd7d   :  { %7019 = vrsqrt.f32 %v2508_v35  ;;  %v2507_v31 = vadd.f32 1e-05, %v2491_v61  ;;  %v8074_v54 = vmul.f32 0.03125, %v2419_v19  ;;  %v2486_v57 = vmul.f32 %v8067_v45, %v8067_v45  ;;  %v7016_v61 = vpop.eup %7015 }
 0xd7e   :  { %v2251_v3 = vmul.f32 %v7012_v44, %v2211_v17  ;;  %v2210_v29 = vmul.f32 %v7006_v16, %v2202_v2  ;;  %v2462_v13 = vpop.xlane.xlu1 %2461  ;;  %v2189_v20 = vadd.f32 -0.28449672, %v2181_v28  ;;  %v2180_v12 = vmul.f32 %v8058_v48, %v2172_v62 }
 0xd7f   :  { %7021 = vrsqrt.f32 %v2507_v31  ;;  %v2478_v59 = vmul.f32 0.03125, %v2462_v13  ;;  %v2485_v16 = vmul.f32 %v8074_v54, %v8074_v54  ;;  %v2533_v35 = vsub.s32 4, %v7437_v36 }
 0xd80   :  { %v2259_v23 = vsub.f32 1.0, %v2251_v3  ;;  %v2250_v58 = vmul.f32 %v7014_v51, %v2210_v29  ;;  %v2459_v46 = vpop.xlane.xlu0 %2458  ;;  %v2197_v30 = vmul.f32 %v8051_v53, %v2189_v20  ;;  %v2188_v56 = vadd.f32 -0.28449672, %v2180_v12  ;;  %v7233_v51 = vld [vmem:[#allocation5 + $0x160] sm:$0xff] }
 0xd81   :  { %v2494_v43 = vsub.f32 %v2478_v59, %v2486_v57  ;;  %v2477_v63 = vmul.f32 0.03125, %v2459_v46  ;;  %v2082_v2 = vmul.f32 0.5, %v8030_v37  ;;  %v2083_v31 = vmul.f32 0.5, %v8024_v60 }
 0xd82   :  { %v2267_v10 = vmul.f32 %v2259_v23, %v2107_v6  ;;  %v2258_v18 = vsub.f32 1.0, %v2250_v58  ;;  %v2205_v55 = vadd.f32 0.2548296, %v2197_v30  ;;  %v2196_v17 = vmul.f32 %v8058_v48, %v2188_v56  ;;  %v7018_v6 = vpop.eup %7017 }
 0xd83   :  { %v2510_v34 = vadd.f32 1e-05, %v2494_v43  ;;  %v2493_v32 = vsub.f32 %v2477_v63, %v2485_v16  ;;  %v8092_v13 = vrot.slane %v7233_v51, %v2533_v35  ;;  %v2500_v37 = vsub.f32 %v7988_v8, %v8053_v4 }
 0xd84   :  { %v2266_v39 = vmul.f32 %v2258_v18, %v2106_v5  ;;  %v2275_v49 = vadd.f32 1.0, %v2267_v10  ;;  %v2213_v44 = vmul.f32 %v8051_v53, %v2205_v55  ;;  %v2204_v19 = vadd.f32 0.2548296, %v2196_v17 }
 0xd85   :  { %7023 = vrsqrt.f32 %v2510_v34  ;;  %v2509_v21 = vadd.f32 1e-05, %v2493_v32  ;;  %v2545_v53 = vsub.s32 5, %v7437_v36  ;;  %v2109_v20 = vsel %vm2101_vm8, 1.0, %v7339_v22 }
 0xd86   :  { %v2274_v28 = vadd.f32 1.0, %v2266_v39  ;;  %v2253_v3 = vmul.f32 %v7016_v61, %v2213_v44  ;;  %v2283_v23 = vmul.f32 %v2275_v49, %v2083_v31  ;;  %v2212_v60 = vmul.f32 %v8058_v48, %v2204_v19 }
 0xd87   :  { %7025 = vrsqrt.f32 %v2509_v21  ;;  %v2499_v57 = vsub.f32 %v7992_v52, %v8056_v0  ;;  %v8104_v8 = vrot.slane %v7233_v51, %v2545_v53  ;;  %v2108_v30 = vsel %vm2100_vm9, 1.0, %v7339_v22  ;;  %v8110_v0 = vpop.permute.xlu1 %2566 }
 0xd88   :  { %v2282_v29 = vmul.f32 %v2274_v28, %v2082_v2  ;;  %v2261_v62 = vsub.f32 1.0, %v2253_v3  ;;  %v2252_v58 = vmul.f32 %v7018_v6, %v2212_v60  ;;  %v2084_v63 = vmul.f32 0.5, %v8044_v26  ;;  %v8117_v34 = vpop.permute.xlu0 %2561 }
 0xd89   :  { %v2085_v56 = vmul.f32 0.5, %v8038_v14  ;;  %v2502_v55 = vsub.f32 %v8006_v41, %v8067_v45  ;;  %v2501_v49 = vsub.f32 %v8010_v33, %v8074_v54 }
 0xd8a   :  { %v7020_v38 = vpop.eup %7019  ;;  %6580 = vmatprep.mubr.f32.mxu1 %v2282_v29  ;;  %v2269_v4 = vmul.f32 %v2261_v62, %v2109_v20  ;;  %v2260_v12 = vsub.f32 1.0, %v2252_v58 }
 0xd8b   :  { %6581 = vmatmul.mubr.f32.gmra.mxu1 %v2283_v23  ;;  %v2524_v59 = vmul.f32 %v7020_v38, %v2500_v37  ;;  %v8124_v14 = vpop.permute.xlu1 %2571 }
 0xd8c   :  { %v7022_v46 = vpop.eup %7021  ;;  %v2268_v16 = vmul.f32 %v2260_v12, %v2108_v30  ;;  %v2277_v43 = vadd.f32 1.0, %v2269_v4 }
 0xd8d   :  { %v2523_v48 = vmul.f32 %v7022_v46, %v2499_v57  ;;  %v2536_v10 = vmul.f32 %v8092_v13, %v2524_v59 }
 0xd8e   :  { %v2276_v5 = vadd.f32 1.0, %v2268_v16  ;;  %v2285_v44 = vmul.f32 %v2277_v43, %v2085_v56 }
 0xd8f   :  { %v2535_v24 = vmul.f32 %v8092_v13, %v2523_v48  ;;  %v2548_v52 = vadd.f32 %v8104_v8, %v2536_v10  ;;  %v8132_v31 = vpop.permute.xlu1 %2576 }
 0xd90   :  { %v2284_v61 = vmul.f32 %v2276_v5, %v2084_v63 }
 0xd91   :  { %v2547_v18 = vadd.f32 %v8104_v8, %v2535_v24  ;;  %v2580_v17 = vmul.f32 %v8110_v0, %v2548_v52 }
 0xd92   :  { %v7024_v32 = vpop.eup %7023  ;;  %6583 = vmatprep.mubr.f32.mxu1 %v2284_v61 }
 0xd93   :  { %v2579_v39 = vmul.f32 %v8117_v34, %v2547_v18  ;;  %v2526_v26 = vmul.f32 %v7024_v32, %v2502_v55  ;;  %6584 = vmatmul.mubr.f32.gmra.mxu1 %v2285_v44  ;;  %v8137_v3 = vpop.permute.xlu1 %2753 }
 0xd94   :  { %v7026_v2 = vpop.eup %7025 }
 0xd95   :  { %6594 = vmatprep.mubr.msk.f32.mxu0 %vm224_vm0, %v2579_v39  ;;  %v2525_v41 = vmul.f32 %v7026_v2, %v2501_v49  ;;  %v2538_v45 = vmul.f32 %v8092_v13, %v2526_v26 }
 0xd96   :  { %6595 = vmatmul.mubr.msk.f32.vlgmr.msra.gmra.mxu0 %vm224_vm0, %v2580_v17  ;;  %v8189_v17 = vpop.permute.xlu0 %2731 }
 0xd97   :  { %v2537_v21 = vmul.f32 %v8092_v13, %v2525_v41  ;;  %v2550_v33 = vadd.f32 %v8104_v8, %v2538_v45  ;;  %v8139_v6 = vpop.permute.xlu1 %2757  ;;  %v8198_v41 = vld [vmem:[#allocation7 + $0x30] sm:$0xff] }
 0xd99   :  { %v2549_v54 = vadd.f32 %v8104_v8, %v2537_v21  ;;  %v2582_v19 = vmul.f32 %v8132_v31, %v2550_v33 }
 0xd9a   :  { %v8193_v26 = vpop.permute.xlu0 %2741 }
 0xd9b   :  { %v2581_v28 = vmul.f32 %v8124_v14, %v2549_v54  ;;  %v8142_v23 = vpop.permute.xlu1 %2761  ;;  %v8201_v54 = vld [vmem:[#allocation7 + $0x28] sm:$0xff] }
 0xd9d   :  { %6597 = vmatprep.mubr.msk.f32.mxu0 %vm224_vm0, %v2581_v28 }
 0xd9e   :  { %6598 = vmatmul.mubr.msk.f32.gmra.mxu0 %vm224_vm0, %v2582_v19 }
 0xd9f   :  { %v8147_v62 = vpop.permute.xlu1 %2765 }
 0xe4b   :  { %v6582_v58 = vpop.f32.mrf.mxu1 }
 0xe4c   :  { %v2396_v4 = vadd.f32 %v6582_v58, %v7885_v27 }
 0xe4d   :  { %v2372_v46 = vpop.f32.mrf.mxu1 }
 0xe4e   :  { %v2395_v48 = vadd.f32 %v2372_v46, %v7889_v11  ;;  %v8156_v12 = vadd.f32 %v7984_v50, %v2396_v4  ;;  %v8218_v46 = vld [vmem:[#allocation7 + $0x40] sm:$0xff] }
 0xe50   :  { %v8159_v30 = vadd.f32 %v7984_v50, %v2395_v48  ;;  %v2426_v52 = vsel %vm224_vm0, %v8156_v12, 0.0 }
 0xe52   :  { %v2447_v43 = vmul.f32 %v8159_v30, %v8159_v30  ;;  %v2423_v18 = vsel %vm224_vm0, %v8159_v30, 0.0 }
 0xe53   :  { %v6585_v10 = vpop.f32.mrf.mxu1 }
 0xe54   :  { %v2463_v11 = vsel %vm224_vm0, %v2447_v43, 0.0  ;;  %v2398_v63 = vadd.f32 %v6585_v10, %v7895_v15 }
 0xe55   :  { %v2382_v24 = vpop.f32.mrf.mxu1 }
 0xe56   :  { %v6596_v29 = vpop.f32.mrf.mxu0  ;;  %v2397_v16 = vadd.f32 %v2382_v24, %v7917_v9  ;;  %v2448_v9 = vmul.f32 %v8156_v12, %v8156_v12  ;;  %v8180_v55 = vadd.f32 %v7984_v50, %v2398_v63 }
 0xe57   :  { %v2769_v51 = vmul.f32 %v6596_v29, %v8139_v6  ;;  %v2745_v2 = vmul.f32 %v6596_v29, %v8189_v17 }
 0xe58   :  { %v2681_v37 = vpop.f32.mrf.mxu0  ;;  %v8167_v27 = vadd.f32 %v7984_v50, %v2397_v16  ;;  %v2466_v32 = vsel %vm224_vm0, %v2448_v9, 0.0  ;;  %v2432_v39 = vsel %vm224_vm0, %v8180_v55, 0.0  ;;  %v2450_v61 = vmul.f32 %v8180_v55, %v8180_v55  ;;  %v8191_v50 = vpop.permute.xlu1 %2726  ;;  %v8222_v16 = vld [vmem:[#allocation7 + $0x38] sm:$0xff] }
 0xe59   :  { %v2768_v60 = vmul.f32 %v8137_v3, %v2681_v37  ;;  %2786 = vrot.lane.b32.xlu0 %v2769_v51, %s7332_s0  ;;  %v2744_v21 = vmul.f32 %v8191_v50, %v2681_v37 }
 0xe5a   :  { %v2429_v5 = vsel %vm224_vm0, %v8167_v27, 0.0  ;;  %v2449_v56 = vmul.f32 %v8167_v27, %v8167_v27  ;;  %v2472_v49 = vsel %vm224_vm0, %v2450_v61, 0.0  ;;  %v2829_v61 = vld [vmem:[#allocation5 + $0x178] sm:$0xff] }
 0xe5b   :  { %2784 = vrot.lane.b32.xlu1 %v2768_v60, %s7332_s0 }
 0xe5c   :  { %v2469_v15 = vsel %vm224_vm0, %v2449_v56, 0.0  ;;  %v8195_v44 = vpop.permute.xlu1 %2736 }
 0xe5e   :  { %v6599_v38 = vpop.f32.mrf.mxu0 }
 0xe5f   :  { %v2771_v20 = vmul.f32 %v6599_v38, %v8147_v62  ;;  %v2747_v58 = vmul.f32 %v6599_v38, %v8193_v26 }
 0xe60   :  { %v2691_v57 = vpop.f32.mrf.mxu0 }
 0xe61   :  { %v2770_v59 = vmul.f32 %v8142_v23, %v2691_v57  ;;  %2790 = vrot.lane.b32.xlu0 %v2771_v20, %s7332_s0  ;;  %v2746_v10 = vmul.f32 %v8195_v44, %v2691_v57 }
 0xe63   :  { %2788 = vrot.lane.b32.xlu1 %v2770_v59, %s7332_s0 }
 0xe80   :  { %2427 = vadd.xlane.f32.xlu0 %v2426_v52 }
 0xe84   :  { %2464 = vadd.xlane.f32.xlu0 %v2463_v11 }
 0xe87   :  { %2424 = vadd.xlane.f32.xlu1 %v2423_v18 }
 0xe88   :  { %2430 = vadd.xlane.f32.xlu0 %v2429_v5 }
 0xe8b   :  { %2467 = vadd.xlane.f32.xlu1 %v2466_v32 }
 0xe8c   :  { %2470 = vadd.xlane.f32.xlu0 %v2469_v15  ;;  %v2831_v15 = vld [vmem:[#allocation5 + $0x188] sm:$0xff] }
 0xe8d   :  { %6606 = vmatprep.subr.mxu0 %v2831_v15 }
 0xe8e   :  { %6607 = vmatpush3.msra.mxu0 %v2831_v15 }
 0xe8f   :  { %2433 = vadd.xlane.f32.xlu1 %v2432_v39  ;;  %v2830_v39 = vld [vmem:[#allocation5 + $0x180] sm:$0xff] }
 0xe90   :  { %6608 = vmatprep.subr.mxu0 %v2830_v39 }
 0xe91   :  { %6609 = vmatpush3.msra.mxu0 %v2830_v39 }
 0xe92   :  { %6610 = vmatprep.subr.mxu0 %v2829_v61 }
 0xe93   :  { %2473 = vadd.xlane.f32.xlu1 %v2472_v49  ;;  %v2828_v49 = vld [vmem:[#allocation5 + $0x170] sm:$0xff]  ;;  %6611 = vmatpush3.msra.mxu0 %v2829_v61 }
 0xe94   :  { %6612 = vmatprep.subr.mxu0 %v2828_v49 }
 0xe95   :  { %6613 = vmatpush3.msra.mxu0 %v2828_v49 }
 0xecb   :  { %v2787_v45 = vpop.permute.xlu0 %2786 }
 0xecc   :  { %v2809_v33 = vadd.f32 %v2787_v45, %v2745_v2 }
 0xecd   :  { %v2785_v28 = vpop.permute.xlu1 %2784 }
 0xece   :  { %v8204_v19 = vadd.f32 %v8198_v41, %v2809_v33  ;;  %v2808_v51 = vadd.f32 %v2785_v28, %v2744_v21 }
 0xed0   :  { %v8207_v60 = vadd.f32 %v8201_v54, %v2808_v51  ;;  %v2857_v20 = vsel %vm224_vm0, %v8204_v19, 0.0  ;;  %v2887_v29 = vmul.f32 %v8204_v19, %v8204_v19 }
 0xed1   :  { %2858 = vadd.xlane.f32.xlu1 %v2857_v20 }
 0xed2   :  { %v2854_v37 = vsel %vm224_vm0, %v8207_v60, 0.0  ;;  %v2886_v59 = vmul.f32 %v8207_v60, %v8207_v60  ;;  %v2897_v48 = vsel %vm224_vm0, %v2887_v29, 0.0 }
 0xed3   :  { %2855 = vadd.xlane.f32.xlu0 %v2854_v37  ;;  %v2791_v4 = vpop.permute.xlu0 %2790 }
 0xed4   :  { %v2811_v24 = vadd.f32 %v2791_v4, %v2747_v58  ;;  %v2894_v43 = vsel %vm224_vm0, %v2886_v59, 0.0 }
 0xed5   :  { %2898 = vadd.xlane.f32.xlu1 %v2897_v48  ;;  %v2789_v52 = vpop.permute.xlu1 %2788 }
 0xed6   :  { %v8226_v11 = vadd.f32 %v8218_v46, %v2811_v24  ;;  %v2810_v63 = vadd.f32 %v2789_v52, %v2746_v10 }
 0xed7   :  { %2895 = vadd.xlane.f32.xlu0 %v2894_v43 }
 0xed8   :  { %v8229_v38 = vadd.f32 %v8222_v16, %v2810_v63  ;;  %v2863_v18 = vsel %vm224_vm0, %v8226_v11, 0.0  ;;  %v2889_v57 = vmul.f32 %v8226_v11, %v8226_v11 }
 0xed9   :  { %2864 = vadd.xlane.f32.xlu1 %v2863_v18 }
 0xeda   :  { %v2860_v9 = vsel %vm224_vm0, %v8229_v38, 0.0  ;;  %v2888_v5 = vmul.f32 %v8229_v38, %v8229_v38  ;;  %v2903_v56 = vsel %vm224_vm0, %v2889_v57, 0.0 }
 0xedb   :  { %2861 = vadd.xlane.f32.xlu0 %v2860_v9 }
 0xedc   :  { %v2900_v32 = vsel %vm224_vm0, %v2888_v5, 0.0 }
 0xedd   :  { %2904 = vadd.xlane.f32.xlu1 %v2903_v56 }
 0xedf   :  { %2901 = vadd.xlane.f32.xlu0 %v2900_v32 }
 0xf09   :  { %v2428_v2 = vpop.xlane.xlu0 %2427 }
 0xf0a   :  { %v2440_v33 = vmul.f32 0.03125, %v2428_v2 }
 0xf0c   :  { %v2488_v58 = vmul.f32 %v2440_v33, %v2440_v33 }
 0xf0d   :  { %v2465_v45 = vpop.xlane.xlu0 %2464 }
 0xf0e   :  { %v2479_v29 = vmul.f32 0.03125, %v2465_v45 }
 0xf10   :  { %v2425_v21 = vpop.xlane.xlu1 %2424 }
 0xf11   :  { %v2439_v28 = vmul.f32 0.03125, %v2425_v21  ;;  %v2431_v51 = vpop.xlane.xlu0 %2430  ;;  %v2504_v21 = vsub.f32 %v8156_v12, %v2440_v33 }
 0xf12   :  { %v2441_v20 = vmul.f32 0.03125, %v2431_v51 }
 0xf13   :  { %v2487_v37 = vmul.f32 %v2439_v28, %v2439_v28  ;;  %v2503_v2 = vsub.f32 %v8159_v30, %v2439_v28 }
 0xf14   :  { %v2468_v59 = vpop.xlane.xlu1 %2467  ;;  %v2489_v24 = vmul.f32 %v2441_v20, %v2441_v20 }
 0xf15   :  { %v2495_v4 = vsub.f32 %v2479_v29, %v2487_v37  ;;  %v2480_v48 = vmul.f32 0.03125, %v2468_v59  ;;  %v2471_v10 = vpop.xlane.xlu0 %2470  ;;  %v2505_v37 = vsub.f32 %v8167_v27, %v2441_v20 }
 0xf16   :  { %v2481_v52 = vmul.f32 0.03125, %v2471_v10 }
 0xf17   :  { %v2511_v43 = vadd.f32 1e-05, %v2495_v4  ;;  %v2496_v63 = vsub.f32 %v2480_v48, %v2488_v58 }
 0xf18   :  { %v2497_v18 = vsub.f32 %v2481_v52, %v2489_v24  ;;  %v2434_v57 = vpop.xlane.xlu1 %2433 }
 0xf19   :  { %7027 = vrsqrt.f32 %v2511_v43  ;;  %v2512_v9 = vadd.f32 1e-05, %v2496_v63  ;;  %v2442_v5 = vmul.f32 0.03125, %v2434_v57 }
 0xf1a   :  { %v2513_v56 = vadd.f32 1e-05, %v2497_v18 }
 0xf1b   :  { %7029 = vrsqrt.f32 %v2512_v9  ;;  %v2490_v15 = vmul.f32 %v2442_v5, %v2442_v5  ;;  %v2506_v33 = vsub.f32 %v8180_v55, %v2442_v5 }
 0xf1c   :  { %7031 = vrsqrt.f32 %v2513_v56  ;;  %v2474_v32 = vpop.xlane.xlu1 %2473 }
 0xf1d   :  { %v2482_v39 = vmul.f32 0.03125, %v2474_v32 }
 0xf1f   :  { %v2498_v61 = vsub.f32 %v2482_v39, %v2490_v15 }
 0xf21   :  { %v2514_v49 = vadd.f32 1e-05, %v2498_v61 }
 0xf23   :  { %7033 = vrsqrt.f32 %v2514_v49 }
 0xf26   :  { %v7028_v45 = vpop.eup %7027 }
 0xf27   :  { %v2527_v51 = vmul.f32 %v7028_v45, %v2503_v2 }
 0xf28   :  { %v7030_v29 = vpop.eup %7029 }
 0xf29   :  { %v7032_v59 = vpop.eup %7031  ;;  %v2539_v58 = vmul.f32 %v8092_v13, %v2527_v51  ;;  %v2528_v4 = vmul.f32 %v7030_v29, %v2504_v21 }
 0xf2a   :  { %v2529_v48 = vmul.f32 %v7032_v59, %v2505_v37 }
 0xf2b   :  { %v2551_v10 = vadd.f32 %v8104_v8, %v2539_v58  ;;  %v2540_v24 = vmul.f32 %v8092_v13, %v2528_v4 }
 0xf2c   :  { %v2541_v52 = vmul.f32 %v8092_v13, %v2529_v48 }
 0xf2d   :  { %v2583_v30 = vmul.f32 %v8117_v34, %v2551_v10  ;;  %v2552_v28 = vadd.f32 %v8104_v8, %v2540_v24 }
 0xf2e   :  { %v2553_v12 = vadd.f32 %v8104_v8, %v2541_v52 }
 0xf2f   :  { %6600 = vmatprep.mubr.msk.f32.mxu0 %vm224_vm0, %v2583_v30  ;;  %v2584_v27 = vmul.f32 %v8110_v0, %v2552_v28  ;;  %v2852_v28 = vld [vmem:[#allocation5 + $0x230] sm:$0xff] }
 0xf30   :  { %v7034_v20 = vpop.eup %7033  ;;  %v2585_v43 = vmul.f32 %v8124_v14, %v2553_v12 }
 0xf31   :  { %6601 = vmatmul.mubr.msk.f32.gmra.mxu0 %vm224_vm0, %v2584_v27  ;;  %v2530_v63 = vmul.f32 %v7034_v20, %v2506_v33  ;;  %v8263_v27 = vrot.slane %v2852_v28, %v7440_v42 }
 0xf32   :  { %6603 = vmatprep.mubr.msk.f32.mxu0 %vm224_vm0, %v2585_v43 }
 0xf33   :  { %v2542_v34 = vmul.f32 %v8092_v13, %v2530_v63 }
 0xf35   :  { %v2554_v18 = vadd.f32 %v8104_v8, %v2542_v34 }
 0xf37   :  { %v2586_v57 = vmul.f32 %v8132_v31, %v2554_v18  ;;  %v8267_v18 = vrot.slane %v2852_v28, %v7447_v47 }
 0xf39   :  { %6604 = vmatmul.mubr.msk.f32.gmra.mxu0 %vm224_vm0, %v2586_v57 }
 0xf5a   :  { %v2859_v55 = vpop.xlane.xlu1 %2858 }
 0xf5b   :  { %v2879_v9 = vmul.f32 0.03125, %v2859_v55 }
 0xf5c   :  { %v2856_v5 = vpop.xlane.xlu0 %2855 }
 0xf5d   :  { %v2878_v0 = vmul.f32 0.03125, %v2856_v5  ;;  %v2927_v32 = vmul.f32 %v2879_v9, %v2879_v9  ;;  %v2943_v12 = vsub.f32 %v8204_v19, %v2879_v9 }
 0xf5e   :  { %v2899_v56 = vpop.xlane.xlu1 %2898 }
 0xf5f   :  { %v2919_v14 = vmul.f32 0.03125, %v2899_v56  ;;  %v2926_v39 = vmul.f32 %v2878_v0, %v2878_v0  ;;  %v2942_v20 = vsub.f32 %v8207_v60, %v2878_v0 }
 0xf60   :  { %v2896_v15 = vpop.xlane.xlu0 %2895 }
 0xf61   :  { %v2935_v61 = vsub.f32 %v2919_v14, %v2927_v32  ;;  %v2918_v49 = vmul.f32 0.03125, %v2896_v15 }
 0xf62   :  { %v2865_v13 = vpop.xlane.xlu1 %2864 }
 0xf63   :  { %v2951_v2 = vadd.f32 1e-05, %v2935_v61  ;;  %v2934_v45 = vsub.f32 %v2918_v49, %v2926_v39  ;;  %v2881_v21 = vmul.f32 0.03125, %v2865_v13 }
 0xf64   :  { %v2862_v31 = vpop.xlane.xlu0 %2861 }
 0xf65   :  { %7035 = vrsqrt.f32 %v2951_v2  ;;  %v2950_v8 = vadd.f32 1e-05, %v2934_v45  ;;  %v2880_v51 = vmul.f32 0.03125, %v2862_v31  ;;  %v2929_v37 = vmul.f32 %v2881_v21, %v2881_v21 }
 0xf66   :  { %v2905_v29 = vpop.xlane.xlu1 %2904  ;;  %v2945_v9 = vsub.f32 %v8226_v11, %v2881_v21 }
 0xf67   :  { %7037 = vrsqrt.f32 %v2950_v8  ;;  %v2921_v59 = vmul.f32 0.03125, %v2905_v29  ;;  %v2928_v4 = vmul.f32 %v2880_v51, %v2880_v51  ;;  %v2944_v0 = vsub.f32 %v8229_v38, %v2880_v51  ;;  %v2853_v51 = vld [vmem:[#allocation5 + $0x238] sm:$0x3] }
 0xf68   :  { %v2902_v58 = vpop.xlane.xlu0 %2901 }
 0xf69   :  { %v2937_v48 = vsub.f32 %v2921_v59, %v2929_v37  ;;  %v2920_v10 = vmul.f32 0.03125, %v2902_v58  ;;  %v8290_v37 = vrot.slane %v2853_v51, %v7440_v42 }
 0xf6b   :  { %v2953_v24 = vadd.f32 1e-05, %v2937_v48  ;;  %v2936_v52 = vsub.f32 %v2920_v10, %v2928_v4 }
 0xf6d   :  { %7039 = vrsqrt.f32 %v2953_v24  ;;  %v2952_v30 = vadd.f32 1e-05, %v2936_v52 }
 0xf6f   :  { %7041 = vrsqrt.f32 %v2952_v30 }
 0xf72   :  { %v7036_v33 = vpop.eup %7035 }
 0xf73   :  { %v2967_v43 = vmul.f32 %v7036_v33, %v2943_v12 }
 0xf74   :  { %v7038_v63 = vpop.eup %7037 }
 0xf75   :  { %v2966_v34 = vmul.f32 %v7038_v63, %v2942_v20  ;;  %v2979_v57 = vmul.f32 %v8263_v27, %v2967_v43 }
 0xf77   :  { %v2978_v55 = vmul.f32 %v8263_v27, %v2966_v34  ;;  %v2991_v56 = vadd.f32 %v8267_v18, %v2979_v57 }
 0xf79   :  { %v2990_v5 = vadd.f32 %v8267_v18, %v2978_v55 }
 0xf7a   :  { %v7040_v32 = vpop.eup %7039 }
 0xf7b   :  { %6614 = vmatprep.mubr.msk.f32.mxu0 %vm224_vm0, %v2990_v5  ;;  %v2969_v14 = vmul.f32 %v7040_v32, %v2945_v9 }
 0xf7c   :  { %6615 = vmatmul.mubr.msk.f32.vlgmr.msra.gmra.mxu0 %vm224_vm0, %v2991_v56  ;;  %v7042_v15 = vpop.eup %7041 }
 0xf7d   :  { %v2968_v39 = vmul.f32 %v7042_v15, %v2944_v0  ;;  %v2981_v61 = vmul.f32 %v8263_v27, %v2969_v14 }
 0xf7f   :  { %v2980_v49 = vmul.f32 %v8263_v27, %v2968_v39  ;;  %v2993_v45 = vadd.f32 %v8267_v18, %v2981_v61 }
 0xf81   :  { %v2992_v2 = vadd.f32 %v8267_v18, %v2980_v49 }
 0xf83   :  { %6617 = vmatprep.mubr.msk.f32.mxu0 %vm224_vm0, %v2992_v2 }
 0xf84   :  { %6618 = vmatmul.mubr.msk.f32.gmra.mxu0 %vm224_vm0, %v2993_v45 }
 0xff1   :  { %v8283_v13 = vpop.f32.mrf.mxu0 }
 0xff2   :  { %v2773_v20 = vmul.f32 %v8283_v13, %v8139_v6  ;;  %v2749_v61 = vmul.f32 %v8283_v13, %v8189_v17 }
 0xff3   :  { %v2701_v21 = vpop.f32.mrf.mxu0 }
 0xff4   :  { %v2772_v12 = vmul.f32 %v8137_v3, %v2701_v21  ;;  %v2748_v0 = vmul.f32 %v8191_v50, %v2701_v21 }
 0xff9   :  { %v8285_v8 = vpop.f32.mrf.mxu0 }
 0xffa   :  { %v2775_v43 = vmul.f32 %v8285_v8, %v8147_v62  ;;  %v2751_v2 = vmul.f32 %v8285_v8, %v8193_v26 }
 0xffb   :  { %v8287_v31 = vpop.f32.mrf.mxu0 }
 0xffc   :  { %v2774_v63 = vmul.f32 %v8142_v23, %v8287_v31  ;;  %v2750_v17 = vmul.f32 %v8195_v44, %v8287_v31 }
0x103c   :  { %v6616_v29 = vpop.f32.mrf.mxu0 }
0x103d   :  { %v8308_v42 = vadd.f32 %v6616_v29, %v8290_v37 }
0x103e   :  { %v3092_v59 = vpop.f32.mrf.mxu0 }
0x103f   :  { %v8293_v58 = vadd.f32 %v3092_v59, %v8290_v37  ;;  %v3132_v30 = vmul.f32 0.25, %v8308_v42 }
0x1041   :  { %v3131_v4 = vmul.f32 0.25, %v8293_v58 }
0x1043   :  { %6634 = vmatprep.mubr.msk.f32.mxu1 %vm523_vm1, %v3131_v4 }
0x1044   :  { %v6619_v48 = vpop.f32.mrf.mxu0 }
0x1045   :  { %v8298_v10 = vadd.f32 %v6619_v48, %v8290_v37 }
0x1046   :  { %v3102_v24 = vpop.f32.mrf.mxu0 }
0x1047   :  { %v8301_v52 = vadd.f32 %v3102_v24, %v8290_v37  ;;  %3145 = vrot.lane.b32.xlu0 %v8298_v10, %s7332_s0  ;;  %v3134_v33 = vmul.f32 0.25, %v8298_v10 }
0x1049   :  { %3143 = vrot.lane.b32.xlu1 %v8301_v52, %s7332_s0  ;;  %v3133_v28 = vmul.f32 0.25, %v8301_v52 }
0x104b   :  { %3139 = vrot.lane.b32.xlu0 %v8293_v58, %s7332_s0 }
0x104d   :  { %3141 = vrot.lane.b32.xlu1 %v8308_v42, %s7332_s0 }
0x104f   :  { %3417 = vrot.lane.b32.xlu0 %v8301_v52, %s7333_s2 }
0x1051   :  { %3419 = vrot.lane.b32.xlu1 %v8298_v10, %s7333_s2 }
0x1053   :  { %3413 = vrot.lane.b32.xlu0 %v8293_v58, %s7333_s2 }
0x1055   :  { %3415 = vrot.lane.b32.xlu1 %v8308_v42, %s7333_s2 }
0x1057   :  { %3407 = vrot.lane.b32.xlu0 %v3132_v30, %s7334_s28 }
0x1059   :  { %3405 = vrot.lane.b32.xlu1 %v3131_v4, %s7334_s28 }
0x105b   :  { %3409 = vrot.lane.b32.xlu0 %v3133_v28, %s7334_s28 }
0x105d   :  { %2792 = vrot.lane.b32.xlu1 %v2772_v12, %s7332_s0 }
0x105f   :  { %3411 = vrot.lane.b32.xlu0 %v3134_v33, %s7334_s28 }
0x1061   :  { %2794 = vrot.lane.b32.xlu1 %v2773_v20, %s7332_s0 }
0x1063   :  { %2798 = vrot.lane.b32.xlu0 %v2775_v43, %s7332_s0 }
0x1065   :  { %2796 = vrot.lane.b32.xlu1 %v2774_v63, %s7332_s0 }
0x10b9   :  { %v3146_v3 = vpop.permute.xlu0 %3145 }
0x10ba   :  { %6626 = vmatprep.subr.msk.mxu1 %vm523_vm1, %v3146_v3 }
0x10bb   :  { %6627 = vmatpush3.xpose.msk.msra.mxu1 %vm523_vm1, %v3146_v3  ;;  %v3144_v6 = vpop.permute.xlu1 %3143 }
0x10bc   :  { %6628 = vmatprep.subr.msk.mxu1 %vm523_vm1, %v3144_v6 }
0x10bd   :  { %v3140_v34 = vpop.permute.xlu0 %3139 }
0x10bf   :  { %6629 = vmatpush3.xpose.msk.msra.mxu1 %vm523_vm1, %v3144_v6  ;;  %v3142_v62 = vpop.permute.xlu1 %3141 }
0x10c0   :  { %6630 = vmatprep.subr.msk.mxu1 %vm523_vm1, %v3142_v62 }
0x10c1   :  { %v3418_v57 = vpop.permute.xlu0 %3417 }
0x10c3   :  { %6631 = vmatpush3.xpose.msk.msra.mxu1 %vm523_vm1, %v3142_v62  ;;  %v3420_v23 = vpop.permute.xlu1 %3419 }
0x10c4   :  { %6632 = vmatprep.subr.msk.mxu1 %vm523_vm1, %v3140_v34 }
0x10c5   :  { %v3414_v55 = vpop.permute.xlu0 %3413 }
0x10c7   :  { %6633 = vmatpush3.xpose.msk.msra.mxu1 %vm523_vm1, %v3140_v34  ;;  %v3416_v5 = vpop.permute.xlu1 %3415 }
0x10c8   :  { %6654 = vmatprep.subr.msk.mxu1 %vm523_vm1, %v3420_v23 }
0x10c9   :  { %v3408_v9 = vpop.permute.xlu0 %3407 }
0x10ca   :  { %6635 = vmatmul.mubr.msk.f32.vlgmr.msra.gmra.mxu1 %vm523_vm1, %v3132_v30 }
0x10cb   :  { %6655 = vmatpush3.xpose.msk.msra.mxu1 %vm523_vm1, %v3420_v23  ;;  %v3406_v56 = vpop.permute.xlu1 %3405  ;;  %6637 = vmatprep.mubr.msk.f32.mxu1 %vm523_vm1, %v3133_v28 }
0x10cc   :  { %6656 = vmatprep.subr.msk.mxu1 %vm523_vm1, %v3418_v57 }
0x10cd   :  { %v3410_v32 = vpop.permute.xlu0 %3409 }
0x10ce   :  { %6638 = vmatmul.mubr.msk.f32.gmra.mxu1 %vm523_vm1, %v3134_v33 }
0x10cf   :  { %6657 = vmatpush3.xpose.msk.msra.mxu1 %vm523_vm1, %v3418_v57  ;;  %v2793_v14 = vpop.permute.xlu1 %2792  ;;  %6662 = vmatprep.mubr.msk.f32.mxu1 %vm523_vm1, %v3406_v56 }
0x10d0   :  { %v2812_v15 = vadd.f32 %v2793_v14, %v2748_v0  ;;  %6658 = vmatprep.subr.msk.mxu1 %vm523_vm1, %v3416_v5 }
0x10d1   :  { %v3412_v39 = vpop.permute.xlu0 %3411 }
0x10d2   :  { %v8361_v49 = vadd.f32 %v8201_v54, %v2812_v15 }
0x10d3   :  { %6659 = vmatpush3.xpose.msk.msra.mxu1 %vm523_vm1, %v3416_v5  ;;  %v2795_v50 = vpop.permute.xlu1 %2794 }
0x10d4   :  { %v2813_v45 = vadd.f32 %v2795_v50, %v2749_v61  ;;  %6660 = vmatprep.subr.msk.mxu1 %vm523_vm1, %v3414_v55  ;;  %v2866_v21 = vsel %vm224_vm0, %v8361_v49, 0.0  ;;  %v2890_v4 = vmul.f32 %v8361_v49, %v8361_v49 }
0x10d5   :  { %2867 = vadd.xlane.f32.xlu1 %v2866_v21  ;;  %v2799_v51 = vpop.permute.xlu0 %2798 }
0x10d6   :  { %v8372_v54 = vadd.f32 %v8198_v41, %v2813_v45  ;;  %v2815_v13 = vadd.f32 %v2799_v51, %v2751_v2  ;;  %v2906_v48 = vsel %vm224_vm0, %v2890_v4, 0.0 }
0x10d7   :  { %6661 = vmatpush3.xpose.msk.msra.mxu1 %vm523_vm1, %v3414_v55  ;;  %v2797_v29 = vpop.permute.xlu1 %2796 }
0x10d8   :  { %v2814_v59 = vadd.f32 %v2797_v29, %v2750_v17  ;;  %v2869_v26 = vsel %vm224_vm0, %v8372_v54, 0.0  ;;  %v2891_v8 = vmul.f32 %v8372_v54, %v8372_v54  ;;  %v8382_v44 = vadd.f32 %v8218_v46, %v2815_v13 }
0x10d9   :  { %2870 = vadd.xlane.f32.xlu0 %v2869_v26 }
0x10da   :  { %6663 = vmatmul.mubr.msk.f32.vlgmr.msra.gmra.mxu1 %vm523_vm1, %v3408_v9  ;;  %v2909_v41 = vsel %vm224_vm0, %v2891_v8, 0.0  ;;  %v8388_v31 = vadd.f32 %v8222_v16, %v2814_v59  ;;  %v2875_v24 = vsel %vm224_vm0, %v8382_v44, 0.0  ;;  %v2893_v46 = vmul.f32 %v8382_v44, %v8382_v44 }
0x10db   :  { %2910 = vadd.xlane.f32.xlu1 %v2909_v41  ;;  %6665 = vmatprep.mubr.msk.f32.mxu1 %vm523_vm1, %v3410_v32 }
0x10dc   :  { %v2872_v30 = vsel %vm224_vm0, %v8388_v31, 0.0  ;;  %v2892_v28 = vmul.f32 %v8388_v31, %v8388_v31  ;;  %v2915_v16 = vsel %vm224_vm0, %v2893_v46, 0.0 }
0x10dd   :  { %2907 = vadd.xlane.f32.xlu0 %v2906_v48 }
0x10de   :  { %6666 = vmatmul.mubr.msk.f32.gmra.mxu1 %vm523_vm1, %v3412_v39  ;;  %v2912_v12 = vsel %vm224_vm0, %v2892_v28, 0.0 }
0x10df   :  { %2876 = vadd.xlane.f32.xlu1 %v2875_v24 }
0x10e1   :  { %2873 = vadd.xlane.f32.xlu0 %v2872_v30 }
0x10e3   :  { %2916 = vadd.xlane.f32.xlu1 %v2915_v16 }
0x10e5   :  { %2913 = vadd.xlane.f32.xlu0 %v2912_v12 }
0x115e   :  { %v2868_v33 = vpop.xlane.xlu1 %2867 }
0x115f   :  { %v2882_v43 = vmul.f32 0.03125, %v2868_v33 }
0x1161   :  { %v2930_v57 = vmul.f32 %v2882_v43, %v2882_v43  ;;  %v2946_v8 = vsub.f32 %v8361_v49, %v2882_v43 }
0x1162   :  { %v2871_v20 = vpop.xlane.xlu0 %2870 }
0x1163   :  { %v2883_v63 = vmul.f32 0.03125, %v2871_v20 }
0x1164   :  { %v2911_v3 = vpop.xlane.xlu1 %2910 }
0x1165   :  { %v2931_v6 = vmul.f32 %v2883_v63, %v2883_v63  ;;  %v2923_v34 = vmul.f32 0.03125, %v2911_v3  ;;  %v2947_v59 = vsub.f32 %v8372_v54, %v2883_v63 }
0x1166   :  { %v2908_v62 = vpop.xlane.xlu0 %2907 }
0x1167   :  { %v2939_v23 = vsub.f32 %v2923_v34, %v2931_v6  ;;  %v2922_v55 = vmul.f32 0.03125, %v2908_v62 }
0x1168   :  { %v2877_v5 = vpop.xlane.xlu1 %2876 }
0x1169   :  { %v2955_v9 = vadd.f32 1e-05, %v2939_v23  ;;  %v2938_v56 = vsub.f32 %v2922_v55, %v2930_v57  ;;  %v2885_v32 = vmul.f32 0.03125, %v2877_v5 }
0x116a   :  { %v2874_v0 = vpop.xlane.xlu0 %2873 }
0x116b   :  { %7043 = vrsqrt.f32 %v2955_v9  ;;  %v2954_v14 = vadd.f32 1e-05, %v2938_v56  ;;  %v2884_v15 = vmul.f32 0.03125, %v2874_v0  ;;  %v2933_v61 = vmul.f32 %v2885_v32, %v2885_v32 }
0x116c   :  { %v2917_v39 = vpop.xlane.xlu1 %2916  ;;  %v2949_v30 = vsub.f32 %v8382_v44, %v2885_v32 }
0x116d   :  { %7045 = vrsqrt.f32 %v2954_v14  ;;  %v2925_v50 = vmul.f32 0.03125, %v2917_v39  ;;  %v2932_v45 = vmul.f32 %v2884_v15, %v2884_v15  ;;  %v2948_v33 = vsub.f32 %v8388_v31, %v2884_v15 }
0x116e   :  { %v2914_v2 = vpop.xlane.xlu0 %2913 }
0x116f   :  { %v2941_v21 = vsub.f32 %v2925_v50, %v2933_v61  ;;  %v2924_v51 = vmul.f32 0.03125, %v2914_v2 }
0x1171   :  { %v2957_v17 = vadd.f32 1e-05, %v2941_v21  ;;  %v2940_v13 = vsub.f32 %v2924_v51, %v2932_v45 }
0x1173   :  { %7047 = vrsqrt.f32 %v2957_v17  ;;  %v2956_v29 = vadd.f32 1e-05, %v2940_v13 }
0x1175   :  { %7049 = vrsqrt.f32 %v2956_v29 }
0x1178   :  { %v7044_v26 = vpop.eup %7043 }
0x1179   :  { %v2971_v4 = vmul.f32 %v7044_v26, %v2947_v59 }
0x117a   :  { %v7046_v41 = vpop.eup %7045 }
0x117b   :  { %v2970_v48 = vmul.f32 %v7046_v41, %v2946_v8  ;;  %v2983_v24 = vmul.f32 %v8263_v27, %v2971_v4 }
0x117d   :  { %v2982_v46 = vmul.f32 %v8263_v27, %v2970_v48  ;;  %v2995_v12 = vadd.f32 %v8267_v18, %v2983_v24 }
0x117f   :  { %v2994_v28 = vadd.f32 %v8267_v18, %v2982_v46 }
0x1180   :  { %v7048_v16 = vpop.eup %7047 }
0x1181   :  { %6620 = vmatprep.mubr.msk.f32.mxu0 %vm224_vm0, %v2994_v28  ;;  %v2973_v20 = vmul.f32 %v7048_v16, %v2949_v30 }
0x1182   :  { %v7050_v43 = vpop.eup %7049  ;;  %6621 = vmatmul.mubr.msk.f32.gmra.mxu0 %vm224_vm0, %v2995_v12 }
0x1183   :  { %v2972_v63 = vmul.f32 %v7050_v43, %v2948_v33  ;;  %v2985_v3 = vmul.f32 %v8263_v27, %v2973_v20 }
0x1185   :  { %v2984_v6 = vmul.f32 %v8263_v27, %v2972_v63  ;;  %v2997_v62 = vadd.f32 %v8267_v18, %v2985_v3 }
0x1187   :  { %v2996_v34 = vadd.f32 %v8267_v18, %v2984_v6 }
0x1189   :  { %6623 = vmatprep.mubr.msk.f32.mxu0 %vm224_vm0, %v2996_v34 }
0x118a   :  { %6624 = vmatmul.mubr.msk.f32.gmra.mxu0 %vm224_vm0, %v2997_v62  ;;  %v8418_v57 = vpop.f32.mrf.mxu1 }
0x118b   :  { %v3255_v23 = vsel %vm224_vm0, %v8418_v57, -inf }
0x118c   :  { %v3233_v55 = vpop.f32.mrf.mxu1  ;;  %3256 = vmax.xlane.f32.xlu1 %v3255_v23 }
0x118d   :  { %v3252_v5 = vsel %vm224_vm0, %v3233_v55, -inf }
0x118e   :  { %3253 = vmax.xlane.f32.xlu0 %v3252_v5  ;;  %v8423_v9 = vpop.f32.mrf.mxu1 }
0x118f   :  { %v3261_v27 = vsel %vm224_vm0, %v8423_v9, -inf }
0x1190   :  { %3262 = vmax.xlane.f32.xlu1 %v3261_v27  ;;  %v3243_v18 = vpop.f32.mrf.mxu1 }
0x1191   :  { %v3258_v56 = vsel %vm224_vm0, %v3243_v18, -inf }
0x1192   :  { %3259 = vmax.xlane.f32.xlu0 %v3258_v56 }
0x119a   :  { %v8428_v32 = vpop.f32.mrf.mxu1 }
0x119b   :  { %v3525_v0 = vsel %vm224_vm0, %v8428_v32, -inf }
0x119c   :  { %3526 = vmax.xlane.f32.xlu1 %v3525_v0  ;;  %v3503_v14 = vpop.f32.mrf.mxu1 }
0x119d   :  { %v3522_v15 = vsel %vm224_vm0, %v3503_v14, -inf }
0x119e   :  { %v8437_v39 = vpop.f32.mrf.mxu1 }
0x119f   :  { %v3531_v61 = vsel %vm224_vm0, %v8437_v39, -inf }
0x11a0   :  { %v8451_v50 = vpop.f32.mrf.mxu1 }
0x11a1   :  { %v3528_v2 = vsel %vm224_vm0, %v8451_v50, -inf }
0x11a8   :  { %3300 = vrot.lane.b32.xlu0 %v8301_v52, %s7335_s29 }
0x11ad   :  { %3302 = vrot.lane.b32.xlu1 %v8298_v10, %s7335_s29 }
0x11c7   :  { %3523 = vmax.xlane.f32.xlu0 %v3522_v15 }
0x11d1   :  { %3532 = vmax.xlane.f32.xlu1 %v3531_v61 }
0x11dd   :  { %3570 = vrot.lane.b32.xlu0 %v8301_v52, %s7336_s30 }
0x11e2   :  { %3298 = vrot.lane.b32.xlu1 %v8308_v42, %s7335_s29 }
0x11e6   :  { %3296 = vrot.lane.b32.xlu1 %v8293_v58, %s7335_s29 }
0x11ea   :  { %3572 = vrot.lane.b32.xlu1 %v8298_v10, %s7336_s30 }
0x11ee   :  { %3568 = vrot.lane.b32.xlu1 %v8308_v42, %s7336_s30 }
0x11fc   :  { %3529 = vmax.xlane.f32.xlu0 %v3528_v2 }
0x1212   :  { %3566 = vrot.lane.b32.xlu0 %v8293_v58, %s7336_s30 }
0x1215   :  { %v3257_v21 = vpop.xlane.xlu1 %3256 }
0x1216   :  { %v3265_v33 = vsub.f32 %v8418_v57, %v3257_v21 }
0x1217   :  { %v3254_v52 = vpop.xlane.xlu0 %3253 }
0x1218   :  { %v3264_v45 = vsub.f32 %v3233_v55, %v3254_v52  ;;  %v3270_v43 = vmul.f32 1.442695, %v3265_v33 }
0x1219   :  { %v3263_v29 = vpop.xlane.xlu1 %3262 }
0x121a   :  { %v3268_v17 = vmul.f32 1.442695, %v3264_v45  ;;  %v3267_v63 = vsub.f32 %v8423_v9, %v3263_v29 }
0x121b   :  { %v3260_v51 = vpop.xlane.xlu0 %3259 }
0x121c   :  { %v3266_v13 = vsub.f32 %v3243_v18, %v3260_v51  ;;  %7051 = vpow2.f32 %v3268_v17  ;;  %v3274_v6 = vmul.f32 1.442695, %v3267_v63 }
0x121e   :  { %v3272_v10 = vmul.f32 1.442695, %v3266_v13 }
0x121f   :  { %v3301_v26 = vpop.permute.xlu0 %3300 }
0x1220   :  { %7053 = vpow2.f32 %v3272_v10 }
0x1225   :  { %v3527_v42 = vpop.xlane.xlu1 %3526 }
0x1226   :  { %v3535_v34 = vsub.f32 %v8428_v32, %v3527_v42 }
0x1228   :  { %v3540_v57 = vmul.f32 1.442695, %v3535_v34 }
0x1229   :  { %v3303_v59 = vpop.permute.xlu1 %3302  ;;  %v8457_v8 = vpop.eup %7051 }
0x122a   :  { %6640 = vmatprep.subr.mxu0 %v3303_v59  ;;  %v3276_v58 = vsel %vm224_vm0, %v8457_v8, 0.0 }
0x122b   :  { %6641 = vmatpush3.msra.mxu0 %v3303_v59 }
0x122c   :  { %6642 = vmatprep.subr.mxu0 %v3301_v26 }
0x122d   :  { %6643 = vmatpush3.msra.mxu0 %v3301_v26  ;;  %v8461_v4 = vpop.eup %7053 }
0x122e   :  { %v3282_v41 = vsel %vm224_vm0, %v8461_v4, 0.0 }
0x1231   :  { %3277 = vadd.xlane.f32.xlu0 %v3276_v58 }
0x1235   :  { %3283 = vadd.xlane.f32.xlu0 %v3282_v41 }
0x1242   :  { %v6622_v48 = vpop.f32.mrf.mxu0 }
0x1243   :  { %v8491_v51 = vadd.f32 %v6622_v48, %v8290_v37 }
0x1244   :  { %v3112_v24 = vpop.f32.mrf.mxu0 }
0x1245   :  { %v8508_v29 = vadd.f32 %v3112_v24, %v8290_v37 }
0x124a   :  { %v6625_v46 = vpop.f32.mrf.mxu0 }
0x124b   :  { %v8466_v30 = vadd.f32 %v6625_v46, %v8290_v37 }
0x124c   :  { %v3122_v0 = vpop.f32.mrf.mxu0 }
0x124d   :  { %3709 = vrot.lane.b32.xlu1 %v8466_v30, %s7332_s0 }
0x1250   :  { %v3524_v28 = vpop.xlane.xlu0 %3523 }
0x1251   :  { %v3534_v16 = vsub.f32 %v3503_v14, %v3524_v28  ;;  %v8482_v14 = vadd.f32 %v3122_v0, %v8290_v37 }
0x1253   :  { %v3538_v12 = vmul.f32 1.442695, %v3534_v16 }
0x1254   :  { %v3571_v2 = vpop.permute.xlu0 %3570 }
0x1255   :  { %7055 = vpow2.f32 %v3538_v12 }
0x1256   :  { %7057 = vpow2.f32 %v3270_v43 }
0x1257   :  { %7059 = vpow2.f32 %v3274_v6 }
0x1258   :  { %7061 = vpow2.f32 %v3540_v57 }
0x125a   :  { %v3533_v20 = vpop.xlane.xlu1 %3532 }
0x125b   :  { %v3537_v61 = vsub.f32 %v8437_v39, %v3533_v20 }
0x125d   :  { %v3544_v52 = vmul.f32 1.442695, %v3537_v61  ;;  %v8536_v61 = vmul.f32 0.25, %v8508_v29 }
0x125e   :  { %v3299_v3 = vpop.permute.xlu1 %3298 }
0x125f   :  { %6644 = vmatprep.subr.mxu0 %v3299_v3  ;;  %7063 = vpow2.f32 %v3544_v52  ;;  %v3697_v52 = vmul.f32 0.25, %v8482_v14 }
0x1260   :  { %6645 = vmatpush3.msra.mxu0 %v3299_v3 }
0x1262   :  { %v8473_v62 = vpop.eup %7055  ;;  %v3297_v23 = vpop.permute.xlu1 %3296 }
0x1263   :  { %6646 = vmatprep.subr.mxu0 %v3297_v23  ;;  %v3546_v55 = vsel %vm224_vm0, %v8473_v62, 0.0  ;;  %v7058_v9 = vpop.eup %7057 }
0x1264   :  { %6647 = vmatpush3.msra.mxu0 %v3297_v23  ;;  %3547 = vadd.xlane.f32.xlu0 %v3546_v55  ;;  %v3279_v27 = vsel %vm224_vm0, %v7058_v9, 0.0  ;;  %v7060_v18 = vpop.eup %7059 }
0x1265   :  { %v3285_v56 = vsel %vm224_vm0, %v7060_v18, 0.0  ;;  %v8479_v32 = vpop.eup %7061 }
0x1266   :  { %v3573_v5 = vpop.permute.xlu1 %3572  ;;  %v3549_v15 = vsel %vm224_vm0, %v8479_v32, 0.0 }
0x1267   :  { %6668 = vmatprep.subr.mxu0 %v3573_v5 }
0x126a   :  { %v3569_v41 = vpop.permute.xlu1 %3568 }
0x126c   :  { %v8499_v39 = vpop.eup %7063 }
0x1271   :  { %3280 = vadd.xlane.f32.xlu1 %v3279_v27 }
0x1275   :  { %3286 = vadd.xlane.f32.xlu1 %v3285_v56 }
0x1279   :  { %3550 = vadd.xlane.f32.xlu1 %v3549_v15 }
0x127a   :  { %3707 = vrot.lane.b32.xlu0 %v8482_v14, %s7332_s0 }
0x1285   :  { %v3530_v45 = vpop.xlane.xlu0 %3529 }
0x1286   :  { %v3536_v21 = vsub.f32 %v8451_v50, %v3530_v45  ;;  %v3555_v50 = vsel %vm224_vm0, %v8499_v39, 0.0  ;;  %v3698_v45 = vmul.f32 0.25, %v8466_v30 }
0x1288   :  { %v3542_v17 = vmul.f32 1.442695, %v3536_v21 }
0x1289   :  { %v3567_v42 = vpop.permute.xlu0 %3566 }
0x128a   :  { %3705 = vrot.lane.b32.xlu1 %v8491_v51, %s7332_s0  ;;  %7065 = vpow2.f32 %v3542_v17 }
0x128e   :  { %3864 = vrot.lane.b32.xlu1 %v8482_v14, %s7335_s29 }
0x1292   :  { %3862 = vrot.lane.b32.xlu1 %v8491_v51, %s7335_s29 }
0x1297   :  { %v8503_v13 = vpop.eup %7065 }
0x1298   :  { %v3552_v10 = vsel %vm224_vm0, %v8503_v13, 0.0 }
0x1299   :  { %3556 = vadd.xlane.f32.xlu0 %v3555_v50 }
0x129d   :  { %3553 = vadd.xlane.f32.xlu0 %v3552_v10 }
0x12b3   :  { %3703 = vrot.lane.b32.xlu0 %v8508_v29, %s7332_s0 }
0x12b7   :  { %3866 = vrot.lane.b32.xlu0 %v8466_v30, %s7335_s29 }
0x12ba   :  { %v3278_v59 = vpop.xlane.xlu0 %3277 }
0x12bb   :  { %7067 = vrcp.f32 %v3278_v59 }
0x12be   :  { %v3284_v46 = vpop.xlane.xlu0 %3283 }
0x12bf   :  { %v3710_v48 = vpop.permute.xlu1 %3709  ;;  %7069 = vrcp.f32 %v3284_v46 }
0x12c8   :  { %v7068_v26 = vpop.eup %7067 }
0x12c9   :  { %v3289_v58 = vmul.f32 %v7068_v26, %v8457_v8 }
0x12cb   :  { %6648 = vmatprep.mubr.msk.f32.mxu0 %vm224_vm0, %v3289_v58 }
0x12cc   :  { %v7070_v12 = vpop.eup %7069 }
0x12cd   :  { %v3293_v43 = vmul.f32 %v7070_v12, %v8461_v4 }
0x12ed   :  { %v3548_v24 = vpop.xlane.xlu0 %3547 }
0x12f1   :  { %v3708_v23 = vpop.permute.xlu0 %3707 }
0x12fa   :  { %v3281_v37 = vpop.xlane.xlu1 %3280 }
0x12fb   :  { %7071 = vrcp.f32 %v3281_v37 }
0x12fc   :  { %7073 = vrcp.f32 %v3548_v24 }
0x12fe   :  { %v3287_v28 = vpop.xlane.xlu1 %3286 }
0x12ff   :  { %7075 = vrcp.f32 %v3287_v28 }
0x1302   :  { %v3551_v16 = vpop.xlane.xlu1 %3550 }
0x1303   :  { %7077 = vrcp.f32 %v3551_v16 }
0x1308   :  { %v7072_v33 = vpop.eup %7071 }
0x1309   :  { %v3291_v20 = vmul.f32 %v7072_v33, %v7058_v9  ;;  %v7074_v8 = vpop.eup %7073 }
0x130a   :  { %v3559_v6 = vmul.f32 %v7074_v8, %v8473_v62  ;;  %v3706_v62 = vpop.permute.xlu1 %3705 }
0x130b   :  { %6649 = vmatmul.mubr.msk.f32.vlgmr.msra.gmra.mxu0 %vm224_vm0, %v3291_v20 }
0x130c   :  { %v7076_v63 = vpop.eup %7075  ;;  %6669 = vmatpush3.msra.mxu0 %v3573_v5  ;;  %6651 = vmatprep.mubr.msk.f32.mxu0 %vm224_vm0, %v3293_v43 }
0x130d   :  { %6670 = vmatprep.subr.mxu0 %v3571_v2  ;;  %v3295_v3 = vmul.f32 %v7076_v63, %v7060_v18 }
0x130e   :  { %6671 = vmatpush3.msra.mxu0 %v3571_v2  ;;  %v3865_v9 = vpop.permute.xlu1 %3864  ;;  %v8542_v2 = vmul.f32 0.25, %v8491_v51 }
0x130f   :  { %6672 = vmatprep.subr.mxu0 %v3569_v41  ;;  %6652 = vmatmul.mubr.msk.f32.gmra.mxu0 %vm224_vm0, %v3295_v3 }
0x1310   :  { %v7078_v34 = vpop.eup %7077  ;;  %6673 = vmatpush3.msra.mxu0 %v3569_v41  ;;  %6676 = vmatprep.mubr.msk.f32.mxu0 %vm224_vm0, %v3559_v6 }
0x1311   :  { %v3561_v4 = vmul.f32 %v7078_v34, %v8479_v32  ;;  %6674 = vmatprep.subr.mxu0 %v3567_v42 }
0x1312   :  { %6675 = vmatpush3.msra.mxu0 %v3567_v42  ;;  %v3863_v18 = vpop.permute.xlu1 %3862 }
0x1313   :  { %6682 = vmatprep.subr.msk.mxu0 %vm523_vm1, %v3710_v48  ;;  %6677 = vmatmul.mubr.msk.f32.vlgmr.msra.gmra.mxu0 %vm224_vm0, %v3561_v4 }
0x1314   :  { %6683 = vmatpush3.xpose.msk.msra.mxu0 %vm523_vm1, %v3710_v48 }
0x1315   :  { %6684 = vmatprep.subr.msk.mxu0 %vm523_vm1, %v3708_v23 }
0x1318   :  { %6685 = vmatpush3.xpose.msk.msra.mxu0 %vm523_vm1, %v3708_v23 }
0x1319   :  { %6686 = vmatprep.subr.msk.mxu0 %vm523_vm1, %v3706_v62 }
0x131c   :  { %6687 = vmatpush3.xpose.msk.msra.mxu0 %vm523_vm1, %v3706_v62 }
0x1322   :  { %v3557_v55 = vpop.xlane.xlu0 %3556 }
0x1323   :  { %7079 = vrcp.f32 %v3557_v55 }
0x1326   :  { %v3554_v57 = vpop.xlane.xlu0 %3553 }
0x1327   :  { %7081 = vrcp.f32 %v3554_v57 }
0x132a   :  { %v3704_v5 = vpop.permute.xlu0 %3703 }
0x132b   :  { %6688 = vmatprep.subr.msk.mxu0 %vm523_vm1, %v3704_v5 }
0x132c   :  { %6689 = vmatpush3.xpose.msk.msra.mxu0 %vm523_vm1, %v3704_v5 }
0x132e   :  { %v3867_v27 = vpop.permute.xlu0 %3866 }
0x132f   :  { %6696 = vmatprep.subr.mxu1 %v3867_v27 }
0x1330   :  { %6697 = vmatpush3.msra.mxu1 %v3867_v27  ;;  %v7080_v56 = vpop.eup %7079 }
0x1331   :  { %6698 = vmatprep.subr.mxu1 %v3865_v9  ;;  %v3565_v15 = vmul.f32 %v7080_v56, %v8499_v39 }
0x1332   :  { %6699 = vmatpush3.msra.mxu1 %v3865_v9 }
0x1333   :  { %6700 = vmatprep.subr.mxu1 %v3863_v18 }
0x1334   :  { %v7082_v32 = vpop.eup %7081  ;;  %6701 = vmatpush3.msra.mxu1 %v3863_v18 }
0x1335   :  { %v3563_v0 = vmul.f32 %v7082_v32, %v8503_v13 }
0x1337   :  { %6679 = vmatprep.mubr.msk.f32.mxu0 %vm224_vm0, %v3563_v0 }
0x1338   :  { %6680 = vmatmul.mubr.msk.f32.gmra.mxu0 %vm224_vm0, %v3565_v15 }
0x1339   :  { %6690 = vmatprep.mubr.msk.f32.mxu0 %vm523_vm1, %v8536_v61 }
0x133c   :  { %6691 = vmatmul.mubr.msk.f32.vlgmr.msra.gmra.mxu0 %vm523_vm1, %v8542_v2 }
0x133d   :  { %6693 = vmatprep.mubr.msk.f32.mxu0 %vm523_vm1, %v3697_v52 }
0x1340   :  { %6694 = vmatmul.mubr.msk.f32.gmra.mxu0 %vm523_vm1, %v3698_v45 }
0x13cb   :  { %v8550_v21 = vpop.f32.mrf.mxu0 }
0x13cd   :  { %v8552_v17 = vpop.f32.mrf.mxu0 }
0x13cf   :  { %v8554_v39 = vpop.f32.mrf.mxu0 }
0x13d1   :  { %v8556_v50 = vpop.f32.mrf.mxu0 }
0x13d3   :  { %v8558_v13 = vpop.f32.mrf.mxu0 }
0x13d5   :  { %v8560_v10 = vpop.f32.mrf.mxu0 }
0x13f8   :  { %v8562_v42 = vpop.f32.mrf.mxu0 }
0x13fa   :  { %v8564_v59 = vpop.f32.mrf.mxu0 }
0x13fc   :  { %v6692_v26 = vpop.f32.mrf.mxu0 }
0x13fd   :  { %v3819_v58 = vsel %vm224_vm0, %v6692_v26, -inf }
0x13fe   :  { %3820 = vmax.xlane.f32.xlu0 %v3819_v58  ;;  %v3797_v41 = vpop.f32.mrf.mxu0 }
0x13ff   :  { %v3816_v48 = vsel %vm224_vm0, %v3797_v41, -inf }
0x1400   :  { %3817 = vmax.xlane.f32.xlu1 %v3816_v48  ;;  %v6695_v46 = vpop.f32.mrf.mxu0 }
0x1401   :  { %v3825_v24 = vsel %vm224_vm0, %v6695_v46, -inf }
0x1402   :  { %v3807_v37 = vpop.f32.mrf.mxu0 }
0x1403   :  { %v3822_v28 = vsel %vm224_vm0, %v3807_v37, -inf }
0x1404   :  { %3826 = vmax.xlane.f32.xlu1 %v3825_v24  ;;  %3823 = vmax.xlane.f32.xlu0 %v3822_v28 }
0x1415   :  { %3983 = vrot.lane.b32.xlu1 %v8466_v30, %s7333_s2 }
0x141a   :  { %3860 = vrot.lane.b32.xlu0 %v8508_v29, %s7335_s29 }
0x1487   :  { %v3821_v16 = vpop.xlane.xlu0 %3820 }
0x1488   :  { %v3829_v12 = vsub.f32 %v6692_v26, %v3821_v16 }
0x1489   :  { %v3818_v33 = vpop.xlane.xlu1 %3817 }
0x148a   :  { %v3834_v20 = vmul.f32 1.442695, %v3829_v12  ;;  %v3828_v43 = vsub.f32 %v3797_v41, %v3818_v33 }
0x148c   :  { %7083 = vpow2.f32 %v3834_v20  ;;  %v3832_v8 = vmul.f32 1.442695, %v3828_v43 }
0x148d   :  { %v3827_v63 = vpop.xlane.xlu1 %3826  ;;  %v3824_v3 = vpop.xlane.xlu0 %3823 }
0x148e   :  { %7085 = vpow2.f32 %v3832_v8  ;;  %v3831_v57 = vsub.f32 %v6695_v46, %v3827_v63  ;;  %v3830_v5 = vsub.f32 %v3807_v37, %v3824_v3 }
0x1490   :  { %v3838_v9 = vmul.f32 1.442695, %v3831_v57  ;;  %v3836_v27 = vmul.f32 1.442695, %v3830_v5 }
0x1491   :  { %v3861_v6 = vpop.permute.xlu0 %3860  ;;  %v3984_v34 = vpop.permute.xlu1 %3983 }
0x1492   :  { %6702 = vmatprep.subr.mxu1 %v3861_v6  ;;  %7087 = vpow2.f32 %v3838_v9 }
0x1493   :  { %6703 = vmatpush3.msra.mxu1 %v3861_v6  ;;  %7089 = vpow2.f32 %v3836_v27 }
0x1494   :  { %6710 = vmatprep.subr.msk.mxu1 %vm523_vm1, %v3984_v34 }
0x1499   :  { %v7084_v4 = vpop.eup %7083 }
0x149a   :  { %v3843_v23 = vsel %vm224_vm0, %v7084_v4, 0.0 }
0x149b   :  { %v7086_v62 = vpop.eup %7085  ;;  %3844 = vadd.xlane.f32.xlu1 %v3843_v23 }
0x149c   :  { %v3840_v55 = vsel %vm224_vm0, %v7086_v62, 0.0 }
0x149d   :  { %3841 = vadd.xlane.f32.xlu0 %v3840_v55 }
0x149f   :  { %v7088_v18 = vpop.eup %7087 }
0x14a0   :  { %v7090_v56 = vpop.eup %7089  ;;  %v3849_v32 = vsel %vm224_vm0, %v7088_v18, 0.0 }
0x14a1   :  { %v3846_v0 = vsel %vm224_vm0, %v7090_v56, 0.0 }
0x14ac   :  { %3979 = vrot.lane.b32.xlu1 %v8491_v51, %s7333_s2 }
0x14b3   :  { %3981 = vrot.lane.b32.xlu0 %v8482_v14, %s7333_s2 }
0x14d0   :  { %3850 = vadd.xlane.f32.xlu1 %v3849_v32 }
0x14d2   :  { %3847 = vadd.xlane.f32.xlu0 %v3846_v0 }
0x14e1   :  { %3969 = vrot.lane.b32.xlu1 %v8536_v61, %s7334_s28 }
0x14e5   :  { %3973 = vrot.lane.b32.xlu1 %v3697_v52, %s7334_s28 }
0x14e8   :  { %3977 = vrot.lane.b32.xlu0 %v8508_v29, %s7333_s2 }
0x14ec   :  { %3971 = vrot.lane.b32.xlu0 %v8542_v2, %s7334_s28 }
0x14f0   :  { %3975 = vrot.lane.b32.xlu0 %v3698_v45, %s7334_s28 }
0x1524   :  { %v3845_v15 = vpop.xlane.xlu1 %3844 }
0x1525   :  { %7091 = vrcp.f32 %v3845_v15 }
0x1526   :  { %v3842_v26 = vpop.xlane.xlu0 %3841 }
0x1527   :  { %7093 = vrcp.f32 %v3842_v26 }
0x1528   :  { %v3980_v2 = vpop.permute.xlu1 %3979 }
0x152a   :  { %v3982_v61 = vpop.permute.xlu0 %3981 }
0x1532   :  { %v7092_v58 = vpop.eup %7091 }
0x1533   :  { %v3855_v46 = vmul.f32 %v7092_v58, %v7084_v4 }
0x1534   :  { %v7094_v41 = vpop.eup %7093 }
0x1535   :  { %v3853_v48 = vmul.f32 %v7094_v41, %v7086_v62 }
0x1537   :  { %6704 = vmatprep.mubr.msk.f32.mxu1 %vm224_vm0, %v3853_v48 }
0x1538   :  { %6705 = vmatmul.mubr.msk.f32.vlgmr.msra.gmra.mxu1 %vm224_vm0, %v3855_v46 }
0x1539   :  { %6711 = vmatpush3.xpose.msk.msra.mxu1 %vm523_vm1, %v3984_v34 }
0x153a   :  { %6712 = vmatprep.subr.msk.mxu1 %vm523_vm1, %v3982_v61 }
0x153d   :  { %6713 = vmatpush3.xpose.msk.msra.mxu1 %vm523_vm1, %v3982_v61 }
0x153e   :  { %6714 = vmatprep.subr.msk.mxu1 %vm523_vm1, %v3980_v2 }
0x1541   :  { %6715 = vmatpush3.xpose.msk.msra.mxu1 %vm523_vm1, %v3980_v2 }
0x1559   :  { %v3851_v52 = vpop.xlane.xlu1 %3850 }
0x155a   :  { %7095 = vrcp.f32 %v3851_v52 }
0x155b   :  { %v3848_v45 = vpop.xlane.xlu0 %3847 }
0x155c   :  { %7097 = vrcp.f32 %v3848_v45 }
0x155d   :  { %v3970_v12 = vpop.permute.xlu1 %3969 }
0x155f   :  { %v3978_v37 = vpop.permute.xlu0 %3977 }
0x1560   :  { %6716 = vmatprep.subr.msk.mxu1 %vm523_vm1, %v3978_v37 }
0x1561   :  { %6717 = vmatpush3.xpose.msk.msra.mxu1 %vm523_vm1, %v3978_v37  ;;  %v3974_v43 = vpop.permute.xlu1 %3973 }
0x1563   :  { %v3972_v20 = vpop.permute.xlu0 %3971 }
0x1567   :  { %v7096_v24 = vpop.eup %7095  ;;  %v3976_v8 = vpop.permute.xlu0 %3975 }
0x1568   :  { %v3859_v33 = vmul.f32 %v7096_v24, %v7088_v18 }
0x1569   :  { %v7098_v28 = vpop.eup %7097 }
0x156a   :  { %v3857_v16 = vmul.f32 %v7098_v28, %v7090_v56 }
0x156c   :  { %6707 = vmatprep.mubr.msk.f32.mxu1 %vm224_vm0, %v3857_v16 }
0x156d   :  { %6708 = vmatmul.mubr.msk.f32.gmra.mxu1 %vm224_vm0, %v3859_v33 }
0x156e   :  { %6718 = vmatprep.mubr.msk.f32.mxu1 %vm523_vm1, %v3970_v12 }
0x1571   :  { %6719 = vmatmul.mubr.msk.f32.vlgmr.msra.gmra.mxu1 %vm523_vm1, %v3972_v20  ;;  %v7234_v20 = vld [vmem:[#allocation5 + $0x188] sm:$0xff] }
0x1572   :  { %6721 = vmatprep.mubr.msk.f32.mxu1 %vm523_vm1, %v3974_v43  ;;  %v7235_v43 = vld [vmem:[#allocation5 + $0x178] sm:$0xff] }
0x1575   :  { %6722 = vmatmul.mubr.msk.f32.gmra.mxu1 %vm523_vm1, %v3976_v8  ;;  %v7236_v8 = vld [vmem:[#allocation5 + $0x180] sm:$0xff] }
0x15f8   :  { %v8606_v63 = vpop.f32.mrf.mxu1 }
0x15fa   :  { %v8608_v3 = vpop.f32.mrf.mxu1 }
0x162d   :  { %v8610_v6 = vpop.f32.mrf.mxu1 }
0x162f   :  { %v8612_v34 = vpop.f32.mrf.mxu1 }
0x1631   :  { %v6720_v4 = vpop.f32.mrf.mxu1 }
0x1632   :  { %v4089_v23 = vsel %vm224_vm0, %v6720_v4, -inf }
0x1633   :  { %4090 = vmax.xlane.f32.xlu0 %v4089_v23  ;;  %v4067_v62 = vpop.f32.mrf.mxu1 }
0x1634   :  { %v4086_v55 = vsel %vm224_vm0, %v4067_v62, -inf }
0x1635   :  { %4087 = vmax.xlane.f32.xlu1 %v4086_v55  ;;  %v6723_v57 = vpop.f32.mrf.mxu1 }
0x1636   :  { %v4095_v9 = vsel %vm224_vm0, %v6723_v57, -inf }
0x1637   :  { %v4077_v5 = vpop.f32.mrf.mxu1 }
0x1638   :  { %v4092_v27 = vsel %vm224_vm0, %v4077_v5, -inf }
0x1639   :  { %4096 = vmax.xlane.f32.xlu1 %v4095_v9  ;;  %4093 = vmax.xlane.f32.xlu0 %v4092_v27 }
0x164a   :  { %4134 = vrot.lane.b32.xlu1 %v8482_v14, %s7336_s30 }
0x164f   :  { %4136 = vrot.lane.b32.xlu0 %v8466_v30, %s7336_s30 }
0x16bc   :  { %v4091_v18 = vpop.xlane.xlu0 %4090 }
0x16bd   :  { %v4099_v56 = vsub.f32 %v6720_v4, %v4091_v18  ;;  %v7237_v4 = vld [vmem:[#allocation5 + $0x170] sm:$0xff] }
0x16be   :  { %v4088_v32 = vpop.xlane.xlu1 %4087 }
0x16bf   :  { %v4104_v0 = vmul.f32 1.442695, %v4099_v56  ;;  %v4098_v15 = vsub.f32 %v4067_v62, %v4088_v32 }
0x16c1   :  { %7099 = vpow2.f32 %v4104_v0  ;;  %v4102_v26 = vmul.f32 1.442695, %v4098_v15 }
0x16c2   :  { %v4097_v58 = vpop.xlane.xlu1 %4096  ;;  %v4094_v41 = vpop.xlane.xlu0 %4093 }
0x16c3   :  { %7101 = vpow2.f32 %v4102_v26  ;;  %v4101_v48 = vsub.f32 %v6723_v57, %v4097_v58  ;;  %v4100_v46 = vsub.f32 %v4077_v5, %v4094_v41 }
0x16c5   :  { %v4108_v61 = vmul.f32 1.442695, %v4101_v48  ;;  %v4106_v2 = vmul.f32 1.442695, %v4100_v46 }
0x16c6   :  { %v4137_v52 = vpop.permute.xlu0 %4136  ;;  %v4135_v14 = vpop.permute.xlu1 %4134 }
0x16c7   :  { %7103 = vpow2.f32 %v4108_v61  ;;  %6724 = vmatprep.subr.mxu0 %v4137_v52 }
0x16c8   :  { %7105 = vpow2.f32 %v4106_v2  ;;  %6725 = vmatpush3.msra.mxu0 %v4137_v52 }
0x16c9   :  { %6726 = vmatprep.subr.mxu0 %v4135_v14 }
0x16ca   :  { %6727 = vmatpush3.msra.mxu0 %v4135_v14 }
0x16ce   :  { %v7100_v30 = vpop.eup %7099 }
0x16cf   :  { %v4113_v45 = vsel %vm224_vm0, %v7100_v30, 0.0 }
0x16d0   :  { %v7102_v37 = vpop.eup %7101  ;;  %4114 = vadd.xlane.f32.xlu1 %v4113_v45 }
0x16d1   :  { %v4110_v24 = vsel %vm224_vm0, %v7102_v37, 0.0 }
0x16d2   :  { %4111 = vadd.xlane.f32.xlu0 %v4110_v24  ;;  %v8663_v24 = vld [vmem:[#allocation5 + $0x230] sm:$0xff] }
0x16d4   :  { %v7104_v28 = vpop.eup %7103 }
0x16d5   :  { %v7106_v16 = vpop.eup %7105  ;;  %v4119_v12 = vsel %vm224_vm0, %v7104_v28, 0.0 }
0x16d6   :  { %4120 = vadd.xlane.f32.xlu1 %v4119_v12  ;;  %v4116_v33 = vsel %vm224_vm0, %v7106_v16, 0.0 }
0x16d7   :  { %4117 = vadd.xlane.f32.xlu0 %v4116_v33 }
0x16e7   :  { %4132 = vrot.lane.b32.xlu1 %v8491_v51, %s7336_s30 }
0x16eb   :  { %4269 = vrot.lane.b32.xlu1 %v7234_v20, %s7337_s4 }
0x16ed   :  { %4130 = vrot.lane.b32.xlu0 %v8508_v29, %s7336_s30 }
0x16ef   :  { %4265 = vrot.lane.b32.xlu1 %v7235_v43, %s7337_s4 }
0x16f1   :  { %4267 = vrot.lane.b32.xlu0 %v7236_v8, %s7337_s4 }
0x16f3   :  { %4263 = vrot.lane.b32.xlu1 %v7237_v4, %s7337_s4 }
0x16f5   :  { %3679 = vrot.lane.b32.xlu0 %v8560_v10, %s7338_s5 }
0x16f7   :  { %3683 = vrot.lane.b32.xlu1 %v8564_v59, %s7338_s5 }
0x16f9   :  { %3681 = vrot.lane.b32.xlu0 %v8558_v13, %s7338_s5 }
0x16fd   :  { %3685 = vrot.lane.b32.xlu0 %v8562_v42, %s7338_s5 }
0x1759   :  { %v4115_v51 = vpop.xlane.xlu1 %4114 }
0x175a   :  { %7107 = vrcp.f32 %v4115_v51 }
0x175b   :  { %v4112_v29 = vpop.xlane.xlu0 %4111 }
0x175c   :  { %7109 = vrcp.f32 %v4112_v29 }
0x175f   :  { %v4121_v23 = vpop.xlane.xlu1 %4120 }
0x1760   :  { %7111 = vrcp.f32 %v4121_v23  ;;  %v4118_v62 = vpop.xlane.xlu0 %4117 }
0x1761   :  { %7113 = vrcp.f32 %v4118_v62 }
0x1763   :  { %v4133_v55 = vpop.permute.xlu1 %4132 }
0x1764   :  { %v4131_v57 = vpop.permute.xlu0 %4130  ;;  %6728 = vmatprep.subr.mxu0 %v4133_v55 }
0x1765   :  { %6729 = vmatpush3.msra.mxu0 %v4133_v55 }
0x1766   :  { %6730 = vmatprep.subr.mxu0 %v4131_v57 }
0x1767   :  { %v4270_v10 = vpop.permute.xlu1 %4269  ;;  %6731 = vmatpush3.msra.mxu0 %v4131_v57  ;;  %v7108_v59 = vpop.eup %7107 }
0x1768   :  { %v4268_v13 = vpop.permute.xlu0 %4267  ;;  %6738 = vmatprep.subr.mxu0 %v4270_v10  ;;  %v4125_v9 = vmul.f32 %v7108_v59, %v7100_v30 }
0x1769   :  { %v7110_v5 = vpop.eup %7109 }
0x176a   :  { %v4123_v42 = vmul.f32 %v7110_v5, %v7102_v37  ;;  %v2834_v5 = vld [vmem:[#allocation5 + $0x1a0] sm:$0xff] }
0x176b   :  { %v4266_v27 = vpop.permute.xlu1 %4265 }
0x176c   :  { %v3680_v18 = vpop.permute.xlu0 %3679  ;;  %6732 = vmatprep.mubr.msk.f32.mxu0 %vm224_vm0, %v4123_v42  ;;  %v2833_v42 = vld [vmem:[#allocation5 + $0x198] sm:$0xff] }
0x176d   :  { %v7112_v56 = vpop.eup %7111  ;;  %6733 = vmatmul.mubr.msk.f32.vlgmr.msra.gmra.mxu0 %vm224_vm0, %v4125_v9  ;;  %v3691_v41 = vsel %vm523_vm1, %v8552_v17, %v3680_v18  ;;  %v2832_v9 = vld [vmem:[#allocation5 + $0x190] sm:$0xff] }
0x176e   :  { %v7114_v32 = vpop.eup %7113  ;;  %6739 = vmatpush3.msra.mxu0 %v4270_v10  ;;  %v4129_v0 = vmul.f32 %v7112_v56, %v7104_v28 }
0x176f   :  { %v4264_v15 = vpop.permute.xlu1 %4263  ;;  %6740 = vmatprep.subr.mxu0 %v4268_v13  ;;  %v4127_v26 = vmul.f32 %v7114_v32, %v7106_v16 }
0x1770   :  { %v3682_v58 = vpop.permute.xlu0 %3681  ;;  %6741 = vmatpush3.msra.mxu0 %v4268_v13  ;;  %v2835_v13 = vld [vmem:[#allocation5 + $0x1a8] sm:$0xff] }
0x1771   :  { %6735 = vmatprep.mubr.msk.f32.mxu0 %vm224_vm0, %v4127_v26  ;;  %6742 = vmatprep.subr.mxu0 %v4266_v27  ;;  %v3692_v61 = vsel %vm523_vm1, %v8550_v21, %v3682_v58 }
0x1772   :  { %6736 = vmatmul.mubr.msk.f32.gmra.mxu0 %vm224_vm0, %v4129_v0  ;;  %6758 = vmatprep.subr.mxu1 %v2835_v13 }
0x1773   :  { %6743 = vmatpush3.msra.mxu0 %v4266_v27  ;;  %6746 = vmatprep.mubr.msk.f32.mxu0 %vm224_vm0, %v3691_v41  ;;  %v3684_v48 = vpop.permute.xlu1 %3683 }
0x1774   :  { %v3693_v46 = vsel %vm523_vm1, %v8556_v50, %v3684_v48  ;;  %6744 = vmatprep.subr.mxu0 %v4264_v15  ;;  %v3686_v2 = vpop.permute.xlu0 %3685  ;;  %6759 = vmatpush3.msra.mxu1 %v2835_v13 }
0x1775   :  { %6745 = vmatpush3.msra.mxu0 %v4264_v15  ;;  %v3694_v17 = vsel %vm523_vm1, %v8554_v39, %v3686_v2  ;;  %v8668_v39 = vrot.slane %v8663_v24, %v1791_v1  ;;  %6760 = vmatprep.subr.mxu1 %v2834_v5 }
0x1776   :  { %6747 = vmatmul.mubr.msk.f32.vlgmr.msra.gmra.mxu0 %vm224_vm0, %v3692_v61  ;;  %6761 = vmatpush3.msra.mxu1 %v2834_v5 }
0x1777   :  { %6749 = vmatprep.mubr.msk.f32.mxu0 %vm224_vm0, %v3693_v46  ;;  %6762 = vmatprep.subr.mxu1 %v2833_v42 }
0x1778   :  { %6763 = vmatpush3.msra.mxu1 %v2833_v42 }
0x1779   :  { %6764 = vmatprep.subr.mxu1 %v2832_v9 }
0x177a   :  { %6750 = vmatmul.mubr.msk.f32.gmra.mxu0 %vm224_vm0, %v3694_v17  ;;  %6765 = vmatpush3.msra.mxu1 %v2832_v9 }
0x182d   :  { %v6734_v52 = vpop.f32.mrf.mxu0 }
0x182e   :  { %4245 = vrot.lane.b32.xlu0 %v6734_v52, %s7338_s5 }
0x182f   :  { %v4220_v14 = vpop.f32.mrf.mxu0 }
0x1830   :  { %4243 = vrot.lane.b32.xlu1 %v4220_v14, %s7338_s5 }
0x1832   :  { %v6737_v50 = vpop.f32.mrf.mxu0 }
0x1833   :  { %4249 = vrot.lane.b32.xlu0 %v6737_v50, %s7338_s5 }
0x1834   :  { %v4230_v21 = vpop.f32.mrf.mxu0 }
0x1835   :  { %4247 = vrot.lane.b32.xlu1 %v4230_v21, %s7338_s5 }
0x1836   :  { %v6748_v30 = vpop.f32.mrf.mxu0 }
0x1837   :  { %v4405_v37 = vadd.f32 %v6748_v30, %v8204_v19 }
0x1838   :  { %v4365_v45 = vpop.f32.mrf.mxu0 }
0x1839   :  { %v4404_v28 = vadd.f32 %v4365_v45, %v8207_v60  ;;  %v8672_v12 = vadd.f32 %v8668_v39, %v4405_v37 }
0x183a   :  { %v6751_v16 = vpop.f32.mrf.mxu0 }
0x183b   :  { %v8675_v33 = vadd.f32 %v8668_v39, %v4404_v28  ;;  %v4427_v19 = vsel %vm224_vm0, %v8672_v12, 0.0  ;;  %v4407_v4 = vadd.f32 %v6751_v16, %v8226_v11 }
0x183c   :  { %v4375_v20 = vpop.f32.mrf.mxu0 }
0x183d   :  { %v4406_v43 = vadd.f32 %v4375_v20, %v8229_v38  ;;  %v4456_v8 = vmul.f32 %v8675_v33, %v8675_v33  ;;  %v4424_v51 = vsel %vm224_vm0, %v8675_v33, 0.0  ;;  %v4457_v38 = vmul.f32 %v8672_v12, %v8672_v12 }
0x183e   :  { %v8696_v62 = vadd.f32 %v8668_v39, %v4407_v4 }
0x183f   :  { %v8683_v1 = vadd.f32 %v8668_v39, %v4406_v43  ;;  %v4464_v60 = vsel %vm224_vm0, %v4456_v8, 0.0  ;;  %v4467_v55 = vsel %vm224_vm0, %v4457_v38, 0.0 }
0x1840   :  { %v4433_v57 = vsel %vm224_vm0, %v8696_v62, 0.0  ;;  %v4459_v10 = vmul.f32 %v8696_v62, %v8696_v62 }
0x1841   :  { %v4430_v29 = vsel %vm224_vm0, %v8683_v1, 0.0  ;;  %v4458_v23 = vmul.f32 %v8683_v1, %v8683_v1 }
0x1842   :  { %v4473_v59 = vsel %vm224_vm0, %v4459_v10, 0.0 }
0x1843   :  { %v4470_v11 = vsel %vm224_vm0, %v4458_v23, 0.0  ;;  %v8720_v23 = vrot.slane %v8663_v24, %v1923_v40 }
0x1852   :  { %4428 = vadd.xlane.f32.xlu0 %v4427_v19 }
0x1856   :  { %4465 = vadd.xlane.f32.xlu0 %v4464_v60 }
0x1859   :  { %4425 = vadd.xlane.f32.xlu1 %v4424_v51 }
0x185a   :  { %4431 = vadd.xlane.f32.xlu0 %v4430_v29 }
0x185d   :  { %4468 = vadd.xlane.f32.xlu1 %v4467_v55 }
0x185e   :  { %4471 = vadd.xlane.f32.xlu0 %v4470_v11 }
0x1861   :  { %4434 = vadd.xlane.f32.xlu1 %v4433_v57 }
0x1865   :  { %4474 = vadd.xlane.f32.xlu1 %v4473_v59  ;;  %v8727_v59 = vrot.slane %v8663_v24, %v1935_v25 }
0x18a0   :  { %v4246_v27 = vpop.permute.xlu0 %4245 }
0x18a1   :  { %v4256_v32 = vsel %vm523_vm1, %v8606_v63, %v4246_v27 }
0x18a2   :  { %v4244_v18 = vpop.permute.xlu1 %4243 }
0x18a3   :  { %v4255_v56 = vsel %vm523_vm1, %v8608_v3, %v4244_v18 }
0x18a4   :  { %6752 = vmatprep.mubr.msk.f32.mxu0 %vm224_vm0, %v4255_v56 }
0x18a5   :  { %6753 = vmatmul.mubr.msk.f32.gmra.mxu0 %vm224_vm0, %v4256_v32  ;;  %v4250_v0 = vpop.permute.xlu0 %4249 }
0x18a6   :  { %v4258_v58 = vsel %vm523_vm1, %v8610_v6, %v4250_v0 }
0x18a7   :  { %v4248_v15 = vpop.permute.xlu1 %4247 }
0x18a8   :  { %v4257_v26 = vsel %vm523_vm1, %v8612_v34, %v4248_v15 }
0x18a9   :  { %6755 = vmatprep.mubr.msk.f32.mxu0 %vm224_vm0, %v4257_v26 }
0x18aa   :  { %6756 = vmatmul.mubr.msk.f32.gmra.mxu0 %vm224_vm0, %v4258_v58 }
0x18db   :  { %v4429_v3 = vpop.xlane.xlu0 %4428 }
0x18dc   :  { %v4449_v63 = vmul.f32 0.03125, %v4429_v3 }
0x18de   :  { %v4497_v50 = vmul.f32 %v4449_v63, %v4449_v63  ;;  %v4513_v57 = vsub.f32 %v8672_v12, %v4449_v63  ;;  %v2850_v63 = vld [vmem:[#allocation5 + $0x220] sm:$0xff] }
0x18df   :  { %v4466_v41 = vpop.xlane.xlu0 %4465 }
0x18e0   :  { %v4488_v17 = vmul.f32 0.03125, %v4466_v41 }
0x18e2   :  { %v4426_v48 = vpop.xlane.xlu1 %4425 }
0x18e3   :  { %v4448_v46 = vmul.f32 0.03125, %v4426_v48  ;;  %v4432_v61 = vpop.xlane.xlu0 %4431  ;;  %v2851_v48 = vld [vmem:[#allocation5 + $0x228] sm:$0xff] }
0x18e4   :  { %v4450_v2 = vmul.f32 0.03125, %v4432_v61  ;;  %6778 = vmatprep.subr.mxu0 %v2851_v48  ;;  %v2848_v61 = vld [vmem:[#allocation5 + $0x210] sm:$0xff] }
0x18e5   :  { %v4496_v52 = vmul.f32 %v4448_v46, %v4448_v46  ;;  %v4512_v55 = vsub.f32 %v8675_v33, %v4448_v46  ;;  %6779 = vmatpush3.msra.mxu0 %v2851_v48  ;;  %v2849_v46 = vld [vmem:[#allocation5 + $0x218] sm:$0xff] }
0x18e6   :  { %v4469_v14 = vpop.xlane.xlu1 %4468  ;;  %v4498_v45 = vmul.f32 %v4450_v2, %v4450_v2  ;;  %v4514_v5 = vsub.f32 %v8683_v1, %v4450_v2  ;;  %6780 = vmatprep.subr.mxu0 %v2850_v63  ;;  %v2847_v2 = vld [vmem:[#allocation5 + $0x208] sm:$0xff] }
0x18e7   :  { %v4504_v21 = vsub.f32 %v4488_v17, %v4496_v52  ;;  %v4489_v34 = vmul.f32 0.03125, %v4469_v14  ;;  %v4472_v30 = vpop.xlane.xlu0 %4471  ;;  %6781 = vmatpush3.msra.mxu0 %v2850_v63  ;;  %v2846_v17 = vld [vmem:[#allocation5 + $0x200] sm:$0xff] }
0x18e8   :  { %v4490_v6 = vmul.f32 0.03125, %v4472_v30  ;;  %6782 = vmatprep.subr.mxu0 %v2849_v46 }
0x18e9   :  { %v4520_v37 = vadd.f32 1e-05, %v4504_v21  ;;  %v4505_v28 = vsub.f32 %v4489_v34, %v4497_v50  ;;  %6783 = vmatpush3.msra.mxu0 %v2849_v46  ;;  %v2845_v50 = vld [vmem:[#allocation5 + $0x1f8] sm:$0xff] }
0x18ea   :  { %v4506_v16 = vsub.f32 %v4490_v6, %v4498_v45  ;;  %v4435_v20 = vpop.xlane.xlu1 %4434  ;;  %6784 = vmatprep.subr.mxu0 %v2848_v61  ;;  %v2844_v45 = vld [vmem:[#allocation5 + $0x1f0] sm:$0xff] }
0x18eb   :  { %7115 = vrsqrt.f32 %v4520_v37  ;;  %v4521_v43 = vadd.f32 1e-05, %v4505_v28  ;;  %v4451_v19 = vmul.f32 0.03125, %v4435_v20  ;;  %6785 = vmatpush3.msra.mxu0 %v2848_v61 }
0x18ec   :  { %v4522_v8 = vadd.f32 1e-05, %v4506_v16  ;;  %6786 = vmatprep.subr.mxu0 %v2847_v2  ;;  %v2843_v16 = vld [vmem:[#allocation5 + $0x1e8] sm:$0xff] }
0x18ed   :  { %7117 = vrsqrt.f32 %v4521_v43  ;;  %v4499_v4 = vmul.f32 %v4451_v19, %v4451_v19  ;;  %v4515_v15 = vsub.f32 %v8696_v62, %v4451_v19  ;;  %6787 = vmatpush3.msra.mxu0 %v2847_v2 }
0x18ee   :  { %7119 = vrsqrt.f32 %v4522_v8  ;;  %v4475_v60 = vpop.xlane.xlu1 %4474  ;;  %6788 = vmatprep.subr.mxu0 %v2846_v17  ;;  %v2842_v8 = vld [vmem:[#allocation5 + $0x1e0] sm:$0xff] }
0x18ef   :  { %v4491_v51 = vmul.f32 0.03125, %v4475_v60  ;;  %6789 = vmatpush3.msra.mxu0 %v2846_v17 }
0x18f0   :  { %6790 = vmatprep.subr.mxu0 %v2845_v50 }
0x18f1   :  { %v4507_v38 = vsub.f32 %v4491_v51, %v4499_v4  ;;  %6791 = vmatpush3.msra.mxu0 %v2845_v50  ;;  %v2841_v51 = vld [vmem:[#allocation5 + $0x1d8] sm:$0xff] }
0x18f2   :  { %6792 = vmatprep.subr.mxu0 %v2844_v45 }
0x18f3   :  { %v4523_v29 = vadd.f32 1e-05, %v4507_v38  ;;  %6793 = vmatpush3.msra.mxu0 %v2844_v45 }
0x18f4   :  { %6794 = vmatprep.subr.mxu0 %v2843_v16 }
0x18f5   :  { %7121 = vrsqrt.f32 %v4523_v29  ;;  %6795 = vmatpush3.msra.mxu0 %v2843_v16 }
0x18f6   :  { %6796 = vmatprep.subr.mxu0 %v2842_v8 }
0x18f7   :  { %6797 = vmatpush3.msra.mxu0 %v2842_v8 }
0x18f8   :  { %v7116_v11 = vpop.eup %7115  ;;  %6798 = vmatprep.subr.mxu0 %v2841_v51 }
0x18f9   :  { %v4536_v10 = vmul.f32 %v7116_v11, %v4512_v55  ;;  %6799 = vmatpush3.msra.mxu0 %v2841_v51  ;;  %v2840_v55 = vld [vmem:[#allocation5 + $0x1d0] sm:$0xff] }
0x18fa   :  { %v7118_v13 = vpop.eup %7117  ;;  %6800 = vmatprep.subr.mxu0 %v2840_v55 }
0x18fb   :  { %v7120_v42 = vpop.eup %7119  ;;  %v4548_v9 = vmul.f32 %v8720_v23, %v4536_v10  ;;  %v4537_v27 = vmul.f32 %v7118_v13, %v4513_v57  ;;  %6801 = vmatpush3.msra.mxu0 %v2840_v55  ;;  %v2839_v57 = vld [vmem:[#allocation5 + $0x1c8] sm:$0xff]  ;;  %v2838_v13 = vld [vmem:[#allocation5 + $0x1c0] sm:$0xff] }
0x18fc   :  { %v4538_v40 = vmul.f32 %v7120_v42, %v4514_v5  ;;  %6802 = vmatprep.subr.mxu0 %v2839_v57  ;;  %v2837_v5 = vld [vmem:[#allocation5 + $0x1b8] sm:$0xff] }
0x18fd   :  { %v4560_v18 = vadd.f32 %v8727_v59, %v4548_v9  ;;  %v4549_v56 = vmul.f32 %v8720_v23, %v4537_v27  ;;  %6803 = vmatpush3.msra.mxu0 %v2839_v57  ;;  %v2836_v9 = vld [vmem:[#allocation5 + $0x1b0] sm:$0xff] }
0x18fe   :  { %v4550_v32 = vmul.f32 %v8720_v23, %v4538_v40  ;;  %6804 = vmatprep.subr.mxu0 %v2838_v13  ;;  %v7239_v40 = vld [vmem:[#allocation5 + $0x238] sm:$0x3] }
0x18ff   :  { %6766 = vmatprep.mubr.msk.f32.mxu1 %vm224_vm0, %v4560_v18  ;;  %v4561_v0 = vadd.f32 %v8727_v59, %v4549_v56  ;;  %6805 = vmatpush3.msra.mxu0 %v2838_v13  ;;  %v8780_v18 = vrot.slane %v7239_v40, %v7447_v47 }
0x1900   :  { %v4562_v25 = vadd.f32 %v8727_v59, %v4550_v32  ;;  %6806 = vmatprep.subr.mxu0 %v2837_v5 }
0x1901   :  { %6767 = vmatmul.mubr.msk.f32.vlgmr.msra.gmra.mxu1 %vm224_vm0, %v4561_v0  ;;  %6807 = vmatpush3.msra.mxu0 %v2837_v5 }
0x1902   :  { %v7122_v26 = vpop.eup %7121  ;;  %6769 = vmatprep.mubr.msk.f32.mxu1 %vm224_vm0, %v4562_v25  ;;  %6808 = vmatprep.subr.mxu0 %v2836_v9 }
0x1903   :  { %v4539_v58 = vmul.f32 %v7122_v26, %v4515_v15  ;;  %6809 = vmatpush3.msra.mxu0 %v2836_v9 }
0x1905   :  { %v4551_v3 = vmul.f32 %v8720_v23, %v4539_v58 }
0x1907   :  { %v4563_v41 = vadd.f32 %v8727_v59, %v4551_v3 }
0x1909   :  { %6770 = vmatmul.mubr.msk.f32.gmra.mxu1 %vm224_vm0, %v4563_v41 }
0x1965   :  { %v6754_v52 = vpop.f32.mrf.mxu0 }
0x1966   :  { %v4409_v14 = vadd.f32 %v6754_v52, %v8372_v54 }
0x1967   :  { %v4385_v21 = vpop.f32.mrf.mxu0 }
0x1968   :  { %v8745_v34 = vadd.f32 %v8668_v39, %v4409_v14  ;;  %v4408_v30 = vadd.f32 %v4385_v21, %v8361_v49 }
0x196a   :  { %v8749_v6 = vadd.f32 %v8668_v39, %v4408_v30  ;;  %v6757_v37 = vpop.f32.mrf.mxu0  ;;  %v4439_v28 = vsel %vm224_vm0, %v8745_v34, 0.0  ;;  %v4461_v54 = vmul.f32 %v8745_v34, %v8745_v34 }
0x196b   :  { %v4411_v20 = vadd.f32 %v6757_v37, %v8382_v44  ;;  %4440 = vadd.xlane.f32.xlu1 %v4439_v28 }
0x196c   :  { %v4395_v49 = vpop.f32.mrf.mxu0  ;;  %v4436_v43 = vsel %vm224_vm0, %v8749_v6, 0.0  ;;  %v4460_v19 = vmul.f32 %v8749_v6, %v8749_v6  ;;  %v4479_v44 = vsel %vm224_vm0, %v4461_v54, 0.0 }
0x196d   :  { %v4410_v60 = vadd.f32 %v4395_v49, %v8388_v31  ;;  %4437 = vadd.xlane.f32.xlu0 %v4436_v43  ;;  %v8762_v4 = vadd.f32 %v8668_v39, %v4411_v20 }
0x196e   :  { %v4476_v29 = vsel %vm224_vm0, %v4460_v19, 0.0 }
0x196f   :  { %4480 = vadd.xlane.f32.xlu1 %v4479_v44  ;;  %v8766_v38 = vadd.f32 %v8668_v39, %v4410_v60  ;;  %v4445_v31 = vsel %vm224_vm0, %v8762_v4, 0.0  ;;  %v4463_v11 = vmul.f32 %v8762_v4, %v8762_v4 }
0x1971   :  { %4477 = vadd.xlane.f32.xlu0 %v4476_v29  ;;  %v4442_v39 = vsel %vm224_vm0, %v8766_v38, 0.0  ;;  %v4462_v10 = vmul.f32 %v8766_v38, %v8766_v38  ;;  %v4485_v42 = vsel %vm224_vm0, %v4463_v11, 0.0 }
0x1973   :  { %4446 = vadd.xlane.f32.xlu1 %v4445_v31  ;;  %v4482_v27 = vsel %vm224_vm0, %v4462_v10, 0.0 }
0x1975   :  { %4443 = vadd.xlane.f32.xlu0 %v4442_v39 }
0x1977   :  { %4486 = vadd.xlane.f32.xlu1 %v4485_v42 }
0x1979   :  { %4483 = vadd.xlane.f32.xlu0 %v4482_v27 }
0x19c1   :  { %v6768_v56 = vpop.f32.mrf.mxu1 }
0x19c2   :  { %v8783_v32 = vadd.f32 %v6768_v56, %v8780_v18 }
0x19c3   :  { %v4662_v0 = vpop.f32.mrf.mxu1 }
0x19c4   :  { %v8786_v25 = vmul.f32 0.70710677, %v8783_v32  ;;  %v8789_v15 = vadd.f32 %v4662_v0, %v8780_v18 }
0x19c6   :  { %v4734_v26 = vand.u32 2147483647, %v8786_v25  ;;  %v8793_v58 = vmul.f32 0.70710677, %v8789_v15  ;;  %vm4718_vm10 = vcmp.ge.f32.partialorder %v8786_v25, 0.0 }
0x19c8   :  { %v4742_v3 = vmul.f32 0.3275911, %v4734_v26  ;;  %v4733_v47 = vand.u32 2147483647, %v8793_v58  ;;  %v4838_v30 = vsub.f32 0.0, %v4734_v26  ;;  %vm4717_vm11 = vcmp.ge.f32.partialorder %v8793_v58, 0.0 }
0x19c9   :  { %v6771_v41 = vpop.f32.mrf.mxu1 }
0x19ca   :  { %v4750_v48 = vadd.f32 1.0, %v4742_v3  ;;  %v4741_v63 = vmul.f32 0.3275911, %v4733_v47  ;;  %v8797_v46 = vadd.f32 %v6771_v41, %v8780_v18  ;;  %v4837_v54 = vsub.f32 0.0, %v4733_v47 }
0x19cb   :  { %v4672_v61 = vpop.f32.mrf.mxu1  ;;  %v4846_v16 = vmul.f32 %v4838_v30, %v4734_v26 }
0x19cc   :  { %7123 = vrcp.f32 %v4750_v48  ;;  %v4749_v2 = vadd.f32 1.0, %v4741_v63  ;;  %v8800_v17 = vmul.f32 0.70710677, %v8797_v46  ;;  %v8803_v52 = vadd.f32 %v4672_v61, %v8780_v18 }
0x19cd   :  { %v4845_v43 = vmul.f32 %v4837_v54, %v4733_v47  ;;  %v4855_v8 = vmul.f32 1.442695, %v4846_v16 }
0x19ce   :  { %7125 = vrcp.f32 %v4749_v2  ;;  %v4736_v14 = vand.u32 2147483647, %v8800_v17  ;;  %v8807_v50 = vmul.f32 0.70710677, %v8803_v52  ;;  %vm4720_vm12 = vcmp.ge.f32.partialorder %v8800_v17, 0.0 }
0x19cf   :  { %v4853_v29 = vmul.f32 1.442695, %v4845_v43 }
0x19d0   :  { %v4744_v21 = vmul.f32 0.3275911, %v4736_v14  ;;  %v4735_v45 = vand.u32 2147483647, %v8807_v50  ;;  %v4840_v60 = vsub.f32 0.0, %v4736_v14  ;;  %vm4719_vm13 = vcmp.ge.f32.partialorder %v8807_v50, 0.0 }
0x19d2   :  { %v4752_v37 = vadd.f32 1.0, %v4744_v21  ;;  %v4743_v28 = vmul.f32 0.3275911, %v4735_v45  ;;  %v4839_v11 = vsub.f32 0.0, %v4735_v45  ;;  %v4848_v57 = vmul.f32 %v4840_v60, %v4736_v14 }
0x19d4   :  { %7127 = vrcp.f32 %v4752_v37  ;;  %v4751_v20 = vadd.f32 1.0, %v4743_v28  ;;  %v4847_v9 = vmul.f32 %v4839_v11, %v4735_v45  ;;  %v4859_v27 = vmul.f32 1.442695, %v4848_v57 }
0x19d6   :  { %7129 = vrcp.f32 %v4751_v20  ;;  %v4857_v48 = vmul.f32 1.442695, %v4847_v9 }
0x19d7   :  { %7131 = vpow2.f32 %v4855_v8 }
0x19d8   :  { %7133 = vpow2.f32 %v4853_v29 }
0x19d9   :  { %v7124_v49 = vpop.eup %7123  ;;  %7135 = vpow2.f32 %v4859_v27 }
0x19da   :  { %v4766_v19 = vmul.f32 1.0614054, %v7124_v49  ;;  %7137 = vpow2.f32 %v4857_v48  ;;  %v4702_v48 = vmul.f32 0.5, %v8783_v32 }
0x19db   :  { %v7126_v44 = vpop.eup %7125 }
0x19dc   :  { %v4774_v51 = vadd.f32 -1.4531521, %v4766_v19  ;;  %v4765_v55 = vmul.f32 1.0614054, %v7126_v44 }
0x19de   :  { %v4782_v31 = vmul.f32 %v7124_v49, %v4774_v51  ;;  %v4773_v39 = vadd.f32 -1.4531521, %v4765_v55 }
0x19e0   :  { %v4790_v10 = vadd.f32 1.4214138, %v4782_v31  ;;  %v4781_v13 = vmul.f32 %v7126_v44, %v4773_v39  ;;  %v4726_v31 = vsel %vm4718_vm10, 1.0, %v7339_v22 }
0x19e1   :  { %v7128_v5 = vpop.eup %7127 }
0x19e2   :  { %v4798_v42 = vmul.f32 %v7124_v49, %v4790_v10  ;;  %v4789_v40 = vadd.f32 1.4214138, %v4781_v13  ;;  %v4768_v56 = vmul.f32 1.0614054, %v7128_v5 }
0x19e3   :  { %v7130_v26 = vpop.eup %7129 }
0x19e4   :  { %v4806_v0 = vadd.f32 -0.28449672, %v4798_v42  ;;  %v4797_v3 = vmul.f32 %v7126_v44, %v4789_v40  ;;  %v4776_v47 = vadd.f32 -1.4531521, %v4768_v56  ;;  %v4767_v63 = vmul.f32 1.0614054, %v7130_v26  ;;  %v7132_v54 = vpop.eup %7131 }
0x19e5   :  { %v7134_v51 = vpop.eup %7133  ;;  %v4725_v42 = vsel %vm4717_vm11, 1.0, %v7339_v22 }
0x19e6   :  { %v4814_v41 = vmul.f32 %v7124_v49, %v4806_v0  ;;  %v4805_v61 = vadd.f32 -0.28449672, %v4797_v3  ;;  %v4784_v2 = vmul.f32 %v7128_v5, %v4776_v47  ;;  %v4775_v21 = vadd.f32 -1.4531521, %v4767_v63 }
0x19e7   :  { %v4701_v3 = vmul.f32 0.5, %v8789_v15  ;;  %v4728_v15 = vsel %vm4720_vm12, 1.0, %v7339_v22 }
0x19e8   :  { %v4822_v14 = vadd.f32 0.2548296, %v4814_v41  ;;  %v4813_v30 = vmul.f32 %v7126_v44, %v4805_v61  ;;  %v4792_v37 = vadd.f32 1.4214138, %v4784_v2  ;;  %v4783_v45 = vmul.f32 %v7130_v26, %v4775_v21 }
0x19ea   :  { %v4830_v28 = vmul.f32 %v7124_v49, %v4822_v14  ;;  %v4821_v16 = vadd.f32 0.2548296, %v4813_v30  ;;  %v4800_v20 = vmul.f32 %v7128_v5, %v4792_v37  ;;  %v4791_v19 = vadd.f32 1.4214138, %v4783_v45 }
0x19ec   :  { %v4870_v43 = vmul.f32 %v7132_v54, %v4830_v28  ;;  %v4829_v8 = vmul.f32 %v7126_v44, %v4821_v16  ;;  %v4808_v60 = vadd.f32 -0.28449672, %v4800_v20  ;;  %v4799_v55 = vmul.f32 %v7130_v26, %v4791_v19  ;;  %v7136_v44 = vpop.eup %7135 }
0x19ed   :  { %v7138_v2 = vpop.eup %7137 }
0x19ee   :  { %v4878_v29 = vsub.f32 1.0, %v4870_v43  ;;  %v4869_v11 = vmul.f32 %v7134_v51, %v4829_v8  ;;  %v4816_v49 = vmul.f32 %v7128_v5, %v4808_v60  ;;  %v4807_v39 = vadd.f32 -0.28449672, %v4799_v55 }
0x19f0   :  { %v4886_v57 = vmul.f32 %v4878_v29, %v4726_v31  ;;  %v4877_v10 = vsub.f32 1.0, %v4869_v11  ;;  %v4824_v13 = vadd.f32 0.2548296, %v4816_v49  ;;  %v4815_v25 = vmul.f32 %v7130_v26, %v4807_v39 }
0x19f1   :  { %v4703_v31 = vmul.f32 0.5, %v8803_v52 }
0x19f2   :  { %v4885_v9 = vmul.f32 %v4877_v10, %v4725_v42  ;;  %v4832_v27 = vmul.f32 %v7128_v5, %v4824_v13  ;;  %v4894_v40 = vadd.f32 1.0, %v4886_v57  ;;  %v4823_v0 = vadd.f32 0.2548296, %v4815_v25 }
0x19f3   :  { %v4704_v57 = vmul.f32 0.5, %v8797_v46 }
0x19f4   :  { %v4441_v56 = vpop.xlane.xlu1 %4440  ;;  %v4893_v41 = vadd.f32 1.0, %v4885_v9  ;;  %v4872_v58 = vmul.f32 %v7136_v44, %v4832_v27  ;;  %v4831_v61 = vmul.f32 %v7130_v26, %v4823_v0  ;;  %v4902_v30 = vmul.f32 %v4894_v40, %v4702_v48 }
0x19f5   :  { %v4453_v47 = vmul.f32 0.03125, %v4441_v56  ;;  %v4727_v26 = vsel %vm4719_vm13, 1.0, %v7339_v22 }
0x19f6   :  { %v4438_v63 = vpop.xlane.xlu0 %4437  ;;  %v4901_v21 = vmul.f32 %v4893_v41, %v4701_v3  ;;  %v4871_v37 = vmul.f32 %v7138_v2, %v4831_v61  ;;  %v4880_v28 = vsub.f32 1.0, %v4872_v58 }
0x19f7   :  { %v4452_v14 = vmul.f32 0.03125, %v4438_v63  ;;  %v4501_v45 = vmul.f32 %v4453_v47, %v4453_v47  ;;  %v4517_v46 = vsub.f32 %v8745_v34, %v4453_v47 }
0x19f8   :  { %v4481_v5 = vpop.xlane.xlu1 %4480  ;;  %6810 = vmatprep.mubr.f32.mxu0 %v4901_v21  ;;  %v4879_v16 = vsub.f32 1.0, %v4871_v37  ;;  %v4888_v17 = vmul.f32 %v4880_v28, %v4728_v15 }
0x19f9   :  { %v4493_v54 = vmul.f32 0.03125, %v4481_v5  ;;  %6811 = vmatmul.mubr.f32.vlgmr.msra.gmra.mxu0 %v4902_v30  ;;  %v4500_v20 = vmul.f32 %v4452_v14, %v4452_v14  ;;  %v4516_v48 = vsub.f32 %v8749_v6, %v4452_v14 }
0x19fa   :  { %v4478_v32 = vpop.xlane.xlu0 %4477  ;;  %v4887_v60 = vmul.f32 %v4879_v16, %v4727_v26  ;;  %v4896_v55 = vadd.f32 1.0, %v4888_v17 }
0x19fb   :  { %v4509_v43 = vsub.f32 %v4493_v54, %v4501_v45  ;;  %v4492_v19 = vmul.f32 0.03125, %v4478_v32 }
0x19fc   :  { %v4447_v8 = vpop.xlane.xlu1 %4446  ;;  %v4895_v49 = vadd.f32 1.0, %v4887_v60  ;;  %v4904_v27 = vmul.f32 %v4896_v55, %v4704_v57 }
0x19fd   :  { %v4525_v50 = vadd.f32 1e-05, %v4509_v43  ;;  %v4508_v51 = vsub.f32 %v4492_v19, %v4500_v20  ;;  %v4455_v29 = vmul.f32 0.03125, %v4447_v8  ;;  %v8841_v20 = vrot.slane %v8663_v24, %v2401_v7 }
0x19fe   :  { %v4444_v11 = vpop.xlane.xlu0 %4443  ;;  %v4903_v13 = vmul.f32 %v4895_v49, %v4703_v31 }
0x19ff   :  { %7139 = vrsqrt.f32 %v4525_v50  ;;  %v4524_v39 = vadd.f32 1e-05, %v4508_v51  ;;  %v4454_v10 = vmul.f32 0.03125, %v4444_v11  ;;  %v4503_v25 = vmul.f32 %v4455_v29, %v4455_v29 }
0x1a00   :  { %v4487_v42 = vpop.xlane.xlu1 %4486  ;;  %6813 = vmatprep.mubr.f32.mxu0 %v4903_v13  ;;  %v4519_v5 = vsub.f32 %v8762_v4, %v4455_v29 }
0x1a01   :  { %7141 = vrsqrt.f32 %v4524_v39  ;;  %v4495_v9 = vmul.f32 0.03125, %v4487_v42  ;;  %v4502_v40 = vmul.f32 %v4454_v10, %v4454_v10  ;;  %6814 = vmatmul.mubr.f32.gmra.mxu0 %v4904_v27  ;;  %v4518_v45 = vsub.f32 %v8766_v38, %v4454_v10 }
0x1a02   :  { %v4484_v44 = vpop.xlane.xlu0 %4483 }
0x1a03   :  { %v4511_v56 = vsub.f32 %v4495_v9, %v4503_v25  ;;  %v4494_v0 = vmul.f32 0.03125, %v4484_v44 }
0x1a05   :  { %v4527_v52 = vadd.f32 1e-05, %v4511_v56  ;;  %v4510_v3 = vsub.f32 %v4494_v0, %v4502_v40 }
0x1a07   :  { %7143 = vrsqrt.f32 %v4527_v52  ;;  %v4526_v41 = vadd.f32 1e-05, %v4510_v3 }
0x1a09   :  { %7145 = vrsqrt.f32 %v4526_v41 }
0x1a0c   :  { %v7140_v58 = vpop.eup %7139 }
0x1a0d   :  { %v4541_v63 = vmul.f32 %v7140_v58, %v4517_v46 }
0x1a0e   :  { %v7142_v61 = vpop.eup %7141 }
0x1a0f   :  { %v4540_v2 = vmul.f32 %v7142_v61, %v4516_v48  ;;  %v4553_v21 = vmul.f32 %v8720_v23, %v4541_v63 }
0x1a11   :  { %v4552_v30 = vmul.f32 %v8720_v23, %v4540_v2  ;;  %v4565_v15 = vadd.f32 %v8727_v59, %v4553_v21 }
0x1a13   :  { %v4564_v37 = vadd.f32 %v8727_v59, %v4552_v30 }
0x1a14   :  { %v7144_v28 = vpop.eup %7143 }
0x1a15   :  { %6772 = vmatprep.mubr.msk.f32.mxu1 %vm224_vm0, %v4564_v37  ;;  %v4543_v47 = vmul.f32 %v7144_v28, %v4519_v5 }
0x1a16   :  { %v7146_v14 = vpop.eup %7145  ;;  %6773 = vmatmul.mubr.msk.f32.gmra.mxu1 %vm224_vm0, %v4565_v15 }
0x1a17   :  { %v4542_v54 = vmul.f32 %v7146_v14, %v4518_v45  ;;  %v4555_v32 = vmul.f32 %v8720_v23, %v4543_v47 }
0x1a19   :  { %v4554_v16 = vmul.f32 %v8720_v23, %v4542_v54  ;;  %v4567_v26 = vadd.f32 %v8727_v59, %v4555_v32 }
0x1a1b   :  { %v4566_v17 = vadd.f32 %v8727_v59, %v4554_v16 }
0x1a1d   :  { %6775 = vmatprep.mubr.msk.f32.mxu1 %vm224_vm0, %v4566_v17 }
0x1a1e   :  { %6776 = vmatmul.mubr.msk.f32.gmra.mxu1 %vm224_vm0, %v4567_v26 }
0x1ab9   :  { %v6812_v43 = vpop.f32.mrf.mxu0 }
0x1aba   :  { %v5015_v19 = vadd.f32 %v6812_v43, %v8672_v12 }
0x1abb   :  { %v4975_v8 = vpop.f32.mrf.mxu0 }
0x1abc   :  { %v8845_v60 = vadd.f32 %v8841_v20, %v5015_v19  ;;  %v5014_v23 = vadd.f32 %v4975_v8, %v8675_v33 }
0x1abe   :  { %v8849_v59 = vadd.f32 %v8841_v20, %v5014_v23  ;;  %v5037_v50 = vsel %vm224_vm0, %v8845_v60, 0.0  ;;  %v5067_v51 = vmul.f32 %v8845_v60, %v8845_v60 }
0x1abf   :  { %5038 = vadd.xlane.f32.xlu1 %v5037_v50 }
0x1ac0   :  { %v5034_v7 = vsel %vm224_vm0, %v8849_v59, 0.0  ;;  %v5066_v24 = vmul.f32 %v8849_v59, %v8849_v59  ;;  %v5077_v33 = vsel %vm224_vm0, %v5067_v51, 0.0 }
0x1ac1   :  { %5035 = vadd.xlane.f32.xlu0 %v5034_v7  ;;  %v6815_v12 = vpop.f32.mrf.mxu0 }
0x1ac2   :  { %v5017_v29 = vadd.f32 %v6815_v12, %v8696_v62  ;;  %v5074_v31 = vsel %vm224_vm0, %v5066_v24, 0.0 }
0x1ac3   :  { %5078 = vadd.xlane.f32.xlu1 %v5077_v33  ;;  %v4985_v55 = vpop.f32.mrf.mxu0 }
0x1ac4   :  { %v8863_v11 = vadd.f32 %v8841_v20, %v5017_v29  ;;  %v5016_v49 = vadd.f32 %v4985_v55, %v8683_v1 }
0x1ac5   :  { %5075 = vadd.xlane.f32.xlu0 %v5074_v31 }
0x1ac6   :  { %v8867_v57 = vadd.f32 %v8841_v20, %v5016_v49  ;;  %v5043_v39 = vsel %vm224_vm0, %v8863_v11, 0.0  ;;  %v5069_v10 = vmul.f32 %v8863_v11, %v8863_v11 }
0x1ac7   :  { %5044 = vadd.xlane.f32.xlu1 %v5043_v39 }
0x1ac8   :  { %v5040_v62 = vsel %vm224_vm0, %v8867_v57, 0.0  ;;  %v5068_v13 = vmul.f32 %v8867_v57, %v8867_v57  ;;  %v5083_v1 = vsel %vm224_vm0, %v5069_v10, 0.0 }
0x1ac9   :  { %5041 = vadd.xlane.f32.xlu0 %v5040_v62 }
0x1aca   :  { %v5080_v42 = vsel %vm224_vm0, %v5068_v13, 0.0 }
0x1acb   :  { %5084 = vadd.xlane.f32.xlu1 %v5083_v1 }
0x1acd   :  { %5081 = vadd.xlane.f32.xlu0 %v5080_v42 }
0x1ad6   :  { %v6774_v25 = vpop.f32.mrf.mxu1 }
0x1ad7   :  { %v8880_v9 = vadd.f32 %v6774_v25, %v8780_v18 }
0x1ad8   :  { %v4682_v27 = vpop.f32.mrf.mxu1 }
0x1ad9   :  { %v8883_v44 = vmul.f32 0.70710677, %v8880_v9  ;;  %v8886_v40 = vadd.f32 %v4682_v27, %v8780_v18 }
0x1adb   :  { %v4738_v56 = vand.u32 2147483647, %v8883_v44  ;;  %v8890_v0 = vmul.f32 0.70710677, %v8886_v40  ;;  %vm4722_vm14 = vcmp.ge.f32.partialorder %v8883_v44, 0.0 }
0x1add   :  { %v4746_v52 = vmul.f32 0.3275911, %v4738_v56  ;;  %v4737_v3 = vand.u32 2147483647, %v8890_v0  ;;  %v4842_v28 = vsub.f32 0.0, %v4738_v56  ;;  %vm4721_vm15 = vcmp.ge.f32.partialorder %v8890_v0, 0.0 }
0x1ade   :  { %v6777_v41 = vpop.f32.mrf.mxu1 }
0x1adf   :  { %v4754_v46 = vadd.f32 1.0, %v4746_v52  ;;  %v4745_v58 = vmul.f32 0.3275911, %v4737_v3  ;;  %v8894_v48 = vadd.f32 %v6777_v41, %v8780_v18  ;;  %v4841_v14 = vsub.f32 0.0, %v4737_v3 }
0x1ae0   :  { %v4692_v63 = vpop.f32.mrf.mxu1  ;;  %v4850_v54 = vmul.f32 %v4842_v28, %v4738_v56 }
0x1ae1   :  { %7147 = vrcp.f32 %v4754_v46  ;;  %v4753_v61 = vadd.f32 1.0, %v4745_v58  ;;  %v8897_v2 = vmul.f32 0.70710677, %v8894_v48  ;;  %v8900_v21 = vadd.f32 %v4692_v63, %v8780_v18 }
0x1ae2   :  { %v4849_v18 = vmul.f32 %v4841_v14, %v4737_v3  ;;  %v4863_v17 = vmul.f32 1.442695, %v4850_v54 }
0x1ae3   :  { %7149 = vrcp.f32 %v4753_v61  ;;  %v4740_v30 = vand.u32 2147483647, %v8897_v2  ;;  %v8904_v5 = vmul.f32 0.70710677, %v8900_v21  ;;  %vm4724_vm1 = vcmp.ge.f32.partialorder %v8897_v2, 0.0 }
0x1ae4   :  { %v4861_v23 = vmul.f32 1.442695, %v4849_v18 }
0x1ae5   :  { %v4748_v37 = vmul.f32 0.3275911, %v4740_v30  ;;  %v4739_v15 = vand.u32 2147483647, %v8904_v5  ;;  %v4844_v43 = vsub.f32 0.0, %v4740_v30  ;;  %vm4723_vm2 = vcmp.ge.f32.partialorder %v8904_v5, 0.0 }
0x1ae6   :  { %v4731_v2 = vsel %vm4723_vm2, 1.0, %v7339_v22 }
0x1ae7   :  { %v4756_v45 = vadd.f32 1.0, %v4748_v37  ;;  %v4747_v47 = vmul.f32 0.3275911, %v4739_v15  ;;  %v4843_v51 = vsub.f32 0.0, %v4739_v15  ;;  %v4852_v24 = vmul.f32 %v4844_v43, %v4740_v30 }
0x1ae8   :  { %v4730_v43 = vsel %vm4722_vm14, 1.0, %v7339_v22 }
0x1ae9   :  { %7151 = vrcp.f32 %v4756_v45  ;;  %v4755_v32 = vadd.f32 1.0, %v4747_v47  ;;  %v4851_v31 = vmul.f32 %v4843_v51, %v4739_v15  ;;  %v4867_v39 = vmul.f32 1.442695, %v4852_v24 }
0x1aea   :  { %v4729_v24 = vsel %vm4721_vm15, 1.0, %v7339_v22 }
0x1aeb   :  { %7153 = vrcp.f32 %v4755_v32  ;;  %v4865_v27 = vmul.f32 1.442695, %v4851_v31 }
0x1aec   :  { %7155 = vpow2.f32 %v4863_v17 }
0x1aed   :  { %7157 = vpow2.f32 %v4861_v23 }
0x1aee   :  { %v7148_v16 = vpop.eup %7147  ;;  %7159 = vpow2.f32 %v4867_v39 }
0x1aef   :  { %v4770_v26 = vmul.f32 1.0614054, %v7148_v16  ;;  %7161 = vpow2.f32 %v4865_v27  ;;  %v4732_v27 = vsel %vm4724_vm1, 1.0, %v7339_v22 }
0x1af0   :  { %v7150_v19 = vpop.eup %7149 }
0x1af1   :  { %v4778_v8 = vadd.f32 -1.4531521, %v4770_v26  ;;  %v4769_v50 = vmul.f32 1.0614054, %v7150_v19 }
0x1af3   :  { %v4786_v7 = vmul.f32 %v7148_v16, %v4778_v8  ;;  %v4777_v12 = vadd.f32 -1.4531521, %v4769_v50 }
0x1af5   :  { %v4794_v33 = vadd.f32 1.4214138, %v4786_v7  ;;  %v4785_v29 = vmul.f32 %v7150_v19, %v4777_v12 }
0x1af6   :  { %v7152_v55 = vpop.eup %7151 }
0x1af7   :  { %v4802_v49 = vmul.f32 %v7148_v16, %v4794_v33  ;;  %v4793_v10 = vadd.f32 1.4214138, %v4785_v29  ;;  %v4772_v62 = vmul.f32 1.0614054, %v7152_v55 }
0x1af8   :  { %v7154_v1 = vpop.eup %7153 }
0x1af9   :  { %v4810_v13 = vadd.f32 -0.28449672, %v4802_v49  ;;  %v4801_v42 = vmul.f32 %v7150_v19, %v4793_v10  ;;  %v4780_v25 = vadd.f32 -1.4531521, %v4772_v62  ;;  %v4771_v52 = vmul.f32 1.0614054, %v7154_v1  ;;  %v7156_v28 = vpop.eup %7155 }
0x1afa   :  { %v7158_v18 = vpop.eup %7157  ;;  %v4705_v49 = vmul.f32 0.5, %v8886_v40  ;;  %v4706_v10 = vmul.f32 0.5, %v8880_v9  ;;  %v4707_v9 = vmul.f32 0.5, %v8900_v21 }
0x1afb   :  { %v4818_v56 = vmul.f32 %v7148_v16, %v4810_v13  ;;  %v4809_v3 = vadd.f32 -0.28449672, %v4801_v42  ;;  %v4788_v41 = vmul.f32 %v7152_v55, %v4780_v25  ;;  %v4779_v58 = vadd.f32 -1.4531521, %v4771_v52 }
0x1afd   :  { %v4826_v46 = vadd.f32 0.2548296, %v4818_v56  ;;  %v4817_v63 = vmul.f32 %v7150_v19, %v4809_v3  ;;  %v4796_v61 = vadd.f32 1.4214138, %v4788_v41  ;;  %v4787_v37 = vmul.f32 %v7154_v1, %v4779_v58 }
0x1aff   :  { %v4834_v30 = vmul.f32 %v7148_v16, %v4826_v46  ;;  %v4825_v15 = vadd.f32 0.2548296, %v4817_v63  ;;  %v4804_v45 = vmul.f32 %v7152_v55, %v4796_v61  ;;  %v4795_v14 = vadd.f32 1.4214138, %v4787_v37 }
0x1b00   :  { %v4708_v46 = vmul.f32 0.5, %v8894_v48 }
0x1b01   :  { %v4874_v47 = vmul.f32 %v7156_v28, %v4834_v30  ;;  %v4833_v54 = vmul.f32 %v7150_v19, %v4825_v15  ;;  %v4812_v32 = vadd.f32 -0.28449672, %v4804_v45  ;;  %v4803_v26 = vmul.f32 %v7154_v1, %v4795_v14  ;;  %v7160_v19 = vpop.eup %7159 }
0x1b02   :  { %v7162_v13 = vpop.eup %7161 }
0x1b03   :  { %v4882_v17 = vsub.f32 1.0, %v4874_v47  ;;  %v4873_v8 = vmul.f32 %v7158_v18, %v4833_v54  ;;  %v4820_v23 = vmul.f32 %v7152_v55, %v4812_v32  ;;  %v4811_v50 = vadd.f32 -0.28449672, %v4803_v26 }
0x1b05   :  { %v4890_v16 = vmul.f32 %v4882_v17, %v4730_v43  ;;  %v4881_v51 = vsub.f32 1.0, %v4873_v8  ;;  %v4828_v7 = vadd.f32 0.2548296, %v4820_v23  ;;  %v4819_v44 = vmul.f32 %v7154_v1, %v4811_v50 }
0x1b07   :  { %v4889_v12 = vmul.f32 %v4881_v51, %v4729_v24  ;;  %v4836_v33 = vmul.f32 %v7152_v55, %v4828_v7  ;;  %v4898_v29 = vadd.f32 1.0, %v4890_v16  ;;  %v4827_v31 = vadd.f32 0.2548296, %v4819_v44 }
0x1b09   :  { %v4897_v39 = vadd.f32 1.0, %v4889_v12  ;;  %v4876_v0 = vmul.f32 %v7160_v19, %v4836_v33  ;;  %v4835_v62 = vmul.f32 %v7154_v1, %v4827_v31  ;;  %v4906_v55 = vmul.f32 %v4898_v29, %v4706_v10 }
0x1b0b   :  { %v4905_v42 = vmul.f32 %v4897_v39, %v4705_v49  ;;  %v4884_v25 = vsub.f32 1.0, %v4876_v0  ;;  %v4875_v56 = vmul.f32 %v7162_v13, %v4835_v62 }
0x1b0d   :  { %6816 = vmatprep.mubr.f32.mxu0 %v4905_v42  ;;  %v4892_v52 = vmul.f32 %v4884_v25, %v4732_v27  ;;  %v4883_v40 = vsub.f32 1.0, %v4875_v56 }
0x1b0e   :  { %6817 = vmatmul.mubr.f32.gmra.mxu0 %v4906_v55 }
0x1b0f   :  { %v4891_v3 = vmul.f32 %v4883_v40, %v4731_v2  ;;  %v4900_v41 = vadd.f32 1.0, %v4892_v52 }
0x1b11   :  { %v4899_v1 = vadd.f32 1.0, %v4891_v3  ;;  %v4908_v63 = vmul.f32 %v4900_v41, %v4708_v46  ;;  %v7240_v3 = vld [vmem:[#allocation5 + $0x230] sm:$0xff] }
0x1b12   :  { %v8949_v41 = vrot.slane %v7240_v3, %v2533_v35 }
0x1b13   :  { %v4907_v58 = vmul.f32 %v4899_v1, %v4707_v9 }
0x1b15   :  { %6819 = vmatprep.mubr.f32.mxu0 %v4907_v58 }
0x1b16   :  { %6820 = vmatmul.mubr.f32.gmra.mxu0 %v4908_v63 }
0x1b48   :  { %v5039_v5 = vpop.xlane.xlu1 %5038 }
0x1b49   :  { %v5059_v28 = vmul.f32 0.03125, %v5039_v5 }
0x1b4a   :  { %v5036_v61 = vpop.xlane.xlu0 %5035 }
0x1b4b   :  { %v5058_v45 = vmul.f32 0.03125, %v5036_v61  ;;  %v5107_v54 = vmul.f32 %v5059_v28, %v5059_v28 }
0x1b4c   :  { %v5079_v30 = vpop.xlane.xlu1 %5078 }
0x1b4d   :  { %v5099_v47 = vmul.f32 0.03125, %v5079_v30  ;;  %v5106_v18 = vmul.f32 %v5058_v45, %v5058_v45  ;;  %v5122_v52 = vsub.f32 %v8849_v59, %v5058_v45 }
0x1b4e   :  { %v5076_v37 = vpop.xlane.xlu0 %5075 }
0x1b4f   :  { %v5098_v32 = vmul.f32 0.03125, %v5076_v37  ;;  %v5115_v21 = vsub.f32 %v5099_v47, %v5107_v54 }
0x1b50   :  { %v5045_v15 = vpop.xlane.xlu1 %5044 }
0x1b51   :  { %v5114_v26 = vsub.f32 %v5098_v32, %v5106_v18  ;;  %v8919_v48 = vmul.f32 0.03125, %v5045_v15  ;;  %v5131_v8 = vadd.f32 1e-05, %v5115_v21 }
0x1b52   :  { %v5042_v14 = vpop.xlane.xlu0 %5041 }
0x1b53   :  { %v8921_v23 = vmul.f32 0.03125, %v5042_v14  ;;  %v5130_v50 = vadd.f32 1e-05, %v5114_v26  ;;  %v5109_v51 = vmul.f32 %v8919_v48, %v8919_v48  ;;  %7163 = vrsqrt.f32 %v5131_v8 }
0x1b54   :  { %v5085_v17 = vpop.xlane.xlu1 %5084 }
0x1b55   :  { %v5101_v16 = vmul.f32 0.03125, %v5085_v17  ;;  %v5108_v24 = vmul.f32 %v8921_v23, %v8921_v23  ;;  %7165 = vrsqrt.f32 %v5130_v50  ;;  %v5124_v37 = vsub.f32 %v8867_v57, %v8921_v23 }
0x1b56   :  { %v5082_v43 = vpop.xlane.xlu0 %5081 }
0x1b57   :  { %v5100_v7 = vmul.f32 0.03125, %v5082_v43  ;;  %v5117_v44 = vsub.f32 %v5101_v16, %v5109_v51 }
0x1b59   :  { %v5116_v12 = vsub.f32 %v5100_v7, %v5108_v24  ;;  %v5133_v33 = vadd.f32 1e-05, %v5117_v44  ;;  %v5325_v44 = vld [vmem:[#allocation5 + $0x2d8] sm:$0xff] }
0x1b5a   :  { %6822 = vmatprep.subr.mxu1 %v5325_v44 }
0x1b5b   :  { %v5132_v19 = vadd.f32 1e-05, %v5116_v12  ;;  %7167 = vrsqrt.f32 %v5133_v33  ;;  %v5324_v12 = vld [vmem:[#allocation5 + $0x2d0] sm:$0xff]  ;;  %6823 = vmatpush3.msra.mxu1 %v5325_v44  ;;  %v5323_v33 = vld [vmem:[#allocation5 + $0x2c8] sm:$0xff] }
0x1b5c   :  { %6824 = vmatprep.subr.mxu1 %v5324_v12 }
0x1b5d   :  { %7169 = vrsqrt.f32 %v5132_v19  ;;  %6825 = vmatpush3.msra.mxu1 %v5324_v12  ;;  %v5322_v19 = vld [vmem:[#allocation5 + $0x2c0] sm:$0xff] }
0x1b5e   :  { %6826 = vmatprep.subr.mxu1 %v5323_v33 }
0x1b5f   :  { %6827 = vmatpush3.msra.mxu1 %v5323_v33 }
0x1b60   :  { %v7164_v42 = vpop.eup %7163  ;;  %6828 = vmatprep.subr.mxu1 %v5322_v19 }
0x1b61   :  { %6829 = vmatpush3.msra.mxu1 %v5322_v19 }
0x1b62   :  { %v7166_v27 = vpop.eup %7165 }
0x1b63   :  { %v5146_v58 = vmul.f32 %v7166_v27, %v5122_v52 }
0x1b68   :  { %v7168_v61 = vpop.eup %7167 }
0x1b6a   :  { %v7170_v30 = vpop.eup %7169 }
0x1b6b   :  { %v5148_v14 = vmul.f32 %v7170_v30, %v5124_v37 }
0x1b6d   :  { %v5160_v17 = vmul.f32 %v8949_v41, %v5148_v14 }
0x1bce   :  { %v6818_v29 = vpop.f32.mrf.mxu0 }
0x1bcf   :  { %v5019_v31 = vadd.f32 %v6818_v29, %v8745_v34 }
0x1bd0   :  { %v4995_v49 = vpop.f32.mrf.mxu0 }
0x1bd1   :  { %v8929_v39 = vadd.f32 %v8841_v20, %v5019_v31  ;;  %v5018_v0 = vadd.f32 %v4995_v49, %v8749_v6  ;;  %v5123_v6 = vsub.f32 %v8845_v60, %v5059_v28 }
0x1bd3   :  { %v8933_v10 = vadd.f32 %v8841_v20, %v5018_v0  ;;  %v5049_v62 = vsel %vm224_vm0, %v8929_v39, 0.0  ;;  %v5071_v13 = vmul.f32 %v8929_v39, %v8929_v39  ;;  %v5147_v2 = vmul.f32 %v7164_v42, %v5123_v6 }
0x1bd4   :  { %5050 = vadd.xlane.f32.xlu1 %v5049_v62 }
0x1bd5   :  { %v5046_v34 = vsel %vm224_vm0, %v8933_v10, 0.0  ;;  %v5070_v25 = vmul.f32 %v8933_v10, %v8933_v10  ;;  %v5089_v56 = vsel %vm224_vm0, %v5071_v13, 0.0  ;;  %v5159_v5 = vmul.f32 %v8949_v41, %v5147_v2 }
0x1bd6   :  { %5047 = vadd.xlane.f32.xlu0 %v5046_v34  ;;  %v6821_v55 = vpop.f32.mrf.mxu0 }
0x1bd7   :  { %v5021_v40 = vadd.f32 %v6821_v55, %v8762_v4  ;;  %v5086_v1 = vsel %vm224_vm0, %v5070_v25, 0.0  ;;  %v8958_v4 = vrot.slane %v7240_v3, %v2545_v53 }
0x1bd8   :  { %5090 = vadd.xlane.f32.xlu1 %v5089_v56  ;;  %v5005_v9 = vpop.f32.mrf.mxu0 }
0x1bd9   :  { %v8953_v60 = vadd.f32 %v8841_v20, %v5021_v40  ;;  %v5020_v46 = vadd.f32 %v5005_v9, %v8766_v38  ;;  %v5125_v38 = vsub.f32 %v8863_v11, %v8919_v48  ;;  %v8979_v15 = vadd.f32 %v8958_v4, %v5159_v5 }
0x1bda   :  { %5087 = vadd.xlane.f32.xlu0 %v5086_v1  ;;  %v9001_v8 = vadd.f32 %v8958_v4, %v5160_v17 }
0x1bdb   :  { %v8961_v59 = vadd.f32 %v8841_v20, %v5020_v46  ;;  %v5055_v35 = vsel %vm224_vm0, %v8953_v60, 0.0  ;;  %v5073_v63 = vmul.f32 %v8953_v60, %v8953_v60  ;;  %v5158_v20 = vmul.f32 %v8949_v41, %v5146_v58 }
0x1bdc   :  { %5056 = vadd.xlane.f32.xlu1 %v5055_v35  ;;  %v5149_v45 = vmul.f32 %v7168_v61, %v5125_v38  ;;  %v5181_v54 = vsel %vm224_vm0, %v8979_v15, 0.0  ;;  %v5211_v57 = vmul.f32 %v8979_v15, %v8979_v15  ;;  %v5184_v50 = vsel %vm224_vm0, %v9001_v8, 0.0 }
0x1bdd   :  { %v5052_v36 = vsel %vm224_vm0, %v8961_v59, 0.0  ;;  %v5072_v53 = vmul.f32 %v8961_v59, %v8961_v59  ;;  %v5095_v28 = vsel %vm224_vm0, %v5073_v63, 0.0  ;;  %v8983_v47 = vadd.f32 %v8958_v4, %v5158_v20 }
0x1bde   :  { %5053 = vadd.xlane.f32.xlu0 %v5052_v36  ;;  %v5161_v32 = vmul.f32 %v8949_v41, %v5149_v45  ;;  %v5221_v26 = vsel %vm224_vm0, %v5211_v57, 0.0  ;;  %v5212_v51 = vmul.f32 %v9001_v8, %v9001_v8 }
0x1bdf   :  { %v5092_v11 = vsel %vm224_vm0, %v5072_v53, 0.0  ;;  %v5178_v18 = vsel %vm224_vm0, %v8983_v47, 0.0  ;;  %v5210_v21 = vmul.f32 %v8983_v47, %v8983_v47 }
0x1be0   :  { %5096 = vadd.xlane.f32.xlu1 %v5095_v28  ;;  %v8997_v48 = vadd.f32 %v8958_v4, %v5161_v32  ;;  %v5224_v24 = vsel %vm224_vm0, %v5212_v51, 0.0 }
0x1be1   :  { %v5218_v43 = vsel %vm224_vm0, %v5210_v21, 0.0 }
0x1be2   :  { %5093 = vadd.xlane.f32.xlu0 %v5092_v11  ;;  %v5187_v23 = vsel %vm224_vm0, %v8997_v48, 0.0  ;;  %v5213_v16 = vmul.f32 %v8997_v48, %v8997_v48 }
0x1be4   :  { %5182 = vadd.xlane.f32.xlu1 %v5181_v54  ;;  %v5227_v7 = vsel %vm224_vm0, %v5213_v16, 0.0 }
0x1be6   :  { %5179 = vadd.xlane.f32.xlu0 %v5178_v18 }
0x1be8   :  { %5222 = vadd.xlane.f32.xlu1 %v5221_v26 }
0x1bea   :  { %5219 = vadd.xlane.f32.xlu0 %v5218_v43 }
0x1bec   :  { %5188 = vadd.xlane.f32.xlu1 %v5187_v23 }
0x1bee   :  { %5185 = vadd.xlane.f32.xlu0 %v5184_v50 }
0x1bf0   :  { %5228 = vadd.xlane.f32.xlu1 %v5227_v7 }
0x1bf2   :  { %5225 = vadd.xlane.f32.xlu0 %v5224_v24 }
0x1c5d   :  { %v5051_v29 = vpop.xlane.xlu1 %5050 }
0x1c5e   :  { %v5063_v31 = vmul.f32 0.03125, %v5051_v29 }
0x1c5f   :  { %v5048_v49 = vpop.xlane.xlu0 %5047 }
0x1c60   :  { %v5062_v0 = vmul.f32 0.03125, %v5048_v49  ;;  %v5111_v13 = vmul.f32 %v5063_v31, %v5063_v31  ;;  %v5127_v54 = vsub.f32 %v8929_v39, %v5063_v31 }
0x1c61   :  { %v5091_v62 = vpop.xlane.xlu1 %5090 }
0x1c62   :  { %v5103_v42 = vmul.f32 0.03125, %v5091_v62  ;;  %v5110_v25 = vmul.f32 %v5062_v0, %v5062_v0  ;;  %v5126_v26 = vsub.f32 %v8933_v10, %v5062_v0 }
0x1c63   :  { %v5088_v34 = vpop.xlane.xlu0 %5087 }
0x1c64   :  { %v5119_v6 = vsub.f32 %v5103_v42, %v5111_v13  ;;  %v5102_v27 = vmul.f32 0.03125, %v5088_v34 }
0x1c65   :  { %v5057_v52 = vpop.xlane.xlu1 %5056 }
0x1c66   :  { %v5135_v55 = vadd.f32 1e-05, %v5119_v6  ;;  %v5118_v56 = vsub.f32 %v5102_v27, %v5110_v25  ;;  %v9013_v40 = vmul.f32 0.03125, %v5057_v52 }
0x1c67   :  { %v5054_v3 = vpop.xlane.xlu0 %5053 }
0x1c68   :  { %7171 = vrsqrt.f32 %v5135_v55  ;;  %v5134_v2 = vadd.f32 1e-05, %v5118_v56  ;;  %v9015_v9 = vmul.f32 0.03125, %v5054_v3  ;;  %v5113_v46 = vmul.f32 %v9013_v40, %v9013_v40 }
0x1c69   :  { %v5097_v1 = vpop.xlane.xlu1 %5096  ;;  %v5129_v0 = vsub.f32 %v8953_v60, %v9013_v40 }
0x1c6a   :  { %7173 = vrsqrt.f32 %v5134_v2  ;;  %v5105_v58 = vmul.f32 0.03125, %v5097_v1  ;;  %v5112_v63 = vmul.f32 %v9015_v9, %v9015_v9  ;;  %v5128_v52 = vsub.f32 %v8961_v59, %v9015_v9 }
0x1c6b   :  { %v5094_v35 = vpop.xlane.xlu0 %5093 }
0x1c6c   :  { %v5121_v5 = vsub.f32 %v5105_v58, %v5113_v46  ;;  %v5104_v61 = vmul.f32 0.03125, %v5094_v35 }
0x1c6d   :  { %v5183_v38 = vpop.xlane.xlu1 %5182 }
0x1c6e   :  { %v5137_v36 = vadd.f32 1e-05, %v5121_v5  ;;  %v5120_v53 = vsub.f32 %v5104_v61, %v5112_v63  ;;  %v9021_v20 = vmul.f32 0.03125, %v5183_v38 }
0x1c6f   :  { %v5180_v30 = vpop.xlane.xlu0 %5179 }
0x1c70   :  { %7175 = vrsqrt.f32 %v5137_v36  ;;  %v5136_v37 = vadd.f32 1e-05, %v5120_v53  ;;  %v9023_v28 = vmul.f32 0.03125, %v5180_v30  ;;  %v5251_v11 = vmul.f32 %v9021_v20, %v9021_v20 }
0x1c71   :  { %v5223_v45 = vpop.xlane.xlu1 %5222  ;;  %v5267_v9 = vsub.f32 %v8979_v15, %v9021_v20  ;;  %v9081_v20 = vld [vmem:[#allocation5 + $0x288] sm:$0xff] }
0x1c72   :  { %7177 = vrsqrt.f32 %v5136_v37  ;;  %v5243_v14 = vmul.f32 0.03125, %v5223_v45  ;;  %v5250_v18 = vmul.f32 %v9023_v28, %v9023_v28  ;;  %v5266_v37 = vsub.f32 %v8983_v47, %v9023_v28 }
0x1c73   :  { %v5220_v57 = vpop.xlane.xlu0 %5219 }
0x1c74   :  { %v5259_v21 = vsub.f32 %v5243_v14, %v5251_v11  ;;  %v5242_v17 = vmul.f32 0.03125, %v5220_v57  ;;  %v9086_v57 = vld [vmem:[#allocation5 + $0x2a0] sm:$0xff] }
0x1c75   :  { %v7172_v32 = vpop.eup %7171  ;;  %v5189_v43 = vpop.xlane.xlu1 %5188 }
0x1c76   :  { %v5151_v23 = vmul.f32 %v7172_v32, %v5127_v54  ;;  %v5275_v50 = vadd.f32 1e-05, %v5259_v21  ;;  %v5258_v51 = vsub.f32 %v5242_v17, %v5250_v18  ;;  %v9031_v7 = vmul.f32 0.03125, %v5189_v43  ;;  %v9091_v18 = vld [vmem:[#allocation5 + $0x2a8] sm:$0xff] }
0x1c77   :  { %v7174_v16 = vpop.eup %7173  ;;  %v5186_v24 = vpop.xlane.xlu0 %5185 }
0x1c78   :  { %v5163_v44 = vmul.f32 %v8949_v41, %v5151_v23  ;;  %v5150_v39 = vmul.f32 %v7174_v16, %v5126_v26  ;;  %7179 = vrsqrt.f32 %v5275_v50  ;;  %v5274_v12 = vadd.f32 1e-05, %v5258_v51  ;;  %v9100_v50 = vld [vmem:[#allocation5 + $0x298] sm:$0xff] }
0x1c79   :  { %v9034_v33 = vmul.f32 0.03125, %v5186_v24  ;;  %v5229_v19 = vpop.xlane.xlu1 %5228  ;;  %v5253_v31 = vmul.f32 %v9031_v7, %v9031_v7  ;;  %v5269_v21 = vsub.f32 %v8997_v48, %v9031_v7  ;;  %v9103_v24 = vld [vmem:[#allocation5 + $0x290] sm:$0xff] }
0x1c7a   :  { %v9037_v29 = vadd.f32 %v8958_v4, %v5163_v44  ;;  %v5162_v10 = vmul.f32 %v8949_v41, %v5150_v39  ;;  %7181 = vrsqrt.f32 %v5274_v12  ;;  %v5245_v49 = vmul.f32 0.03125, %v5229_v19  ;;  %v9105_v48 = vld [vmem:[#allocation5 + $0x2b0] sm:$0xff]  ;;  %v9109_v12 = vld [vmem:[#allocation5 + $0x2b8] sm:$0xff]  ;;  %v5675_v19 = vld [vmem:[#allocation5 + $0x320] sm:$0xff] }
0x1c7b   :  { %v5226_v62 = vpop.xlane.xlu0 %5225  ;;  %v5252_v34 = vmul.f32 %v9034_v33, %v9034_v33  ;;  %v5268_v23 = vsub.f32 %v9001_v8, %v9034_v33  ;;  %6842 = vmatprep.subr.mxu1 %v5675_v19 }
0x1c7c   :  { %v5193_v13 = vsel %vm224_vm0, %v9037_v29, 0.0  ;;  %v9047_v42 = vadd.f32 %v8958_v4, %v5162_v10  ;;  %v5261_v25 = vsub.f32 %v5245_v49, %v5253_v31  ;;  %v5244_v6 = vmul.f32 0.03125, %v5226_v62  ;;  %v5674_v10 = vld [vmem:[#allocation5 + $0x318] sm:$0xff]  ;;  %v5673_v31 = vld [vmem:[#allocation5 + $0x310] sm:$0xff]  ;;  %v5672_v49 = vld [vmem:[#allocation5 + $0x308] sm:$0xff] }
0x1c7d   :  { %5194 = vadd.xlane.f32.xlu1 %v5193_v13  ;;  %v5215_v27 = vmul.f32 %v9037_v29, %v9037_v29  ;;  %v7176_v55 = vpop.eup %7175  ;;  %v5670_v62 = vld [vmem:[#allocation5 + $0x2f8] sm:$0xff]  ;;  %v5669_v13 = vld [vmem:[#allocation5 + $0x2f0] sm:$0xff] }
0x1c7e   :  { %v5190_v60 = vsel %vm224_vm0, %v9047_v42, 0.0  ;;  %v5214_v56 = vmul.f32 %v9047_v42, %v9047_v42  ;;  %v5277_v40 = vadd.f32 1e-05, %v5261_v25  ;;  %v5260_v2 = vsub.f32 %v5244_v6, %v5252_v34  ;;  %v5668_v6 = vld [vmem:[#allocation5 + $0x2e8] sm:$0xff] }
0x1c7f   :  { %5191 = vadd.xlane.f32.xlu0 %v5190_v60  ;;  %v5153_v3 = vmul.f32 %v7176_v55, %v5129_v0  ;;  %v7178_v1 = vpop.eup %7177  ;;  %v5233_v46 = vsel %vm224_vm0, %v5215_v27, 0.0  ;;  %v5671_v0 = vld [vmem:[#allocation5 + $0x300] sm:$0xff] }
0x1c80   :  { %7183 = vrsqrt.f32 %v5277_v40  ;;  %v5276_v58 = vadd.f32 1e-05, %v5260_v2  ;;  %v5152_v63 = vmul.f32 %v7178_v1, %v5128_v52  ;;  %v5230_v5 = vsel %vm224_vm0, %v5214_v56, 0.0 }
0x1c81   :  { %5234 = vadd.xlane.f32.xlu1 %v5233_v46  ;;  %v5165_v35 = vmul.f32 %v8949_v41, %v5153_v3 }
0x1c82   :  { %7185 = vrsqrt.f32 %v5276_v58  ;;  %v5164_v59 = vmul.f32 %v8949_v41, %v5152_v63 }
0x1c83   :  { %5231 = vadd.xlane.f32.xlu0 %v5230_v5  ;;  %v9063_v61 = vadd.f32 %v8958_v4, %v5165_v35 }
0x1c84   :  { %v9071_v36 = vadd.f32 %v8958_v4, %v5164_v59  ;;  %v9083_v4 = vld [vmem:[#allocation5 + $0x280] sm:$0xff] }
0x1c85   :  { %v5199_v38 = vsel %vm224_vm0, %v9063_v61, 0.0  ;;  %v5217_v53 = vmul.f32 %v9063_v61, %v9063_v61  ;;  %v7180_v30 = vpop.eup %7179 }
0x1c86   :  { %5200 = vadd.xlane.f32.xlu1 %v5199_v38  ;;  %v5291_v45 = vmul.f32 %v7180_v30, %v5267_v9  ;;  %v5196_v41 = vsel %vm224_vm0, %v9071_v36, 0.0  ;;  %v5216_v15 = vmul.f32 %v9071_v36, %v9071_v36 }
0x1c87   :  { %v7182_v11 = vpop.eup %7181  ;;  %5197 = vadd.xlane.f32.xlu0 %v5196_v41  ;;  %v5239_v14 = vsel %vm224_vm0, %v5217_v53, 0.0 }
0x1c88   :  { %v5290_v54 = vmul.f32 %v7182_v11, %v5266_v37  ;;  %v5303_v47 = vmul.f32 %v9081_v20, %v5291_v45  ;;  %v5236_v28 = vsel %vm224_vm0, %v5216_v15, 0.0 }
0x1c8a   :  { %5240 = vadd.xlane.f32.xlu1 %v5239_v14  ;;  %v5302_v32 = vmul.f32 %v9083_v4, %v5290_v54  ;;  %v5315_v43 = vadd.f32 %v9091_v18, %v5303_v47 }
0x1c8b   :  { %5237 = vadd.xlane.f32.xlu0 %v5236_v28 }
0x1c8c   :  { %v5314_v17 = vadd.f32 %v9086_v57, %v5302_v32 }
0x1c8d   :  { %v7184_v26 = vpop.eup %7183 }
0x1c8e   :  { %6830 = vmatprep.mubr.msk.f32.mxu1 %vm224_vm0, %v5314_v17  ;;  %v5293_v16 = vmul.f32 %v7184_v26, %v5269_v21 }
0x1c8f   :  { %v7186_v51 = vpop.eup %7185  ;;  %6831 = vmatmul.mubr.msk.f32.vlgmr.msra.gmra.mxu1 %vm224_vm0, %v5315_v43 }
0x1c90   :  { %v5292_v44 = vmul.f32 %v7186_v51, %v5268_v23  ;;  %v5305_v7 = vmul.f32 %v9100_v50, %v5293_v16  ;;  %6843 = vmatpush3.msra.mxu1 %v5675_v19 }
0x1c91   :  { %6844 = vmatprep.subr.mxu1 %v5674_v10 }
0x1c92   :  { %v5304_v39 = vmul.f32 %v9103_v24, %v5292_v44  ;;  %v5317_v33 = vadd.f32 %v9109_v12, %v5305_v7  ;;  %6845 = vmatpush3.msra.mxu1 %v5674_v10 }
0x1c93   :  { %6846 = vmatprep.subr.mxu1 %v5673_v31 }
0x1c94   :  { %v5316_v8 = vadd.f32 %v9105_v48, %v5304_v39  ;;  %6847 = vmatpush3.msra.mxu1 %v5673_v31 }
0x1c95   :  { %6848 = vmatprep.subr.mxu1 %v5672_v49 }
0x1c96   :  { %6833 = vmatprep.mubr.msk.f32.mxu1 %vm224_vm0, %v5316_v8  ;;  %6849 = vmatpush3.msra.mxu1 %v5672_v49 }
0x1c97   :  { %6834 = vmatmul.mubr.msk.f32.gmra.mxu1 %vm224_vm0, %v5317_v33  ;;  %6850 = vmatprep.subr.mxu1 %v5671_v0 }
0x1c98   :  { %6851 = vmatpush3.msra.mxu1 %v5671_v0 }
0x1c99   :  { %6852 = vmatprep.subr.mxu1 %v5670_v62 }
0x1c9a   :  { %6853 = vmatpush3.msra.mxu1 %v5670_v62 }
0x1c9b   :  { %6854 = vmatprep.subr.mxu1 %v5669_v13 }
0x1c9c   :  { %6855 = vmatpush3.msra.mxu1 %v5669_v13 }
0x1c9d   :  { %6856 = vmatprep.subr.mxu1 %v5668_v6 }
0x1c9e   :  { %6857 = vmatpush3.msra.mxu1 %v5668_v6 }
0x1d06   :  { %v5195_v34 = vpop.xlane.xlu1 %5194 }
0x1d07   :  { %v5207_v25 = vmul.f32 0.03125, %v5195_v34 }
0x1d08   :  { %v5192_v27 = vpop.xlane.xlu0 %5191 }
0x1d09   :  { %v5206_v55 = vmul.f32 0.03125, %v5192_v27  ;;  %v5255_v56 = vmul.f32 %v5207_v25, %v5207_v25  ;;  %v5271_v47 = vsub.f32 %v9037_v29, %v5207_v25 }
0x1d0a   :  { %v5235_v60 = vpop.xlane.xlu1 %5234 }
0x1d0b   :  { %v5247_v52 = vmul.f32 0.03125, %v5235_v60  ;;  %v5254_v2 = vmul.f32 %v5206_v55, %v5206_v55  ;;  %v5270_v32 = vsub.f32 %v9047_v42, %v5206_v55 }
0x1d0c   :  { %v5232_v40 = vpop.xlane.xlu0 %5231 }
0x1d0d   :  { %v5263_v3 = vsub.f32 %v5247_v52, %v5255_v56  ;;  %v5246_v1 = vmul.f32 0.03125, %v5232_v40 }
0x1d0f   :  { %v5279_v46 = vadd.f32 1e-05, %v5263_v3  ;;  %v5262_v58 = vsub.f32 %v5246_v1, %v5254_v2  ;;  %v5201_v35 = vpop.xlane.xlu1 %5200 }
0x1d10   :  { %v5209_v63 = vmul.f32 0.03125, %v5201_v35  ;;  %v5198_v59 = vpop.xlane.xlu0 %5197 }
0x1d11   :  { %7187 = vrsqrt.f32 %v5279_v46  ;;  %v5278_v5 = vadd.f32 1e-05, %v5262_v58  ;;  %v5208_v9 = vmul.f32 0.03125, %v5198_v59 }
0x1d12   :  { %v5257_v53 = vmul.f32 %v5209_v63, %v5209_v63  ;;  %v5273_v51 = vsub.f32 %v9063_v61, %v5209_v63 }
0x1d13   :  { %7189 = vrsqrt.f32 %v5278_v5  ;;  %v5241_v38 = vpop.xlane.xlu1 %5240  ;;  %v5256_v45 = vmul.f32 %v5208_v9, %v5208_v9  ;;  %v5272_v29 = vsub.f32 %v9071_v36, %v5208_v9 }
0x1d14   :  { %v5249_v30 = vmul.f32 0.03125, %v5241_v38  ;;  %v5238_v37 = vpop.xlane.xlu0 %5237 }
0x1d15   :  { %v5248_v15 = vmul.f32 0.03125, %v5238_v37 }
0x1d16   :  { %v5265_v41 = vsub.f32 %v5249_v30, %v5257_v53 }
0x1d17   :  { %v5264_v14 = vsub.f32 %v5248_v15, %v5256_v45 }
0x1d18   :  { %v5281_v11 = vadd.f32 1e-05, %v5265_v41 }
0x1d19   :  { %v5280_v54 = vadd.f32 1e-05, %v5264_v14 }
0x1d1a   :  { %7191 = vrsqrt.f32 %v5281_v11 }
0x1d1b   :  { %7193 = vrsqrt.f32 %v5280_v54 }
0x1d1e   :  { %v7188_v28 = vpop.eup %7187 }
0x1d1f   :  { %v5295_v21 = vmul.f32 %v7188_v28, %v5271_v47 }
0x1d20   :  { %v7190_v17 = vpop.eup %7189 }
0x1d21   :  { %v5294_v26 = vmul.f32 %v7190_v17, %v5270_v32  ;;  %v5307_v43 = vmul.f32 %v9081_v20, %v5295_v21 }
0x1d23   :  { %v5306_v23 = vmul.f32 %v9083_v4, %v5294_v26  ;;  %v5319_v44 = vadd.f32 %v9091_v18, %v5307_v43  ;;  %v9131_v18 = vld [vmem:[#allocation5 + $0x2e0] ss:$0 sm:$0xff] }
0x1d25   :  { %v5318_v16 = vadd.f32 %v9086_v57, %v5306_v23 }
0x1d27   :  { %v7192_v7 = vpop.eup %7191  ;;  %6836 = vmatprep.mubr.msk.f32.mxu1 %vm224_vm0, %v5318_v16 }
0x1d28   :  { %6837 = vmatmul.mubr.msk.f32.gmra.mxu1 %vm224_vm0, %v5319_v44  ;;  %v5297_v42 = vmul.f32 %v7192_v7, %v5273_v51  ;;  %v7194_v39 = vpop.eup %7193 }
0x1d29   :  { %v5296_v8 = vmul.f32 %v7194_v39, %v5272_v29 }
0x1d2a   :  { %v5309_v20 = vmul.f32 %v9100_v50, %v5297_v42 }
0x1d2b   :  { %v5308_v4 = vmul.f32 %v9103_v24, %v5296_v8 }
0x1d2c   :  { %v5321_v61 = vadd.f32 %v9109_v12, %v5309_v20 }
0x1d2d   :  { %v5320_v57 = vadd.f32 %v9105_v48, %v5308_v4 }
0x1d2f   :  { %6839 = vmatprep.mubr.msk.f32.mxu1 %vm224_vm0, %v5320_v57 }
0x1d30   :  { %6840 = vmatmul.mubr.msk.f32.gmra.mxu1 %vm224_vm0, %v5321_v61 }
0x1d4f   :  { %v6832_v36 = vpop.f32.mrf.mxu1 }
0x1d50   :  { %v9134_v33 = vadd.f32 %v6832_v36, %v9131_v18 }
0x1d51   :  { %v5421_v19 = vpop.f32.mrf.mxu1 }
0x1d52   :  { %v9137_v10 = vmul.f32 0.70710677, %v9134_v33  ;;  %v9140_v50 = vadd.f32 %v9131_v18, %v5421_v19 }
0x1d54   :  { %v5493_v24 = vand.u32 2147483647, %v9137_v10  ;;  %v9144_v48 = vmul.f32 0.70710677, %v9140_v50  ;;  %vm5477_vm0 = vcmp.ge.f32.partialorder %v9137_v10, 0.0 }
0x1d56   :  { %v5501_v12 = vmul.f32 0.3275911, %v5493_v24  ;;  %v5492_v31 = vand.u32 2147483647, %v9144_v48  ;;  %v5597_v52 = vsub.f32 0.0, %v5493_v24  ;;  %vm5476_vm3 = vcmp.ge.f32.partialorder %v9144_v48, 0.0 }
0x1d57   :  { %v6835_v49 = vpop.f32.mrf.mxu1 }
0x1d58   :  { %v5509_v0 = vadd.f32 1.0, %v5501_v12  ;;  %v5500_v62 = vmul.f32 0.3275911, %v5492_v31  ;;  %v9148_v13 = vadd.f32 %v6835_v49, %v9131_v18  ;;  %v5596_v1 = vsub.f32 0.0, %v5492_v31 }
0x1d59   :  { %v5431_v34 = vpop.f32.mrf.mxu1  ;;  %v5605_v46 = vmul.f32 %v5597_v52, %v5493_v24 }
0x1d5a   :  { %7195 = vrcp.f32 %v5509_v0  ;;  %v5508_v25 = vadd.f32 1.0, %v5500_v62  ;;  %v9151_v6 = vmul.f32 0.70710677, %v9148_v13  ;;  %v9154_v27 = vadd.f32 %v9131_v18, %v5431_v34 }
0x1d5b   :  { %v5604_v63 = vmul.f32 %v5596_v1, %v5492_v31  ;;  %v5614_v59 = vmul.f32 1.442695, %v5605_v46 }
0x1d5c   :  { %7197 = vrcp.f32 %v5508_v25  ;;  %v5495_v55 = vand.u32 2147483647, %v9151_v6  ;;  %v9158_v60 = vmul.f32 0.70710677, %v9154_v27  ;;  %vm5479_vm4 = vcmp.ge.f32.partialorder %v9151_v6, 0.0 }
0x1d5d   :  { %v5612_v37 = vmul.f32 1.442695, %v5604_v63 }
0x1d5e   :  { %v5503_v56 = vmul.f32 0.3275911, %v5495_v55  ;;  %v5494_v40 = vand.u32 2147483647, %v9158_v60  ;;  %v5599_v9 = vsub.f32 0.0, %v5495_v55  ;;  %vm5478_vm6 = vcmp.ge.f32.partialorder %v9158_v60, 0.0 }
0x1d5f   :  { %v5486_v6 = vsel %vm5478_vm6, 1.0, %v7339_v22 }
0x1d60   :  { %v5511_v2 = vadd.f32 1.0, %v5503_v56  ;;  %v5502_v3 = vmul.f32 0.3275911, %v5494_v40  ;;  %v5598_v41 = vsub.f32 0.0, %v5494_v40  ;;  %v5607_v11 = vmul.f32 %v5599_v9, %v5495_v55 }
0x1d61   :  { %v5485_v56 = vsel %vm5477_vm0, 1.0, %v7339_v22 }
0x1d62   :  { %7199 = vrcp.f32 %v5511_v2  ;;  %v5510_v58 = vadd.f32 1.0, %v5502_v3  ;;  %v5606_v32 = vmul.f32 %v5598_v41, %v5494_v40  ;;  %v5618_v26 = vmul.f32 1.442695, %v5607_v11 }
0x1d64   :  { %7201 = vrcp.f32 %v5510_v58  ;;  %v5616_v29 = vmul.f32 1.442695, %v5606_v32  ;;  %v5484_v58 = vsel %vm5476_vm3, 1.0, %v7339_v22  ;;  %v5462_v32 = vmul.f32 0.5, %v9154_v27 }
0x1d65   :  { %7203 = vpow2.f32 %v5614_v59 }
0x1d66   :  { %7205 = vpow2.f32 %v5612_v37 }
0x1d67   :  { %v7196_v35 = vpop.eup %7195  ;;  %7207 = vpow2.f32 %v5618_v26 }
0x1d68   :  { %v5525_v5 = vmul.f32 1.0614054, %v7196_v35  ;;  %7209 = vpow2.f32 %v5616_v29 }
0x1d69   :  { %v7198_v38 = vpop.eup %7197 }
0x1d6a   :  { %v5533_v53 = vadd.f32 -1.4531521, %v5525_v5  ;;  %v5524_v30 = vmul.f32 1.0614054, %v7198_v38 }
0x1d6c   :  { %v5541_v45 = vmul.f32 %v7196_v35, %v5533_v53  ;;  %v5532_v15 = vadd.f32 -1.4531521, %v5524_v30  ;;  %v5461_v30 = vmul.f32 0.5, %v9134_v33 }
0x1d6e   :  { %v5549_v14 = vadd.f32 1.4214138, %v5541_v45  ;;  %v5540_v54 = vmul.f32 %v7198_v38, %v5532_v15 }
0x1d6f   :  { %v7200_v47 = vpop.eup %7199 }
0x1d70   :  { %v5557_v28 = vmul.f32 %v7196_v35, %v5549_v14  ;;  %v5548_v21 = vadd.f32 1.4214138, %v5540_v54  ;;  %v5527_v17 = vmul.f32 1.0614054, %v7200_v47  ;;  %v5487_v14 = vsel %vm5479_vm4, 1.0, %v7339_v22 }
0x1d71   :  { %v7202_v23 = vpop.eup %7201 }
0x1d72   :  { %v5565_v43 = vadd.f32 -0.28449672, %v5557_v28  ;;  %v5556_v16 = vmul.f32 %v7198_v38, %v5548_v21  ;;  %v5535_v51 = vadd.f32 -1.4531521, %v5527_v17  ;;  %v5526_v7 = vmul.f32 1.0614054, %v7202_v23  ;;  %v7204_v19 = vpop.eup %7203 }
0x1d73   :  { %v7206_v34 = vpop.eup %7205  ;;  %v5463_v17 = vmul.f32 0.5, %v9148_v13 }
0x1d74   :  { %v5573_v44 = vmul.f32 %v7196_v35, %v5565_v43  ;;  %v5564_v42 = vadd.f32 -0.28449672, %v5556_v16  ;;  %v5543_v39 = vmul.f32 %v7200_v47, %v5535_v51  ;;  %v5534_v20 = vadd.f32 -1.4531521, %v5526_v7  ;;  %v7208_v5 = vpop.eup %7207 }
0x1d75   :  { %v7210_v45 = vpop.eup %7209 }
0x1d76   :  { %v5581_v8 = vadd.f32 0.2548296, %v5573_v44  ;;  %v5572_v4 = vmul.f32 %v7198_v38, %v5564_v42  ;;  %v5551_v57 = vadd.f32 1.4214138, %v5543_v39  ;;  %v5542_v36 = vmul.f32 %v7202_v23, %v5534_v20 }
0x1d78   :  { %v5589_v61 = vmul.f32 %v7196_v35, %v5581_v8  ;;  %v5580_v24 = vadd.f32 0.2548296, %v5572_v4  ;;  %v5559_v12 = vmul.f32 %v7200_v47, %v5551_v57  ;;  %v5550_v49 = vadd.f32 1.4214138, %v5542_v36 }
0x1d7a   :  { %v5629_v31 = vmul.f32 %v7204_v19, %v5589_v61  ;;  %v5588_v0 = vmul.f32 %v7198_v38, %v5580_v24  ;;  %v5567_v62 = vadd.f32 -0.28449672, %v5559_v12  ;;  %v5558_v55 = vmul.f32 %v7202_v23, %v5550_v49 }
0x1d7b   :  { %v5460_v38 = vmul.f32 0.5, %v9140_v50 }
0x1d7c   :  { %v5637_v25 = vsub.f32 1.0, %v5629_v31  ;;  %v5628_v52 = vmul.f32 %v7206_v34, %v5588_v0  ;;  %v5575_v40 = vmul.f32 %v7200_v47, %v5567_v62  ;;  %v5566_v3 = vadd.f32 -0.28449672, %v5558_v55 }
0x1d7e   :  { %v5645_v2 = vmul.f32 %v5637_v25, %v5485_v56  ;;  %v5636_v1 = vsub.f32 1.0, %v5628_v52  ;;  %v5583_v46 = vadd.f32 0.2548296, %v5575_v40  ;;  %v5574_v10 = vmul.f32 %v7202_v23, %v5566_v3 }
0x1d80   :  { %v5644_v35 = vmul.f32 %v5636_v1, %v5484_v58  ;;  %v5591_v63 = vmul.f32 %v7200_v47, %v5583_v46  ;;  %v5653_v59 = vadd.f32 1.0, %v5645_v2  ;;  %v5582_v9 = vadd.f32 0.2548296, %v5574_v10 }
0x1d82   :  { %v5652_v53 = vadd.f32 1.0, %v5644_v35  ;;  %v5631_v48 = vmul.f32 %v7208_v5, %v5591_v63  ;;  %v5590_v37 = vmul.f32 %v7202_v23, %v5582_v9  ;;  %v5661_v11 = vmul.f32 %v5653_v59, %v5461_v30 }
0x1d84   :  { %v5660_v41 = vmul.f32 %v5652_v53, %v5460_v38  ;;  %v5639_v15 = vsub.f32 1.0, %v5631_v48  ;;  %v5630_v54 = vmul.f32 %v7210_v45, %v5590_v37 }
0x1d86   :  { %v5647_v47 = vmul.f32 %v5639_v15, %v5487_v14  ;;  %6858 = vmatprep.mubr.msk.f32.mxu1 %vm5676_vm5, %v5660_v41  ;;  %v5638_v50 = vsub.f32 1.0, %v5630_v54 }
0x1d87   :  { %6859 = vmatmul.mubr.msk.f32.vlgmr.msra.gmra.mxu1 %vm5676_vm5, %v5661_v11 }
0x1d88   :  { %v5646_v33 = vmul.f32 %v5638_v50, %v5486_v6  ;;  %v5655_v28 = vadd.f32 1.0, %v5647_v47 }
0x1d8a   :  { %v5654_v21 = vadd.f32 1.0, %v5646_v33  ;;  %v5663_v43 = vmul.f32 %v5655_v28, %v5463_v17 }
0x1d8c   :  { %v5662_v26 = vmul.f32 %v5654_v21, %v5462_v32 }
0x1d8e   :  { %6861 = vmatprep.mubr.msk.f32.mxu1 %vm5676_vm5, %v5662_v26 }
0x1d8f   :  { %6862 = vmatmul.mubr.msk.f32.gmra.mxu1 %vm5676_vm5, %v5663_v43 }
0x1de8   :  { %v6838_v60 = vpop.f32.mrf.mxu1 }
0x1de9   :  { %v9178_v23 = vadd.f32 %v6838_v60, %v9131_v18 }
0x1dea   :  { %v5441_v16 = vpop.f32.mrf.mxu1 }
0x1deb   :  { %v9181_v51 = vmul.f32 0.70710677, %v9178_v23  ;;  %v9184_v44 = vadd.f32 %v9131_v18, %v5441_v16 }
0x1ded   :  { %v5497_v27 = vand.u32 2147483647, %v9181_v51  ;;  %v9188_v13 = vmul.f32 0.70710677, %v9184_v44  ;;  %vm5481_vm7 = vcmp.ge.f32.partialorder %v9181_v51, 0.0 }
0x1def   :  { %v5505_v7 = vmul.f32 0.3275911, %v5497_v27  ;;  %v5496_v29 = vand.u32 2147483647, %v9188_v13  ;;  %v5601_v31 = vsub.f32 0.0, %v5497_v27  ;;  %vm5480_vm8 = vcmp.ge.f32.partialorder %v9188_v13, 0.0 }
0x1df0   :  { %v6841_v8 = vpop.f32.mrf.mxu1 }
0x1df1   :  { %v5513_v42 = vadd.f32 1.0, %v5505_v7  ;;  %v5504_v39 = vmul.f32 0.3275911, %v5496_v29  ;;  %v9192_v20 = vadd.f32 %v6841_v8, %v9131_v18  ;;  %v5600_v34 = vsub.f32 0.0, %v5496_v29 }
0x1df2   :  { %v5451_v57 = vpop.f32.mrf.mxu1  ;;  %v5609_v25 = vmul.f32 %v5601_v31, %v5497_v27 }
0x1df3   :  { %7211 = vrcp.f32 %v5513_v42  ;;  %v5512_v4 = vadd.f32 1.0, %v5504_v39  ;;  %v9195_v61 = vmul.f32 0.70710677, %v9192_v20  ;;  %v9198_v36 = vadd.f32 %v9131_v18, %v5451_v57 }
0x1df4   :  { %v5608_v18 = vmul.f32 %v5600_v34, %v5496_v29  ;;  %v5622_v40 = vmul.f32 1.442695, %v5609_v25  ;;  %v5488_v25 = vsel %vm5480_vm8, 1.0, %v7339_v22 }
0x1df5   :  { %7213 = vrcp.f32 %v5512_v4  ;;  %v5499_v19 = vand.u32 2147483647, %v9195_v61  ;;  %v9202_v24 = vmul.f32 0.70710677, %v9198_v36  ;;  %vm5483_vm9 = vcmp.ge.f32.partialorder %v9195_v61, 0.0 }
0x1df6   :  { %v5620_v58 = vmul.f32 1.442695, %v5608_v18 }
0x1df7   :  { %v5507_v12 = vmul.f32 0.3275911, %v5499_v19  ;;  %v5498_v49 = vand.u32 2147483647, %v9202_v24  ;;  %v5603_v2 = vsub.f32 0.0, %v5499_v19  ;;  %vm5482_vm10 = vcmp.ge.f32.partialorder %v9202_v24, 0.0 }
0x1df8   :  { %v5490_v61 = vsel %vm5482_vm10, 1.0, %v7339_v22  ;;  %v5807_v24 = vld [vmem:[#allocation5 + $0x330] sm:$0xff] }
0x1df9   :  { %v5515_v0 = vadd.f32 1.0, %v5507_v12  ;;  %v5506_v62 = vmul.f32 0.3275911, %v5498_v49  ;;  %v5602_v35 = vsub.f32 0.0, %v5498_v49  ;;  %v5611_v5 = vmul.f32 %v5603_v2, %v5499_v19 }
0x1dfa   :  { %v5489_v19 = vsel %vm5481_vm7, 1.0, %v7339_v22  ;;  %v5464_v2 = vmul.f32 0.5, %v9184_v44 }
0x1dfb   :  { %7215 = vrcp.f32 %v5515_v0  ;;  %v5514_v55 = vadd.f32 1.0, %v5506_v62  ;;  %v5610_v48 = vmul.f32 %v5602_v35, %v5498_v49  ;;  %v5626_v45 = vmul.f32 1.442695, %v5611_v5 }
0x1dfc   :  { %v5491_v5 = vsel %vm5483_vm9, 1.0, %v7339_v22 }
0x1dfd   :  { %7217 = vrcp.f32 %v5514_v55  ;;  %v5624_v50 = vmul.f32 1.442695, %v5610_v48 }
0x1dfe   :  { %7219 = vpow2.f32 %v5622_v40 }
0x1dff   :  { %7221 = vpow2.f32 %v5620_v58 }
0x1e00   :  { %v7212_v56 = vpop.eup %7211  ;;  %7223 = vpow2.f32 %v5626_v45 }
0x1e01   :  { %v5529_v52 = vmul.f32 1.0614054, %v7212_v56  ;;  %7225 = vpow2.f32 %v5624_v50 }
0x1e02   :  { %v7214_v3 = vpop.eup %7213 }
0x1e03   :  { %v5537_v1 = vadd.f32 -1.4531521, %v5529_v52  ;;  %v5528_v46 = vmul.f32 1.0614054, %v7214_v3 }
0x1e05   :  { %v5545_v10 = vmul.f32 %v7212_v56, %v5537_v1  ;;  %v5536_v63 = vadd.f32 -1.4531521, %v5528_v46  ;;  %v5465_v1 = vmul.f32 0.5, %v9178_v23 }
0x1e07   :  { %v5553_v59 = vadd.f32 1.4214138, %v5545_v10  ;;  %v5544_v9 = vmul.f32 %v7214_v3, %v5536_v63 }
0x1e08   :  { %v7216_v38 = vpop.eup %7215 }
0x1e09   :  { %v5561_v53 = vmul.f32 %v7212_v56, %v5553_v59  ;;  %v5552_v30 = vadd.f32 1.4214138, %v5544_v9  ;;  %v5531_v37 = vmul.f32 1.0614054, %v7216_v38 }
0x1e0a   :  { %v7218_v15 = vpop.eup %7217 }
0x1e0b   :  { %v5569_v41 = vadd.f32 -0.28449672, %v5561_v53  ;;  %v5560_v11 = vmul.f32 %v7214_v3, %v5552_v30  ;;  %v5539_v14 = vadd.f32 -1.4531521, %v5531_v37  ;;  %v5530_v47 = vmul.f32 1.0614054, %v7218_v15  ;;  %v7220_v60 = vpop.eup %7219 }
0x1e0c   :  { %v7222_v8 = vpop.eup %7221  ;;  %v5466_v53 = vmul.f32 0.5, %v9198_v36  ;;  %v5467_v30 = vmul.f32 0.5, %v9192_v20  ;;  %v5808_v36 = vld [vmem:[#allocation5 + $0x338] sm:$0xff] }
0x1e0d   :  { %v5577_v54 = vmul.f32 %v7212_v56, %v5569_v41  ;;  %v5568_v6 = vadd.f32 -0.28449672, %v5560_v11  ;;  %v5547_v33 = vmul.f32 %v7216_v38, %v5539_v14  ;;  %v5538_v32 = vadd.f32 -1.4531521, %v5530_v47  ;;  %v7224_v18 = vpop.eup %7223 }
0x1e0e   :  { %v7226_v58 = vpop.eup %7225 }
0x1e0f   :  { %v5585_v28 = vadd.f32 0.2548296, %v5577_v54  ;;  %v5576_v21 = vmul.f32 %v7214_v3, %v5568_v6  ;;  %v5555_v17 = vadd.f32 1.4214138, %v5547_v33  ;;  %v5546_v43 = vmul.f32 %v7218_v15, %v5538_v32  ;;  %v5809_v54 = vld [vmem:[#allocation5 + $0x340] sm:$0xff] }
0x1e11   :  { %v5593_v26 = vmul.f32 %v7212_v56, %v5585_v28  ;;  %v5584_v16 = vadd.f32 0.2548296, %v5576_v21  ;;  %v5563_v27 = vmul.f32 %v7216_v38, %v5555_v17  ;;  %v5554_v29 = vadd.f32 1.4214138, %v5546_v43 }
0x1e13   :  { %v5633_v7 = vmul.f32 %v7220_v60, %v5593_v26  ;;  %v5592_v42 = vmul.f32 %v7214_v3, %v5584_v16  ;;  %v5571_v39 = vadd.f32 -0.28449672, %v5563_v27  ;;  %v5562_v57 = vmul.f32 %v7218_v15, %v5554_v29 }
0x1e15   :  { %v5641_v4 = vsub.f32 1.0, %v5633_v7  ;;  %v5632_v12 = vmul.f32 %v7222_v8, %v5592_v42  ;;  %v5579_v31 = vmul.f32 %v7216_v38, %v5571_v39  ;;  %v5570_v0 = vadd.f32 -0.28449672, %v5562_v57 }
0x1e17   :  { %v5649_v49 = vmul.f32 %v5641_v4, %v5489_v19  ;;  %v5640_v62 = vsub.f32 1.0, %v5632_v12  ;;  %v5587_v34 = vadd.f32 0.2548296, %v5579_v31  ;;  %v5578_v51 = vmul.f32 %v7218_v15, %v5570_v0 }
0x1e19   :  { %v5648_v55 = vmul.f32 %v5640_v62, %v5488_v25  ;;  %v5595_v56 = vmul.f32 %v7216_v38, %v5587_v34  ;;  %v5657_v52 = vadd.f32 1.0, %v5649_v49  ;;  %v5586_v40 = vadd.f32 0.2548296, %v5578_v51 }
0x1e1b   :  { %v5656_v3 = vadd.f32 1.0, %v5648_v55  ;;  %v5635_v13 = vmul.f32 %v7224_v18, %v5595_v56  ;;  %v5594_v46 = vmul.f32 %v7218_v15, %v5586_v40  ;;  %v5665_v63 = vmul.f32 %v5657_v52, %v5465_v1  ;;  %v5806_v15 = vld [vmem:[#allocation5 + $0x328] sm:$0xff] }
0x1e1d   :  { %v5664_v10 = vmul.f32 %v5656_v3, %v5464_v2  ;;  %v5643_v35 = vsub.f32 1.0, %v5635_v13  ;;  %v5634_v59 = vmul.f32 %v7226_v58, %v5594_v46 }
0x1e1f   :  { %v5651_v9 = vmul.f32 %v5643_v35, %v5491_v5  ;;  %6864 = vmatprep.mubr.msk.f32.mxu1 %vm5676_vm5, %v5664_v10  ;;  %v5642_v44 = vsub.f32 1.0, %v5634_v59 }
0x1e20   :  { %6865 = vmatmul.mubr.msk.f32.gmra.mxu1 %vm5676_vm5, %v5665_v63 }
0x1e21   :  { %v5650_v38 = vmul.f32 %v5642_v44, %v5490_v61  ;;  %v5659_v23 = vadd.f32 1.0, %v5651_v9 }
0x1e23   :  { %v5658_v48 = vadd.f32 1.0, %v5650_v38  ;;  %v5667_v45 = vmul.f32 %v5659_v23, %v5467_v30 }
0x1e25   :  { %v5666_v37 = vmul.f32 %v5658_v48, %v5466_v53 }
0x1e27   :  { %6867 = vmatprep.mubr.msk.f32.mxu1 %vm5676_vm5, %v5666_v37 }
0x1e28   :  { %6868 = vmatmul.mubr.msk.f32.gmra.mxu1 %vm5676_vm5, %v5667_v45 }
0x1e47   :  { %v6860_v41 = vpop.f32.mrf.mxu1 }
0x1e48   :  { %v5811_v11 = vadd.f32 %v6860_v41, %v5807_v24 }
0x1e49   :  { %v5767_v14 = vpop.f32.mrf.mxu1 }
0x1e4a   :  { %5819 = vst [vmem:[#allocation8 + $0x8] sm:$0xff] %v5811_v11  ;;  %v5810_v22 = vadd.f32 %v5806_v15, %v5767_v14 }
0x1e4c   :  { %5818 = vst [vmem:[#allocation8] sm:$0xff] %v5810_v22 }
0x1e4f   :  { %v6863_v47 = vpop.f32.mrf.mxu1 }
0x1e50   :  { %v5813_v50 = vadd.f32 %v6863_v47, %v5809_v54 }
0x1e51   :  { %v5777_v6 = vpop.f32.mrf.mxu1 }
0x1e52   :  { %5821 = vst [vmem:[#allocation8 + $0x18] sm:$0xff] %v5813_v50  ;;  %v5812_v20 = vadd.f32 %v5808_v36, %v5777_v6 }
0x1e54   :  { %5820 = vst [vmem:[#allocation8 + $0x10] sm:$0xff] %v5812_v20 }
0x1ee0   :  { %v6866_v33 = vpop.f32.mrf.mxu1 }
0x1ee1   :  { %v5815_v28 = vadd.f32 %v6866_v33, %v5807_v24 }
0x1ee2   :  { %v5787_v32 = vpop.f32.mrf.mxu1 }
0x1ee3   :  { %5823 = vst [vmem:[#allocation8 + $0x28] sm:$0xff] %v5815_v28  ;;  %v5814_v21 = vadd.f32 %v5806_v15, %v5787_v32 }
0x1ee5   :  { %5822 = vst [vmem:[#allocation8 + $0x20] sm:$0xff] %v5814_v21 }
0x1ee8   :  { %v6869_v17 = vpop.f32.mrf.mxu1 }
0x1ee9   :  { %v5817_v26 = vadd.f32 %v6869_v17, %v5809_v54 }
0x1eea   :  { %v5797_v43 = vpop.f32.mrf.mxu1 }
0x1eeb   :  { %5825 = vst [vmem:[#allocation8 + $0x38] sm:$0xff] %v5817_v26  ;;  %v5816_v60 = vadd.f32 %v5808_v36, %v5797_v43 }
0x1eed   :  { %5824 = vst [vmem:[#allocation8 + $0x30] sm:$0xff] %v5816_v60 }
0x1eee   :  { %7312 = shalt.err (!%p7309_p5)
}
0x1eef   :  { %5837 = dma.vmem_to_hbm [thread:$0]  %s5832_s7, 1024, %s9230_s3, [#allocation4], %s7329_s17, %s7329_s17, %s7330_s18  }
0x1ef0   :  { %7325 = dma.done.wait [#allocation4], 1024  }
0x1ef1   :  { %7326 = vsyncadd [#allocation4], 4294966272 }
0x1ef2   :  { %5841 = vsyncpa [#allocation3], 1 }
0x1ef3   :  { %5842 = vsyncpa [#allocation6], 1 }
0x1ef4   :  { %5843 = vsyncpa [#allocation4], 1 }

</bundles_post_ra>
